<compile_context>
chip_gen: v7x
topology: tpu7x:2x2x1
jax: 0.10.0
libtpu: 0.0.40
codegen_flags: <defaults>
</compile_context>

<pallas_src>
import functools

import jax
import jax.numpy as jnp
from jax.experimental import pallas as pl
from jax.experimental.pallas import tpu as pltpu


NF = 50               # channel count fixed by the module (Cascade uses 50)
CP = 128              # lane-padded channel count (activations, weights, output)
LRELU_SLOPE = 0.05

# On v6e/v7x this can be set to jnp.bfloat16 (accumulation stays f32 via
# preferred_element_type) for ~2x MXU throughput and half the weight VMEM.
_MM_DTYPE = jnp.float32


# ----------------------------------------------------------------------------
# Fused Cascade kernel: one grid step == one image. All intermediates in VMEM.
# ----------------------------------------------------------------------------
def _make_cascade_kernel(H, W):
    HW = H * W

    def kernel(x_ref, w5_ref, w3_ref, w1_ref, wc_ref,
               b5_ref, b3_ref, b1_ref, bc_ref,
               o_ref,
               xp5, xp3, xf, c5s, c3s):
        # x_ref : (1, H, W, CP)          input image, channel-padded to CP lanes
        # w5_ref: (5, 5*CP, CP)          5x5 weights, dx taps merged into rows
        # w3_ref: (3, 3*CP, CP)          3x3 weights, dx taps merged into rows
        # w1_ref: (CP, CP)               1x1 weights
        # wc_ref: (4, CP, CP)            final 1x1 weights split per concat branch
        # b*_ref: (1, CP)                biases (zero in padded channels)
        # o_ref : (1, HW, CP)            lane-dense output rows
        # xp5   : (H+4, W+4, CP) VMEM    x zero-padded by 2  (conv5 input)
        # xp3   : (H+2, W+2, CP) VMEM    (x+conv5) zero-padded by 1 (conv3 input)
        # xf    : (HW, CP)       VMEM    x as pixel rows
        # c5s   : (HW, CP)       VMEM    conv5 output rows
        # c3s   : (HW, CP)       VMEM    conv3 output rows

        # ---- stage 0: place x into zero-bordered VMEM buffers ---------------
        xp5[...] = jnp.zeros_like(xp5)
        xp3[...] = jnp.zeros_like(xp3)
        x = x_ref[0].astype(jnp.float32)                  # (H, W, CP)
        xp5[2:2 + H, 2:2 + W, :] = x
        xf[...] = x.reshape(HW, CP)

        def conv(xpad_ref, w_ref, b_ref, K):
            # dx taps merged: K matmuls of (HW, K*CP) x (K*CP, CP), acc in f32.
            acc = jnp.zeros((HW, CP), jnp.float32)
            for dy in range(K):                            # static unroll
                slab = jnp.concatenate(
                    [xpad_ref[dy:dy + H, dx:dx + W, :] for dx in range(K)],
                    axis=-1)                               # (H, W, K*CP)
                acc = acc + jnp.dot(
                    slab.reshape(HW, K * CP).astype(_MM_DTYPE), w_ref[dy],
                    preferred_element_type=jnp.float32)
            return acc + b_ref[...]

        # ---- conv5 -----------------------------------------------------------
        c5 = conv(xp5, w5_ref, b5_ref, 5)
        c5s[...] = c5

        # ---- conv3 on (x + conv5) --------------------------------------------
        xp3[1:1 + H, 1:1 + W, :] = (xf[...] + c5).reshape(H, W, CP)
        c3 = conv(xp3, w3_ref, b3_ref, 3)
        c3s[...] = c3

        # ---- conv1 (1x1) on (x + conv3) --------------------------------------
        c1 = jnp.dot((xf[...] + c3).astype(_MM_DTYPE), w1_ref[...],
                     preferred_element_type=jnp.float32) + b1_ref[...]

        # ---- final 1x1 over concat([conv5, conv3, conv1, x]) -----------------
        # The concat is never materialized: accumulate four per-branch matmuls.
        out = jnp.dot(c5s[...].astype(_MM_DTYPE), wc_ref[0],
                      preferred_element_type=jnp.float32)
        out = out + jnp.dot(c3s[...].astype(_MM_DTYPE), wc_ref[1],
                            preferred_element_type=jnp.float32)
        out = out + jnp.dot(c1.astype(_MM_DTYPE), wc_ref[2],
                            preferred_element_type=jnp.float32)
        out = out + jnp.dot(xf[...].astype(_MM_DTYPE), wc_ref[3],
                            preferred_element_type=jnp.float32)
        out = out + bc_ref[...]
        out = jnp.where(out >= 0.0, out, out * LRELU_SLOPE)   # LeakyReLU(0.05)
        o_ref[0] = out.astype(o_ref.dtype)

    return kernel


# ----------------------------------------------------------------------------
# Parameter preprocessing: lane-pad channels to CP and merge dx taps.
# ----------------------------------------------------------------------------
def _prep_params(params):
    def pad_w(w):
        kh, kw, ci, co = w.shape
        return jnp.pad(w, ((0, 0), (0, 0), (0, CP - ci), (0, CP - co)))

    def pad_b(b):
        return jnp.pad(b, (0, CP - b.shape[0])).reshape(1, CP)

    w5 = pad_w(params["w5"]).reshape(5, 5 * CP, CP).astype(_MM_DTYPE)
    w3 = pad_w(params["w3"]).reshape(3, 3 * CP, CP).astype(_MM_DTYPE)
    w1 = pad_w(params["w1"]).reshape(CP, CP).astype(_MM_DTYPE)
    # Final 1x1 over concat([conv5, conv3, conv1, x]): split by input channel
    # group and pad each (NF, NF) slice to (CP, CP). Padded rows meet only
    # zero-padded activation channels, so no correction is needed.
    wc = params["wc"].reshape(4 * NF, NF)
    wc = jnp.stack([
        jnp.pad(wc[i * NF:(i + 1) * NF], ((0, CP - NF), (0, CP - NF)))
        for i in range(4)]).astype(_MM_DTYPE)              # (4, CP, CP)

    return dict(w5=w5, w3=w3, w1=w1, wc=wc,
                b5=pad_b(params["b5"]), b3=pad_b(params["b3"]),
                b1=pad_b(params["b1"]), bc=pad_b(params["bc"]))


# ----------------------------------------------------------------------------
# Cascade forward.
# ----------------------------------------------------------------------------
def cascade_forward(x_nchw, params):
    B, C, H, W = x_nchw.shape
    assert C == NF, "Cascade is defined for 50 channels"
    p = _prep_params(params)

    x = jnp.transpose(x_nchw, (0, 2, 3, 1))                    # NCHW -> NHWC
    # Single pad op: lane-pad channels to CP (spatial padding happens in-kernel).
    x = jnp.pad(x, ((0, 0), (0, 0), (0, 0), (0, CP - C)))

    kernel = _make_cascade_kernel(H, W)
    out = pl.pallas_call(
        kernel,
        out_shape=jax.ShapeDtypeStruct((B, H * W, CP), x_nchw.dtype),
        grid=(B,),
        in_specs=[
            pl.BlockSpec((1, H, W, CP), lambda b: (b, 0, 0, 0)),     # x
            pl.BlockSpec((5, 5 * CP, CP), lambda b: (0, 0, 0)),      # w5 (tap-merged)
            pl.BlockSpec((3, 3 * CP, CP), lambda b: (0, 0, 0)),      # w3 (tap-merged)
            pl.BlockSpec((CP, CP), lambda b: (0, 0)),                # w1
            pl.BlockSpec((4, CP, CP), lambda b: (0, 0, 0)),          # wc (per branch)
            pl.BlockSpec((1, CP), lambda b: (0, 0)),                 # b5
            pl.BlockSpec((1, CP), lambda b: (0, 0)),                 # b3
            pl.BlockSpec((1, CP), lambda b: (0, 0)),                 # b1
            pl.BlockSpec((1, CP), lambda b: (0, 0)),                 # bc
        ],
        out_specs=pl.BlockSpec((1, H * W, CP), lambda b: (b, 0, 0)),
        scratch_shapes=[
            pltpu.VMEM((H + 4, W + 4, CP), jnp.float32),   # x, zero-padded by 2
            pltpu.VMEM((H + 2, W + 2, CP), jnp.float32),   # x+conv5, padded by 1
            pltpu.VMEM((H * W, CP), jnp.float32),          # x rows
            pltpu.VMEM((H * W, CP), jnp.float32),          # conv5 rows
            pltpu.VMEM((H * W, CP), jnp.float32),          # conv3 rows
        ],
        compiler_params=pltpu.CompilerParams(
            dimension_semantics=("parallel",)),            # 2 TCs on v7x when B>=2
    )(x, p["w5"], p["w3"], p["w1"], p["wc"],
      p["b5"], p["b3"], p["b1"], p["bc"])

    out = out[:, :, :C].reshape(B, H, W, C)                # drop padded channels
    return jnp.transpose(out, (0, 3, 1, 2))                # NHWC -> NCHW


# ----------------------------------------------------------------------------
# Pure-JAX reference (correctness check only).
# ----------------------------------------------------------------------------
def _conv_ref(x_nhwc, w, b):
    K = w.shape[0]
    p = (K - 1) // 2
    y = jax.lax.conv_general_dilated(
        x_nhwc, w, window_strides=(1, 1), padding=((p, p), (p, p)),
        dimension_numbers=("NHWC", "HWIO", "NHWC"))
    return y + b


def cascade_reference(x_nchw, params):
    x = jnp.transpose(x_nchw, (0, 2, 3, 1))
    conv5 = _conv_ref(x, params["w5"], params["b5"])
    extra = x + conv5
    conv3 = _conv_ref(extra, params["w3"], params["b3"])
    extra = x + conv3
    conv1 = _conv_ref(extra, params["w1"], params["b1"])
    cat = jnp.concatenate([conv5, conv3, conv1, x], axis=-1)
    out = _conv_ref(cat, params["wc"], params["bc"])
    out = jnp.where(out >= 0.0, out, out * LRELU_SLOPE)
    return jnp.transpose(out, (0, 3, 1, 2))


# ----------------------------------------------------------------------------
# Deterministic parameter init (shapes as in the PyTorch module, HWIO layout).
# ----------------------------------------------------------------------------
def init_params(key, nf=50):
    ks = jax.random.split(key, 8)

    def w(k, kk, cin, cout):
        scale = 1.0 / (kk * kk * cin) ** 0.5
        return jax.random.uniform(k, (kk, kk, cin, cout), jnp.float32,
                                  -scale, scale)

    def b(k, kk, cin, cout):
        scale = 1.0 / (kk * kk * cin) ** 0.5
        return jax.random.uniform(k, (cout,), jnp.float32, -scale, scale)

    return {
        "w5": w(ks[0], 5, nf, nf), "b5": b(ks[1], 5, nf, nf),
        "w3": w(ks[2], 3, nf, nf), "b3": b(ks[3], 3, nf, nf),
        "w1": w(ks[4], 1, nf, nf), "b1": b(ks[5], 1, nf, nf),
        "wc": w(ks[6], 1, 4 * nf, nf), "bc": b(ks[7], 1, 4 * nf, nf),
    }


if __name__ == "__main__":
    key = jax.random.PRNGKey(0)
    kx, kp = jax.random.split(key)

    B, C, H, W = 2, 50, 16, 16          # channel count fixed to 50 by the module
    x = jax.random.normal(kx, (B, C, H, W), jnp.float32)
    params = init_params(kp, nf=C)

    fwd = jax.jit(functools.partial(cascade_forward, params=params))
    out = jax.block_until_ready(fwd(x))
    assert out.shape == (B, C, H, W), out.shape

    ref = jax.block_until_ready(cascade_reference(x, params))
    if not jnp.allclose(out, ref, atol=2e-3, rtol=2e-3):
        raise AssertionError("Pallas Cascade output mismatch vs JAX reference")

    print("KERNEL_OK")
</pallas_src>

<mosaic_0001>
module attributes {stable_mosaic.version = 11 : i64} {
  func.func @kernel(%arg0: i32, %arg1: memref<1x16x16x128xf32, #tpu.memory_space<vmem>>, %arg2: memref<5x640x128xf32, #tpu.memory_space<vmem>>, %arg3: memref<3x384x128xf32, #tpu.memory_space<vmem>>, %arg4: memref<128x128xf32, #tpu.memory_space<vmem>>, %arg5: memref<4x128x128xf32, #tpu.memory_space<vmem>>, %arg6: memref<1x128xf32, #tpu.memory_space<vmem>>, %arg7: memref<1x128xf32, #tpu.memory_space<vmem>>, %arg8: memref<1x128xf32, #tpu.memory_space<vmem>>, %arg9: memref<1x128xf32, #tpu.memory_space<vmem>>, %arg10: memref<1x256x128xf32, #tpu.memory_space<vmem>>, %arg11: memref<20x20x128xf32, #tpu.memory_space<vmem>>, %arg12: memref<18x18x128xf32, #tpu.memory_space<vmem>>, %arg13: memref<256x128xf32, #tpu.memory_space<vmem>>, %arg14: memref<256x128xf32, #tpu.memory_space<vmem>>, %arg15: memref<256x128xf32, #tpu.memory_space<vmem>>) attributes {dimension_semantics = [#tpu.dimension_semantics<parallel>], iteration_bounds = array<i64: 2>, scalar_prefetch = 0 : i64, scratch_operands = 5 : i64, tpu.core_type = #tpu.core_type<tc>, window_params = [{transform_indices = @transform_0, window_bounds = array<i64: 1, 16, 16, 128>}, {pipeline_mode = #tpu.pipeline_mode<synchronous>, transform_indices = @transform_1, window_bounds = array<i64: 5, 640, 128>}, {pipeline_mode = #tpu.pipeline_mode<synchronous>, transform_indices = @transform_2, window_bounds = array<i64: 3, 384, 128>}, {pipeline_mode = #tpu.pipeline_mode<synchronous>, transform_indices = @transform_3, window_bounds = array<i64: 128, 128>}, {pipeline_mode = #tpu.pipeline_mode<synchronous>, transform_indices = @transform_4, window_bounds = array<i64: 4, 128, 128>}, {pipeline_mode = #tpu.pipeline_mode<synchronous>, transform_indices = @transform_5, window_bounds = array<i64: 1, 128>}, {pipeline_mode = #tpu.pipeline_mode<synchronous>, transform_indices = @transform_6, window_bounds = array<i64: 1, 128>}, {pipeline_mode = #tpu.pipeline_mode<synchronous>, transform_indices = @transform_7, window_bounds = array<i64: 1, 128>}, {pipeline_mode = #tpu.pipeline_mode<synchronous>, transform_indices = @transform_8, window_bounds = array<i64: 1, 128>}, {transform_indices = @transform_9, window_bounds = array<i64: 1, 256, 128>}]} {
    %cst = arith.constant 0.000000e+00 : f32
    %0 = vector.broadcast %cst : f32 to vector<20x20x128xf32>
    %c0 = arith.constant 0 : index
    %c0_0 = arith.constant 0 : index
    %c0_1 = arith.constant 0 : index
    %1 = vector.load %arg11[%c0, %c0_0, %c0_1] : memref<20x20x128xf32, #tpu.memory_space<vmem>>, vector<20x20x128xf32>
    tpu.vector_store %arg11[%c0, %c0_0, %c0_1], %0 {strides = array<i32>} : memref<20x20x128xf32, #tpu.memory_space<vmem>>, vector<20x20x128xf32>,
    %cst_2 = arith.constant 0.000000e+00 : f32
    %2 = vector.broadcast %cst_2 : f32 to vector<18x18x128xf32>
    %c0_3 = arith.constant 0 : index
    %c0_4 = arith.constant 0 : index
    %c0_5 = arith.constant 0 : index
    %3 = vector.load %arg12[%c0_3, %c0_4, %c0_5] : memref<18x18x128xf32, #tpu.memory_space<vmem>>, vector<18x18x128xf32>
    tpu.vector_store %arg12[%c0_3, %c0_4, %c0_5], %2 {strides = array<i32>} : memref<18x18x128xf32, #tpu.memory_space<vmem>>, vector<18x18x128xf32>,
    %c0_6 = arith.constant 0 : index
    %c0_7 = arith.constant 0 : index
    %c0_8 = arith.constant 0 : index
    %c0_9 = arith.constant 0 : index
    %4 = vector.load %arg1[%c0_6, %c0_7, %c0_8, %c0_9] : memref<1x16x16x128xf32, #tpu.memory_space<vmem>>, vector<1x16x16x128xf32>
    %5 = vector.shape_cast %4 : vector<1x16x16x128xf32> to vector<16x16x128xf32>
    %c2 = arith.constant 2 : index
    %c2_10 = arith.constant 2 : index
    %c0_11 = arith.constant 0 : index
    %6 = vector.load %arg11[%c2, %c2_10, %c0_11] : memref<20x20x128xf32, #tpu.memory_space<vmem>>, vector<16x16x128xf32>
    tpu.vector_store %arg11[%c2, %c2_10, %c0_11], %5 {strides = array<i32>} : memref<20x20x128xf32, #tpu.memory_space<vmem>>, vector<16x16x128xf32>,
    %7 = vector.shape_cast %5 : vector<16x16x128xf32> to vector<256x128xf32>
    %c0_12 = arith.constant 0 : index
    %c0_13 = arith.constant 0 : index
    %8 = vector.load %arg13[%c0_12, %c0_13] : memref<256x128xf32, #tpu.memory_space<vmem>>, vector<256x128xf32>
    tpu.vector_store %arg13[%c0_12, %c0_13], %7 {strides = array<i32>} : memref<256x128xf32, #tpu.memory_space<vmem>>, vector<256x128xf32>,
    %cst_14 = arith.constant 0.000000e+00 : f32
    %9 = vector.broadcast %cst_14 : f32 to vector<256x128xf32>
    %c0_15 = arith.constant 0 : index
    %c0_16 = arith.constant 0 : index
    %c0_17 = arith.constant 0 : index
    %10 = vector.load %arg11[%c0_15, %c0_16, %c0_17] : memref<20x20x128xf32, #tpu.memory_space<vmem>>, vector<16x16x128xf32>
    %c0_18 = arith.constant 0 : index
    %c1 = arith.constant 1 : index
    %c0_19 = arith.constant 0 : index
    %11 = vector.load %arg11[%c0_18, %c1, %c0_19] : memref<20x20x128xf32, #tpu.memory_space<vmem>>, vector<16x16x128xf32>
    %c0_20 = arith.constant 0 : index
    %c2_21 = arith.constant 2 : index
    %c0_22 = arith.constant 0 : index
    %12 = vector.load %arg11[%c0_20, %c2_21, %c0_22] : memref<20x20x128xf32, #tpu.memory_space<vmem>>, vector<16x16x128xf32>
    %c0_23 = arith.constant 0 : index
    %c3 = arith.constant 3 : index
    %c0_24 = arith.constant 0 : index
    %13 = vector.load %arg11[%c0_23, %c3, %c0_24] : memref<20x20x128xf32, #tpu.memory_space<vmem>>, vector<16x16x128xf32>
    %c0_25 = arith.constant 0 : index
    %c4 = arith.constant 4 : index
    %c0_26 = arith.constant 0 : index
    %14 = vector.load %arg11[%c0_25, %c4, %c0_26] : memref<20x20x128xf32, #tpu.memory_space<vmem>>, vector<16x16x128xf32>
    %15 = tpu.concatenate %10, %11, %12, %13, %14 in 2 : vector<16x16x128xf32>, vector<16x16x128xf32>, vector<16x16x128xf32>, vector<16x16x128xf32>, vector<16x16x128xf32> -> vector<16x16x640xf32>
    %16 = vector.shape_cast %15 : vector<16x16x640xf32> to vector<256x640xf32>
    %c0_27 = arith.constant 0 : index
    %c0_28 = arith.constant 0 : index
    %c0_29 = arith.constant 0 : index
    %17 = vector.load %arg2[%c0_27, %c0_28, %c0_29] : memref<5x640x128xf32, #tpu.memory_space<vmem>>, vector<1x640x128xf32>
    %18 = vector.shape_cast %17 : vector<1x640x128xf32> to vector<640x128xf32>
    %cst_30 = arith.constant dense<0.000000e+00> : vector<256x128xf32>
    %19 = tpu.matmul %16, %18, %cst_30 {dimension_numbers = #tpu.dot_dimension_numbers<[1], [0], [0], [1], [0, 0, 1, 1], [], []>} : vector<256x640xf32>, vector<640x128xf32>, vector<256x128xf32> -> vector<256x128xf32>
    %20 = arith.addf %9, %19 : vector<256x128xf32>
    %c1_31 = arith.constant 1 : index
    %c0_32 = arith.constant 0 : index
    %c0_33 = arith.constant 0 : index
    %21 = vector.load %arg11[%c1_31, %c0_32, %c0_33] : memref<20x20x128xf32, #tpu.memory_space<vmem>>, vector<16x16x128xf32>
    %c1_34 = arith.constant 1 : index
    %c1_35 = arith.constant 1 : index
    %c0_36 = arith.constant 0 : index
    %22 = vector.load %arg11[%c1_34, %c1_35, %c0_36] : memref<20x20x128xf32, #tpu.memory_space<vmem>>, vector<16x16x128xf32>
    %c1_37 = arith.constant 1 : index
    %c2_38 = arith.constant 2 : index
    %c0_39 = arith.constant 0 : index
    %23 = vector.load %arg11[%c1_37, %c2_38, %c0_39] : memref<20x20x128xf32, #tpu.memory_space<vmem>>, vector<16x16x128xf32>
    %c1_40 = arith.constant 1 : index
    %c3_41 = arith.constant 3 : index
    %c0_42 = arith.constant 0 : index
    %24 = vector.load %arg11[%c1_40, %c3_41, %c0_42] : memref<20x20x128xf32, #tpu.memory_space<vmem>>, vector<16x16x128xf32>
    %c1_43 = arith.constant 1 : index
    %c4_44 = arith.constant 4 : index
    %c0_45 = arith.constant 0 : index
    %25 = vector.load %arg11[%c1_43, %c4_44, %c0_45] : memref<20x20x128xf32, #tpu.memory_space<vmem>>, vector<16x16x128xf32>
    %26 = tpu.concatenate %21, %22, %23, %24, %25 in 2 : vector<16x16x128xf32>, vector<16x16x128xf32>, vector<16x16x128xf32>, vector<16x16x128xf32>, vector<16x16x128xf32> -> vector<16x16x640xf32>
    %27 = vector.shape_cast %26 : vector<16x16x640xf32> to vector<256x640xf32>
    %c1_46 = arith.constant 1 : index
    %c0_47 = arith.constant 0 : index
    %c0_48 = arith.constant 0 : index
    %28 = vector.load %arg2[%c1_46, %c0_47, %c0_48] : memref<5x640x128xf32, #tpu.memory_space<vmem>>, vector<1x640x128xf32>
    %29 = vector.shape_cast %28 : vector<1x640x128xf32> to vector<640x128xf32>
    %cst_49 = arith.constant dense<0.000000e+00> : vector<256x128xf32>
    %30 = tpu.matmul %27, %29, %cst_49 {dimension_numbers = #tpu.dot_dimension_numbers<[1], [0], [0], [1], [0, 0, 1, 1], [], []>} : vector<256x640xf32>, vector<640x128xf32>, vector<256x128xf32> -> vector<256x128xf32>
    %31 = arith.addf %20, %30 : vector<256x128xf32>
    %c2_50 = arith.constant 2 : index
    %c0_51 = arith.constant 0 : index
    %c0_52 = arith.constant 0 : index
    %32 = vector.load %arg11[%c2_50, %c0_51, %c0_52] : memref<20x20x128xf32, #tpu.memory_space<vmem>>, vector<16x16x128xf32>
    %c2_53 = arith.constant 2 : index
    %c1_54 = arith.constant 1 : index
    %c0_55 = arith.constant 0 : index
    %33 = vector.load %arg11[%c2_53, %c1_54, %c0_55] : memref<20x20x128xf32, #tpu.memory_space<vmem>>, vector<16x16x128xf32>
    %c2_56 = arith.constant 2 : index
    %c2_57 = arith.constant 2 : index
    %c0_58 = arith.constant 0 : index
    %34 = vector.load %arg11[%c2_56, %c2_57, %c0_58] : memref<20x20x128xf32, #tpu.memory_space<vmem>>, vector<16x16x128xf32>
    %c2_59 = arith.constant 2 : index
    %c3_60 = arith.constant 3 : index
    %c0_61 = arith.constant 0 : index
    %35 = vector.load %arg11[%c2_59, %c3_60, %c0_61] : memref<20x20x128xf32, #tpu.memory_space<vmem>>, vector<16x16x128xf32>
    %c2_62 = arith.constant 2 : index
    %c4_63 = arith.constant 4 : index
    %c0_64 = arith.constant 0 : index
    %36 = vector.load %arg11[%c2_62, %c4_63, %c0_64] : memref<20x20x128xf32, #tpu.memory_space<vmem>>, vector<16x16x128xf32>
    %37 = tpu.concatenate %32, %33, %34, %35, %36 in 2 : vector<16x16x128xf32>, vector<16x16x128xf32>, vector<16x16x128xf32>, vector<16x16x128xf32>, vector<16x16x128xf32> -> vector<16x16x640xf32>
    %38 = vector.shape_cast %37 : vector<16x16x640xf32> to vector<256x640xf32>
    %c2_65 = arith.constant 2 : index
    %c0_66 = arith.constant 0 : index
    %c0_67 = arith.constant 0 : index
    %39 = vector.load %arg2[%c2_65, %c0_66, %c0_67] : memref<5x640x128xf32, #tpu.memory_space<vmem>>, vector<1x640x128xf32>
    %40 = vector.shape_cast %39 : vector<1x640x128xf32> to vector<640x128xf32>
    %cst_68 = arith.constant dense<0.000000e+00> : vector<256x128xf32>
    %41 = tpu.matmul %38, %40, %cst_68 {dimension_numbers = #tpu.dot_dimension_numbers<[1], [0], [0], [1], [0, 0, 1, 1], [], []>} : vector<256x640xf32>, vector<640x128xf32>, vector<256x128xf32> -> vector<256x128xf32>
    %42 = arith.addf %31, %41 : vector<256x128xf32>
    %c3_69 = arith.constant 3 : index
    %c0_70 = arith.constant 0 : index
    %c0_71 = arith.constant 0 : index
    %43 = vector.load %arg11[%c3_69, %c0_70, %c0_71] : memref<20x20x128xf32, #tpu.memory_space<vmem>>, vector<16x16x128xf32>
    %c3_72 = arith.constant 3 : index
    %c1_73 = arith.constant 1 : index
    %c0_74 = arith.constant 0 : index
    %44 = vector.load %arg11[%c3_72, %c1_73, %c0_74] : memref<20x20x128xf32, #tpu.memory_space<vmem>>, vector<16x16x128xf32>
    %c3_75 = arith.constant 3 : index
    %c2_76 = arith.constant 2 : index
    %c0_77 = arith.constant 0 : index
    %45 = vector.load %arg11[%c3_75, %c2_76, %c0_77] : memref<20x20x128xf32, #tpu.memory_space<vmem>>, vector<16x16x128xf32>
    %c3_78 = arith.constant 3 : index
    %c3_79 = arith.constant 3 : index
    %c0_80 = arith.constant 0 : index
    %46 = vector.load %arg11[%c3_78, %c3_79, %c0_80] : memref<20x20x128xf32, #tpu.memory_space<vmem>>, vector<16x16x128xf32>
    %c3_81 = arith.constant 3 : index
    %c4_82 = arith.constant 4 : index
    %c0_83 = arith.constant 0 : index
    %47 = vector.load %arg11[%c3_81, %c4_82, %c0_83] : memref<20x20x128xf32, #tpu.memory_space<vmem>>, vector<16x16x128xf32>
    %48 = tpu.concatenate %43, %44, %45, %46, %47 in 2 : vector<16x16x128xf32>, vector<16x16x128xf32>, vector<16x16x128xf32>, vector<16x16x128xf32>, vector<16x16x128xf32> -> vector<16x16x640xf32>
    %49 = vector.shape_cast %48 : vector<16x16x640xf32> to vector<256x640xf32>
    %c3_84 = arith.constant 3 : index
    %c0_85 = arith.constant 0 : index
    %c0_86 = arith.constant 0 : index
    %50 = vector.load %arg2[%c3_84, %c0_85, %c0_86] : memref<5x640x128xf32, #tpu.memory_space<vmem>>, vector<1x640x128xf32>
    %51 = vector.shape_cast %50 : vector<1x640x128xf32> to vector<640x128xf32>
    %cst_87 = arith.constant dense<0.000000e+00> : vector<256x128xf32>
    %52 = tpu.matmul %49, %51, %cst_87 {dimension_numbers = #tpu.dot_dimension_numbers<[1], [0], [0], [1], [0, 0, 1, 1], [], []>} : vector<256x640xf32>, vector<640x128xf32>, vector<256x128xf32> -> vector<256x128xf32>
    %53 = arith.addf %42, %52 : vector<256x128xf32>
    %c4_88 = arith.constant 4 : index
    %c0_89 = arith.constant 0 : index
    %c0_90 = arith.constant 0 : index
    %54 = vector.load %arg11[%c4_88, %c0_89, %c0_90] : memref<20x20x128xf32, #tpu.memory_space<vmem>>, vector<16x16x128xf32>
    %c4_91 = arith.constant 4 : index
    %c1_92 = arith.constant 1 : index
    %c0_93 = arith.constant 0 : index
    %55 = vector.load %arg11[%c4_91, %c1_92, %c0_93] : memref<20x20x128xf32, #tpu.memory_space<vmem>>, vector<16x16x128xf32>
    %c4_94 = arith.constant 4 : index
    %c2_95 = arith.constant 2 : index
    %c0_96 = arith.constant 0 : index
    %56 = vector.load %arg11[%c4_94, %c2_95, %c0_96] : memref<20x20x128xf32, #tpu.memory_space<vmem>>, vector<16x16x128xf32>
    %c4_97 = arith.constant 4 : index
    %c3_98 = arith.constant 3 : index
    %c0_99 = arith.constant 0 : index
    %57 = vector.load %arg11[%c4_97, %c3_98, %c0_99] : memref<20x20x128xf32, #tpu.memory_space<vmem>>, vector<16x16x128xf32>
    %c4_100 = arith.constant 4 : index
    %c4_101 = arith.constant 4 : index
    %c0_102 = arith.constant 0 : index
    %58 = vector.load %arg11[%c4_100, %c4_101, %c0_102] : memref<20x20x128xf32, #tpu.memory_space<vmem>>, vector<16x16x128xf32>
    %59 = tpu.concatenate %54, %55, %56, %57, %58 in 2 : vector<16x16x128xf32>, vector<16x16x128xf32>, vector<16x16x128xf32>, vector<16x16x128xf32>, vector<16x16x128xf32> -> vector<16x16x640xf32>
    %60 = vector.shape_cast %59 : vector<16x16x640xf32> to vector<256x640xf32>
    %c4_103 = arith.constant 4 : index
    %c0_104 = arith.constant 0 : index
    %c0_105 = arith.constant 0 : index
    %61 = vector.load %arg2[%c4_103, %c0_104, %c0_105] : memref<5x640x128xf32, #tpu.memory_space<vmem>>, vector<1x640x128xf32>
    %62 = vector.shape_cast %61 : vector<1x640x128xf32> to vector<640x128xf32>
    %cst_106 = arith.constant dense<0.000000e+00> : vector<256x128xf32>
    %63 = tpu.matmul %60, %62, %cst_106 {dimension_numbers = #tpu.dot_dimension_numbers<[1], [0], [0], [1], [0, 0, 1, 1], [], []>} : vector<256x640xf32>, vector<640x128xf32>, vector<256x128xf32> -> vector<256x128xf32>
    %64 = arith.addf %53, %63 : vector<256x128xf32>
    %c0_107 = arith.constant 0 : index
    %c0_108 = arith.constant 0 : index
    %65 = vector.load %arg6[%c0_107, %c0_108] : memref<1x128xf32, #tpu.memory_space<vmem>>, vector<1x128xf32>
    %66 = vector.broadcast %65 : vector<1x128xf32> to vector<256x128xf32>
    %67 = arith.addf %64, %66 : vector<256x128xf32>
    %c0_109 = arith.constant 0 : index
    %c0_110 = arith.constant 0 : index
    %68 = vector.load %arg14[%c0_109, %c0_110] : memref<256x128xf32, #tpu.memory_space<vmem>>, vector<256x128xf32>
    tpu.vector_store %arg14[%c0_109, %c0_110], %67 {strides = array<i32>} : memref<256x128xf32, #tpu.memory_space<vmem>>, vector<256x128xf32>,
    %c0_111 = arith.constant 0 : index
    %c0_112 = arith.constant 0 : index
    %69 = vector.load %arg13[%c0_111, %c0_112] : memref<256x128xf32, #tpu.memory_space<vmem>>, vector<256x128xf32>
    %70 = arith.addf %69, %67 : vector<256x128xf32>
    %71 = vector.shape_cast %70 : vector<256x128xf32> to vector<16x16x128xf32>
    %c1_113 = arith.constant 1 : index
    %c1_114 = arith.constant 1 : index
    %c0_115 = arith.constant 0 : index
    %72 = vector.load %arg12[%c1_113, %c1_114, %c0_115] : memref<18x18x128xf32, #tpu.memory_space<vmem>>, vector<16x16x128xf32>
    tpu.vector_store %arg12[%c1_113, %c1_114, %c0_115], %71 {strides = array<i32>} : memref<18x18x128xf32, #tpu.memory_space<vmem>>, vector<16x16x128xf32>,
    %cst_116 = arith.constant 0.000000e+00 : f32
    %73 = vector.broadcast %cst_116 : f32 to vector<256x128xf32>
    %c0_117 = arith.constant 0 : index
    %c0_118 = arith.constant 0 : index
    %c0_119 = arith.constant 0 : index
    %74 = vector.load %arg12[%c0_117, %c0_118, %c0_119] : memref<18x18x128xf32, #tpu.memory_space<vmem>>, vector<16x16x128xf32>
    %c0_120 = arith.constant 0 : index
    %c1_121 = arith.constant 1 : index
    %c0_122 = arith.constant 0 : index
    %75 = vector.load %arg12[%c0_120, %c1_121, %c0_122] : memref<18x18x128xf32, #tpu.memory_space<vmem>>, vector<16x16x128xf32>
    %c0_123 = arith.constant 0 : index
    %c2_124 = arith.constant 2 : index
    %c0_125 = arith.constant 0 : index
    %76 = vector.load %arg12[%c0_123, %c2_124, %c0_125] : memref<18x18x128xf32, #tpu.memory_space<vmem>>, vector<16x16x128xf32>
    %77 = tpu.concatenate %74, %75, %76 in 2 : vector<16x16x128xf32>, vector<16x16x128xf32>, vector<16x16x128xf32> -> vector<16x16x384xf32>
    %78 = vector.shape_cast %77 : vector<16x16x384xf32> to vector<256x384xf32>
    %c0_126 = arith.constant 0 : index
    %c0_127 = arith.constant 0 : index
    %c0_128 = arith.constant 0 : index
    %79 = vector.load %arg3[%c0_126, %c0_127, %c0_128] : memref<3x384x128xf32, #tpu.memory_space<vmem>>, vector<1x384x128xf32>
    %80 = vector.shape_cast %79 : vector<1x384x128xf32> to vector<384x128xf32>
    %cst_129 = arith.constant dense<0.000000e+00> : vector<256x128xf32>
    %81 = tpu.matmul %78, %80, %cst_129 {dimension_numbers = #tpu.dot_dimension_numbers<[1], [0], [0], [1], [0, 0, 1, 1], [], []>} : vector<256x384xf32>, vector<384x128xf32>, vector<256x128xf32> -> vector<256x128xf32>
    %82 = arith.addf %73, %81 : vector<256x128xf32>
    %c1_130 = arith.constant 1 : index
    %c0_131 = arith.constant 0 : index
    %c0_132 = arith.constant 0 : index
    %83 = vector.load %arg12[%c1_130, %c0_131, %c0_132] : memref<18x18x128xf32, #tpu.memory_space<vmem>>, vector<16x16x128xf32>
    %c1_133 = arith.constant 1 : index
    %c1_134 = arith.constant 1 : index
    %c0_135 = arith.constant 0 : index
    %84 = vector.load %arg12[%c1_133, %c1_134, %c0_135] : memref<18x18x128xf32, #tpu.memory_space<vmem>>, vector<16x16x128xf32>
    %c1_136 = arith.constant 1 : index
    %c2_137 = arith.constant 2 : index
    %c0_138 = arith.constant 0 : index
    %85 = vector.load %arg12[%c1_136, %c2_137, %c0_138] : memref<18x18x128xf32, #tpu.memory_space<vmem>>, vector<16x16x128xf32>
    %86 = tpu.concatenate %83, %84, %85 in 2 : vector<16x16x128xf32>, vector<16x16x128xf32>, vector<16x16x128xf32> -> vector<16x16x384xf32>
    %87 = vector.shape_cast %86 : vector<16x16x384xf32> to vector<256x384xf32>
    %c1_139 = arith.constant 1 : index
    %c0_140 = arith.constant 0 : index
    %c0_141 = arith.constant 0 : index
    %88 = vector.load %arg3[%c1_139, %c0_140, %c0_141] : memref<3x384x128xf32, #tpu.memory_space<vmem>>, vector<1x384x128xf32>
    %89 = vector.shape_cast %88 : vector<1x384x128xf32> to vector<384x128xf32>
    %cst_142 = arith.constant dense<0.000000e+00> : vector<256x128xf32>
    %90 = tpu.matmul %87, %89, %cst_142 {dimension_numbers = #tpu.dot_dimension_numbers<[1], [0], [0], [1], [0, 0, 1, 1], [], []>} : vector<256x384xf32>, vector<384x128xf32>, vector<256x128xf32> -> vector<256x128xf32>
    %91 = arith.addf %82, %90 : vector<256x128xf32>
    %c2_143 = arith.constant 2 : index
    %c0_144 = arith.constant 0 : index
    %c0_145 = arith.constant 0 : index
    %92 = vector.load %arg12[%c2_143, %c0_144, %c0_145] : memref<18x18x128xf32, #tpu.memory_space<vmem>>, vector<16x16x128xf32>
    %c2_146 = arith.constant 2 : index
    %c1_147 = arith.constant 1 : index
    %c0_148 = arith.constant 0 : index
    %93 = vector.load %arg12[%c2_146, %c1_147, %c0_148] : memref<18x18x128xf32, #tpu.memory_space<vmem>>, vector<16x16x128xf32>
    %c2_149 = arith.constant 2 : index
    %c2_150 = arith.constant 2 : index
    %c0_151 = arith.constant 0 : index
    %94 = vector.load %arg12[%c2_149, %c2_150, %c0_151] : memref<18x18x128xf32, #tpu.memory_space<vmem>>, vector<16x16x128xf32>
    %95 = tpu.concatenate %92, %93, %94 in 2 : vector<16x16x128xf32>, vector<16x16x128xf32>, vector<16x16x128xf32> -> vector<16x16x384xf32>
    %96 = vector.shape_cast %95 : vector<16x16x384xf32> to vector<256x384xf32>
    %c2_152 = arith.constant 2 : index
    %c0_153 = arith.constant 0 : index
    %c0_154 = arith.constant 0 : index
    %97 = vector.load %arg3[%c2_152, %c0_153, %c0_154] : memref<3x384x128xf32, #tpu.memory_space<vmem>>, vector<1x384x128xf32>
    %98 = vector.shape_cast %97 : vector<1x384x128xf32> to vector<384x128xf32>
    %cst_155 = arith.constant dense<0.000000e+00> : vector<256x128xf32>
    %99 = tpu.matmul %96, %98, %cst_155 {dimension_numbers = #tpu.dot_dimension_numbers<[1], [0], [0], [1], [0, 0, 1, 1], [], []>} : vector<256x384xf32>, vector<384x128xf32>, vector<256x128xf32> -> vector<256x128xf32>
    %100 = arith.addf %91, %99 : vector<256x128xf32>
    %c0_156 = arith.constant 0 : index
    %c0_157 = arith.constant 0 : index
    %101 = vector.load %arg7[%c0_156, %c0_157] : memref<1x128xf32, #tpu.memory_space<vmem>>, vector<1x128xf32>
    %102 = vector.broadcast %101 : vector<1x128xf32> to vector<256x128xf32>
    %103 = arith.addf %100, %102 : vector<256x128xf32>
    %c0_158 = arith.constant 0 : index
    %c0_159 = arith.constant 0 : index
    %104 = vector.load %arg15[%c0_158, %c0_159] : memref<256x128xf32, #tpu.memory_space<vmem>>, vector<256x128xf32>
    tpu.vector_store %arg15[%c0_158, %c0_159], %103 {strides = array<i32>} : memref<256x128xf32, #tpu.memory_space<vmem>>, vector<256x128xf32>,
    %c0_160 = arith.constant 0 : index
    %c0_161 = arith.constant 0 : index
    %105 = vector.load %arg13[%c0_160, %c0_161] : memref<256x128xf32, #tpu.memory_space<vmem>>, vector<256x128xf32>
    %106 = arith.addf %105, %103 : vector<256x128xf32>
    %c0_162 = arith.constant 0 : index
    %c0_163 = arith.constant 0 : index
    %107 = vector.load %arg4[%c0_162, %c0_163] : memref<128x128xf32, #tpu.memory_space<vmem>>, vector<128x128xf32>
    %cst_164 = arith.constant dense<0.000000e+00> : vector<256x128xf32>
    %108 = tpu.matmul %106, %107, %cst_164 {dimension_numbers = #tpu.dot_dimension_numbers<[1], [0], [0], [1], [0, 0, 1, 1], [], []>} : vector<256x128xf32>, vector<128x128xf32>, vector<256x128xf32> -> vector<256x128xf32>
    %c0_165 = arith.constant 0 : index
    %c0_166 = arith.constant 0 : index
    %109 = vector.load %arg8[%c0_165, %c0_166] : memref<1x128xf32, #tpu.memory_space<vmem>>, vector<1x128xf32>
    %110 = vector.broadcast %109 : vector<1x128xf32> to vector<256x128xf32>
    %111 = arith.addf %108, %110 : vector<256x128xf32>
    %c0_167 = arith.constant 0 : index
    %c0_168 = arith.constant 0 : index
    %112 = vector.load %arg14[%c0_167, %c0_168] : memref<256x128xf32, #tpu.memory_space<vmem>>, vector<256x128xf32>
    %c0_169 = arith.constant 0 : index
    %c0_170 = arith.constant 0 : index
    %c0_171 = arith.constant 0 : index
    %113 = vector.load %arg5[%c0_169, %c0_170, %c0_171] : memref<4x128x128xf32, #tpu.memory_space<vmem>>, vector<1x128x128xf32>
    %114 = vector.shape_cast %113 : vector<1x128x128xf32> to vector<128x128xf32>
    %cst_172 = arith.constant dense<0.000000e+00> : vector<256x128xf32>
    %115 = tpu.matmul %112, %114, %cst_172 {dimension_numbers = #tpu.dot_dimension_numbers<[1], [0], [0], [1], [0, 0, 1, 1], [], []>} : vector<256x128xf32>, vector<128x128xf32>, vector<256x128xf32> -> vector<256x128xf32>
    %c0_173 = arith.constant 0 : index
    %c0_174 = arith.constant 0 : index
    %116 = vector.load %arg15[%c0_173, %c0_174] : memref<256x128xf32, #tpu.memory_space<vmem>>, vector<256x128xf32>
    %c1_175 = arith.constant 1 : index
    %c0_176 = arith.constant 0 : index
    %c0_177 = arith.constant 0 : index
    %117 = vector.load %arg5[%c1_175, %c0_176, %c0_177] : memref<4x128x128xf32, #tpu.memory_space<vmem>>, vector<1x128x128xf32>
    %118 = vector.shape_cast %117 : vector<1x128x128xf32> to vector<128x128xf32>
    %cst_178 = arith.constant dense<0.000000e+00> : vector<256x128xf32>
    %119 = tpu.matmul %116, %118, %cst_178 {dimension_numbers = #tpu.dot_dimension_numbers<[1], [0], [0], [1], [0, 0, 1, 1], [], []>} : vector<256x128xf32>, vector<128x128xf32>, vector<256x128xf32> -> vector<256x128xf32>
    %120 = arith.addf %115, %119 : vector<256x128xf32>
    %c2_179 = arith.constant 2 : index
    %c0_180 = arith.constant 0 : index
    %c0_181 = arith.constant 0 : index
    %121 = vector.load %arg5[%c2_179, %c0_180, %c0_181] : memref<4x128x128xf32, #tpu.memory_space<vmem>>, vector<1x128x128xf32>
    %122 = vector.shape_cast %121 : vector<1x128x128xf32> to vector<128x128xf32>
    %cst_182 = arith.constant dense<0.000000e+00> : vector<256x128xf32>
    %123 = tpu.matmul %111, %122, %cst_182 {dimension_numbers = #tpu.dot_dimension_numbers<[1], [0], [0], [1], [0, 0, 1, 1], [], []>} : vector<256x128xf32>, vector<128x128xf32>, vector<256x128xf32> -> vector<256x128xf32>
    %124 = arith.addf %120, %123 : vector<256x128xf32>
    %c0_183 = arith.constant 0 : index
    %c0_184 = arith.constant 0 : index
    %125 = vector.load %arg13[%c0_183, %c0_184] : memref<256x128xf32, #tpu.memory_space<vmem>>, vector<256x128xf32>
    %c3_185 = arith.constant 3 : index
    %c0_186 = arith.constant 0 : index
    %c0_187 = arith.constant 0 : index
    %126 = vector.load %arg5[%c3_185, %c0_186, %c0_187] : memref<4x128x128xf32, #tpu.memory_space<vmem>>, vector<1x128x128xf32>
    %127 = vector.shape_cast %126 : vector<1x128x128xf32> to vector<128x128xf32>
    %cst_188 = arith.constant dense<0.000000e+00> : vector<256x128xf32>
    %128 = tpu.matmul %125, %127, %cst_188 {dimension_numbers = #tpu.dot_dimension_numbers<[1], [0], [0], [1], [0, 0, 1, 1], [], []>} : vector<256x128xf32>, vector<128x128xf32>, vector<256x128xf32> -> vector<256x128xf32>
    %129 = arith.addf %124, %128 : vector<256x128xf32>
    %c0_189 = arith.constant 0 : index
    %c0_190 = arith.constant 0 : index
    %130 = vector.load %arg9[%c0_189, %c0_190] : memref<1x128xf32, #tpu.memory_space<vmem>>, vector<1x128xf32>
    %131 = vector.broadcast %130 : vector<1x128xf32> to vector<256x128xf32>
    %132 = arith.addf %129, %131 : vector<256x128xf32>
    %cst_191 = arith.constant 0.000000e+00 : f32
    %133 = vector.broadcast %cst_191 : f32 to vector<256x128xf32>
    %134 = arith.cmpf oge, %132, %133 : vector<256x128xf32>
    %cst_192 = arith.constant 5.000000e-02 : f32
    %135 = vector.broadcast %cst_192 : f32 to vector<256x128xf32>
    %136 = arith.mulf %132, %135 : vector<256x128xf32>
    %137 = arith.select %134, %132, %136 : vector<256x128xi1>, vector<256x128xf32>
    %c0_193 = arith.constant 0 : index
    %c0_194 = arith.constant 0 : index
    %c0_195 = arith.constant 0 : index
    %138 = vector.load %arg10[%c0_193, %c0_194, %c0_195] : memref<1x256x128xf32, #tpu.memory_space<vmem>>, vector<1x256x128xf32>
    %139 = vector.shape_cast %138 : vector<1x256x128xf32> to vector<256x128xf32>
    %140 = vector.shape_cast %137 : vector<256x128xf32> to vector<1x256x128xf32>
    tpu.vector_store %arg10[%c0_193, %c0_194, %c0_195], %140 {strides = array<i32>} : memref<1x256x128xf32, #tpu.memory_space<vmem>>, vector<1x256x128xf32>,
    return
  }
  func.func @transform_0(%arg0: i32) -> (i32, i32, i32, i32) {
    %c0_i32 = arith.constant 0 : i32
    %c0_i32_0 = arith.constant 0 : i32
    %c0_i32_1 = arith.constant 0 : i32
    %c0_i32_2 = arith.constant 0 : i32
    return %arg0, %c0_i32, %c0_i32_0, %c0_i32_1 : i32, i32, i32, i32
  }
  func.func @transform_1(%arg0: i32) -> (i32, i32, i32) {
    %c0_i32 = arith.constant 0 : i32
    %c0_i32_0 = arith.constant 0 : i32
    %c0_i32_1 = arith.constant 0 : i32
    %c0_i32_2 = arith.constant 0 : i32
    return %c0_i32, %c0_i32_0, %c0_i32_1 : i32, i32, i32
  }
  func.func @transform_2(%arg0: i32) -> (i32, i32, i32) {
    %c0_i32 = arith.constant 0 : i32
    %c0_i32_0 = arith.constant 0 : i32
    %c0_i32_1 = arith.constant 0 : i32
    %c0_i32_2 = arith.constant 0 : i32
    return %c0_i32, %c0_i32_0, %c0_i32_1 : i32, i32, i32
  }
  func.func @transform_3(%arg0: i32) -> (i32, i32) {
    %c0_i32 = arith.constant 0 : i32
    %c0_i32_0 = arith.constant 0 : i32
    %c0_i32_1 = arith.constant 0 : i32
    return %c0_i32, %c0_i32_0 : i32, i32
  }
  func.func @transform_4(%arg0: i32) -> (i32, i32, i32) {
    %c0_i32 = arith.constant 0 : i32
    %c0_i32_0 = arith.constant 0 : i32
    %c0_i32_1 = arith.constant 0 : i32
    %c0_i32_2 = arith.constant 0 : i32
    return %c0_i32, %c0_i32_0, %c0_i32_1 : i32, i32, i32
  }
  func.func @transform_5(%arg0: i32) -> (i32, i32) {
    %c0_i32 = arith.constant 0 : i32
    %c0_i32_0 = arith.constant 0 : i32
    %c0_i32_1 = arith.constant 0 : i32
    return %c0_i32, %c0_i32_0 : i32, i32
  }
  func.func @transform_6(%arg0: i32) -> (i32, i32) {
    %c0_i32 = arith.constant 0 : i32
    %c0_i32_0 = arith.constant 0 : i32
    %c0_i32_1 = arith.constant 0 : i32
    return %c0_i32, %c0_i32_0 : i32, i32
  }
  func.func @transform_7(%arg0: i32) -> (i32, i32) {
    %c0_i32 = arith.constant 0 : i32
    %c0_i32_0 = arith.constant 0 : i32
    %c0_i32_1 = arith.constant 0 : i32
    return %c0_i32, %c0_i32_0 : i32, i32
  }
  func.func @transform_8(%arg0: i32) -> (i32, i32) {
    %c0_i32 = arith.constant 0 : i32
    %c0_i32_0 = arith.constant 0 : i32
    %c0_i32_1 = arith.constant 0 : i32
    return %c0_i32, %c0_i32_0 : i32, i32
  }
  func.func @transform_9(%arg0: i32) -> (i32, i32, i32) {
    %c0_i32 = arith.constant 0 : i32
    %c0_i32_0 = arith.constant 0 : i32
    %c0_i32_1 = arith.constant 0 : i32
    return %arg0, %c0_i32, %c0_i32_0 : i32, i32, i32
  }
}

</mosaic_0001>

<bundles_post_ra>
// kernel: cascade_forward.1
= control target key start
LH: loop header
LB: loop body
LE: loop exit
PB: predicated region body
PF: predicated region fallthrough
CT: control target
= control target key end

     0   :  { %s16545_s0 = inlined_call_operand.vmem [shape: f32[2,16,16,128], index: 0, kind: input, shape index: {}]   ;;  %s16546_s1 = inlined_call_operand.hbm [shape: f32[5,640,128], index: 1, kind: input, shape index: {}]   ;;  %s16547_s2 = inlined_call_operand.hbm [shape: f32[3,384,128], index: 2, kind: input, shape index: {}]   ;;  %s16548_s3 = inlined_call_operand.hbm [shape: f32[128,128], index: 3, kind: input, shape index: {}]   ;;  %s16549_s4 = inlined_call_operand.hbm [shape: f32[4,128,128], index: 4, kind: input, shape index: {}]   ;;  %s16550_s5 = inlined_call_operand.hbm [shape: f32[1,128], index: 5, kind: input, shape index: {}]   ;;  %s16551_s6 = inlined_call_operand.hbm [shape: f32[1,128], index: 6, kind: input, shape index: {}]   ;;  %s16552_s7 = inlined_call_operand.hbm [shape: f32[1,128], index: 7, kind: input, shape index: {}]   ;;  %s16553_s8 = inlined_call_operand.hbm [shape: f32[1,128], index: 8, kind: input, shape index: {}]   ;;  %s16554_s9 = inlined_call_operand.hbm [shape: f32[2,256,128], index: 9, kind: output, shape index: {}]  }
   0x1   :  { %16609 = sst [smem:[#allocation93_spill]] %s16546_s1 }
   0x2   :  { %14 = vsyncpa [#allocation8], 0 }
   0x3   :  { %15 = vsyncpa [#allocation11], 0 }
   0x4   :  { %16 = vsyncpa [#allocation14], 0 }
   0x5   :  { %17 = vsyncpa [#allocation17], 0 }
   0x6   :  { %18 = vsyncpa [#allocation20], 0 }
   0x7   :  { %19 = vsyncpa [#allocation9], 0 }
   0x8   :  { %21 = vsyncpa [#allocation9 + $0x1], 0  ;;  %s12843_s30 = smov 0   ;;  %s12845_s10 = smov 0  }
   0x9   :  { %s12847_s11 = smov 0   ;;  %s12849_s12 = smov 0  }
   0xa LB: > { %16610 = sst [smem:[#allocation28_spill]] %s12764_s30  ;;  %s12864_s13 = sadd.s32 4294967295, %s12776_s12   ;;  %s12776_s12 = sphi %s12849_s12, %s17011_s12   ;;  %s12772_s11 = sphi %s12847_s11, %s17013_s11   ;;  %s12768_s10 = sphi %s12845_s10, %s17015_s10   ;;  %s12764_s30 = sphi %s12843_s30, %s17014_s30  }
   0xb   : > { %16611 = sst [smem:[#allocation29_spill]] %s12772_s11  ;;  %s9114_s14 = sadd.s32 4294967294, %s12776_s12  }
   0xc   : > { %s12868_s15 = sadd.s32 1, %s12776_s12   ;;  %s228_s16 = sadd.s32 1, %s12772_s11 }
   0xd   : > { %16612 = sst [smem:[#allocation30_spill]] %s12868_s15  ;;  %s225_s17 = ssub.s32 %s12776_s12, %s12868_s15 }
   0xe   : > { %p238_p0 = scmp.ne.s32.totalorder %s12772_s11, %s12768_s10  ;;  %p226_p1 = scmp.eq.s32.totalorder %s225_s17, 0 }
   0xf   : > { %p239_p2 = scmp.eq.s32.totalorder %s12864_s13, 1  ;;  %p244_p3 = scmp.ne.s32.totalorder %s12768_s10, %s12764_s30 }
  0x10   : > { %p245_p4 = scmp.eq.s32.totalorder %s9114_s14, 1  ;;  %p9115_p7 = scmp.ge.s32.totalorder %s12776_s12, 1 }
  0x11   : > { %s12879_s18 = scalar_select %p226_p1, %s12772_s11, %s228_s16  }
  0x12   : > { %p12881_p5 = por %p239_p2, %p238_p0  ;;  %p12885_p6 = por %p245_p4, %p244_p3 }
  0x13   : > { %16613 = sst [smem:[#allocation31_spill]] %s12879_s18  ;;  %p252_p8 = scmp.lt.s32.totalorder %s12776_s12, 3 }
  0x14   : > { %s16614_s19 = scalar_select %p12881_p5, 1, 0 }
  0x15   : > { %s16615_s20 = scalar_select %p12885_p6, 1, 0 }
  0x16   : > { %p16555_p9 = scmp.eq.s32.totalorder %s12864_s13, 0  ;;  %p12892_p10 = pnand %p9115_p7, %p252_p8 }
  0x17   : > { %16616 = sst [smem:[#allocation32_spill]] %s16615_s20  ;;  %s12778_s22 = smov [#allocation10]  }
  0x18   : > { %s16617_s21 = scalar_select %p12892_p10, 1, 0 }
  0x19   : > { %p12294_p11 = pneg %p12892_p10  ;;  %s277_s23 = sshll.u32 %s12778_s22, 4  ;;  %s12898_s23 = int_to_ptr.vmem [resolvable:$true] %s277_s23 }
  0x1a   : > { %s12779_s25 = smov [#allocation13]   ;;  %s12780_s27 = smov [#allocation16]  }
  0x1b   : > { %p12902_p12 = pnand %p16555_p9, %p12294_p11  ;;  %s303_s26 = sshll.u32 %s12779_s25, 4  ;;  %s12906_s26 = int_to_ptr.vmem [resolvable:$true] %s303_s26 }
  0x1c   : > { %s12908_s28 = sshll.u32 %s12780_s27, 4  ;;  %s12470_s16 = scalar_lea.hbm %s16547_s2, 18432  ;;  %s329_s28 = int_to_ptr.vmem [resolvable:$true] %s12908_s28 }
  0x1d   : > { %p12471_p13 = scmp.ne.s32.totalorder %s16547_s2, %s12470_s16  ;;  %p12918_p0 = pneg %p12902_p12 }
  0x1e   : > { %p12477_p3 = scmp.lt.u32.totalorder %s12470_s16, %s16547_s2 }
  0x1f   : > { %p12473_p1 = pnand %p12918_p0, %p12471_p13 }
  0x21   : > { %p12474_p2 = pneg %p12473_p1 }
  0x23   : > { %p12479_p4 = pnand %p12477_p3, %p12474_p2 }
  0x25   : > { %12482 = shalt.err (!%p12479_p4)
}
  0x26   : > { %s12483_s29 = scalar_lea.vmem %s12898_s23, 18432  ;;  %p12491_p9 = scmp.lt.s32.totalorder %s12898_s23, %s12898_s23 }
  0x27   : > { %p12484_p7 = scmp.ne.s32.totalorder %s12898_s23, %s12483_s29  ;;  %p12492_p6 = scmp.lt.s32.totalorder %s12483_s29, %s12483_s29 }
  0x29   : > { %p12486_p8 = pnand %p12484_p7, %p12918_p0  ;;  %p12493_p13 = por %p12492_p6, %p12491_p9 }
  0x2b   : > { %p12487_p11 = pneg %p12486_p8 }
  0x2d   : > { %p12494_p1 = pnand %p12493_p13, %p12487_p11 }
  0x2f   : > { %12497 = shalt.err (!%p12494_p1)
}
  0x30   : > { %s16563_s14 = smov 128   ;;  %s12782_s16 = smov 8  }
  0x31   : > { %12300 = dma.hbm_to_vmem [thread:$0]  (!%p12902_p12), %s16547_s2, 18432, %s12898_s23, [#allocation11], %s16563_s14, %s16563_s14, %s12782_s16  }
  0x32   : > { %s12498_s29 = scalar_lea.hbm %s16549_s4, 8192 }
  0x33   : > { %p12499_p6 = scmp.ne.s32.totalorder %s16549_s4, %s12498_s29  ;;  %p12505_p3 = scmp.lt.u32.totalorder %s12498_s29, %s16549_s4 }
  0x35   : > { %p12501_p9 = pnand %p12499_p6, %p12918_p0 }
  0x37   : > { %p12502_p2 = pneg %p12501_p9 }
  0x39   : > { %p12507_p4 = pnand %p12505_p3, %p12502_p2 }
  0x3b   : > { %12510 = shalt.err (!%p12507_p4)
}
  0x3c   : > { %s12511_s23 = scalar_lea.vmem %s12906_s26, 8192  ;;  %p12519_p13 = scmp.lt.s32.totalorder %s12906_s26, %s12906_s26 }
  0x3d   : > { %p12512_p7 = scmp.ne.s32.totalorder %s12906_s26, %s12511_s23  ;;  %p12520_p1 = scmp.lt.s32.totalorder %s12511_s23, %s12511_s23 }
  0x3f   : > { %p12514_p8 = pnand %p12512_p7, %p12918_p0  ;;  %p12521_p6 = por %p12520_p1, %p12519_p13 }
  0x41   : > { %p12515_p11 = pneg %p12514_p8 }
  0x43   : > { %p12522_p9 = pnand %p12521_p6, %p12515_p11 }
  0x45   : > { %12525 = shalt.err (!%p12522_p9)
}
  0x46   : > { %12306 = dma.hbm_to_vmem [thread:$0]  (!%p12902_p12), %s16549_s4, 8192, %s12906_s26, [#allocation14], %s16563_s14, %s16563_s14, %s12782_s16  }
  0x47   : > { %s12526_s17 = scalar_lea.hbm %s16551_s6, 16 }
  0x48   : > { %p12527_p2 = scmp.ne.s32.totalorder %s16551_s6, %s12526_s17  ;;  %p12533_p7 = scmp.lt.u32.totalorder %s12526_s17, %s16551_s6 }
  0x4a   : > { %p12529_p3 = pnand %p12527_p2, %p12918_p0 }
  0x4c   : > { %p12530_p4 = pneg %p12529_p3 }
  0x4e   : > { %p12535_p8 = pnand %p12533_p7, %p12530_p4 }
  0x50   : > { %12538 = shalt.err (!%p12535_p8)
}
  0x51   : > { %s12539_s23 = scalar_lea.vmem %s329_s28, 16  ;;  %s12546_s26 = scalar_lea.vmem %s329_s28, 32 }
  0x52   : > { %p12540_p11 = scmp.ne.s32.totalorder %s329_s28, %s12539_s23  ;;  %p12547_p6 = scmp.lt.s32.totalorder %s329_s28, %s329_s28 }
  0x53   : > { %p12548_p9 = scmp.lt.s32.totalorder %s12546_s26, %s12539_s23 }
  0x54   : > { %p12542_p13 = pnand %p12540_p11, %p12918_p0 }
  0x55   : > { %p12549_p5 = por %p12548_p9, %p12547_p6 }
  0x56   : > { %p12543_p1 = pneg %p12542_p13 }
  0x58   : > { %p12550_p10 = pnand %p12549_p5, %p12543_p1 }
  0x5a   : > { %12553 = shalt.err (!%p12550_p10)
}
  0x5b   : > { %12312 = dma.hbm_to_vmem [thread:$0]  (!%p12902_p12), %s16551_s6, 16, %s329_s28, [#allocation17]  }
  0x5c   : > { %s12783_s15 = smov [#allocation7]   ;;  %s12784_s17 = smov [#allocation12]  }
  0x5d   : > { %s264_s20 = sshll.u32 %s12783_s15, 4  ;;  %s290_s22 = sshll.u32 %s12784_s17, 4  ;;  %s265_s20 = int_to_ptr.vmem [resolvable:$true] %s264_s20  ;;  %s291_s22 = int_to_ptr.vmem [resolvable:$true] %s290_s22 }
  0x5e   : > { %s16620_s1 = sld [smem:[#allocation93_spill]] }
  0x64   : > { %s12554_s29 = scalar_lea.hbm %s16620_s1, 51200 }
  0x65   : > { %p12555_p5 = scmp.ne.s32.totalorder %s16620_s1, %s12554_s29  ;;  %p12561_p3 = scmp.lt.u32.totalorder %s12554_s29, %s16620_s1 }
  0x67   : > { %p12557_p10 = pnand %p12555_p5, %p12918_p0 }
  0x69   : > { %p12558_p2 = pneg %p12557_p10 }
  0x6b   : > { %p12563_p4 = pnand %p12561_p3, %p12558_p2 }
  0x6d   : > { %12566 = shalt.err (!%p12563_p4)
}
  0x6e   : > { %s12567_s28 = scalar_lea.vmem %s265_s20, 51200  ;;  %p12575_p13 = scmp.lt.s32.totalorder %s265_s20, %s265_s20 }
  0x6f   : > { %p12568_p7 = scmp.ne.s32.totalorder %s265_s20, %s12567_s28  ;;  %p12576_p1 = scmp.lt.s32.totalorder %s12567_s28, %s12567_s28 }
  0x71   : > { %p12570_p8 = pnand %p12568_p7, %p12918_p0  ;;  %p12577_p6 = por %p12576_p1, %p12575_p13 }
  0x73   : > { %p12571_p11 = pneg %p12570_p8 }
  0x75   : > { %p12578_p9 = pnand %p12577_p6, %p12571_p11 }
  0x77   : > { %12581 = shalt.err (!%p12578_p9)
}
  0x78   : > { %s16621_s11 = smov 128   ;;  %s12582_s27 = scalar_lea.hbm %s16548_s3, 2048 }
  0x79   : > { %12297 = dma.hbm_to_vmem [thread:$0]  (!%p12902_p12), %s16620_s1, 51200, %s265_s20, [#allocation8], %s16621_s11, %s16621_s11, %s12782_s16  }
  0x7a   : > { %p12583_p5 = scmp.ne.s32.totalorder %s16548_s3, %s12582_s27  ;;  %p12589_p3 = scmp.lt.u32.totalorder %s12582_s27, %s16548_s3 }
  0x7c   : > { %p12585_p10 = pnand %p12583_p5, %p12918_p0 }
  0x7e   : > { %p12586_p2 = pneg %p12585_p10 }
  0x80   : > { %p12591_p4 = pnand %p12589_p3, %p12586_p2 }
  0x82   : > { %12594 = shalt.err (!%p12591_p4)
}
  0x83   : > { %s12595_s28 = scalar_lea.vmem %s291_s22, 2048  ;;  %p12603_p13 = scmp.lt.s32.totalorder %s291_s22, %s291_s22 }
  0x84   : > { %p12596_p7 = scmp.ne.s32.totalorder %s291_s22, %s12595_s28  ;;  %p12604_p1 = scmp.lt.s32.totalorder %s12595_s28, %s12595_s28 }
  0x86   : > { %p12598_p8 = pnand %p12596_p7, %p12918_p0  ;;  %p12605_p6 = por %p12604_p1, %p12603_p13 }
  0x88   : > { %p12599_p11 = pneg %p12598_p8 }
  0x8a   : > { %p12606_p9 = pnand %p12605_p6, %p12599_p11 }
  0x8c   : > { %12609 = shalt.err (!%p12606_p9)
}
  0x8d   : > { %12303 = dma.hbm_to_vmem [thread:$0]  (!%p12902_p12), %s16548_s3, 2048, %s291_s22, [#allocation11], %s16621_s11, %s16621_s11, %s12782_s16  }
  0x8e   : > { %s12785_s15 = smov [#allocation15]   ;;  %s12786_s25 = smov [#allocation18]  }
  0x8f   : > { %s317_s17 = sshll.u32 %s12785_s15, 4  ;;  %s339_s27 = sshll.u32 %s12786_s25, 4  ;;  %s318_s17 = int_to_ptr.vmem [resolvable:$true] %s317_s17  ;;  %s340_s27 = int_to_ptr.vmem [resolvable:$true] %s339_s27 }
  0x90   : > { %s12610_s26 = scalar_lea.hbm %s16550_s5, 16 }
  0x91   : > { %p12611_p5 = scmp.ne.s32.totalorder %s16550_s5, %s12610_s26  ;;  %p12617_p3 = scmp.lt.u32.totalorder %s12610_s26, %s16550_s5 }
  0x93   : > { %p12613_p10 = pnand %p12611_p5, %p12918_p0 }
  0x95   : > { %p12614_p2 = pneg %p12613_p10 }
  0x97   : > { %p12619_p4 = pnand %p12617_p3, %p12614_p2 }
  0x99   : > { %12622 = shalt.err (!%p12619_p4)
}
  0x9a   : > { %s12623_s16 = scalar_lea.vmem %s318_s17, 16  ;;  %s12630_s22 = scalar_lea.vmem %s318_s17, 32 }
  0x9b   : > { %p12624_p7 = scmp.ne.s32.totalorder %s318_s17, %s12623_s16  ;;  %p12631_p13 = scmp.lt.s32.totalorder %s318_s17, %s318_s17 }
  0x9c   : > { %p12632_p1 = scmp.lt.s32.totalorder %s12630_s22, %s12623_s16 }
  0x9d   : > { %p12626_p8 = pnand %p12624_p7, %p12918_p0 }
  0x9e   : > { %p12633_p6 = por %p12632_p1, %p12631_p13 }
  0x9f   : > { %p12627_p11 = pneg %p12626_p8 }
  0xa1   : > { %p12634_p9 = pnand %p12633_p6, %p12627_p11 }
  0xa3   : > { %12637 = shalt.err (!%p12634_p9)
}
  0xa4   : > { %12309 = dma.hbm_to_vmem [thread:$0]  (!%p12902_p12), %s16550_s5, 16, %s318_s17, [#allocation14]  }
  0xa5   : > { %s12638_s25 = scalar_lea.hbm %s16552_s7, 16 }
  0xa6   : > { %p12639_p5 = scmp.ne.s32.totalorder %s16552_s7, %s12638_s25  ;;  %p12645_p3 = scmp.lt.u32.totalorder %s12638_s25, %s16552_s7 }
  0xa8   : > { %p12641_p10 = pnand %p12639_p5, %p12918_p0 }
  0xaa   : > { %p12642_p2 = pneg %p12641_p10 }
  0xac   : > { %p12647_p4 = pnand %p12645_p3, %p12642_p2 }
  0xae   : > { %12650 = shalt.err (!%p12647_p4)
}
  0xaf   : > { %s12651_s28 = scalar_lea.vmem %s340_s27, 16  ;;  %s12658_s17 = scalar_lea.vmem %s340_s27, 32 }
  0xb0   : > { %p12652_p7 = scmp.ne.s32.totalorder %s340_s27, %s12651_s28  ;;  %p12659_p13 = scmp.lt.s32.totalorder %s340_s27, %s340_s27 }
  0xb1   : > { %p12660_p1 = scmp.lt.s32.totalorder %s12658_s17, %s12651_s28 }
  0xb2   : > { %p12654_p8 = pnand %p12652_p7, %p12918_p0 }
  0xb3   : > { %p12661_p6 = por %p12660_p1, %p12659_p13 }
  0xb4   : > { %p12655_p11 = pneg %p12654_p8 }
  0xb6   : > { %p12662_p9 = pnand %p12661_p6, %p12655_p11 }
  0xb8   : > { %12665 = shalt.err (!%p12662_p9)
}
  0xb9   : > { %12315 = dma.hbm_to_vmem [thread:$0]  (!%p12902_p12), %s16552_s7, 16, %s340_s27, [#allocation17]  }
  0xba   : > { %s12787_s22 = smov [#allocation19]   ;;  %s12666_s15 = scalar_lea.hbm %s16553_s8, 16 }
  0xbb   : > { %s350_s11 = sshll.u32 %s12787_s22, 4  ;;  %p12667_p5 = scmp.ne.s32.totalorder %s16553_s8, %s12666_s15  ;;  %s351_s11 = int_to_ptr.vmem [resolvable:$true] %s350_s11 }
  0xbc   : > { %p12673_p3 = scmp.lt.u32.totalorder %s12666_s15, %s16553_s8 }
  0xbd   : > { %p12669_p10 = pnand %p12667_p5, %p12918_p0 }
  0xbf   : > { %p12670_p2 = pneg %p12669_p10 }
  0xc1   : > { %p12675_p4 = pnand %p12673_p3, %p12670_p2 }
  0xc3   : > { %12678 = shalt.err (!%p12675_p4)
}
  0xc4   : > { %s12679_s27 = scalar_lea.vmem %s351_s11, 16  ;;  %s12686_s30 = scalar_lea.vmem %s351_s11, 32 }
  0xc5   : > { %p12680_p7 = scmp.ne.s32.totalorder %s351_s11, %s12679_s27  ;;  %p12687_p13 = scmp.lt.s32.totalorder %s351_s11, %s351_s11 }
  0xc6   : > { %p12688_p1 = scmp.lt.s32.totalorder %s12686_s30, %s12679_s27 }
  0xc7   : > { %p12682_p8 = pnand %p12680_p7, %p12918_p0 }
  0xc8   : > { %p12689_p6 = por %p12688_p1, %p12687_p13 }
  0xc9   : > { %p12683_p11 = pneg %p12682_p8 }
  0xcb   : > { %p12690_p9 = pnand %p12689_p6, %p12683_p11 }
  0xcd   : > { %12693 = shalt.err (!%p12690_p9)
}
  0xce   : > { %12318 = dma.hbm_to_vmem [thread:$0]  (!%p12902_p12), %s16553_s8, 16, %s351_s11, [#allocation20]  }
  0xcf   : > { %p16622_p5 = scmp.ne.s32.totalorder %s16617_s21, 0 }
  0xd1   : > { %371 = sbr.rel (%p16622_p5) target bundleno = 2515 (0x9d3), region = 56 }
  0xd8   : > { %p16623_p10 = scmp.eq.s32.totalorder %s12864_s13, 0 }
  0xda   : > { %12739 = dma.done.wait (%p16623_p10), [#allocation8], 51200   ;;  %p16624_p0 = pmov %p16623_p10 }
  0xdc   : > { %12741 = vsyncadd (%p16624_p0), [#allocation8], 4294916096  ;;  %p16625_p2 = pmov %p16624_p0 }
  0xdd   : > { %p16626_p3 = pmov %p16624_p0 }
  0xde   : > { %12743 = dma.done.wait (%p16625_p2), [#allocation11], 20480  }
  0xdf   : > { %12745 = vsyncadd (%p16626_p3), [#allocation11], 4294946816  ;;  %p16627_p4 = pmov %p16624_p0 }
  0xe0   : > { %p16628_p12 = pmov %p16624_p0 }
  0xe1   : > { %12747 = dma.done.wait (%p16627_p4), [#allocation14], 8208  }
  0xe2   : > { %12749 = vsyncadd (%p16628_p12), [#allocation14], 4294959088  ;;  %p16629_p7 = pmov %p16624_p0 }
  0xe3   : > { %p16630_p8 = pmov %p16624_p0 }
  0xe4   : > { %12751 = dma.done.wait (%p16629_p7), [#allocation17], 32  }
  0xe5   : > { %12753 = vsyncadd (%p16630_p8), [#allocation17], 4294967264  ;;  %p16631_p11 = pmov %p16624_p0 }
  0xe6   : > { %p16632_p13 = pmov %p16624_p0 }
  0xe7   : > { %12755 = dma.done.wait (%p16631_p11), [#allocation20], 16  }
  0xe8   : > { %12757 = vsyncadd (%p16632_p13), [#allocation20], 4294967280  ;;  %v16573_v0 = vmov 0.0|0.0   ;;  %v12789_v1 = vmov 0.0   ;;  %v1053_v2 = vld [vmem:[#allocation7 + $0x280] sm:$0xff]  ;;  %v1054_v3 = vld [vmem:[#allocation7 + $0x288] sm:$0xff] }
  0xe9   : > { %10812 = vmatprep.subr.bf16.mxu0 %v16573_v0  ;;  %11852 = vmatprep.subr.bf16.mxu1 %v16573_v0  ;;  %443 = vst [vmem:[#allocation2 + $0x18] sm:$0xff] %v12789_v1  ;;  %444 = vst [vmem:[#allocation2 + $0x20] sm:$0xff] %v12789_v1  ;;  %v1085_v4 = vld [vmem:[#allocation7 + $0x380] sm:$0xff]  ;;  %v10813_v5 = vpack.c.bf16 %v1054_v3, %v1053_v2  ;;  %v1086_v6 = vld [vmem:[#allocation7 + $0x388] sm:$0xff]  ;;  %p435_p1 = scmp.lt.s32.totalorder %s12864_s13, 1  ;;  %s432_s22 = sand.u32 1, %s12768_s10  }
  0xea   : > { %440 = vst [vmem:[#allocation2] sm:$0xff] %v12789_v1  ;;  %441 = vst [vmem:[#allocation2 + $0x8] sm:$0xff] %v12789_v1  ;;  %v1055_v7 = vld [vmem:[#allocation7 + $0x290] sm:$0xff]  ;;  %v1056_v8 = vld [vmem:[#allocation7 + $0x298] sm:$0xff]  ;;  %v13221_v9 = vpack.c.bf16 %v1086_v6, %v1085_v4  ;;  %s9134_s11 = sshll.u32 %s432_s22, 8  ;;  %s9147_s1 = sshll.u32 %s12864_s13, 12 }
  0xeb   : > { %442 = vst [vmem:[#allocation2 + $0x10] sm:$0xf] %v12789_v1  ;;  %445 = vst [vmem:[#allocation2 + $0x28] sm:$0xf] %v12789_v1  ;;  %v1087_v10 = vld [vmem:[#allocation7 + $0x390] sm:$0xff]  ;;  %v1088_v11 = vld [vmem:[#allocation7 + $0x398] sm:$0xff]  ;;  %10814 = vmatpush1.bf16.msra.mxu0 %v10813_v5  ;;  %v10816_v12 = vpack.c.bf16 %v1056_v8, %v1055_v7  ;;  %s16496_s23 = scalar_lea.hbm %s16554_s9, %s9147_s1 }
  0xec   : > { %446 = vst [vmem:[#allocation2 + $0x30] sm:$0xff] %v12789_v1  ;;  %447 = vst [vmem:[#allocation2 + $0x38] sm:$0xff] %v12789_v1  ;;  %11868 = vmatpush1.bf16.msra.mxu1 %v13221_v9  ;;  %10815 = vmatprep.subr.bf16.mxu0 %v16573_v0  ;;  %v13225_v13 = vpack.c.bf16 %v1088_v11, %v1087_v10  ;;  %v1057_v14 = vld [vmem:[#allocation7 + $0x2a0] sm:$0xff]  ;;  %v1058_v15 = vld [vmem:[#allocation7 + $0x2a8] sm:$0xff]  ;;  %s436_s18 = scalar_select %p435_p1, %s12864_s13, 1 }
  0xed   : > { %448 = vst [vmem:[#allocation2 + $0x40] sm:$0xf] %v12789_v1  ;;  %449 = vst [vmem:[#allocation2 + $0x48] sm:$0xff] %v12789_v1  ;;  %11853 = vmatprep.subr.bf16.mxu1 %v16573_v0  ;;  %v1089_v16 = vld [vmem:[#allocation7 + $0x3a0] sm:$0xff]  ;;  %v1090_v17 = vld [vmem:[#allocation7 + $0x3a8] sm:$0xff]  ;;  %v10819_v18 = vpack.c.bf16 %v1058_v15, %v1057_v14  ;;  %s16430_s14 = scalar_lea.vmem [#allocation21], %s9134_s11 }
  0xee   : > { %450 = vst [vmem:[#allocation2 + $0x50] sm:$0xff] %v12789_v1  ;;  %451 = vst [vmem:[#allocation2 + $0x58] sm:$0xf] %v12789_v1  ;;  %v13231_v19 = vpack.c.bf16 %v1090_v17, %v1089_v16  ;;  %v1059_v20 = vld [vmem:[#allocation7 + $0x2b0] sm:$0xff]  ;;  %v1060_v21 = vld [vmem:[#allocation7 + $0x2b8] sm:$0xff]  ;;  %s9146_s21 = sshll.u32 %s436_s18, 8 }
  0xef   : > { %452 = vst [vmem:[#allocation2 + $0x60] sm:$0xff] %v12789_v1  ;;  %453 = vst [vmem:[#allocation2 + $0x68] sm:$0xff] %v12789_v1  ;;  %10817 = vmatpush1.bf16.msra.mxu0 %v10816_v12  ;;  %v1091_v22 = vld [vmem:[#allocation7 + $0x3b0] sm:$0xff]  ;;  %v1092_v23 = vld [vmem:[#allocation7 + $0x3b8] sm:$0xff]  ;;  %v10822_v24 = vpack.c.bf16 %v1060_v21, %v1059_v20  ;;  %s13248_s16 = scalar_lea.vmem %s16545_s0, %s9146_s21  ;;  %s8973_s15 = sshll.u32 %s16430_s14, 4  ;;  %s16498_s15 = int_to_ptr.vmem [resolvable:$true] %s8973_s15 }
  0xf0   : > { %454 = vst [vmem:[#allocation2 + $0x70] sm:$0xf] %v12789_v1  ;;  %455 = vst [vmem:[#allocation2 + $0x78] sm:$0xff] %v12789_v1  ;;  %11869 = vmatpush1.bf16.msra.mxu1 %v13225_v13  ;;  %10818 = vmatprep.subr.bf16.mxu0 %v16573_v0  ;;  %v13237_v25 = vpack.c.bf16 %v1092_v23, %v1091_v22  ;;  %v1061_v26 = vld [vmem:[#allocation7 + $0x2c0] sm:$0xff]  ;;  %v1062_v27 = vld [vmem:[#allocation7 + $0x2c8] sm:$0xff]  ;;  %s16504_s13 = scalar_lea.sflag [#allocation9], %s432_s22 }
  0xf1   : > { %456 = vst [vmem:[#allocation2 + $0x80] sm:$0xff] %v12789_v1  ;;  %457 = vst [vmem:[#allocation2 + $0x88] sm:$0xf] %v12789_v1  ;;  %11854 = vmatprep.subr.bf16.mxu1 %v16573_v0  ;;  %v1093_v28 = vld [vmem:[#allocation7 + $0x3c0] sm:$0xff]  ;;  %v1094_v29 = vld [vmem:[#allocation7 + $0x3c8] sm:$0xff]  ;;  %v10825_v30 = vpack.c.bf16 %v1062_v27, %v1061_v26  ;;  %s12694_s26 = scalar_lea.vmem %s16498_s15, 4096 }
  0xf2   : > { %458 = vst [vmem:[#allocation2 + $0x90] sm:$0xff] %v12789_v1  ;;  %459 = vst [vmem:[#allocation2 + $0x98] sm:$0xff] %v12789_v1  ;;  %v13242_v31 = vpack.c.bf16 %v1094_v29, %v1093_v28  ;;  %v1063_v32 = vld [vmem:[#allocation7 + $0x2d0] sm:$0xff]  ;;  %v1064_v33 = vld [vmem:[#allocation7 + $0x2d8] sm:$0xff]  ;;  %p12695_p6 = scmp.ne.s32.totalorder %s16498_s15, %s12694_s26  ;;  %p17007_p9 = scmp.ne.s32.totalorder %s16614_s19, 0 }
  0xf3   : > { %460 = vst [vmem:[#allocation2 + $0xa0] sm:$0xf] %v12789_v1  ;;  %461 = vst [vmem:[#allocation2 + $0xa8] sm:$0xff] %v12789_v1  ;;  %10820 = vmatpush1.bf16.msra.mxu0 %v10819_v18  ;;  %v1095_v34 = vld [vmem:[#allocation7 + $0x3d0] sm:$0xff]  ;;  %v1096_v35 = vld [vmem:[#allocation7 + $0x3d8] sm:$0xff]  ;;  %v10828_v36 = vpack.c.bf16 %v1064_v33, %v1063_v32  ;;  %s12790_s27 = smov [#allocation21]  }
  0xf4   : > { %462 = vst [vmem:[#allocation2 + $0xb0] sm:$0xff] %v12789_v1  ;;  %463 = vst [vmem:[#allocation2 + $0xb8] sm:$0xf] %v12789_v1  ;;  %11870 = vmatpush1.bf16.msra.mxu1 %v13231_v19  ;;  %10821 = vmatprep.subr.bf16.mxu0 %v16573_v0  ;;  %v13252_v37 = vpack.c.bf16 %v1096_v35, %v1095_v34  ;;  %v1065_v38 = vld [vmem:[#allocation7 + $0x2e0] sm:$0xff]  ;;  %v1066_v39 = vld [vmem:[#allocation7 + $0x2e8] sm:$0xff]  ;;  %p12696_p5 = pnand %p12695_p6, %p17007_p9  ;;  %s12698_s30 = sshll.u32 %s12790_s27, 4  ;;  %s12699_s30 = int_to_ptr.vmem [resolvable:$false] %s12698_s30 }
  0xf5   : > { %464 = vst [vmem:[#allocation2 + $0xc0] sm:$0xff] %v12789_v1  ;;  %465 = vst [vmem:[#allocation2 + $0xc8] sm:$0xff] %v12789_v1  ;;  %11855 = vmatprep.subr.bf16.mxu1 %v16573_v0  ;;  %v1097_v40 = vld [vmem:[#allocation7 + $0x3e0] sm:$0xff]  ;;  %v1098_v41 = vld [vmem:[#allocation7 + $0x3e8] sm:$0xff]  ;;  %v10831_v46 = vpack.c.bf16 %v1066_v39, %v1065_v38  ;;  %s12700_s28 = scalar_lea.vmem %s12699_s30, 8192  ;;  %p12701_p0 = scmp.lt.s32.totalorder %s16498_s15, %s12699_s30 }
  0xf6   : > { %466 = vst [vmem:[#allocation2 + $0xd0] sm:$0xf] %v12789_v1  ;;  %467 = vst [vmem:[#allocation2 + $0xd8] sm:$0xff] %v12789_v1  ;;  %v924_v42 = vld [vmem:[#allocation2 + $0x19] sm:$0xff]  ;;  %v13256_v43 = vld [vmem:[%s13248_s16 + $0x30] sm:$0xff]  ;;  %v13269_v50 = vpack.c.bf16 %v1098_v41, %v1097_v40  ;;  %p12697_p10 = pneg %p12696_p5  ;;  %p12702_p2 = scmp.lt.s32.totalorder %s12700_s28, %s12694_s26 }
  0xf7   : > { %468 = vst [vmem:[#allocation2 + $0xe0] sm:$0xff] %v12789_v1  ;;  %469 = vst [vmem:[#allocation2 + $0xe8] sm:$0xf] %v12789_v1  ;;  %10823 = vmatpush1.bf16.msra.mxu0 %v10822_v24  ;;  %v1067_v44 = vld [vmem:[#allocation7 + $0x2f0] sm:$0xff]  ;;  %1197 = vmatprep.mubr.f32.mxu0 %v924_v42  ;;  %v13259_v45 = vld [vmem:[%s13248_s16 + $0x38] sm:$0xff] }
  0xf8   : > { %470 = vst [vmem:[#allocation2 + $0xf0] sm:$0xff] %v12789_v1  ;;  %471 = vst [vmem:[#allocation2 + $0xf8] sm:$0xff] %v12789_v1  ;;  %11871 = vmatpush1.bf16.msra.mxu1 %v13237_v25  ;;  %10824 = vmatprep.subr.bf16.mxu0 %v16573_v0  ;;  %v1068_v47 = vld [vmem:[#allocation7 + $0x2f8] sm:$0xff]  ;;  %v554_v48 = vld [vmem:[%s13248_s16] sm:$0xff]  ;;  %p12703_p3 = por %p12702_p2, %p12701_p0 }
  0xf9   : > { %472 = vst [vmem:[#allocation2 + $0x100] sm:$0xf] %v12789_v1  ;;  %473 = vst [vmem:[#allocation2 + $0x108] sm:$0xff] %v12789_v1  ;;  %11856 = vmatprep.subr.bf16.mxu1 %v16573_v0  ;;  %v13265_v49 = vld [vmem:[%s13248_s16 + $0x40] sm:$0xff]  ;;  %v13272_v52 = vld [vmem:[%s13248_s16 + $0x48] sm:$0xff]  ;;  %v10834_v60 = vpack.c.bf16 %v1068_v47, %v1067_v44 }
  0xfa   : > { %474 = vst [vmem:[#allocation2 + $0x110] sm:$0xff] %v12789_v1  ;;  %475 = vst [vmem:[#allocation2 + $0x118] sm:$0xf] %v12789_v1  ;;  %v1099_v51 = vld [vmem:[#allocation7 + $0x3f0] sm:$0xff]  ;;  %v555_v53 = vld [vmem:[%s13248_s16 + $0x8] sm:$0xff]  ;;  %p12704_p4 = pnand %p12703_p3, %p12697_p10 }
  0xfb   : > { %476 = vst [vmem:[#allocation2 + $0x120] sm:$0xff] %v12789_v1  ;;  %477 = vst [vmem:[#allocation2 + $0x128] sm:$0xff] %v12789_v1  ;;  %10826 = vmatpush1.bf16.msra.mxu0 %v10825_v30  ;;  %v1100_v54 = vld [vmem:[#allocation7 + $0x3f8] sm:$0xff]  ;;  %v556_v55 = vld [vmem:[%s13248_s16 + $0x10] sm:$0xff] }
  0xfc   : > { %478 = vst [vmem:[#allocation2 + $0x130] sm:$0xf] %v12789_v1  ;;  %479 = vst [vmem:[#allocation2 + $0x138] sm:$0xff] %v12789_v1  ;;  %11872 = vmatpush1.bf16.msra.mxu1 %v13242_v31  ;;  %10827 = vmatprep.subr.bf16.mxu0 %v16573_v0  ;;  %v13280_v56 = vld [vmem:[%s13248_s16 + $0x50] sm:$0xff]  ;;  %v13283_v57 = vld [vmem:[%s13248_s16 + $0x58] sm:$0xff]  ;;  %v13297_v2 = vpack.c.bf16 %v1100_v54, %v1099_v51 }
  0xfd   : > { %480 = vst [vmem:[#allocation2 + $0x140] sm:$0xff] %v12789_v1  ;;  %481 = vst [vmem:[#allocation2 + $0x148] sm:$0xf] %v12789_v1  ;;  %11857 = vmatprep.subr.bf16.mxu1 %v16573_v0  ;;  %v557_v58 = vld [vmem:[%s13248_s16 + $0x18] sm:$0xff]  ;;  %v558_v59 = vld [vmem:[%s13248_s16 + $0x20] sm:$0xff] }
  0xfe   : > { %482 = vst [vmem:[#allocation2 + $0x150] sm:$0xff] %v12789_v1  ;;  %483 = vst [vmem:[#allocation2 + $0x158] sm:$0xff] %v12789_v1  ;;  %v1069_v61 = vld [vmem:[#allocation7 + $0x300] sm:$0xff]  ;;  %v13290_v62 = vld [vmem:[%s13248_s16 + $0x60] sm:$0xff] }
  0xff   : > { %484 = vst [vmem:[#allocation2 + $0x160] sm:$0xf] %v12789_v1  ;;  %485 = vst [vmem:[#allocation2 + $0x168] sm:$0xff] %v12789_v1  ;;  %10829 = vmatpush1.bf16.msra.mxu0 %v10828_v36  ;;  %v13293_v63 = vld [vmem:[%s13248_s16 + $0x68] sm:$0xff]  ;;  %v1070_v3 = vld [vmem:[#allocation7 + $0x308] sm:$0xff] }
 0x100   : > { %486 = vst [vmem:[#allocation2 + $0x170] sm:$0xff] %v12789_v1  ;;  %487 = vst [vmem:[#allocation2 + $0x178] sm:$0xf] %v12789_v1  ;;  %11873 = vmatpush1.bf16.msra.mxu1 %v13252_v37  ;;  %10830 = vmatprep.subr.bf16.mxu0 %v16573_v0  ;;  %v559_v4 = vld [vmem:[%s13248_s16 + $0x28] sm:$0xff]  ;;  %v13303_v5 = vld [vmem:[%s13248_s16 + $0x70] sm:$0xff]  ;;  %v10837_v11 = vpack.c.bf16 %v1070_v3, %v1069_v61 }
 0x101   : > { %488 = vst [vmem:[#allocation2 + $0x180] sm:$0xff] %v12789_v1  ;;  %489 = vst [vmem:[#allocation2 + $0x188] sm:$0xff] %v12789_v1  ;;  %11858 = vmatprep.subr.bf16.mxu1 %v16573_v0  ;;  %v1101_v6 = vld [vmem:[#allocation7 + $0x400] sm:$0xff]  ;;  %v1102_v7 = vld [vmem:[#allocation7 + $0x408] sm:$0xff] }
 0x102   : > { %490 = vst [vmem:[#allocation2 + $0x190] sm:$0xf] %v12789_v1  ;;  %491 = vst [vmem:[#allocation2 + $0x198] sm:$0xff] %v12789_v1  ;;  %v13307_v8 = vld [vmem:[%s13248_s16 + $0x78] sm:$0xff]  ;;  %v13313_v12 = vpack.c.bf16 %v1102_v7, %v1101_v6  ;;  %v1071_v14 = vld [vmem:[#allocation7 + $0x310] sm:$0xff] }
 0x103   : > { %492 = vst [vmem:[#allocation2 + $0x1a0] sm:$0xff] %v12789_v1  ;;  %493 = vst [vmem:[#allocation2 + $0x1a8] sm:$0xf] %v12789_v1  ;;  %10832 = vmatpush1.bf16.msra.mxu0 %v10831_v46  ;;  %v1072_v15 = vld [vmem:[#allocation7 + $0x318] sm:$0xff]  ;;  %v1103_v16 = vld [vmem:[#allocation7 + $0x410] sm:$0xff] }
 0x104   : > { %494 = vst [vmem:[#allocation2 + $0x1b0] sm:$0xff] %v12789_v1  ;;  %495 = vst [vmem:[#allocation2 + $0x1b8] sm:$0xff] %v12789_v1  ;;  %11874 = vmatpush1.bf16.msra.mxu1 %v13269_v50  ;;  %10833 = vmatprep.subr.bf16.mxu0 %v16573_v0  ;;  %v1104_v17 = vld [vmem:[#allocation7 + $0x418] sm:$0xff]  ;;  %v10840_v18 = vpack.c.bf16 %v1072_v15, %v1071_v14  ;;  %v1073_v21 = vld [vmem:[#allocation7 + $0x320] sm:$0xff] }
 0x105   : > { %496 = vst [vmem:[#allocation2 + $0x1c0] sm:$0xf] %v12789_v1  ;;  %497 = vst [vmem:[#allocation2 + $0x1c8] sm:$0xff] %v12789_v1  ;;  %11859 = vmatprep.subr.bf16.mxu1 %v16573_v0  ;;  %v13318_v20 = vpack.c.bf16 %v1104_v17, %v1103_v16  ;;  %v1074_v22 = vld [vmem:[#allocation7 + $0x328] sm:$0xff]  ;;  %v1105_v23 = vld [vmem:[#allocation7 + $0x420] sm:$0xff] }
 0x106   : > { %498 = vst [vmem:[#allocation2 + $0x1d0] sm:$0xff] %v12789_v1  ;;  %499 = vst [vmem:[#allocation2 + $0x1d8] sm:$0xf] %v12789_v1  ;;  %v1106_v24 = vld [vmem:[#allocation7 + $0x428] sm:$0xff]  ;;  %v10843_v26 = vpack.c.bf16 %v1074_v22, %v1073_v21  ;;  %v13322_v27 = vld [vmem:[%s13248_s16 + $0x80] sm:$0xff] }
 0x107   : > { %500 = vst [vmem:[#allocation3] sm:$0xff] %v12789_v1  ;;  %501 = vst [vmem:[#allocation3 + $0x8] sm:$0xff] %v12789_v1  ;;  %10835 = vmatpush1.bf16.msra.mxu0 %v10834_v60  ;;  %v13325_v28 = vld [vmem:[%s13248_s16 + $0x88] sm:$0xff]  ;;  %v13329_v29 = vpack.c.bf16 %v1106_v24, %v1105_v23  ;;  %v1075_v30 = vld [vmem:[#allocation7 + $0x330] sm:$0xff] }
 0x108   : > { %502 = vst [vmem:[#allocation3 + $0x10] sm:$0x3] %v12789_v1  ;;  %503 = vst [vmem:[#allocation3 + $0x18] sm:$0xff] %v12789_v1  ;;  %11875 = vmatpush1.bf16.msra.mxu1 %v13297_v2  ;;  %10836 = vmatprep.subr.bf16.mxu0 %v16573_v0  ;;  %v1076_v32 = vld [vmem:[#allocation7 + $0x338] sm:$0xff]  ;;  %v1107_v33 = vld [vmem:[#allocation7 + $0x430] sm:$0xff] }
 0x109   : > { %504 = vst [vmem:[#allocation3 + $0x20] sm:$0xff] %v12789_v1  ;;  %505 = vst [vmem:[#allocation3 + $0x28] sm:$0x3] %v12789_v1  ;;  %11860 = vmatprep.subr.bf16.mxu1 %v16573_v0  ;;  %v1108_v34 = vld [vmem:[#allocation7 + $0x438] sm:$0xff]  ;;  %v13335_v35 = vld [vmem:[%s13248_s16 + $0x90] sm:$0xff]  ;;  %v10846_v38 = vpack.c.bf16 %v1076_v32, %v1075_v30 }
 0x10a   : > { %506 = vst [vmem:[#allocation3 + $0x30] sm:$0xff] %v12789_v1  ;;  %507 = vst [vmem:[#allocation3 + $0x38] sm:$0xff] %v12789_v1  ;;  %v13338_v36 = vld [vmem:[%s13248_s16 + $0x98] sm:$0xff]  ;;  %v13343_v39 = vld [vmem:[%s13248_s16 + $0xa0] sm:$0xff]  ;;  %v13347_v40 = vpack.c.bf16 %v1108_v34, %v1107_v33 }
 0x10b   : > { %508 = vst [vmem:[#allocation3 + $0x40] sm:$0x3] %v12789_v1  ;;  %509 = vst [vmem:[#allocation3 + $0x48] sm:$0xff] %v12789_v1  ;;  %10838 = vmatpush1.bf16.msra.mxu0 %v10837_v11  ;;  %v1077_v41 = vld [vmem:[#allocation7 + $0x340] sm:$0xff]  ;;  %v1078_v42 = vld [vmem:[#allocation7 + $0x348] sm:$0xff] }
 0x10c   : > { %510 = vst [vmem:[#allocation3 + $0x50] sm:$0xff] %v12789_v1  ;;  %511 = vst [vmem:[#allocation3 + $0x58] sm:$0x3] %v12789_v1  ;;  %11876 = vmatpush1.bf16.msra.mxu1 %v13313_v12  ;;  %10839 = vmatprep.subr.bf16.mxu0 %v16573_v0  ;;  %v13350_v44 = vld [vmem:[%s13248_s16 + $0xa8] sm:$0xff]  ;;  %v1109_v46 = vld [vmem:[#allocation7 + $0x440] sm:$0xff] }
 0x10d   : > { %512 = vst [vmem:[#allocation3 + $0x60] sm:$0xff] %v12789_v1  ;;  %513 = vst [vmem:[#allocation3 + $0x68] sm:$0xff] %v12789_v1  ;;  %11861 = vmatprep.subr.bf16.mxu1 %v16573_v0  ;;  %v1110_v47 = vld [vmem:[#allocation7 + $0x448] sm:$0xff]  ;;  %v1112_v60 = vld [vmem:[#allocation7 + $0x458] sm:$0xff] }
 0x10e   : > { %514 = vst [vmem:[#allocation3 + $0x70] sm:$0x3] %v12789_v1  ;;  %515 = vst [vmem:[#allocation3 + $0x78] sm:$0xff] %v12789_v1  ;;  %v13359_v51 = vld [vmem:[%s13248_s16 + $0xb8] sm:$0xff]  ;;  %v13365_v54 = vpack.c.bf16 %v1110_v47, %v1109_v46  ;;  %v13369_v61 = vld [vmem:[%s13248_s16 + $0xc0] sm:$0xff] }
 0x10f   : > { %516 = vst [vmem:[#allocation3 + $0x80] sm:$0xff] %v12789_v1  ;;  %517 = vst [vmem:[#allocation3 + $0x88] sm:$0x3] %v12789_v1  ;;  %10841 = vmatpush1.bf16.msra.mxu0 %v10840_v18  ;;  %v13372_v3 = vld [vmem:[%s13248_s16 + $0xc8] sm:$0xff]  ;;  %v1081_v7 = vld [vmem:[#allocation7 + $0x360] sm:$0xff] }
 0x110   : > { %518 = vst [vmem:[#allocation3 + $0x90] sm:$0xff] %v12789_v1  ;;  %519 = vst [vmem:[#allocation3 + $0x98] sm:$0xff] %v12789_v1  ;;  %11877 = vmatpush1.bf16.msra.mxu1 %v13318_v20  ;;  %10842 = vmatprep.subr.bf16.mxu0 %v16573_v0  ;;  %v1113_v11 = vld [vmem:[#allocation7 + $0x460] sm:$0xff]  ;;  %v1114_v14 = vld [vmem:[#allocation7 + $0x468] sm:$0xff] }
 0x111   : > { %520 = vst [vmem:[#allocation3 + $0xa0] sm:$0x3] %v12789_v1  ;;  %521 = vst [vmem:[#allocation3 + $0xa8] sm:$0xff] %v12789_v1  ;;  %11862 = vmatprep.subr.bf16.mxu1 %v16573_v0  ;;  %v13382_v15 = vld [vmem:[%s13248_s16 + $0xd0] sm:$0xff]  ;;  %v13385_v16 = vld [vmem:[%s13248_s16 + $0xd8] sm:$0xff]  ;;  %v13391_v21 = vpack.c.bf16 %v1114_v14, %v1113_v11 }
 0x112   : > { %522 = vst [vmem:[#allocation3 + $0xb0] sm:$0xff] %v12789_v1  ;;  %523 = vst [vmem:[#allocation3 + $0xb8] sm:$0x3] %v12789_v1  ;;  %v1083_v18 = vld [vmem:[#allocation7 + $0x370] sm:$0xff]  ;;  %v1084_v22 = vld [vmem:[#allocation7 + $0x378] sm:$0xff] }
 0x113   : > { %524 = vst [vmem:[#allocation3 + $0xc0] sm:$0xff] %v12789_v1  ;;  %525 = vst [vmem:[#allocation3 + $0xc8] sm:$0xff] %v12789_v1  ;;  %10844 = vmatpush1.bf16.msra.mxu0 %v10843_v26  ;;  %v13394_v23 = vld [vmem:[%s13248_s16 + $0xe0] sm:$0xff]  ;;  %v13397_v24 = vld [vmem:[%s13248_s16 + $0xe8] sm:$0xff]  ;;  %v10858_v34 = vpack.c.bf16 %v1084_v22, %v1083_v18 }
 0x114   : > { %526 = vst [vmem:[#allocation3 + $0xd0] sm:$0x3] %v12789_v1  ;;  %527 = vst [vmem:[#allocation3 + $0xd8] sm:$0xff] %v12789_v1  ;;  %11878 = vmatpush1.bf16.msra.mxu1 %v13329_v29  ;;  %10845 = vmatprep.subr.bf16.mxu0 %v16573_v0  ;;  %v1115_v26 = vld [vmem:[#allocation7 + $0x470] sm:$0xff]  ;;  %v1116_v30 = vld [vmem:[#allocation7 + $0x478] sm:$0xff] }
 0x115   : > { %528 = vst [vmem:[#allocation3 + $0xe0] sm:$0xff] %v12789_v1  ;;  %529 = vst [vmem:[#allocation3 + $0xe8] sm:$0x3] %v12789_v1  ;;  %11863 = vmatprep.subr.bf16.mxu1 %v16573_v0  ;;  %v1117_v32 = vld [vmem:[#allocation7 + $0x480] sm:$0xff]  ;;  %v1118_v33 = vld [vmem:[#allocation7 + $0x488] sm:$0xff] }
 0x116   : > { %530 = vst [vmem:[#allocation3 + $0xf0] sm:$0xff] %v12789_v1  ;;  %531 = vst [vmem:[#allocation3 + $0xf8] sm:$0xff] %v12789_v1  ;;  %v1120_v46 = vld [vmem:[#allocation7 + $0x498] sm:$0xff]  ;;  %v1126_v22 = vld [vmem:[#allocation7 + $0x4c8] sm:$0xff] }
 0x117   : > { %532 = vst [vmem:[#allocation3 + $0x100] sm:$0x3] %v12789_v1  ;;  %533 = vst [vmem:[#allocation3 + $0x108] sm:$0xff] %v12789_v1  ;;  %10847 = vmatpush1.bf16.msra.mxu0 %v10846_v38  ;;  %v13404_v38 = vpack.c.bf16 %v1116_v30, %v1115_v26  ;;  %v925_v47 = vld [vmem:[#allocation2 + $0x21] sm:$0xff] }
 0x118   : > { %534 = vst [vmem:[#allocation3 + $0x110] sm:$0xff] %v12789_v1  ;;  %535 = vst [vmem:[#allocation3 + $0x118] sm:$0x3] %v12789_v1  ;;  %11879 = vmatpush1.bf16.msra.mxu1 %v13347_v40  ;;  %10848 = vmatprep.subr.bf16.mxu0 %v16573_v0  ;;  %v1124_v11 = vld [vmem:[#allocation7 + $0x4b8] sm:$0xff] }
 0x119   : > { %536 = vst [vmem:[#allocation3 + $0x120] sm:$0xff] %v12789_v1  ;;  %537 = vst [vmem:[#allocation3 + $0x128] sm:$0xff] %v12789_v1  ;;  %11864 = vmatprep.subr.bf16.mxu1 %v16573_v0 }
 0x11a   : > { %538 = vst [vmem:[#allocation3 + $0x130] sm:$0x3] %v12789_v1  ;;  %539 = vst [vmem:[#allocation3 + $0x138] sm:$0xff] %v12789_v1 }
 0x11b   : > { %540 = vst [vmem:[#allocation3 + $0x140] sm:$0xff] %v12789_v1  ;;  %541 = vst [vmem:[#allocation3 + $0x148] sm:$0x3] %v12789_v1 }
 0x11c   : > { %542 = vst [vmem:[#allocation3 + $0x150] sm:$0xff] %v12789_v1  ;;  %543 = vst [vmem:[#allocation3 + $0x158] sm:$0xff] %v12789_v1  ;;  %11880 = vmatpush1.bf16.msra.mxu1 %v13365_v54 }
 0x11d   : > { %544 = vst [vmem:[#allocation3 + $0x160] sm:$0x3] %v12789_v1  ;;  %545 = vst [vmem:[#allocation3 + $0x168] sm:$0xff] %v12789_v1  ;;  %11865 = vmatprep.subr.bf16.mxu1 %v16573_v0 }
 0x11e   : > { %546 = vst [vmem:[#allocation3 + $0x170] sm:$0xff] %v12789_v1  ;;  %547 = vst [vmem:[#allocation3 + $0x178] sm:$0x3] %v12789_v1 }
 0x11f   : > { %548 = vst [vmem:[#allocation3 + $0x180] sm:$0xff] %v12789_v1  ;;  %549 = vst [vmem:[#allocation3 + $0x188] sm:$0xff] %v12789_v1 }
 0x120   : > { %550 = vst [vmem:[#allocation3 + $0x190] sm:$0x3] %v12789_v1  ;;  %551 = vst [vmem:[#allocation3 + $0x198] sm:$0xff] %v12789_v1 }
 0x121   : > { %552 = vst [vmem:[#allocation3 + $0x1a0] sm:$0xff] %v12789_v1  ;;  %553 = vst [vmem:[#allocation3 + $0x1a8] sm:$0x3] %v12789_v1 }
 0x122   : > { %593 = vst [vmem:[#allocation2 + $0x7a] sm:$0xff] %v13256_v43  ;;  %594 = vst [vmem:[#allocation2 + $0x82] sm:$0xff] %v13259_v45 }
 0x123   : > { %587 = vst [vmem:[#allocation2 + $0x32] sm:$0xff] %v554_v48  ;;  %595 = vst [vmem:[#allocation2 + $0x92] sm:$0xff] %v13265_v49  ;;  %v13356_v48 = vld [vmem:[%s13248_s16 + $0xb0] sm:$0xff] }
 0x124   : > { %596 = vst [vmem:[#allocation2 + $0x9a] sm:$0xff] %v13272_v52  ;;  %588 = vst [vmem:[#allocation2 + $0x3a] sm:$0xff] %v555_v53  ;;  %v10849_v53 = vpack.c.bf16 %v1078_v42, %v1077_v41  ;;  %v10908_v41 = vpack.c.bf16 %v1118_v33, %v1117_v32  ;;  %v1119_v42 = vld [vmem:[#allocation7 + $0x490] sm:$0xff] }
 0x125   : > { %589 = vst [vmem:[#allocation2 + $0x4a] sm:$0xff] %v556_v55  ;;  %597 = vst [vmem:[#allocation2 + $0xaa] sm:$0xff] %v13280_v56  ;;  %v1079_v55 = vld [vmem:[#allocation7 + $0x350] sm:$0xff] }
 0x126   : > { %598 = vst [vmem:[#allocation2 + $0xb2] sm:$0xff] %v13283_v57  ;;  %590 = vst [vmem:[#allocation2 + $0x52] sm:$0xff] %v557_v58  ;;  %v1080_v58 = vld [vmem:[#allocation7 + $0x358] sm:$0xff]  ;;  %10850 = vmatpush1.bf16.msra.mxu0 %v10849_v53  ;;  %v1127_v32 = vld [vmem:[#allocation7 + $0x4d0] sm:$0xff] }
 0x127   : > { %591 = vst [vmem:[#allocation2 + $0x62] sm:$0xff] %v558_v59  ;;  %599 = vst [vmem:[#allocation2 + $0xc2] sm:$0xff] %v13290_v62  ;;  %v1111_v59 = vld [vmem:[#allocation7 + $0x450] sm:$0xff]  ;;  %10851 = vmatprep.subr.bf16.mxu0 %v16573_v0 }
 0x128   : > { %600 = vst [vmem:[#allocation2 + $0xca] sm:$0xff] %v13293_v63  ;;  %592 = vst [vmem:[#allocation2 + $0x6a] sm:$0xff] %v559_v4  ;;  %v10852_v4 = vpack.c.bf16 %v1080_v58, %v1079_v55  ;;  %v13378_v6 = vpack.c.bf16 %v1112_v60, %v1111_v59  ;;  %v10912_v55 = vpack.c.bf16 %v1120_v46, %v1119_v42  ;;  %v1121_v58 = vld [vmem:[#allocation7 + $0x4a0] sm:$0xff]  ;;  %v1122_v59 = vld [vmem:[#allocation7 + $0x4a8] sm:$0xff] }
 0x129   : > { %601 = vst [vmem:[#allocation2 + $0xda] sm:$0xff] %v13303_v5  ;;  %v996_v10 = vld [vmem:[#allocation2 + $0x7b] sm:$0xff]  ;;  %602 = vst [vmem:[#allocation2 + $0xe2] sm:$0xff] %v13307_v8  ;;  %v997_v53 = vld [vmem:[#allocation2 + $0x83] sm:$0xff] }
 0x12a   : > { %1462 = vmatprep.mubr.f32.mxu1 %v996_v10  ;;  %603 = vst [vmem:[#allocation2 + $0xf2] sm:$0xff] %v13322_v27  ;;  %604 = vst [vmem:[#allocation2 + $0xfa] sm:$0xff] %v13325_v28  ;;  %v1082_v10 = vld [vmem:[#allocation7 + $0x368] sm:$0xff]  ;;  %10853 = vmatpush1.bf16.msra.mxu0 %v10852_v4  ;;  %v894_v14 = vld [vmem:[#allocation2 + $0x30] sm:$0xff] }
 0x12b   : > { %605 = vst [vmem:[#allocation2 + $0x10a] sm:$0xff] %v13335_v35  ;;  %606 = vst [vmem:[#allocation2 + $0x112] sm:$0xff] %v13338_v36  ;;  %v10855_v17 = vpack.c.bf16 %v1082_v10, %v1081_v7  ;;  %11881 = vmatpush1.bf16.msra.mxu1 %v13378_v6  ;;  %10854 = vmatprep.subr.bf16.mxu0 %v16573_v0  ;;  %v926_v60 = vld [vmem:[#allocation2 + $0x31] sm:$0xff]  ;;  %v10916_v7 = vpack.c.bf16 %v1122_v59, %v1121_v58  ;;  %v1123_v10 = vld [vmem:[#allocation7 + $0x4b0] sm:$0xff] }
 0x12c   : > { %607 = vst [vmem:[#allocation2 + $0x122] sm:$0xff] %v13343_v39  ;;  %608 = vst [vmem:[#allocation2 + $0x12a] sm:$0xff] %v13350_v44  ;;  %11866 = vmatprep.subr.bf16.mxu1 %v16573_v0  ;;  %v998_v4 = vld [vmem:[#allocation2 + $0x93] sm:$0xff]  ;;  %v10920_v18 = vpack.c.bf16 %v1124_v11, %v1123_v10  ;;  %v13421_v33 = vld [vmem:[#allocation2 + $0x48] sm:$0xff] }
 0x12d   : > { %609 = vst [vmem:[#allocation2 + $0x13a] sm:$0xff] %v13356_v48  ;;  %610 = vst [vmem:[#allocation2 + $0x142] sm:$0xff] %v13359_v51  ;;  %v1000_v26 = vld [vmem:[#allocation2 + $0xab] sm:$0xff]  ;;  %v1130_v42 = vld [vmem:[#allocation7 + $0x4e8] sm:$0xff] }
 0x12e   : > { %611 = vst [vmem:[#allocation2 + $0x152] sm:$0xff] %v13369_v61  ;;  %612 = vst [vmem:[#allocation2 + $0x15a] sm:$0xff] %v13372_v3  ;;  %10856 = vmatpush1.bf16.msra.mxu0 %v10855_v17  ;;  %v999_v17 = vld [vmem:[#allocation2 + $0x9b] sm:$0xff] }
 0x12f   : > { %613 = vst [vmem:[#allocation2 + $0x16a] sm:$0xff] %v13382_v15  ;;  %614 = vst [vmem:[#allocation2 + $0x172] sm:$0xff] %v13385_v16  ;;  %11882 = vmatpush1.bf16.msra.mxu1 %v13391_v21  ;;  %10857 = vmatprep.subr.bf16.mxu0 %v16573_v0  ;;  %v13432_v46 = vld [vmem:[#allocation2 + $0x61] sm:$0xff]  ;;  %v13441_v58 = vld [vmem:[#allocation2 + $0x69] sm:$0xff] }
 0x130   : > { %615 = vst [vmem:[#allocation2 + $0x182] sm:$0xff] %v13394_v23  ;;  %616 = vst [vmem:[#allocation2 + $0x18a] sm:$0xff] %v13397_v24  ;;  %11867 = vmatprep.subr.bf16.mxu1 %v16573_v0  ;;  %v1003_v59 = vld [vmem:[#allocation2 + $0xcb] sm:$0xff] }
 0x131   : > { %v1006_v10 = vld [vmem:[#allocation2 + $0xf3] sm:$0xff]  ;;  %v1007_v11 = vld [vmem:[#allocation2 + $0xfb] sm:$0xff] }
 0x132   : > { %10859 = vmatpush1.bf16.msra.mxu0 %v10858_v34  ;;  %v1001_v34 = vld [vmem:[#allocation2 + $0xb3] sm:$0xff] }
 0x133   : > { %11883 = vmatpush1.bf16.msra.mxu1 %v13404_v38  ;;  %10860 = vmatprep.subr.bf16.mxu0 %v16573_v0 }
 0x134   : > { %10909 = vmatprep.subr.bf16.mxu1 %v10908_v41 }
 0x135   : > { %1198 = vmatmul.mubr.f32.vlgmr.msra.gmra.mrb[0].mxu0 %v12789_v1 }
 0x136   : > { %1463 = vmatmul.mubr.f32.vlgmr.msra.gmra.mrb[0].mxu1 %v13256_v43  ;;  %1202 = vmatprep.mubr.f32.mxu0 %v925_v47  ;;  %v927_v43 = vld [vmem:[#allocation2 + $0x39] sm:$0xff]  ;;  %v1002_v47 = vld [vmem:[#allocation2 + $0xc3] sm:$0xff] }
 0x137   : > { %10911 = vmatpush3.bf16.msra.mxu1 %v10908_v41  ;;  %1467 = vmatprep.mubr.f32.mxu1 %v997_v53 }
 0x138   : > { %10913 = vmatprep.subr.bf16.mxu1 %v10912_v55  ;;  %10862 = vmatpush1.bf16.msra.mxu0 %v13221_v9  ;;  %v1125_v9 = vld [vmem:[#allocation7 + $0x4c0] sm:$0xff] }
 0x139   : > { %1203 = vmatmul.mubr.f32.gmra.mrb[2].mxu0 %v12789_v1  ;;  %10863 = vmatprep.subr.bf16.mxu0 %v16573_v0  ;;  %v895_v1 = vld [vmem:[#allocation2 + $0x38] sm:$0xff]  ;;  %v10924_v30 = vpack.c.bf16 %v1126_v22, %v1125_v9  ;;  %v1013_v22 = vld [vmem:[#allocation2 + $0x143] sm:$0xff] }
 0x13a   : > { %1468 = vmatmul.mubr.f32.gmra.mrb[2].mxu1 %v13259_v45  ;;  %1207 = vmatprep.mubr.f32.mxu0 %v926_v60  ;;  %v928_v45 = vld [vmem:[#allocation2 + $0x49] sm:$0xff]  ;;  %v1012_v9 = vld [vmem:[#allocation2 + $0x13b] sm:$0xff] }
 0x13b   : > { %1472 = vmatprep.mubr.f32.mxu1 %v998_v4  ;;  %10915 = vmatpush3.bf16.msra.mxu1 %v10912_v55  ;;  %v1132_v55 = vld [vmem:[#allocation7 + $0x4f8] sm:$0xff]  ;;  %v1004_v4 = vld [vmem:[#allocation2 + $0xdb] sm:$0xff] }
 0x13c   : > { %10917 = vmatprep.subr.bf16.mxu1 %v10916_v7  ;;  %10865 = vmatpush1.bf16.msra.mxu0 %v13225_v13  ;;  %v1128_v13 = vld [vmem:[#allocation7 + $0x4d8] sm:$0xff] }
 0x13d   : > { %1208 = vmatmul.mubr.f32.gmra.mrb[4].mxu0 %v894_v14  ;;  %10866 = vmatprep.subr.bf16.mxu0 %v16573_v0  ;;  %v10928_v41 = vpack.c.bf16 %v1128_v13, %v1127_v32  ;;  %v1008_v14 = vld [vmem:[#allocation2 + $0x10b] sm:$0xff] }
 0x13e   : > { %1473 = vmatmul.mubr.f32.gmra.mrb[4].mxu1 %v13265_v49  ;;  %1212 = vmatprep.mubr.f32.mxu0 %v927_v43  ;;  %v13423_v49 = vld [vmem:[#allocation2 + $0x51] sm:$0xff]  ;;  %v13559_v32 = vld [vmem:[#allocation2 + $0x108] sm:$0xff] }
 0x13f   : > { %1477 = vmatprep.mubr.f32.mxu1 %v999_v17  ;;  %10919 = vmatpush3.bf16.msra.mxu1 %v10916_v7  ;;  %v1005_v7 = vld [vmem:[#allocation2 + $0xe3] sm:$0xff]  ;;  %v1009_v43 = vld [vmem:[#allocation2 + $0x113] sm:$0xff] }
 0x140   : > { %10921 = vmatprep.subr.bf16.mxu1 %v10920_v18  ;;  %10868 = vmatpush1.bf16.msra.mxu0 %v13231_v19  ;;  %v1129_v19 = vld [vmem:[#allocation7 + $0x4e0] sm:$0xff]  ;;  %v1010_v17 = vld [vmem:[#allocation2 + $0x123] sm:$0xff] }
 0x141   : > { %1213 = vmatmul.mubr.f32.gmra.mrb[6].mxu0 %v895_v1  ;;  %10869 = vmatprep.subr.bf16.mxu0 %v16573_v0  ;;  %v10932_v53 = vpack.c.bf16 %v1130_v42, %v1129_v19  ;;  %v1014_v1 = vld [vmem:[#allocation2 + $0x153] sm:$0xff]  ;;  %v13573_v19 = vld [vmem:[#allocation2 + $0x120] sm:$0xff]  ;;  %v13575_v42 = vld [vmem:[#allocation2 + $0x129] sm:$0xff] }
 0x142   : > { %1478 = vmatmul.mubr.f32.gmra.mrb[6].mxu1 %v13272_v52  ;;  %1217 = vmatprep.mubr.f32.mxu0 %v928_v45  ;;  %v13430_v52 = vld [vmem:[#allocation2 + $0x50] sm:$0xff] }
 0x143   : > { %1482 = vmatprep.mubr.f32.mxu1 %v1000_v26  ;;  %10923 = vmatpush3.bf16.msra.mxu1 %v10920_v18  ;;  %v1011_v18 = vld [vmem:[#allocation2 + $0x12b] sm:$0xff]  ;;  %v13552_v26 = vld [vmem:[#allocation2 + $0xf8] sm:$0xff] }
 0x144   : > { %10925 = vmatprep.subr.bf16.mxu1 %v10924_v30  ;;  %10871 = vmatpush1.bf16.msra.mxu0 %v13237_v25  ;;  %v1131_v25 = vld [vmem:[#allocation7 + $0x4f0] sm:$0xff]  ;;  %v13545_v45 = vld [vmem:[#allocation2 + $0xf0] sm:$0xff] }
 0x145   : > { %1218 = vmatmul.mubr.f32.gmra.mrb[8].mxu0 %v13421_v33  ;;  %10872 = vmatprep.subr.bf16.mxu0 %v16573_v0  ;;  %v10936_v60 = vpack.c.bf16 %v1132_v55, %v1131_v25  ;;  %v13561_v13 = vld [vmem:[#allocation2 + $0x111] sm:$0xff] }
 0x146   : > { %1483 = vmatmul.mubr.f32.gmra.mrb[8].mxu1 %v13280_v56  ;;  %1222 = vmatprep.mubr.f32.mxu0 %v13423_v49  ;;  %v13439_v56 = vld [vmem:[#allocation2 + $0x60] sm:$0xff]  ;;  %v811_v25 = vld [vmem:[#allocation7] sm:$0xff]  ;;  %v812_v55 = vld [vmem:[#allocation7 + $0x8] sm:$0xff] }
 0x147   : > { %1487 = vmatprep.mubr.f32.mxu1 %v1001_v34  ;;  %10927 = vmatpush3.bf16.msra.mxu1 %v10924_v30  ;;  %v13554_v30 = vld [vmem:[#allocation2 + $0x109] sm:$0xff] }
 0x148   : > { %10929 = vmatprep.subr.bf16.mxu1 %v10928_v41  ;;  %10874 = vmatpush1.bf16.msra.mxu0 %v13242_v31  ;;  %v13448_v31 = vld [vmem:[#allocation2 + $0x68] sm:$0xff]  ;;  %v13566_v34 = vld [vmem:[#allocation2 + $0x110] sm:$0xff] }
 0x149   : > { %1223 = vmatmul.mubr.f32.gmra.mrb[10].mxu0 %v13430_v52  ;;  %10875 = vmatprep.subr.bf16.mxu0 %v16573_v0 }
 0x14a   : > { %1488 = vmatmul.mubr.f32.gmra.mrb[10].mxu1 %v13283_v57  ;;  %1227 = vmatprep.mubr.f32.mxu0 %v13432_v46  ;;  %v13450_v57 = vld [vmem:[#allocation2 + $0x79] sm:$0xff] }
 0x14b   : > { %1492 = vmatprep.mubr.f32.mxu1 %v1002_v47  ;;  %10931 = vmatpush3.bf16.msra.mxu1 %v10928_v41  ;;  %v13568_v41 = vld [vmem:[#allocation2 + $0x121] sm:$0xff] }
 0x14c   : > { %10933 = vmatprep.subr.bf16.mxu1 %v10932_v53  ;;  %10877 = vmatpush1.bf16.msra.mxu0 %v13252_v37  ;;  %v13457_v37 = vld [vmem:[#allocation2 + $0x78] sm:$0xff]  ;;  %v13580_v47 = vld [vmem:[#allocation2 + $0x128] sm:$0xff] }
 0x14d   : > { %1228 = vmatmul.mubr.f32.gmra.mrb[12].mxu0 %v13439_v56  ;;  %10878 = vmatprep.subr.bf16.mxu0 %v16573_v0 }
 0x14e   : > { %1493 = vmatmul.mubr.f32.gmra.mrb[12].mxu1 %v13290_v62  ;;  %1232 = vmatprep.mubr.f32.mxu0 %v13441_v58  ;;  %v13459_v62 = vld [vmem:[#allocation2 + $0x81] sm:$0xff] }
 0x14f   : > { %1497 = vmatprep.mubr.f32.mxu1 %v1003_v59  ;;  %10935 = vmatpush3.bf16.msra.mxu1 %v10932_v53  ;;  %v13582_v53 = vld [vmem:[#allocation2 + $0x139] sm:$0xff] }
 0x150   : > { %10937 = vmatprep.subr.bf16.mxu1 %v10936_v60  ;;  %10880 = vmatpush1.bf16.msra.mxu0 %v13269_v50  ;;  %v13467_v50 = vld [vmem:[#allocation2 + $0x80] sm:$0xff]  ;;  %v13587_v59 = vld [vmem:[#allocation2 + $0x138] sm:$0xff] }
 0x151   : > { %1233 = vmatmul.mubr.f32.gmra.mrb[14].mxu0 %v13448_v31  ;;  %10881 = vmatprep.subr.bf16.mxu0 %v16573_v0 }
 0x152   : > { %1498 = vmatmul.mubr.f32.gmra.mrb[14].mxu1 %v13293_v63  ;;  %1237 = vmatprep.mubr.f32.mxu0 %v13450_v57  ;;  %v13469_v63 = vld [vmem:[#allocation2 + $0x91] sm:$0xff] }
 0x153   : > { %1502 = vmatprep.mubr.f32.mxu1 %v1004_v4  ;;  %10939 = vmatpush3.bf16.msra.mxu1 %v10936_v60  ;;  %v10941_v60 = vpack.c.bf16 %v812_v55, %v811_v25  ;;  %v13589_v4 = vld [vmem:[#allocation2 + $0x141] sm:$0xff]  ;;  %v13607_v25 = vld [vmem:[#allocation2 + $0x158] sm:$0xff]  ;;  %v1027_v55 = vld [vmem:[#allocation2 + $0x6c] sm:$0xff] }
 0x154   : > { %10883 = vmatpush1.bf16.msra.mxu0 %v13297_v2  ;;  %10940 = vmatprep.subr.bf16.mxu1 %v16573_v0  ;;  %v13476_v2 = vld [vmem:[#allocation2 + $0x90] sm:$0xff]  ;;  %16636 = vst [vmem:[#allocation36_spill] sm:$0xff] %v13607_v25 }
 0x155   : > { %1238 = vmatmul.mubr.f32.gmra.mrb[16].mxu0 %v13457_v37  ;;  %10884 = vmatprep.subr.bf16.mxu0 %v16573_v0 }
 0x156   : > { %1503 = vmatmul.mubr.f32.gmra.mrb[16].mxu1 %v13303_v5  ;;  %1242 = vmatprep.mubr.f32.mxu0 %v13459_v62  ;;  %v13478_v5 = vld [vmem:[#allocation2 + $0x99] sm:$0xff] }
 0x157   : > { %1507 = vmatprep.mubr.f32.mxu1 %v1005_v7  ;;  %v1022_v7 = vld [vmem:[#allocation2 + $0x34] sm:$0xff] }
 0x158   : > { %10886 = vmatpush1.bf16.msra.mxu0 %v13313_v12  ;;  %v13485_v12 = vld [vmem:[#allocation2 + $0x98] sm:$0xff] }
 0x159   : > { %1243 = vmatmul.mubr.f32.gmra.mrb[18].mxu0 %v13467_v50  ;;  %10887 = vmatprep.subr.bf16.mxu0 %v16573_v0 }
 0x15a   : > { %1508 = vmatmul.mubr.f32.gmra.mrb[18].mxu1 %v13307_v8  ;;  %1247 = vmatprep.mubr.f32.mxu0 %v13469_v63  ;;  %v13487_v8 = vld [vmem:[#allocation2 + $0xa9] sm:$0xff] }
 0x15b   : > { %1512 = vmatprep.mubr.f32.mxu1 %v1006_v10  ;;  %v813_v10 = vld [vmem:[#allocation7 + $0x10] sm:$0xff] }
 0x15c   : > { %10889 = vmatpush1.bf16.msra.mxu0 %v13318_v20  ;;  %v13494_v20 = vld [vmem:[#allocation2 + $0xa8] sm:$0xff] }
 0x15d   : > { %1248 = vmatmul.mubr.f32.gmra.mrb[20].mxu0 %v13476_v2  ;;  %10890 = vmatprep.subr.bf16.mxu0 %v16573_v0 }
 0x15e   : > { %1513 = vmatmul.mubr.f32.gmra.mrb[20].mxu1 %v13322_v27  ;;  %1252 = vmatprep.mubr.f32.mxu0 %v13478_v5  ;;  %v13496_v27 = vld [vmem:[#allocation2 + $0xb1] sm:$0xff] }
 0x15f   : > { %1517 = vmatprep.mubr.f32.mxu1 %v1007_v11  ;;  %v814_v11 = vld [vmem:[#allocation7 + $0x18] sm:$0xff] }
 0x160   : > { %10892 = vmatpush1.bf16.msra.mxu0 %v13329_v29  ;;  %v13503_v29 = vld [vmem:[#allocation2 + $0xb0] sm:$0xff] }
 0x161   : > { %1253 = vmatmul.mubr.f32.gmra.mrb[22].mxu0 %v13485_v12  ;;  %10893 = vmatprep.subr.bf16.mxu0 %v16573_v0 }
 0x162   : > { %1518 = vmatmul.mubr.f32.gmra.mrb[22].mxu1 %v13325_v28  ;;  %1257 = vmatprep.mubr.f32.mxu0 %v13487_v8  ;;  %v13505_v28 = vld [vmem:[#allocation2 + $0xc1] sm:$0xff] }
 0x163   : > { %1522 = vmatprep.mubr.f32.mxu1 %v1008_v14  ;;  %v13593_v14 = vld [vmem:[#allocation2 + $0x140] sm:$0xff] }
 0x164   : > { %10895 = vmatpush1.bf16.msra.mxu0 %v13347_v40  ;;  %v13512_v40 = vld [vmem:[#allocation2 + $0xc0] sm:$0xff] }
 0x165   : > { %1258 = vmatmul.mubr.f32.gmra.mrb[24].mxu0 %v13494_v20  ;;  %10896 = vmatprep.subr.bf16.mxu0 %v16573_v0 }
 0x166   : > { %1523 = vmatmul.mubr.f32.gmra.mrb[24].mxu1 %v13335_v35  ;;  %1262 = vmatprep.mubr.f32.mxu0 %v13496_v27  ;;  %v13514_v35 = vld [vmem:[#allocation2 + $0xc9] sm:$0xff] }
 0x167   : > { %1527 = vmatprep.mubr.f32.mxu1 %v1009_v43  ;;  %v10944_v43 = vpack.c.bf16 %v814_v11, %v813_v10  ;;  %v819_v10 = vld [vmem:[#allocation7 + $0x40] sm:$0xff]  ;;  %v820_v11 = vld [vmem:[#allocation7 + $0x48] sm:$0xff] }
 0x168   : > { %10898 = vmatpush1.bf16.msra.mxu0 %v13365_v54  ;;  %v13521_v54 = vld [vmem:[#allocation2 + $0xc8] sm:$0xff] }
 0x169   : > { %1263 = vmatmul.mubr.f32.gmra.mrb[26].mxu0 %v13503_v29  ;;  %10899 = vmatprep.subr.bf16.mxu0 %v16573_v0 }
 0x16a   : > { %1528 = vmatmul.mubr.f32.gmra.mrb[26].mxu1 %v13338_v36  ;;  %1267 = vmatprep.mubr.f32.mxu0 %v13505_v28  ;;  %v13523_v36 = vld [vmem:[#allocation2 + $0xd9] sm:$0xff] }
 0x16b   : > { %1532 = vmatprep.mubr.f32.mxu1 %v1010_v17  ;;  %v13595_v17 = vld [vmem:[#allocation2 + $0x151] sm:$0xff] }
 0x16c   : > { %10901 = vmatpush1.bf16.msra.mxu0 %v13378_v6  ;;  %v13530_v6 = vld [vmem:[#allocation2 + $0xd8] sm:$0xff]  ;;  %16633 = vst [vmem:[#allocation33_spill] sm:$0xff] %v13595_v17 }
 0x16d   : > { %1268 = vmatmul.mubr.f32.gmra.mrb[28].mxu0 %v13512_v40  ;;  %10902 = vmatprep.subr.bf16.mxu0 %v16573_v0 }
 0x16e   : > { %1533 = vmatmul.mubr.f32.gmra.mrb[28].mxu1 %v13343_v39  ;;  %1272 = vmatprep.mubr.f32.mxu0 %v13514_v35  ;;  %v13532_v39 = vld [vmem:[#allocation2 + $0xe1] sm:$0xff] }
 0x16f   : > { %1537 = vmatprep.mubr.f32.mxu1 %v1011_v18  ;;  %v1024_v18 = vld [vmem:[#allocation2 + $0x4c] sm:$0xff] }
 0x170   : > { %10904 = vmatpush1.bf16.msra.mxu0 %v13391_v21  ;;  %v13538_v21 = vld [vmem:[#allocation2 + $0xe0] sm:$0xff] }
 0x171   : > { %1273 = vmatmul.mubr.f32.gmra.mrb[30].mxu0 %v13521_v54  ;;  %10905 = vmatprep.subr.bf16.mxu0 %v16573_v0 }
 0x172   : > { %1538 = vmatmul.mubr.f32.gmra.mrb[30].mxu1 %v13350_v44  ;;  %1277 = vmatprep.mubr.f32.mxu0 %v13523_v36  ;;  %v13540_v44 = vld [vmem:[#allocation2 + $0xf1] sm:$0xff] }
 0x173   : > { %1542 = vmatprep.mubr.f32.mxu1 %v1012_v9  ;;  %v815_v9 = vld [vmem:[#allocation7 + $0x20] sm:$0xff] }
 0x174   : > { %10907 = vmatpush1.bf16.msra.mxu0 %v13404_v38  ;;  %v13547_v38 = vld [vmem:[#allocation2 + $0xf9] sm:$0xff] }
 0x175   : > { %1278 = vmatmul.mubr.f32.gmra.mrb[32].mxu0 %v13530_v6 }
 0x176   : > { %1543 = vmatmul.mubr.f32.gmra.mrb[32].mxu1 %v13356_v48  ;;  %1282 = vmatprep.mubr.f32.mxu0 %v13532_v39  ;;  %v1015_v48 = vld [vmem:[#allocation2 + $0x15b] sm:$0xff] }
 0x177   : > { %1547 = vmatprep.mubr.f32.mxu1 %v1013_v22  ;;  %v816_v22 = vld [vmem:[#allocation7 + $0x28] sm:$0xff] }
 0x179   : > { %1283 = vmatmul.mubr.f32.gmra.mrb[34].mxu0 %v13538_v21 }
 0x17a   : > { %1548 = vmatmul.mubr.f32.gmra.mrb[34].mxu1 %v13359_v51  ;;  %1287 = vmatprep.mubr.f32.mxu0 %v13540_v44  ;;  %v1016_v51 = vld [vmem:[#allocation2 + $0x16b] sm:$0xff] }
 0x17b   : > { %1552 = vmatprep.mubr.f32.mxu1 %v1014_v1  ;;  %v13600_v1 = vld [vmem:[#allocation2 + $0x150] sm:$0xff] }
 0x17c   : > { %16634 = vst [vmem:[#allocation34_spill] sm:$0xff] %v13600_v1 }
 0x17d   : > { %1288 = vmatmul.mubr.f32.gmra.mrb[36].mxu0 %v13545_v45 }
 0x17e   : > { %1553 = vmatmul.mubr.f32.gmra.mrb[36].mxu1 %v13369_v61  ;;  %1292 = vmatprep.mubr.f32.mxu0 %v13547_v38  ;;  %v1017_v61 = vld [vmem:[#allocation2 + $0x173] sm:$0xff] }
 0x17f   : > { %1557 = vmatprep.mubr.f32.mxu1 %v1015_v48  ;;  %v1025_v48 = vld [vmem:[#allocation2 + $0x54] sm:$0xff] }
 0x181   : > { %1293 = vmatmul.mubr.f32.gmra.mrb[38].mxu0 %v13552_v26 }
 0x182   : > { %1558 = vmatmul.mubr.f32.gmra.mrb[38].mxu1 %v13372_v3  ;;  %1297 = vmatprep.mubr.f32.mxu0 %v13554_v30  ;;  %v1018_v3 = vld [vmem:[#allocation2 + $0x183] sm:$0xff] }
 0x183   : > { %1562 = vmatprep.mubr.f32.mxu1 %v1016_v51  ;;  %v10947_v51 = vpack.c.bf16 %v816_v22, %v815_v9  ;;  %v13616_v9 = vld [vmem:[#allocation2 + $0x171] sm:$0xff] }
 0x184   : > { %16639 = vst [vmem:[#allocation39_spill] sm:$0xff] %v13616_v9  ;;  %v1030_v22 = vld [vmem:[#allocation2 + $0x94] sm:$0xff] }
 0x185   : > { %1298 = vmatmul.mubr.f32.gmra.mrb[40].mxu0 %v13559_v32 }
 0x186   : > { %1563 = vmatmul.mubr.f32.gmra.mrb[40].mxu1 %v13382_v15  ;;  %1302 = vmatprep.mubr.f32.mxu0 %v13561_v13  ;;  %v1019_v15 = vld [vmem:[#allocation2 + $0x18b] sm:$0xff] }
 0x187   : > { %1567 = vmatprep.mubr.f32.mxu1 %v1017_v61  ;;  %v13602_v61 = vld [vmem:[#allocation2 + $0x159] sm:$0xff] }
 0x188   : > { %16635 = vst [vmem:[#allocation35_spill] sm:$0xff] %v13602_v61 }
 0x189   : > { %1303 = vmatmul.mubr.f32.gmra.mrb[42].mxu0 %v13566_v34 }
 0x18a   : > { %1568 = vmatmul.mubr.f32.gmra.mrb[42].mxu1 %v13385_v16  ;;  %1307 = vmatprep.mubr.f32.mxu0 %v13568_v41  ;;  %v1020_v16 = vld [vmem:[#allocation2 + $0x1c] sm:$0xff] }
 0x18b   : > { %1572 = vmatprep.mubr.f32.mxu1 %v1018_v3  ;;  %v1026_v3 = vld [vmem:[#allocation2 + $0x64] sm:$0xff] }
 0x18d   : > { %1308 = vmatmul.mubr.f32.gmra.mrb[44].mxu0 %v13573_v19 }
 0x18e   : > { %1573 = vmatmul.mubr.f32.gmra.mrb[44].mxu1 %v13394_v23  ;;  %1312 = vmatprep.mubr.f32.mxu0 %v13575_v42  ;;  %v1021_v23 = vld [vmem:[#allocation2 + $0x24] sm:$0xff] }
 0x18f   : > { %1577 = vmatprep.mubr.f32.mxu1 %v1019_v15  ;;  %v817_v15 = vld [vmem:[#allocation7 + $0x30] sm:$0xff] }
 0x191   : > { %1313 = vmatmul.mubr.f32.gmra.mrb[46].mxu0 %v13580_v47 }
 0x192   : > { %1578 = vmatmul.mubr.f32.gmra.mrb[46].mxu1 %v13397_v24  ;;  %1317 = vmatprep.mubr.f32.mxu0 %v13582_v53  ;;  %v1023_v24 = vld [vmem:[#allocation2 + $0x3c] sm:$0xff] }
 0x193   : > { %9804 = vmatprep.mubr.f32.mxu1 %v1020_v16  ;;  %v818_v16 = vld [vmem:[#allocation7 + $0x38] sm:$0xff] }
 0x195   : > { %1318 = vmatmul.mubr.f32.gmra.mrb[48].mxu0 %v13587_v59 }
 0x196   : > { %9805 = vmatmul.mubr.f32.vlgmr.msra.gmra.mrb[48].mxu1 %v1021_v23  ;;  %1322 = vmatprep.mubr.f32.mxu0 %v13589_v4  ;;  %v10950_v23 = vpack.c.bf16 %v818_v16, %v817_v15  ;;  %v1031_v15 = vld [vmem:[#allocation2 + $0x9c] sm:$0xff] }
 0x197   : > { %10942 = vmatpush1.bf16.msra.mxu1 %v10941_v60  ;;  %9807 = vmatprep.mubr.f32.mxu1 %v1022_v7  ;;  %v13609_v60 = vld [vmem:[#allocation2 + $0x169] sm:$0xff]  ;;  %v1028_v7 = vld [vmem:[#allocation2 + $0x7c] sm:$0xff] }
 0x198   : > { %10943 = vmatprep.subr.bf16.mxu1 %v16573_v0  ;;  %16637 = vst [vmem:[#allocation37_spill] sm:$0xff] %v13609_v60 }
 0x199   : > { %1323 = vmatmul.mubr.f32.gmra.mrb[50].mxu0 %v13593_v14 }
 0x19a   : > { %9808 = vmatmul.mubr.f32.gmra.mrb[50].mxu1 %v1023_v24  ;;  %1327 = vmatprep.mubr.f32.mxu0 %v13595_v17  ;;  %v13614_v24 = vld [vmem:[#allocation2 + $0x168] sm:$0xff] }
 0x19b   : > { %10945 = vmatpush1.bf16.msra.mxu1 %v10944_v43  ;;  %9810 = vmatprep.mubr.f32.mxu1 %v1024_v18  ;;  %16638 = vst [vmem:[#allocation38_spill] sm:$0xff] %v13614_v24  ;;  %v1029_v43 = vld [vmem:[#allocation2 + $0x84] sm:$0xff]  ;;  %v10953_v18 = vpack.c.bf16 %v820_v11, %v819_v10  ;;  %v824_v10 = vld [vmem:[#allocation7 + $0x68] sm:$0xff] }
 0x19c   : > { %10946 = vmatprep.subr.bf16.mxu1 %v16573_v0  ;;  %v922_v11 = vld [vmem:[#allocation2 + $0x180] sm:$0xff] }
 0x19d   : > { %1328 = vmatmul.mubr.f32.gmra.mrb[52].mxu0 %v13600_v1  ;;  %v878_v1 = vld [vmem:[#allocation7 + $0x218] sm:$0xff] }
 0x19e   : > { %9811 = vmatmul.mubr.f32.gmra.mrb[52].mxu1 %v1025_v48  ;;  %1332 = vmatprep.mubr.f32.mxu0 %v13602_v61  ;;  %v821_v48 = vld [vmem:[#allocation7 + $0x50] sm:$0xff] }
 0x19f   : > { %10948 = vmatpush1.bf16.msra.mxu1 %v10947_v51  ;;  %9813 = vmatprep.mubr.f32.mxu1 %v1026_v3  ;;  %v822_v51 = vld [vmem:[#allocation7 + $0x58] sm:$0xff]  ;;  %v13621_v3 = vld [vmem:[#allocation2 + $0x170] sm:$0xff]  ;;  %v877_v61 = vld [vmem:[#allocation7 + $0x210] sm:$0xff] }
 0x1a0   : > { %10949 = vmatprep.subr.bf16.mxu1 %v16573_v0  ;;  %16640 = vst [vmem:[#allocation40_spill] sm:$0xff] %v13621_v3  ;;  %v10956_v16 = vpack.c.bf16 %v822_v51, %v821_v48  ;;  %v826_v48 = vld [vmem:[#allocation7 + $0x78] sm:$0xff]  ;;  %v11040_v17 = vpack.c.bf16 %v878_v1, %v877_v61 }
 0x1a1   : > { %1333 = vmatmul.mubr.f32.gmra.mrb[54].mxu0 %v13607_v25  ;;  %v923_v51 = vld [vmem:[#allocation2 + $0x188] sm:$0xff] }
 0x1a2   : > { %9814 = vmatmul.mubr.f32.gmra.mrb[54].mxu1 %v1027_v55  ;;  %1337 = vmatprep.mubr.f32.mxu0 %v13609_v60  ;;  %v954_v55 = vld [vmem:[#allocation2 + $0x181] sm:$0xff]  ;;  %v1043_v1 = vld [vmem:[#allocation2 + $0x12c] sm:$0xff] }
 0x1a3   : > { %10951 = vmatpush1.bf16.msra.mxu1 %v10950_v23  ;;  %9816 = vmatprep.mubr.f32.mxu1 %v1028_v7  ;;  %v1032_v23 = vld [vmem:[#allocation2 + $0xac] sm:$0xff]  ;;  %v1037_v60 = vld [vmem:[#allocation2 + $0xe4] sm:$0xff] }
 0x1a4   : > { %10952 = vmatprep.subr.bf16.mxu1 %v16573_v0  ;;  %v823_v7 = vld [vmem:[#allocation7 + $0x60] sm:$0xff] }
 0x1a5   : > { %1338 = vmatmul.mubr.f32.gmra.mrb[56].mxu0 %v13614_v24  ;;  %v955_v24 = vld [vmem:[#allocation2 + $0x189] sm:$0xff] }
 0x1a6   : > { %9817 = vmatmul.mubr.f32.gmra.mrb[56].mxu1 %v1029_v43  ;;  %1342 = vmatprep.mubr.f32.mxu0 %v13616_v9  ;;  %v1033_v43 = vld [vmem:[#allocation2 + $0xb4] sm:$0xff]  ;;  %v10959_v9 = vpack.c.bf16 %v824_v10, %v823_v7 }
 0x1a7   : > { %10954 = vmatpush1.bf16.msra.mxu1 %v10953_v18  ;;  %9819 = vmatprep.mubr.f32.mxu1 %v1030_v22  ;;  %v1034_v18 = vld [vmem:[#allocation2 + $0xc4] sm:$0xff]  ;;  %v828_v7 = vld [vmem:[#allocation7 + $0x88] sm:$0xff] }
 0x1a8   : > { %10955 = vmatprep.subr.bf16.mxu1 %v16573_v0  ;;  %v825_v22 = vld [vmem:[#allocation7 + $0x70] sm:$0xff] }
 0x1a9   : > { %1343 = vmatmul.mubr.f32.gmra.mrb[58].mxu0 %v13621_v3  ;;  %v1035_v3 = vld [vmem:[#allocation2 + $0xcc] sm:$0xff]  ;;  %v956_v10 = vld [vmem:[#allocation2 + $0x1a] sm:$0xff] }
 0x1aa   : > { %9820 = vmatmul.mubr.f32.gmra.mrb[58].mxu1 %v1031_v15  ;;  %1347 = vmatprep.mubr.f32.mxu0 %v954_v55  ;;  %v10962_v15 = vpack.c.bf16 %v826_v48, %v825_v22  ;;  %v988_v55 = vld [vmem:[#allocation2 + $0x1b] sm:$0xff]  ;;  %v875_v22 = vld [vmem:[#allocation7 + $0x200] sm:$0xff] }
 0x1ab   : > { %10957 = vmatpush1.bf16.msra.mxu1 %v10956_v16  ;;  %9822 = vmatprep.mubr.f32.mxu1 %v1032_v23  ;;  %v1036_v16 = vld [vmem:[#allocation2 + $0xdc] sm:$0xff]  ;;  %v827_v23 = vld [vmem:[#allocation7 + $0x80] sm:$0xff] }
 0x1ac   : > { %10958 = vmatprep.subr.bf16.mxu1 %v16573_v0  ;;  %v876_v48 = vld [vmem:[#allocation7 + $0x208] sm:$0xff] }
 0x1ad   : > { %1348 = vmatmul.mubr.f32.gmra.mrb[60].mxu0 %v922_v11  ;;  %v10965_v11 = vpack.c.bf16 %v828_v7, %v827_v23  ;;  %v11036_v25 = vpack.c.bf16 %v876_v48, %v875_v22  ;;  %v831_v23 = vld [vmem:[#allocation7 + $0xa0] sm:$0xff]  ;;  %v832_v7 = vld [vmem:[#allocation7 + $0xa8] sm:$0xff] }
 0x1ae   : > { %9823 = vmatmul.mubr.f32.gmra.mrb[60].mxu1 %v1033_v43  ;;  %1352 = vmatprep.mubr.f32.mxu0 %v955_v24  ;;  %v989_v24 = vld [vmem:[#allocation2 + $0x23] sm:$0xff]  ;;  %v1038_v43 = vld [vmem:[#allocation2 + $0xf4] sm:$0xff] }
 0x1af   : > { %10960 = vmatpush1.bf16.msra.mxu1 %v10959_v9  ;;  %9825 = vmatprep.mubr.f32.mxu1 %v1034_v18  ;;  %v829_v9 = vld [vmem:[#allocation7 + $0x90] sm:$0xff]  ;;  %v830_v18 = vld [vmem:[#allocation7 + $0x98] sm:$0xff]  ;;  %v880_v22 = vld [vmem:[#allocation7 + $0x228] sm:$0xff] }
 0x1b0   : > { %10961 = vmatprep.subr.bf16.mxu1 %v16573_v0  ;;  %11037 = vmatprep.subr.bf16.mxu0 %v11036_v25  ;;  %v12386_v48 = vld [vmem:[#allocation2 + $0x32] sm:$0xff] }
 0x1b1   : > { %1353 = vmatmul.mubr.f32.gmra.mrb[62].mxu0 %v923_v51  ;;  %v957_v51 = vld [vmem:[#allocation2 + $0x22] sm:$0xff] }
 0x1b2   : > { %9826 = vmatmul.mubr.f32.gmra.mrb[62].mxu1 %v1035_v3  ;;  %1422 = vmatprep.mubr.f32.mxu0 %v988_v55  ;;  %v1039_v3 = vld [vmem:[#allocation2 + $0xfc] sm:$0xff]  ;;  %v10968_v55 = vpack.c.bf16 %v830_v18, %v829_v9  ;;  %v834_v9 = vld [vmem:[#allocation7 + $0xb8] sm:$0xff]  ;;  %v879_v18 = vld [vmem:[#allocation7 + $0x220] sm:$0xff] }
 0x1b3   : > { %10963 = vmatpush1.bf16.msra.mxu1 %v10962_v15  ;;  %9828 = vmatprep.mubr.f32.mxu1 %v1036_v16  ;;  %v990_v15 = vld [vmem:[#allocation2 + $0x33] sm:$0xff] }
 0x1b4   : > { %10964 = vmatprep.subr.bf16.mxu1 %v16573_v0  ;;  %v1040_v16 = vld [vmem:[#allocation2 + $0x10c] sm:$0xff] }
 0x1b5   : > { %1423 = vmatmul.mubr.f32.vlgmr.msra.gmra.mrb[0].mxu0 %v956_v10  ;;  %v10971_v10 = vpack.c.bf16 %v832_v7, %v831_v23  ;;  %v882_v23 = vld [vmem:[#allocation7 + $0x238] sm:$0xff]  ;;  %v12387_v7 = vld [vmem:[#allocation2 + $0x3a] sm:$0xff] }
 0x1b6   : > { %9829 = vmatmul.mubr.f32.gmra.mrb[64].mxu1 %v1037_v60  ;;  %1427 = vmatprep.mubr.f32.mxu0 %v989_v24  ;;  %v1041_v60 = vld [vmem:[#allocation2 + $0x114] sm:$0xff]  ;;  %v1042_v24 = vld [vmem:[#allocation2 + $0x124] sm:$0xff] }
 0x1b7   : > { %10966 = vmatpush1.bf16.msra.mxu1 %v10965_v11  ;;  %9831 = vmatprep.mubr.f32.mxu1 %v1038_v43  ;;  %v991_v11 = vld [vmem:[#allocation2 + $0x3b] sm:$0xff] }
 0x1b8   : > { %10967 = vmatprep.subr.bf16.mxu1 %v16573_v0  ;;  %v833_v43 = vld [vmem:[#allocation7 + $0xb0] sm:$0xff]  ;;  %11039 = vmatpush3.bf16.msra.mxu0 %v11036_v25 }
 0x1b9   : > { %1428 = vmatmul.mubr.f32.gmra.mrb[2].mxu0 %v957_v51  ;;  %11041 = vmatprep.subr.bf16.mxu0 %v11040_v17  ;;  %v11044_v51 = vpack.c.bf16 %v880_v22, %v879_v18  ;;  %v10974_v61 = vpack.c.bf16 %v834_v9, %v833_v43  ;;  %v881_v25 = vld [vmem:[#allocation7 + $0x230] sm:$0xff]  ;;  %v838_v9 = vld [vmem:[#allocation7 + $0xd8] sm:$0xff]  ;;  %v884_v18 = vld [vmem:[#allocation7 + $0x248] sm:$0xff] }
 0x1ba   : > { %9832 = vmatmul.mubr.f32.gmra.mrb[66].mxu1 %v1039_v3  ;;  %1432 = vmatprep.mubr.f32.mxu0 %v990_v15  ;;  %v992_v3 = vld [vmem:[#allocation2 + $0x4b] sm:$0xff]  ;;  %v837_v43 = vld [vmem:[#allocation7 + $0xd0] sm:$0xff] }
 0x1bb   : > { %10969 = vmatpush1.bf16.msra.mxu1 %v10968_v55  ;;  %9834 = vmatprep.mubr.f32.mxu1 %v1040_v16  ;;  %v1044_v55 = vld [vmem:[#allocation2 + $0x13c] sm:$0xff]  ;;  %v835_v15 = vld [vmem:[#allocation7 + $0xc0] sm:$0xff] }
 0x1bc   : > { %10970 = vmatprep.subr.bf16.mxu1 %v16573_v0  ;;  %v836_v16 = vld [vmem:[#allocation7 + $0xc8] sm:$0xff]  ;;  %11043 = vmatpush3.bf16.msra.mxu0 %v11040_v17  ;;  %v883_v17 = vld [vmem:[#allocation7 + $0x240] sm:$0xff] }
 0x1bd   : > { %1433 = vmatmul.mubr.f32.gmra.mrb[4].mxu0 %v12386_v48  ;;  %11045 = vmatprep.subr.bf16.mxu0 %v11044_v51  ;;  %v11048_v48 = vpack.c.bf16 %v882_v23, %v881_v25  ;;  %v12388_v22 = vld [vmem:[#allocation2 + $0x4a] sm:$0xff]  ;;  %v12389_v23 = vld [vmem:[#allocation2 + $0x52] sm:$0xff] }
 0x1be   : > { %9835 = vmatmul.mubr.f32.gmra.mrb[68].mxu1 %v1041_v60  ;;  %1437 = vmatprep.mubr.f32.mxu0 %v991_v11  ;;  %v1045_v60 = vld [vmem:[#allocation2 + $0x144] sm:$0xff]  ;;  %v993_v11 = vld [vmem:[#allocation2 + $0x53] sm:$0xff] }
 0x1bf   : > { %10972 = vmatpush1.bf16.msra.mxu1 %v10971_v10  ;;  %9837 = vmatprep.mubr.f32.mxu1 %v1042_v24  ;;  %v10977_v10 = vpack.c.bf16 %v836_v16, %v835_v15  ;;  %v1046_v24 = vld [vmem:[#allocation2 + $0x154] sm:$0xff]  ;;  %v886_v25 = vld [vmem:[#allocation7 + $0x258] sm:$0xff] }
 0x1c0   : > { %10973 = vmatprep.subr.bf16.mxu1 %v16573_v0  ;;  %11047 = vmatpush3.bf16.msra.mxu0 %v11044_v51  ;;  %v839_v15 = vld [vmem:[#allocation7 + $0xe0] sm:$0xff]  ;;  %v840_v16 = vld [vmem:[#allocation7 + $0xe8] sm:$0xff]  ;;  %v885_v51 = vld [vmem:[#allocation7 + $0x250] sm:$0xff] }
 0x1c1   : > { %1438 = vmatmul.mubr.f32.gmra.mrb[6].mxu0 %v12387_v7  ;;  %11049 = vmatprep.subr.bf16.mxu0 %v11048_v48  ;;  %v11052_v7 = vpack.c.bf16 %v884_v18, %v883_v17  ;;  %v888_v17 = vld [vmem:[#allocation7 + $0x268] sm:$0xff]  ;;  %v12390_v18 = vld [vmem:[#allocation2 + $0x62] sm:$0xff] }
 0x1c2   : > { %9838 = vmatmul.mubr.f32.gmra.mrb[70].mxu1 %v1043_v1  ;;  %1442 = vmatprep.mubr.f32.mxu0 %v992_v3  ;;  %v1047_v1 = vld [vmem:[#allocation2 + $0x15c] sm:$0xff] }
 0x1c3   : > { %10975 = vmatpush1.bf16.msra.mxu1 %v10974_v61  ;;  %9840 = vmatprep.mubr.f32.mxu1 %v1044_v55  ;;  %v10980_v61 = vpack.c.bf16 %v838_v9, %v837_v43  ;;  %v994_v3 = vld [vmem:[#allocation2 + $0x63] sm:$0xff]  ;;  %v1048_v55 = vld [vmem:[#allocation2 + $0x16c] sm:$0xff] }
 0x1c4   : > { %10976 = vmatprep.subr.bf16.mxu1 %v16573_v0  ;;  %11051 = vmatpush3.bf16.msra.mxu0 %v11048_v48  ;;  %v841_v43 = vld [vmem:[#allocation7 + $0xf0] sm:$0xff]  ;;  %v842_v9 = vld [vmem:[#allocation7 + $0xf8] sm:$0xff]  ;;  %v887_v48 = vld [vmem:[#allocation7 + $0x260] sm:$0xff] }
 0x1c5   : > { %1443 = vmatmul.mubr.f32.gmra.mrb[8].mxu0 %v12388_v22  ;;  %11053 = vmatprep.subr.bf16.mxu0 %v11052_v7  ;;  %v11056_v22 = vpack.c.bf16 %v886_v25, %v885_v51  ;;  %v12391_v51 = vld [vmem:[#allocation2 + $0x6a] sm:$0xff] }
 0x1c6   : > { %9841 = vmatmul.mubr.f32.gmra.mrb[72].mxu1 %v1045_v60  ;;  %1447 = vmatprep.mubr.f32.mxu0 %v993_v11  ;;  %v1049_v60 = vld [vmem:[#allocation2 + $0x174] sm:$0xff]  ;;  %v995_v11 = vld [vmem:[#allocation2 + $0x6b] sm:$0xff] }
 0x1c7   : > { %10978 = vmatpush1.bf16.msra.mxu1 %v10977_v10  ;;  %9843 = vmatprep.mubr.f32.mxu1 %v1046_v24  ;;  %v10983_v10 = vpack.c.bf16 %v840_v16, %v839_v15  ;;  %v1050_v24 = vld [vmem:[#allocation2 + $0x184] sm:$0xff]  ;;  %v844_v15 = vld [vmem:[#allocation7 + $0x108] sm:$0xff] }
 0x1c8   : > { %10979 = vmatprep.subr.bf16.mxu1 %v16573_v0  ;;  %11055 = vmatpush3.bf16.msra.mxu0 %v11052_v7  ;;  %v889_v16 = vld [vmem:[#allocation7 + $0x270] sm:$0xff]  ;;  %v890_v7 = vld [vmem:[#allocation7 + $0x278] sm:$0xff] }
 0x1c9   : > { %1448 = vmatmul.mubr.f32.gmra.mrb[10].mxu0 %v12389_v23  ;;  %11057 = vmatprep.subr.bf16.mxu0 %v11056_v22  ;;  %v11060_v23 = vpack.c.bf16 %v888_v17, %v887_v48  ;;  %v11064_v25 = vpack.c.bf16 %v890_v7, %v889_v16  ;;  %v685_v48 = vld [vmem:[#allocation2 + $0x19] sm:$0xff]  ;;  %v847_v17 = vld [vmem:[#allocation7 + $0x120] sm:$0xff]  ;;  %v782_v16 = vld [vmem:[#allocation2 + $0x24] sm:$0xff] }
 0x1ca   : > { %9844 = vmatmul.mubr.f32.gmra.mrb[74].mxu1 %v1047_v1  ;;  %1452 = vmatprep.mubr.f32.mxu0 %v994_v3  ;;  %v1051_v1 = vld [vmem:[#allocation2 + $0x18c] sm:$0xff]  ;;  %v683_v3 = vld [vmem:[#allocation2 + $0x1] sm:$0xff] }
 0x1cb   : > { %10981 = vmatpush1.bf16.msra.mxu1 %v10980_v61  ;;  %9846 = vmatprep.mubr.f32.mxu1 %v1048_v55  ;;  %v10986_v61 = vpack.c.bf16 %v842_v9, %v841_v43  ;;  %v843_v55 = vld [vmem:[#allocation7 + $0x100] sm:$0xff]  ;;  %v779_v43 = vld [vmem:[#allocation2 + $0x4] sm:$0xff]  ;;  %v12392_v9 = vld [vmem:[#allocation2 + $0x18] sm:$0xff] }
 0x1cc   : > { %10982 = vmatprep.subr.bf16.mxu1 %v16573_v0  ;;  %11059 = vmatpush3.bf16.msra.mxu0 %v11056_v22 }
 0x1cd   : > { %1453 = vmatmul.mubr.f32.gmra.mrb[12].mxu0 %v12390_v18  ;;  %11061 = vmatprep.subr.bf16.mxu0 %v11060_v23  ;;  %v848_v18 = vld [vmem:[#allocation7 + $0x128] sm:$0xff] }
 0x1ce   : > { %9847 = vmatmul.mubr.f32.gmra.mrb[76].mxu1 %v1049_v60  ;;  %1457 = vmatprep.mubr.f32.mxu0 %v995_v11  ;;  %v10989_v60 = vpack.c.bf16 %v844_v15, %v843_v55  ;;  %v845_v11 = vld [vmem:[#allocation7 + $0x110] sm:$0xff]  ;;  %v850_v55 = vld [vmem:[#allocation7 + $0x138] sm:$0xff] }
 0x1cf   : > { %10984 = vmatpush1.bf16.msra.mxu1 %v10983_v10  ;;  %9849 = vmatprep.mubr.f32.mxu1 %v1050_v24  ;;  %v684_v10 = vld [vmem:[#allocation2 + $0x9] sm:$0xff]  ;;  %v781_v15 = vld [vmem:[#allocation2 + $0x1c] sm:$0xff] }
 0x1d0   : > { %10985 = vmatprep.subr.bf16.mxu1 %v16573_v0  ;;  %v846_v24 = vld [vmem:[#allocation7 + $0x118] sm:$0xff]  ;;  %11063 = vmatpush3.bf16.msra.mxu0 %v11060_v23 }
 0x1d1   : > { %1458 = vmatmul.mubr.f32.gmra.mrb[14].mxu0 %v12391_v51  ;;  %11065 = vmatprep.subr.bf16.mxu0 %v11064_v25  ;;  %v10992_v22 = vpack.c.bf16 %v846_v24, %v845_v11  ;;  %v686_v23 = vld [vmem:[#allocation2 + $0x21] sm:$0xff]  ;;  %v687_v51 = vld [vmem:[#allocation2 + $0x31] sm:$0xff]  ;;  %v688_v24 = vld [vmem:[#allocation2 + $0x39] sm:$0xff] }
 0x1d2   : > { %9850 = vmatmul.mubr.f32.gmra.mrb[78].mxu1 %v1051_v1  ;;  %9884 = vmatprep.mubr.f32.mxu0 %v779_v43  ;;  %v780_v1 = vld [vmem:[#allocation2 + $0xc] sm:$0xff]  ;;  %v853_v43 = vld [vmem:[#allocation7 + $0x150] sm:$0xff] }
 0x1d3   : > { %10987 = vmatpush1.bf16.msra.mxu1 %v10986_v61  ;;  %1872 = vmatprep.mubr.f32.mxu1 %v683_v3  ;;  %v10995_v61 = vpack.c.bf16 %v848_v18, %v847_v17  ;;  %v849_v3 = vld [vmem:[#allocation7 + $0x130] sm:$0xff]  ;;  %v656_v18 = vld [vmem:[#allocation2 + $0x38] sm:$0xff] }
 0x1d4   : > { %10988 = vmatprep.subr.bf16.mxu1 %v16573_v0  ;;  %11067 = vmatpush3.bf16.msra.mxu0 %v11064_v25  ;;  %v10998_v7 = vpack.c.bf16 %v850_v55, %v849_v3  ;;  %v851_v25 = vld [vmem:[#allocation7 + $0x140] sm:$0xff]  ;;  %v13643_v17 = vld [vmem:[#allocation2 + $0x3c] sm:$0xff] }
 0x1d5   : > { %v857_v55 = vld [vmem:[#allocation7 + $0x170] sm:$0xff] }
 0x1d6   : > { %1873 = vmatmul.mubr.f32.vlgmr.msra.gmra.mrb[80].mxu1 %v12392_v9 }
 0x1d7   : > { %10990 = vmatpush1.bf16.msra.mxu1 %v10989_v60  ;;  %1877 = vmatprep.mubr.f32.mxu1 %v684_v10  ;;  %v852_v60 = vld [vmem:[#allocation7 + $0x148] sm:$0xff]  ;;  %v655_v10 = vld [vmem:[#allocation2 + $0x30] sm:$0xff] }
 0x1d8   : > { %10991 = vmatprep.subr.bf16.mxu1 %v16573_v0  ;;  %9885 = vmatmul.mubr.f32.vlgmr.msra.gmra.mrb[64].mxu0 %v780_v1  ;;  %v11001_v11 = vpack.c.bf16 %v852_v60, %v851_v25  ;;  %v689_v1 = vld [vmem:[#allocation2 + $0x49] sm:$0xff]  ;;  %v860_v60 = vld [vmem:[#allocation7 + $0x188] sm:$0xff] }
 0x1d9   : > { %9887 = vmatprep.mubr.f32.mxu0 %v781_v15  ;;  %v858_v15 = vld [vmem:[#allocation7 + $0x178] sm:$0xff]  ;;  %v859_v25 = vld [vmem:[#allocation7 + $0x180] sm:$0xff] }
 0x1da   : > { %1878 = vmatmul.mubr.f32.gmra.mrb[82].mxu1 %v12392_v9 }
 0x1db   : > { %1882 = vmatprep.mubr.f32.mxu1 %v685_v48  ;;  %10993 = vmatpush1.bf16.msra.mxu1 %v10992_v22  ;;  %v854_v22 = vld [vmem:[#allocation7 + $0x158] sm:$0xff]  ;;  %v13640_v48 = vld [vmem:[#allocation2 + $0x34] sm:$0xff] }
 0x1dc   : > { %10994 = vmatprep.subr.bf16.mxu1 %v16573_v0  ;;  %9888 = vmatmul.mubr.f32.gmra.mrb[66].mxu0 %v782_v16  ;;  %v13648_v16 = vld [vmem:[#allocation2 + $0x4c] sm:$0xff] }
 0x1dd   : > { %9890 = vmatprep.mubr.f32.mxu0 %v13640_v48 }
 0x1de   : > { %1883 = vmatmul.mubr.f32.gmra.mrb[84].mxu1 %v12392_v9 }
 0x1df   : > { %1887 = vmatprep.mubr.f32.mxu1 %v686_v23  ;;  %10996 = vmatpush1.bf16.msra.mxu1 %v10995_v61  ;;  %v855_v61 = vld [vmem:[#allocation7 + $0x160] sm:$0xff]  ;;  %v856_v23 = vld [vmem:[#allocation7 + $0x168] sm:$0xff] }
 0x1e0   : > { %10997 = vmatprep.subr.bf16.mxu1 %v16573_v0  ;;  %9891 = vmatmul.mubr.f32.gmra.mrb[68].mxu0 %v13643_v17  ;;  %v11007_v3 = vpack.c.bf16 %v856_v23, %v855_v61  ;;  %v869_v61 = vld [vmem:[#allocation7 + $0x1d0] sm:$0xff]  ;;  %v870_v23 = vld [vmem:[#allocation7 + $0x1d8] sm:$0xff] }
 0x1e1   : > { %9893 = vmatprep.mubr.f32.mxu0 %v13648_v16 }
 0x1e2   : > { %1888 = vmatmul.mubr.f32.gmra.mrb[86].mxu1 %v12392_v9  ;;  %v11004_v9 = vpack.c.bf16 %v854_v22, %v853_v43  ;;  %v864_v43 = vld [vmem:[#allocation7 + $0x1a8] sm:$0xff]  ;;  %v865_v22 = vld [vmem:[#allocation7 + $0x1b0] sm:$0xff] }
 0x1e3   : > { %1892 = vmatprep.mubr.f32.mxu1 %v687_v51  ;;  %10999 = vmatpush1.bf16.msra.mxu1 %v10998_v7  ;;  %v13652_v7 = vld [vmem:[#allocation2 + $0x54] sm:$0xff]  ;;  %v11010_v51 = vpack.c.bf16 %v858_v15, %v857_v55 }
 0x1e4   : > { %11000 = vmatprep.subr.bf16.mxu1 %v16573_v0  ;;  %9894 = vmatmul.mubr.f32.gmra.mrb[70].mxu0 %v13652_v7  ;;  %v872_v55 = vld [vmem:[#allocation7 + $0x1e8] sm:$0xff] }
 0x1e6   : > { %1893 = vmatmul.mubr.f32.gmra.mrb[88].mxu1 %v655_v10  ;;  %v861_v10 = vld [vmem:[#allocation7 + $0x190] sm:$0xff] }
 0x1e7   : > { %1897 = vmatprep.mubr.f32.mxu1 %v688_v24  ;;  %11002 = vmatpush1.bf16.msra.mxu1 %v11001_v11  ;;  %v862_v11 = vld [vmem:[#allocation7 + $0x198] sm:$0xff] }
 0x1e8   : > { %11003 = vmatprep.subr.bf16.mxu1 %v16573_v0  ;;  %v13660_v24 = vld [vmem:[#allocation2 + $0x64] sm:$0xff] }
 0x1e9   : > { %9896 = vmatprep.mubr.f32.mxu0 %v13660_v24 }
 0x1ea   : > { %1898 = vmatmul.mubr.f32.gmra.mrb[90].mxu1 %v656_v18  ;;  %v866_v18 = vld [vmem:[#allocation7 + $0x1b8] sm:$0xff] }
 0x1eb   : > { %1902 = vmatprep.mubr.f32.mxu1 %v689_v1  ;;  %11005 = vmatpush1.bf16.msra.mxu1 %v11004_v9  ;;  %v13672_v9 = vld [vmem:[#allocation2 + $0x7c] sm:$0xff] }
 0x1ec   : > { %11006 = vmatprep.subr.bf16.mxu1 %v16573_v0  ;;  %v868_v1 = vld [vmem:[#allocation7 + $0x1c8] sm:$0xff] }
 0x1ee   : > { %1903 = vmatmul.mubr.f32.gmra.mrb[92].mxu1 %v13421_v33  ;;  %v11013_v33 = vpack.c.bf16 %v860_v60, %v859_v25  ;;  %v873_v25 = vld [vmem:[#allocation7 + $0x1f0] sm:$0xff] }
 0x1ef   : > { %1907 = vmatprep.mubr.f32.mxu1 %v13423_v49  ;;  %11008 = vmatpush1.bf16.msra.mxu1 %v11007_v3  ;;  %v13664_v49 = vld [vmem:[#allocation2 + $0x6c] sm:$0xff]  ;;  %v13684_v3 = vld [vmem:[#allocation2 + $0x94] sm:$0xff] }
 0x1f0   : > { %11009 = vmatprep.subr.bf16.mxu1 %v16573_v0  ;;  %9897 = vmatmul.mubr.f32.gmra.mrb[72].mxu0 %v13664_v49 }
 0x1f1   : > { %9899 = vmatprep.mubr.f32.mxu0 %v13672_v9 }
 0x1f2   : > { %1908 = vmatmul.mubr.f32.gmra.mrb[94].mxu1 %v13430_v52  ;;  %v11016_v52 = vpack.c.bf16 %v862_v11, %v861_v10  ;;  %v13700_v11 = vld [vmem:[#allocation2 + $0xb4] sm:$0xff] }
 0x1f3   : > { %1912 = vmatprep.mubr.f32.mxu1 %v13432_v46  ;;  %11011 = vmatpush1.bf16.msra.mxu1 %v11010_v51  ;;  %v863_v46 = vld [vmem:[#allocation7 + $0x1a0] sm:$0xff] }
 0x1f4   : > { %11012 = vmatprep.subr.bf16.mxu1 %v16573_v0 }
 0x1f6   : > { %1913 = vmatmul.mubr.f32.gmra.mrb[96].mxu1 %v13439_v56  ;;  %v11019_v56 = vpack.c.bf16 %v864_v43, %v863_v46  ;;  %v13708_v46 = vld [vmem:[#allocation2 + $0xc4] sm:$0xff] }
 0x1f7   : > { %1917 = vmatprep.mubr.f32.mxu1 %v13441_v58  ;;  %11014 = vmatpush1.bf16.msra.mxu1 %v11013_v33  ;;  %v13676_v58 = vld [vmem:[#allocation2 + $0x84] sm:$0xff]  ;;  %v13696_v33 = vld [vmem:[#allocation2 + $0xac] sm:$0xff] }
 0x1f8   : > { %11015 = vmatprep.subr.bf16.mxu1 %v16573_v0  ;;  %9900 = vmatmul.mubr.f32.gmra.mrb[74].mxu0 %v13676_v58 }
 0x1f9   : > { %9902 = vmatprep.mubr.f32.mxu0 %v13684_v3 }
 0x1fa   : > { %1918 = vmatmul.mubr.f32.gmra.mrb[98].mxu1 %v13448_v31  ;;  %v11022_v31 = vpack.c.bf16 %v866_v18, %v865_v22  ;;  %v13722_v22 = vld [vmem:[#allocation2 + $0xdc] sm:$0xff]  ;;  %v13726_v18 = vld [vmem:[#allocation2 + $0xe4] sm:$0xff] }
 0x1fb   : > { %1922 = vmatprep.mubr.f32.mxu1 %v13450_v57  ;;  %11017 = vmatpush1.bf16.msra.mxu1 %v11016_v52  ;;  %v867_v57 = vld [vmem:[#allocation7 + $0x1c0] sm:$0xff] }
 0x1fc   : > { %11018 = vmatprep.subr.bf16.mxu1 %v16573_v0 }
 0x1fe   : > { %1923 = vmatmul.mubr.f32.gmra.mrb[100].mxu1 %v13457_v37  ;;  %v11025_v37 = vpack.c.bf16 %v868_v1, %v867_v57  ;;  %v13740_v57 = vld [vmem:[#allocation2 + $0xfc] sm:$0xff] }
 0x1ff   : > { %1927 = vmatprep.mubr.f32.mxu1 %v13459_v62  ;;  %11020 = vmatpush1.bf16.msra.mxu1 %v11019_v56  ;;  %v13688_v62 = vld [vmem:[#allocation2 + $0x9c] sm:$0xff] }
 0x200   : > { %11021 = vmatprep.subr.bf16.mxu1 %v16573_v0  ;;  %9903 = vmatmul.mubr.f32.gmra.mrb[76].mxu0 %v13688_v62 }
 0x201   : > { %9905 = vmatprep.mubr.f32.mxu0 %v13696_v33 }
 0x202   : > { %1928 = vmatmul.mubr.f32.gmra.mrb[102].mxu1 %v13467_v50  ;;  %v11028_v50 = vpack.c.bf16 %v870_v23, %v869_v61 }
 0x203   : > { %1932 = vmatprep.mubr.f32.mxu1 %v13469_v63  ;;  %11023 = vmatpush1.bf16.msra.mxu1 %v11022_v31  ;;  %v871_v63 = vld [vmem:[#allocation7 + $0x1e0] sm:$0xff] }
 0x204   : > { %11024 = vmatprep.subr.bf16.mxu1 %v16573_v0  ;;  %9906 = vmatmul.mubr.f32.gmra.mrb[78].mxu0 %v13700_v11  ;;  %v13736_v31 = vld [vmem:[#allocation2 + $0xf4] sm:$0xff] }
 0x205   : > { %9908 = vmatprep.mubr.f32.mxu0 %v13708_v46 }
 0x206   : > { %1933 = vmatmul.mubr.f32.gmra.mrb[104].mxu1 %v13476_v2  ;;  %v11031_v2 = vpack.c.bf16 %v872_v55, %v871_v63  ;;  %v13758_v55 = vld [vmem:[#allocation2 + $0x114] sm:$0xff] }
 0x207   : > { %1937 = vmatprep.mubr.f32.mxu1 %v13478_v5  ;;  %11026 = vmatpush1.bf16.msra.mxu1 %v11025_v37  ;;  %v874_v5 = vld [vmem:[#allocation7 + $0x1f8] sm:$0xff] }
 0x208   : > { %11027 = vmatprep.subr.bf16.mxu1 %v16573_v0 }
 0x209   : > { %v1464_v15 = vpop.f32.mrb[0].mxu1 }
 0x20a   : > { %v1466_v51 = vpop.f32.mrb[1].mxu1  ;;  %1938 = vmatmul.mubr.f32.gmra.mrb[106].mxu1 %v13485_v12  ;;  %v11034_v12 = vpack.c.bf16 %v874_v5, %v873_v25  ;;  %v2709_v25 = vld [vmem:[#allocation7 + $0x708] sm:$0xff] }
 0x20b   : > { %1942 = vmatprep.mubr.f32.mxu1 %v13487_v8  ;;  %11029 = vmatpush1.bf16.msra.mxu1 %v11028_v50 }
 0x20c   : > { %11030 = vmatprep.subr.bf16.mxu1 %v16573_v0 }
 0x20d   : > { %v1469_v60 = vpop.f32.mrb[2].mxu1 }
 0x20e   : > { %v1471_v10 = vpop.f32.mrb[3].mxu1  ;;  %1943 = vmatmul.mubr.f32.gmra.mrb[108].mxu1 %v13494_v20 }
 0x20f   : > { %1947 = vmatprep.mubr.f32.mxu1 %v13496_v27  ;;  %11032 = vmatpush1.bf16.msra.mxu1 %v11031_v2  ;;  %v13712_v27 = vld [vmem:[#allocation2 + $0xcc] sm:$0xff] }
 0x210   : > { %11033 = vmatprep.subr.bf16.mxu1 %v16573_v0  ;;  %9909 = vmatmul.mubr.f32.gmra.mrb[80].mxu0 %v13712_v27  ;;  %v2708_v2 = vld [vmem:[#allocation7 + $0x700] sm:$0xff] }
 0x211   : > { %v1474_v8 = vpop.f32.mrb[4].mxu1  ;;  %9911 = vmatprep.mubr.f32.mxu0 %v13722_v22 }
 0x212   : > { %v1476_v52 = vpop.f32.mrb[5].mxu1  ;;  %1948 = vmatmul.mubr.f32.gmra.mrb[110].mxu1 %v13503_v29 }
 0x213   : > { %1952 = vmatprep.mubr.f32.mxu1 %v13505_v28  ;;  %11035 = vmatpush1.bf16.msra.mxu1 %v11034_v12  ;;  %v2710_v52 = vld [vmem:[#allocation7 + $0x710] sm:$0xff] }
 0x214   : > { %11068 = vmatprep.subr.bf16.mxu1 %v16573_v0  ;;  %9912 = vmatmul.mubr.f32.gmra.mrb[82].mxu0 %v13726_v18 }
 0x215   : > { %v1479_v20 = vpop.f32.mrb[6].mxu1  ;;  %9914 = vmatprep.mubr.f32.mxu0 %v13736_v31 }
 0x216   : > { %v1481_v43 = vpop.f32.mrb[7].mxu1  ;;  %1953 = vmatmul.mubr.f32.gmra.mrb[112].mxu1 %v13512_v40 }
 0x217   : > { %1957 = vmatprep.mubr.f32.mxu1 %v13514_v35 }
 0x218   : > { %9915 = vmatmul.mubr.f32.gmra.mrb[84].mxu0 %v13740_v57 }
 0x219   : > { %v13716_v29 = vpop.f32.mrb[8].mxu1 }
 0x21a   : > { %v1486_v28 = vpop.f32.mrb[9].mxu1  ;;  %1958 = vmatmul.mubr.f32.gmra.mrb[114].mxu1 %v13521_v54 }
 0x21b   : > { %1962 = vmatprep.mubr.f32.mxu1 %v13523_v36 }
 0x21d   : > { %v13720_v56 = vpop.f32.mrb[10].mxu1 }
 0x21e   : > { %v1491_v40 = vpop.f32.mrb[11].mxu1  ;;  %1963 = vmatmul.mubr.f32.gmra.mrb[116].mxu1 %v13530_v6 }
 0x21f   : > { %1967 = vmatprep.mubr.f32.mxu1 %v13532_v39 }
 0x221   : > { %v13730_v35 = vpop.f32.mrb[12].mxu1 }
 0x222   : > { %v1496_v54 = vpop.f32.mrb[13].mxu1  ;;  %1968 = vmatmul.mubr.f32.gmra.mrb[118].mxu1 %v13538_v21 }
 0x223   : > { %1972 = vmatprep.mubr.f32.mxu1 %v13540_v44 }
 0x225   : > { %v13734_v36 = vpop.f32.mrb[14].mxu1 }
 0x226   : > { %v1501_v6 = vpop.f32.mrb[15].mxu1  ;;  %1973 = vmatmul.mubr.f32.gmra.mrb[120].mxu1 %v13545_v45 }
 0x227   : > { %1977 = vmatprep.mubr.f32.mxu1 %v13547_v38  ;;  %v13754_v38 = vld [vmem:[#allocation2 + $0x10c] sm:$0xff] }
 0x228   : > { %v1239_v39 = vpop.f32.mrb[16].mxu0  ;;  %9917 = vmatprep.mubr.f32.mxu0 %v13754_v38 }
 0x229   : > { %v13744_v1 = vadd.f32 %v1464_v15, %v1239_v39  ;;  %v13746_v21 = vpop.f32.mrb[16].mxu1  ;;  %v1241_v44 = vpop.f32.mrb[17].mxu0  ;;  %9918 = vmatmul.mubr.f32.gmra.mrb[86].mxu0 %v13758_v55  ;;  %v2712_v39 = vld [vmem:[#allocation7 + $0x720] sm:$0xff] }
 0x22a   : > { %v1506_v37 = vpop.f32.mrb[17].mxu1  ;;  %1978 = vmatmul.mubr.f32.gmra.mrb[122].mxu1 %v13552_v26  ;;  %v2713_v44 = vld [vmem:[#allocation7 + $0x728] sm:$0xff] }
 0x22b   : > { %1982 = vmatprep.mubr.f32.mxu1 %v13554_v30  ;;  %v11172_v37 = vpack.c.bf16 %v2713_v44, %v2712_v39  ;;  %v16642_v44 = vld [vmem:[#allocation34_spill] sm:$0xff] }
 0x22c   : > { %v1244_v45 = vpop.f32.mrb[18].mxu0 }
 0x22d   : > { %v13750_v61 = vadd.f32 %v1469_v60, %v1244_v45  ;;  %v13752_v23 = vpop.f32.mrb[18].mxu1  ;;  %v1246_v50 = vpop.f32.mrb[19].mxu0 }
 0x22e   : > { %v1511_v63 = vpop.f32.mrb[19].mxu1  ;;  %1983 = vmatmul.mubr.f32.gmra.mrb[124].mxu1 %v13559_v32  ;;  %v11164_v32 = vpack.c.bf16 %v2709_v25, %v2708_v2 }
 0x22f   : > { %1987 = vmatprep.mubr.f32.mxu1 %v13561_v13  ;;  %v13792_v63 = vld [vmem:[#allocation2 + $0x13c] sm:$0xff] }
 0x230   : > { %v1249_v26 = vpop.f32.mrb[20].mxu0  ;;  %11165 = vmatprep.subr.bf16.mxu0 %v11164_v32 }
 0x231   : > { %v13762_v30 = vadd.f32 %v1474_v8, %v1249_v26  ;;  %v13764_v15 = vpop.f32.mrb[20].mxu1  ;;  %v1251_v51 = vpop.f32.mrb[21].mxu0  ;;  %v13772_v8 = vld [vmem:[#allocation2 + $0x124] sm:$0xff]  ;;  %11167 = vmatpush3.bf16.msra.mxu0 %v11164_v32 }
 0x232   : > { %v1516_v5 = vpop.f32.mrb[21].mxu1  ;;  %1988 = vmatmul.mubr.f32.gmra.mrb[126].mxu1 %v13566_v34  ;;  %9920 = vmatprep.mubr.f32.mxu0 %v13772_v8  ;;  %v13776_v34 = vld [vmem:[#allocation2 + $0x12c] sm:$0xff]  ;;  %v2714_v26 = vld [vmem:[#allocation7 + $0x730] sm:$0xff] }
 0x233   : > { %1992 = vmatprep.mubr.f32.mxu1 %v13568_v41  ;;  %9921 = vmatmul.mubr.f32.gmra.mrb[88].mxu0 %v13776_v34  ;;  %v2711_v41 = vld [vmem:[#allocation7 + $0x718] sm:$0xff] }
 0x234   : > { %v1254_v60 = vpop.f32.mrb[22].mxu0  ;;  %v11168_v28 = vpack.c.bf16 %v2711_v41, %v2710_v52  ;;  %9923 = vmatprep.mubr.f32.mxu0 %v13792_v63 }
 0x235   : > { %v13768_v10 = vadd.f32 %v1479_v20, %v1254_v60  ;;  %v13770_v13 = vpop.f32.mrb[22].mxu1  ;;  %v1256_v12 = vpop.f32.mrb[23].mxu0  ;;  %v2716_v60 = vld [vmem:[#allocation7 + $0x740] sm:$0xff] }
 0x236   : > { %v1521_v43 = vpop.f32.mrb[23].mxu1  ;;  %1993 = vmatmul.mubr.f32.gmra.mrb[128].mxu1 %v13573_v19  ;;  %11169 = vmatprep.subr.bf16.mxu0 %v11168_v28 }
 0x237   : > { %1997 = vmatprep.mubr.f32.mxu1 %v13575_v42  ;;  %11171 = vmatpush3.bf16.msra.mxu0 %v11168_v28  ;;  %v13812_v28 = vld [vmem:[#allocation2 + $0x154] sm:$0xff] }
 0x238   : > { %v1259_v20 = vpop.f32.mrb[24].mxu0  ;;  %11173 = vmatprep.subr.bf16.mxu0 %v11172_v37 }
 0x239   : > { %v13781_v40 = vadd.f32 %v13716_v29, %v1259_v20  ;;  %v13783_v54 = vpop.f32.mrb[24].mxu1  ;;  %v1261_v6 = vpop.f32.mrb[25].mxu0 }
 0x23a   : > { %v1526_v19 = vpop.f32.mrb[25].mxu1  ;;  %1998 = vmatmul.mubr.f32.gmra.mrb[130].mxu1 %v13580_v47  ;;  %v13796_v47 = vld [vmem:[#allocation2 + $0x144] sm:$0xff] }
 0x23b   : > { %2002 = vmatprep.mubr.f32.mxu1 %v13582_v53  ;;  %11175 = vmatpush3.bf16.msra.mxu0 %v11172_v37  ;;  %v2715_v53 = vld [vmem:[#allocation7 + $0x738] sm:$0xff]  ;;  %v2718_v6 = vld [vmem:[#allocation7 + $0x750] sm:$0xff] }
 0x23c   : > { %v1264_v42 = vpop.f32.mrb[26].mxu0  ;;  %9924 = vmatmul.mubr.f32.gmra.mrb[90].mxu0 %v13796_v47  ;;  %v16643_v19 = vld [vmem:[#allocation35_spill] sm:$0xff] }
 0x23d   : > { %v13788_v45 = vadd.f32 %v13720_v56, %v1264_v42  ;;  %v13790_v29 = vpop.f32.mrb[26].mxu1  ;;  %v1266_v50 = vpop.f32.mrb[27].mxu0  ;;  %v11176_v56 = vpack.c.bf16 %v2715_v53, %v2714_v26  ;;  %9926 = vmatprep.mubr.f32.mxu0 %v13812_v28  ;;  %v2719_v37 = vld [vmem:[#allocation7 + $0x758] sm:$0xff]  ;;  %v2720_v53 = vld [vmem:[#allocation7 + $0x760] sm:$0xff] }
 0x23e   : > { %v1531_v51 = vpop.f32.mrb[27].mxu1  ;;  %2003 = vmatmul.mubr.f32.gmra.mrb[132].mxu1 %v13587_v59  ;;  %v2717_v59 = vld [vmem:[#allocation7 + $0x748] sm:$0xff] }
 0x23f   : > { %2007 = vmatprep.mubr.f32.mxu1 %v13589_v4  ;;  %11177 = vmatprep.subr.bf16.mxu0 %v11176_v56  ;;  %v11180_v52 = vpack.c.bf16 %v2717_v59, %v2716_v60  ;;  %v16641_v4 = vld [vmem:[#allocation33_spill] sm:$0xff] }
 0x240   : > { %v1269_v2 = vpop.f32.mrb[28].mxu0  ;;  %11179 = vmatpush3.bf16.msra.mxu0 %v11176_v56  ;;  %v16645_v59 = vld [vmem:[#allocation37_spill] sm:$0xff] }
 0x241   : > { %v13801_v25 = vadd.f32 %v13730_v35, %v1269_v2  ;;  %v13803_v5 = vpop.f32.mrb[28].mxu1  ;;  %v1271_v32 = vpop.f32.mrb[29].mxu0  ;;  %11181 = vmatprep.subr.bf16.mxu0 %v11180_v52  ;;  %v2721_v2 = vld [vmem:[#allocation7 + $0x768] sm:$0xff] }
 0x242   : > { %v1536_v12 = vpop.f32.mrb[29].mxu1  ;;  %2008 = vmatmul.mubr.f32.gmra.mrb[134].mxu1 %v13593_v14  ;;  %v13816_v14 = vld [vmem:[#allocation2 + $0x15c] sm:$0xff]  ;;  %v16644_v32 = vld [vmem:[#allocation36_spill] sm:$0xff]  ;;  %v11188_v60 = vpack.c.bf16 %v2721_v2, %v2720_v53 }
 0x243   : > { %2012 = vmatprep.mubr.f32.mxu1 %v16641_v4  ;;  %9927 = vmatmul.mubr.f32.gmra.mrb[92].mxu0 %v13816_v14 }
 0x244   : > { %v1274_v43 = vpop.f32.mrb[30].mxu0  ;;  %11183 = vmatpush3.bf16.msra.mxu0 %v11180_v52 }
 0x245   : > { %v13808_v41 = vadd.f32 %v13734_v36, %v1274_v43  ;;  %v13810_v35 = vpop.f32.mrb[30].mxu1  ;;  %v1276_v20 = vpop.f32.mrb[31].mxu0  ;;  %v11184_v36 = vpack.c.bf16 %v2719_v37, %v2718_v6  ;;  %v13832_v43 = vld [vmem:[#allocation2 + $0x16c] sm:$0xff] }
 0x246   : > { %v1541_v39 = vpop.f32.mrb[31].mxu1  ;;  %2013 = vmatmul.mubr.f32.gmra.mrb[136].mxu1 %v16642_v44  ;;  %v2722_v20 = vld [vmem:[#allocation7 + $0x770] sm:$0xff]  ;;  %9929 = vmatprep.mubr.f32.mxu0 %v13832_v43  ;;  %v13836_v44 = vld [vmem:[#allocation2 + $0x174] sm:$0xff]  ;;  %v2723_v37 = vld [vmem:[#allocation7 + $0x778] sm:$0xff] }
 0x247   : > { %2017 = vmatprep.mubr.f32.mxu1 %v16643_v19  ;;  %11185 = vmatprep.subr.bf16.mxu0 %v11184_v36  ;;  %v16646_v39 = vld [vmem:[#allocation38_spill] sm:$0xff]  ;;  %v16647_v19 = vld [vmem:[#allocation39_spill] sm:$0xff]  ;;  %v11192_v53 = vpack.c.bf16 %v2723_v37, %v2722_v20 }
 0x248   : > { %v1279_v42 = vpop.f32.mrb[32].mxu0  ;;  %11187 = vmatpush3.bf16.msra.mxu0 %v11184_v36  ;;  %v2644_v36 = vld [vmem:[#allocation7 + $0x500] sm:$0xff]  ;;  %v2646_v37 = vld [vmem:[#allocation7 + $0x510] sm:$0xff] }
 0x249   : > { %v13821_v50 = vadd.f32 %v13746_v21, %v1279_v42  ;;  %v13823_v26 = vpop.f32.mrb[32].mxu1  ;;  %v1281_v51 = vpop.f32.mrb[33].mxu0  ;;  %11189 = vmatprep.subr.bf16.mxu0 %v11188_v60  ;;  %9930 = vmatmul.mubr.f32.gmra.mrb[94].mxu0 %v13836_v44  ;;  %v748_v20 = vld [vmem:[#allocation2 + $0xb] sm:$0xff] }
 0x24a   : > { %v1546_v56 = vpop.f32.mrb[33].mxu1  ;;  %2018 = vmatmul.mubr.f32.gmra.mrb[138].mxu1 %v16644_v32  ;;  %v2645_v51 = vld [vmem:[#allocation7 + $0x508] sm:$0xff]  ;;  %9964 = vmatprep.mubr.f32.mxu0 %v13640_v48 }
 0x24b   : > { %2022 = vmatprep.mubr.f32.mxu1 %v16645_v59 }
 0x24c   : > { %v1284_v12 = vpop.f32.mrb[34].mxu0  ;;  %11191 = vmatpush3.bf16.msra.mxu0 %v11188_v60  ;;  %v3593_v60 = vld [vmem:[#allocation7 + $0x780] sm:$0xff] }
 0x24d   : > { %v13828_v52 = vadd.f32 %v13752_v23, %v1284_v12  ;;  %v13830_v21 = vpop.f32.mrb[34].mxu1  ;;  %v1286_v4 = vpop.f32.mrb[35].mxu0  ;;  %v747_v23 = vld [vmem:[#allocation2 + $0x3] sm:$0xff]  ;;  %v16649_v12 = vld [vmem:[#allocation40_spill] sm:$0xff]  ;;  %11193 = vmatprep.subr.bf16.mxu0 %v11192_v53 }
 0x24e   : > { %v1551_v6 = vpop.f32.mrb[35].mxu1  ;;  %2023 = vmatmul.mubr.f32.gmra.mrb[140].mxu1 %v16646_v39  ;;  %v3594_v4 = vld [vmem:[#allocation7 + $0x788] sm:$0xff]  ;;  %v11069_v39 = vpack.c.bf16 %v2645_v51, %v2644_v36  ;;  %v716_v36 = vld [vmem:[#allocation2 + $0xa] sm:$0xff] }
 0x24f   : > { %2027 = vmatprep.mubr.f32.mxu1 %v16647_v19  ;;  %v715_v6 = vld [vmem:[#allocation2 + $0x2] sm:$0xff] }
 0x250   : > { %v1289_v42 = vpop.f32.mrb[36].mxu0  ;;  %11195 = vmatpush3.bf16.msra.mxu0 %v11192_v53  ;;  %v3596_v53 = vld [vmem:[#allocation7 + $0x798] sm:$0xff] }
 0x251   : > { %v13841_v2 = vadd.f32 %v13764_v15, %v1289_v42  ;;  %v13843_v56 = vpop.f32.mrb[36].mxu1  ;;  %v1291_v32 = vpop.f32.mrb[37].mxu0  ;;  %v2647_v15 = vld [vmem:[#allocation7 + $0x518] sm:$0xff]  ;;  %11196 = vmatprep.subr.bf16.mxu0 %v16573_v0  ;;  %v11197_v42 = vpack.c.bf16 %v3594_v4, %v3593_v60  ;;  %v2648_v60 = vld [vmem:[#allocation7 + $0x520] sm:$0xff]  ;;  %v2649_v4 = vld [vmem:[#allocation7 + $0x528] sm:$0xff] }
 0x252   : > { %v1556_v59 = vpop.f32.mrb[37].mxu1  ;;  %2028 = vmatmul.mubr.f32.gmra.mrb[142].mxu1 %v16649_v12  ;;  %v11072_v51 = vpack.c.bf16 %v2647_v15, %v2646_v37  ;;  %v12393_v37 = vld [vmem:[#allocation2 + $0x1b] sm:$0xff]  ;;  %v11075_v15 = vpack.c.bf16 %v2649_v4, %v2648_v60 }
 0x253   : > { %16648 = vst [vmem:[#allocation33_spill] sm:$0xff] %v13841_v2  ;;  %2097 = vmatprep.mubr.f32.mxu1 %v747_v23  ;;  %9965 = vmatmul.mubr.f32.vlgmr.msra.gmra.mrb[96].mxu0 %v13643_v17  ;;  %v3595_v23 = vld [vmem:[#allocation7 + $0x790] sm:$0xff] }
 0x254   : > { %v1294_v19 = vpop.f32.mrb[38].mxu0  ;;  %11198 = vmatpush1.bf16.msra.mxu0 %v11197_v42  ;;  %9967 = vmatprep.mubr.f32.mxu0 %v13648_v16  ;;  %v3599_v4 = vld [vmem:[#allocation7 + $0x7b0] sm:$0xff] }
 0x255   : > { %v13849_v32 = vadd.f32 %v13770_v13, %v1294_v19  ;;  %v13851_v48 = vpop.f32.mrb[38].mxu1  ;;  %v1296_v59 = vpop.f32.mrb[39].mxu0  ;;  %v11200_v13 = vpack.c.bf16 %v3596_v53, %v3595_v23  ;;  %11199 = vmatprep.subr.bf16.mxu0 %v16573_v0  ;;  %v12395_v53 = vld [vmem:[#allocation2 + $0x23] sm:$0xff] }
 0x256   : > { %v1561_v12 = vpop.f32.mrb[39].mxu1  ;;  %2098 = vmatmul.mubr.f32.vlgmr.msra.gmra.mrb[80].mxu1 %v715_v6 }
 0x257   : > { %11070 = vmatpush1.bf16.msra.mxu1 %v11069_v39  ;;  %2102 = vmatprep.mubr.f32.mxu1 %v748_v20  ;;  %v3597_v39 = vld [vmem:[#allocation7 + $0x7a0] sm:$0xff]  ;;  %v3598_v20 = vld [vmem:[#allocation7 + $0x7a8] sm:$0xff] }
 0x258   : > { %v1299_v2 = vpop.f32.mrb[40].mxu0  ;;  %11071 = vmatprep.subr.bf16.mxu1 %v16573_v0  ;;  %9968 = vmatmul.mubr.f32.gmra.mrb[98].mxu0 %v13652_v7  ;;  %v11203_v12 = vpack.c.bf16 %v3598_v20, %v3597_v39 }
 0x259   : > { %v13856_v19 = vadd.f32 %v13783_v54, %v1299_v2  ;;  %v13858_v59 = vpop.f32.mrb[40].mxu1  ;;  %v1301_v6 = vpop.f32.mrb[41].mxu0  ;;  %v2650_v54 = vld [vmem:[#allocation7 + $0x530] sm:$0xff]  ;;  %v2651_v2 = vld [vmem:[#allocation7 + $0x538] sm:$0xff]  ;;  %11201 = vmatpush1.bf16.msra.mxu0 %v11200_v13  ;;  %9970 = vmatprep.mubr.f32.mxu0 %v13660_v24 }
 0x25a   : > { %v1566_v17 = vpop.f32.mrb[41].mxu1  ;;  %2103 = vmatmul.mubr.f32.gmra.mrb[144].mxu1 %v716_v36  ;;  %11202 = vmatprep.subr.bf16.mxu0 %v16573_v0  ;;  %v11078_v60 = vpack.c.bf16 %v2651_v2, %v2650_v54  ;;  %v3600_v13 = vld [vmem:[#allocation7 + $0x7b8] sm:$0xff]  ;;  %v2652_v6 = vld [vmem:[#allocation7 + $0x540] sm:$0xff]  ;;  %v3602_v54 = vld [vmem:[#allocation7 + $0x7c8] sm:$0xff] }
 0x25b   : > { %2107 = vmatprep.mubr.f32.mxu1 %v12393_v37  ;;  %11073 = vmatpush1.bf16.msra.mxu1 %v11072_v51  ;;  %v12394_v51 = vld [vmem:[#allocation2 + $0x1a] sm:$0xff]  ;;  %v11206_v24 = vpack.c.bf16 %v3600_v13, %v3599_v4 }
 0x25c   : > { %v1304_v42 = vpop.f32.mrb[42].mxu0  ;;  %11074 = vmatprep.subr.bf16.mxu1 %v16573_v0  ;;  %9971 = vmatmul.mubr.f32.gmra.mrb[100].mxu0 %v13664_v49  ;;  %v2653_v17 = vld [vmem:[#allocation7 + $0x548] sm:$0xff] }
 0x25d   : > { %v13865_v16 = vadd.f32 %v13790_v29, %v1304_v42  ;;  %v13867_v23 = vpop.f32.mrb[42].mxu1  ;;  %v1306_v36 = vpop.f32.mrb[43].mxu0  ;;  %11204 = vmatpush1.bf16.msra.mxu0 %v11203_v12  ;;  %9973 = vmatprep.mubr.f32.mxu0 %v13672_v9  ;;  %v3601_v42 = vld [vmem:[#allocation7 + $0x7c0] sm:$0xff] }
 0x25e   : > { %v1571_v7 = vpop.f32.mrb[43].mxu1  ;;  %2108 = vmatmul.mubr.f32.gmra.mrb[84].mxu1 %v12394_v51  ;;  %11205 = vmatprep.subr.bf16.mxu0 %v16573_v0  ;;  %v12397_v2 = vld [vmem:[#allocation2 + $0x33] sm:$0xff]  ;;  %v2655_v51 = vld [vmem:[#allocation7 + $0x558] sm:$0xff]  ;;  %v11209_v9 = vpack.c.bf16 %v3602_v54, %v3601_v42 }
 0x25f   : > { %2112 = vmatprep.mubr.f32.mxu1 %v12395_v53  ;;  %11076 = vmatpush1.bf16.msra.mxu1 %v11075_v15  ;;  %v12396_v15 = vld [vmem:[#allocation2 + $0x22] sm:$0xff]  ;;  %v719_v12 = vld [vmem:[#allocation2 + $0x32] sm:$0xff] }
 0x260   : > { %v1309_v29 = vpop.f32.mrb[44].mxu0  ;;  %11077 = vmatprep.subr.bf16.mxu1 %v16573_v0  ;;  %9974 = vmatmul.mubr.f32.gmra.mrb[102].mxu0 %v13676_v58  ;;  %v2654_v7 = vld [vmem:[#allocation7 + $0x550] sm:$0xff] }
 0x261   : > { %v13874_v39 = vadd.f32 %v13803_v5, %v1309_v29  ;;  %v13876_v20 = vpop.f32.mrb[44].mxu1  ;;  %v1311_v37 = vpop.f32.mrb[45].mxu0  ;;  %v11081_v5 = vpack.c.bf16 %v2653_v17, %v2652_v6  ;;  %11207 = vmatpush1.bf16.msra.mxu0 %v11206_v24  ;;  %9976 = vmatprep.mubr.f32.mxu0 %v13684_v3  ;;  %v720_v29 = vld [vmem:[#allocation2 + $0x3a] sm:$0xff]  ;;  %v11084_v6 = vpack.c.bf16 %v2655_v51, %v2654_v7  ;;  %v3604_v24 = vld [vmem:[#allocation7 + $0x7d8] sm:$0xff] }
 0x262   : > { %v1576_v49 = vpop.f32.mrb[45].mxu1  ;;  %2113 = vmatmul.mubr.f32.gmra.mrb[146].mxu1 %v12396_v15  ;;  %11208 = vmatprep.subr.bf16.mxu0 %v16573_v0  ;;  %v3603_v17 = vld [vmem:[#allocation7 + $0x7d0] sm:$0xff]  ;;  %v2656_v37 = vld [vmem:[#allocation7 + $0x560] sm:$0xff] }
 0x263   : > { %2117 = vmatprep.mubr.f32.mxu1 %v12397_v2  ;;  %11079 = vmatpush1.bf16.msra.mxu1 %v11078_v60  ;;  %v12398_v60 = vld [vmem:[#allocation2 + $0x3b] sm:$0xff]  ;;  %v11212_v3 = vpack.c.bf16 %v3604_v24, %v3603_v17  ;;  %v3605_v2 = vld [vmem:[#allocation7 + $0x7e0] sm:$0xff] }
 0x264   : > { %v1314_v36 = vpop.f32.mrb[46].mxu0  ;;  %11080 = vmatprep.subr.bf16.mxu1 %v16573_v0  ;;  %9977 = vmatmul.mubr.f32.gmra.mrb[104].mxu0 %v13688_v62  ;;  %v2657_v49 = vld [vmem:[#allocation7 + $0x568] sm:$0xff]  ;;  %v2658_v51 = vld [vmem:[#allocation7 + $0x570] sm:$0xff] }
 0x265   : > { %v13883_v53 = vadd.f32 %v13810_v35, %v1314_v36  ;;  %v13885_v4 = vpop.f32.mrb[46].mxu1  ;;  %v1316_v58 = vpop.f32.mrb[47].mxu0  ;;  %11210 = vmatpush1.bf16.msra.mxu0 %v11209_v9  ;;  %9979 = vmatprep.mubr.f32.mxu0 %v13696_v33  ;;  %v721_v36 = vld [vmem:[#allocation2 + $0x4a] sm:$0xff]  ;;  %v3607_v24 = vld [vmem:[#allocation7 + $0x7f0] sm:$0xff] }
 0x266   : > { %v1581_v13 = vpop.f32.mrb[47].mxu1  ;;  %2118 = vmatmul.mubr.f32.gmra.mrb[88].mxu1 %v719_v12  ;;  %11211 = vmatprep.subr.bf16.mxu0 %v16573_v0  ;;  %v3606_v12 = vld [vmem:[#allocation7 + $0x7e8] sm:$0xff]  ;;  %v2659_v9 = vld [vmem:[#allocation7 + $0x578] sm:$0xff] }
 0x267   : > { %2122 = vmatprep.mubr.f32.mxu1 %v12398_v60  ;;  %11082 = vmatpush1.bf16.msra.mxu1 %v11081_v5  ;;  %v12399_v5 = vld [vmem:[#allocation2 + $0x4b] sm:$0xff]  ;;  %v11215_v33 = vpack.c.bf16 %v3606_v12, %v3605_v2  ;;  %v11090_v17 = vpack.c.bf16 %v2659_v9, %v2658_v51  ;;  %v2662_v51 = vld [vmem:[#allocation7 + $0x590] sm:$0xff] }
 0x268   : > { %v1319_v35 = vpop.f32.mrb[48].mxu0  ;;  %11083 = vmatprep.subr.bf16.mxu1 %v16573_v0  ;;  %9980 = vmatmul.mubr.f32.gmra.mrb[106].mxu0 %v13700_v11  ;;  %v3609_v12 = vld [vmem:[#allocation7 + $0x800] sm:$0xff]  ;;  %v2663_v9 = vld [vmem:[#allocation7 + $0x598] sm:$0xff] }
 0x269   : > { %v13892_v15 = vadd.f32 %v13823_v26, %v1319_v35  ;;  %v13894_v42 = vpop.f32.mrb[48].mxu1  ;;  %v1321_v62 = vpop.f32.mrb[49].mxu0  ;;  %v11087_v26 = vpack.c.bf16 %v2657_v49, %v2656_v37  ;;  %11213 = vmatpush1.bf16.msra.mxu0 %v11212_v3  ;;  %9982 = vmatprep.mubr.f32.mxu0 %v13708_v46  ;;  %v2660_v37 = vld [vmem:[#allocation7 + $0x580] sm:$0xff]  ;;  %v2661_v49 = vld [vmem:[#allocation7 + $0x588] sm:$0xff] }
 0x26a   : > { %v13898_v54 = vpop.f32.mrb[49].mxu1  ;;  %2123 = vmatmul.mubr.f32.gmra.mrb[148].mxu1 %v720_v29  ;;  %11214 = vmatprep.subr.bf16.mxu0 %v16573_v0  ;;  %v12400_v29 = vld [vmem:[#allocation2 + $0x53] sm:$0xff] }
 0x26b   : > { %2127 = vmatprep.mubr.f32.mxu1 %v12399_v5  ;;  %11085 = vmatpush1.bf16.msra.mxu1 %v11084_v6  ;;  %v722_v6 = vld [vmem:[#allocation2 + $0x52] sm:$0xff] }
 0x26c   : > { %v1324_v7 = vpop.f32.mrb[50].mxu0  ;;  %11086 = vmatprep.subr.bf16.mxu1 %v16573_v0  ;;  %9983 = vmatmul.mubr.f32.gmra.mrb[108].mxu0 %v13712_v27  ;;  %v3610_v5 = vld [vmem:[#allocation7 + $0x808] sm:$0xff] }
 0x26d   : > { %v13903_v58 = vadd.f32 %v13830_v21, %v1324_v7  ;;  %v13905_v13 = vpop.f32.mrb[50].mxu1  ;;  %v1326_v11 = vpop.f32.mrb[51].mxu0  ;;  %v3608_v21 = vld [vmem:[#allocation7 + $0x7f8] sm:$0xff]  ;;  %11216 = vmatpush1.bf16.msra.mxu0 %v11215_v33  ;;  %9985 = vmatprep.mubr.f32.mxu0 %v13722_v22  ;;  %v11221_v22 = vpack.c.bf16 %v3610_v5, %v3609_v12 }
 0x26e   : > { %v13909_v60 = vpop.f32.mrb[51].mxu1  ;;  %2128 = vmatmul.mubr.f32.gmra.mrb[92].mxu1 %v721_v36  ;;  %v11218_v46 = vpack.c.bf16 %v3608_v21, %v3607_v24  ;;  %11217 = vmatprep.subr.bf16.mxu0 %v16573_v0  ;;  %v12401_v36 = vld [vmem:[#allocation2 + $0x63] sm:$0xff]  ;;  %v11096_v24 = vpack.c.bf16 %v2663_v9, %v2662_v51 }
 0x26f   : > { %2132 = vmatprep.mubr.f32.mxu1 %v12400_v29  ;;  %11088 = vmatpush1.bf16.msra.mxu1 %v11087_v26  ;;  %v723_v26 = vld [vmem:[#allocation2 + $0x62] sm:$0xff] }
 0x270   : > { %v1329_v35 = vpop.f32.mrb[52].mxu0  ;;  %11089 = vmatprep.subr.bf16.mxu1 %v16573_v0  ;;  %9986 = vmatmul.mubr.f32.gmra.mrb[110].mxu0 %v13726_v18  ;;  %v3611_v21 = vld [vmem:[#allocation7 + $0x810] sm:$0xff] }
 0x271   : > { %v13914_v3 = vadd.f32 %v13843_v56, %v1329_v35  ;;  %v13916_v62 = vpop.f32.mrb[52].mxu1  ;;  %v1331_v27 = vpop.f32.mrb[53].mxu0  ;;  %v11093_v56 = vpack.c.bf16 %v2661_v49, %v2660_v37  ;;  %11219 = vmatpush1.bf16.msra.mxu0 %v11218_v46  ;;  %9988 = vmatprep.mubr.f32.mxu0 %v13736_v31  ;;  %v757_v37 = vld [vmem:[#allocation2 + $0x7b] sm:$0xff]  ;;  %v2664_v49 = vld [vmem:[#allocation7 + $0x5a0] sm:$0xff] }
 0x272   : > { %v13920_v2 = vpop.f32.mrb[53].mxu1  ;;  %2133 = vmatmul.mubr.f32.gmra.mrb[150].mxu1 %v722_v6  ;;  %11220 = vmatprep.subr.bf16.mxu0 %v16573_v0  ;;  %v12402_v6 = vld [vmem:[#allocation2 + $0x6b] sm:$0xff]  ;;  %v2665_v31 = vld [vmem:[#allocation7 + $0x5a8] sm:$0xff] }
 0x273   : > { %2137 = vmatprep.mubr.f32.mxu1 %v12401_v36  ;;  %11091 = vmatpush1.bf16.msra.mxu1 %v11090_v17  ;;  %v724_v17 = vld [vmem:[#allocation2 + $0x6a] sm:$0xff] }
 0x274   : > { %v1334_v7 = vpop.f32.mrb[54].mxu0  ;;  %11092 = vmatprep.subr.bf16.mxu1 %v16573_v0  ;;  %9989 = vmatmul.mubr.f32.gmra.mrb[112].mxu0 %v13740_v57 }
 0x275   : > { %v13925_v33 = vadd.f32 %v13851_v48, %v1334_v7  ;;  %v13927_v11 = vpop.f32.mrb[54].mxu1  ;;  %v1336_v18 = vpop.f32.mrb[55].mxu0  ;;  %v3612_v48 = vld [vmem:[#allocation7 + $0x818] sm:$0xff]  ;;  %11222 = vmatpush1.bf16.msra.mxu0 %v11221_v22  ;;  %9991 = vmatprep.mubr.f32.mxu0 %v13754_v38  ;;  %v725_v7 = vld [vmem:[#allocation2 + $0x7a] sm:$0xff] }
 0x276   : > { %v13931_v29 = vpop.f32.mrb[55].mxu1  ;;  %2138 = vmatmul.mubr.f32.gmra.mrb[96].mxu1 %v723_v26  ;;  %v11224_v46 = vpack.c.bf16 %v3612_v48, %v3611_v21  ;;  %11223 = vmatprep.subr.bf16.mxu0 %v16573_v0  ;;  %v3613_v26 = vld [vmem:[#allocation7 + $0x820] sm:$0xff]  ;;  %v758_v38 = vld [vmem:[#allocation2 + $0x83] sm:$0xff] }
 0x277   : > { %2142 = vmatprep.mubr.f32.mxu1 %v12402_v6  ;;  %11094 = vmatpush1.bf16.msra.mxu1 %v11093_v56  ;;  %v3614_v56 = vld [vmem:[#allocation7 + $0x828] sm:$0xff]  ;;  %v2666_v22 = vld [vmem:[#allocation7 + $0x5b0] sm:$0xff]  ;;  %v2667_v18 = vld [vmem:[#allocation7 + $0x5b8] sm:$0xff] }
 0x278   : > { %v1339_v35 = vpop.f32.mrb[56].mxu0  ;;  %11095 = vmatprep.subr.bf16.mxu1 %v16573_v0  ;;  %9992 = vmatmul.mubr.f32.gmra.mrb[114].mxu0 %v13758_v55  ;;  %v726_v21 = vld [vmem:[#allocation2 + $0x82] sm:$0xff]  ;;  %v11102_v48 = vpack.c.bf16 %v2667_v18, %v2666_v22 }
 0x279   : > { %v13936_v27 = vadd.f32 %v13858_v59, %v1339_v35  ;;  %v9818_v12 = vpop.f32.mrb[56].mxu1  ;;  %v1341_v57 = vpop.f32.mrb[57].mxu0  ;;  %v11099_v59 = vpack.c.bf16 %v2665_v31, %v2664_v49  ;;  %11225 = vmatpush1.bf16.msra.mxu0 %v11224_v46  ;;  %9994 = vmatprep.mubr.f32.mxu0 %v13772_v8  ;;  %v3615_v35 = vld [vmem:[#allocation7 + $0x830] sm:$0xff]  ;;  %v759_v8 = vld [vmem:[#allocation2 + $0x93] sm:$0xff]  ;;  %v2671_v22 = vld [vmem:[#allocation7 + $0x5d8] sm:$0xff] }
 0x27a   : > { %v1689_v5 = vpop.f32.mrb[57].mxu1  ;;  %2143 = vmatmul.mubr.f32.gmra.mrb[152].mxu1 %v724_v17  ;;  %v13941_v36 = vadd.f32 %v9818_v12, %v13750_v61  ;;  %v11227_v61 = vpack.c.bf16 %v3614_v56, %v3613_v26  ;;  %11226 = vmatprep.subr.bf16.mxu0 %v16573_v0  ;;  %v2668_v31 = vld [vmem:[#allocation7 + $0x5c0] sm:$0xff]  ;;  %v2669_v46 = vld [vmem:[#allocation7 + $0x5c8] sm:$0xff] }
 0x27b   : > { %2147 = vmatprep.mubr.f32.mxu1 %v757_v37  ;;  %11097 = vmatpush1.bf16.msra.mxu1 %v11096_v24  ;;  %v13945_v51 = vadd.f32 %v1689_v5, %v13744_v1  ;;  %v3617_v26 = vld [vmem:[#allocation7 + $0x840] sm:$0xff]  ;;  %v3618_v56 = vld [vmem:[#allocation7 + $0x848] sm:$0xff] }
 0x27c   : > { %v1344_v9 = vpop.f32.mrb[58].mxu0  ;;  %11098 = vmatprep.subr.bf16.mxu1 %v16573_v0  ;;  %9995 = vmatmul.mubr.f32.gmra.mrb[116].mxu0 %v13776_v34 }
 0x27d   : > { %16650 = vst [vmem:[#allocation34_spill] sm:$0xff] %v13945_v51  ;;  %v13949_v6 = vadd.f32 %v13867_v23, %v1344_v9  ;;  %v9821_v55 = vpop.f32.mrb[58].mxu1  ;;  %v1346_v17 = vpop.f32.mrb[59].mxu0  ;;  %v3616_v23 = vld [vmem:[#allocation7 + $0x838] sm:$0xff]  ;;  %11228 = vmatpush1.bf16.msra.mxu0 %v11227_v61  ;;  %9997 = vmatprep.mubr.f32.mxu0 %v13792_v63  ;;  %v760_v63 = vld [vmem:[#allocation2 + $0x9b] sm:$0xff] }
 0x27e   : > { %v1699_v24 = vpop.f32.mrb[59].mxu1  ;;  %2148 = vmatmul.mubr.f32.gmra.mrb[100].mxu1 %v725_v7  ;;  %v13954_v1 = vadd.f32 %v9821_v55, %v13768_v10  ;;  %v11230_v10 = vpack.c.bf16 %v3616_v23, %v3615_v35  ;;  %11229 = vmatprep.subr.bf16.mxu0 %v16573_v0  ;;  %v727_v7 = vld [vmem:[#allocation2 + $0x92] sm:$0xff]  ;;  %v3620_v35 = vld [vmem:[#allocation7 + $0x858] sm:$0xff] }
 0x27f   : > { %2152 = vmatprep.mubr.f32.mxu1 %v758_v38  ;;  %11100 = vmatpush1.bf16.msra.mxu1 %v11099_v59  ;;  %v13958_v37 = vadd.f32 %v1699_v24, %v13762_v30  ;;  %v2670_v38 = vld [vmem:[#allocation7 + $0x5d0] sm:$0xff]  ;;  %v761_v17 = vld [vmem:[#allocation2 + $0xab] sm:$0xff] }
 0x280   : > { %v1349_v49 = vpop.f32.mrb[60].mxu0  ;;  %11101 = vmatprep.subr.bf16.mxu1 %v16573_v0  ;;  %9998 = vmatmul.mubr.f32.gmra.mrb[118].mxu0 %v13796_v47  ;;  %v745_v51 = vld [vmem:[#allocation2 + $0x16a] sm:$0xff] }
 0x281   : > { %16651 = vst [vmem:[#allocation35_spill] sm:$0xff] %v13958_v37  ;;  %v13962_v12 = vadd.f32 %v13876_v20, %v1349_v49  ;;  %v9824_v34 = vpop.f32.mrb[60].mxu1  ;;  %v1351_v57 = vpop.f32.mrb[61].mxu0  ;;  %v11105_v20 = vpack.c.bf16 %v2669_v46, %v2668_v31  ;;  %11231 = vmatpush1.bf16.msra.mxu0 %v11230_v10  ;;  %10000 = vmatprep.mubr.f32.mxu0 %v13812_v28  ;;  %v2673_v49 = vld [vmem:[#allocation7 + $0x5e8] sm:$0xff]  ;;  %v584_v31 = vld [vmem:[%s13248_s16 + $0xf0] sm:$0xff]  ;;  %v14179_v37 = vld [vmem:[#allocation2 + $0xe0] sm:$0xff] }
 0x282   : > { %v1709_v5 = vpop.f32.mrb[61].mxu1  ;;  %2153 = vmatmul.mubr.f32.gmra.mrb[154].mxu1 %v726_v21  ;;  %v13967_v30 = vadd.f32 %v9824_v34, %v13788_v45  ;;  %v11233_v45 = vpack.c.bf16 %v3618_v56, %v3617_v26  ;;  %11232 = vmatprep.subr.bf16.mxu0 %v16573_v0  ;;  %v2672_v21 = vld [vmem:[#allocation7 + $0x5e0] sm:$0xff]  ;;  %617 = vst [vmem:[#allocation2 + $0x19a] sm:$0xff] %v584_v31  ;;  %v2639_v57 = vld [vmem:[#allocation2 + $0x184] sm:$0xff]  ;;  %v3622_v26 = vld [vmem:[#allocation7 + $0x868] sm:$0xff] }
 0x283   : > { %2157 = vmatprep.mubr.f32.mxu1 %v759_v8  ;;  %11103 = vmatpush1.bf16.msra.mxu1 %v11102_v48  ;;  %v13971_v59 = vadd.f32 %v1709_v5, %v13781_v40  ;;  %v728_v40 = vld [vmem:[#allocation2 + $0x9a] sm:$0xff]  ;;  %v3621_v5 = vld [vmem:[#allocation7 + $0x860] sm:$0xff]  ;;  %v11111_v56 = vpack.c.bf16 %v2673_v49, %v2672_v21 }
 0x284   : > { %v1354_v9 = vpop.f32.mrb[62].mxu0  ;;  %11104 = vmatprep.subr.bf16.mxu1 %v16573_v0  ;;  %10001 = vmatmul.mubr.f32.gmra.mrb[120].mxu0 %v13816_v14  ;;  %v3619_v48 = vld [vmem:[#allocation7 + $0x850] sm:$0xff] }
 0x285   : > { %16652 = vst [vmem:[#allocation36_spill] sm:$0xff] %v13971_v59  ;;  %v13975_v18 = vadd.f32 %v13885_v4, %v1354_v9  ;;  %v9827_v47 = vpop.f32.mrb[62].mxu1  ;;  %v1356_v61 = vpop.f32.mrb[63].mxu0  ;;  %v11108_v4 = vpack.c.bf16 %v2671_v22, %v2670_v38  ;;  %11234 = vmatpush1.bf16.msra.mxu0 %v11233_v45  ;;  %v11236_v8 = vpack.c.bf16 %v3620_v35, %v3619_v48  ;;  %v762_v9 = vld [vmem:[#allocation2 + $0xb3] sm:$0xff]  ;;  %v763_v48 = vld [vmem:[#allocation2 + $0xc3] sm:$0xff]  ;;  %v777_v59 = vld [vmem:[#allocation2 + $0x16b] sm:$0xff] }
 0x286   : > { %v1719_v55 = vpop.f32.mrb[63].mxu1  ;;  %2158 = vmatmul.mubr.f32.gmra.mrb[104].mxu1 %v727_v7  ;;  %v13980_v24 = vadd.f32 %v9827_v47, %v13808_v41  ;;  %v585_v41 = vld [vmem:[%s13248_s16 + $0xf8] sm:$0xff]  ;;  %10003 = vmatprep.mubr.f32.mxu0 %v13832_v43  ;;  %v2640_v7 = vld [vmem:[#allocation2 + $0x18c] sm:$0xff]  ;;  %v11239_v38 = vpack.c.bf16 %v3622_v26, %v3621_v5 }
 0x287   : > { %2162 = vmatprep.mubr.f32.mxu1 %v760_v63  ;;  %11106 = vmatpush1.bf16.msra.mxu1 %v11105_v20  ;;  %v13984_v28 = vadd.f32 %v1719_v55, %v13801_v25  ;;  %618 = vst [vmem:[#allocation2 + $0x1a2] sm:$0xff] %v585_v41  ;;  %v2674_v63 = vld [vmem:[#allocation7 + $0x5f0] sm:$0xff]  ;;  %v730_v61 = vld [vmem:[#allocation2 + $0xb2] sm:$0xff]  ;;  %v14024_v5 = vld [vmem:[#allocation2 + $0x49] sm:$0xff] }
 0x288   : > { %v1424_v23 = vpop.f32.mrb[0].mxu0  ;;  %11107 = vmatprep.subr.bf16.mxu1 %v16573_v0  ;;  %11235 = vmatprep.subr.bf16.mxu0 %v16573_v0 }
 0x289   : > { %16653 = vst [vmem:[#allocation37_spill] sm:$0xff] %v13984_v28  ;;  %v13990_v46 = vadd.f32 %v13898_v54, %v1424_v23  ;;  %v9830_v14 = vpop.f32.mrb[64].mxu1  ;;  %v1426_v10 = vpop.f32.mrb[1].mxu0  ;;  %10004 = vmatmul.mubr.f32.gmra.mrb[122].mxu0 %v13836_v44  ;;  %v729_v54 = vld [vmem:[#allocation2 + $0xaa] sm:$0xff]  ;;  %v14175_v28 = vld [vmem:[#allocation2 + $0xe1] sm:$0xff] }
 0x28a   : > { %v1729_v25 = vpop.f32.mrb[65].mxu1  ;;  %2163 = vmatmul.mubr.f32.gmra.mrb[156].mxu1 %v728_v40  ;;  %v13995_v34 = vadd.f32 %v9830_v14, %v13828_v52  ;;  %v2675_v52 = vld [vmem:[#allocation7 + $0x5f8] sm:$0xff]  ;;  %11237 = vmatpush1.bf16.msra.mxu0 %v11236_v8  ;;  %v3623_v40 = vld [vmem:[#allocation7 + $0x870] sm:$0xff] }
 0x28b   : > { %2167 = vmatprep.mubr.f32.mxu1 %v761_v17  ;;  %11109 = vmatpush1.bf16.msra.mxu1 %v11108_v4  ;;  %v13999_v43 = vadd.f32 %v1729_v25, %v13821_v50  ;;  %v11114_v55 = vpack.c.bf16 %v2675_v52, %v2674_v63  ;;  %v3624_v17 = vld [vmem:[#allocation7 + $0x878] sm:$0xff]  ;;  %v16655_v4 = vld [vmem:[#allocation33_spill] sm:$0xff] }
 0x28c   : > { %v1429_v20 = vpop.f32.mrb[2].mxu0  ;;  %11110 = vmatprep.subr.bf16.mxu1 %v16573_v0  ;;  %10006 = vmatprep.mubr.f32.mxu0 %v2639_v57  ;;  %v11242_v49 = vpack.c.bf16 %v3624_v17, %v3623_v40  ;;  %v731_v10 = vld [vmem:[#allocation2 + $0xc2] sm:$0xff] }
 0x28d   : > { %16654 = vst [vmem:[#allocation38_spill] sm:$0xff] %v13999_v43  ;;  %v14003_v44 = vadd.f32 %v13894_v42, %v1429_v20  ;;  %v9833_v22 = vpop.f32.mrb[66].mxu1  ;;  %v1431_v45 = vpop.f32.mrb[3].mxu0  ;;  %11238 = vmatprep.subr.bf16.mxu0 %v16573_v0  ;;  %10007 = vmatmul.mubr.f32.gmra.mrb[124].mxu0 %v2640_v7  ;;  %v732_v20 = vld [vmem:[#allocation2 + $0xca] sm:$0xff]  ;;  %v765_v52 = vld [vmem:[#allocation2 + $0xdb] sm:$0xff] }
 0x28e   : > { %v1739_v47 = vpop.f32.mrb[67].mxu1  ;;  %2168 = vmatmul.mubr.f32.gmra.mrb[108].mxu1 %v729_v54  ;;  %v14007_v50 = vadd.f32 %v9833_v22, %v13849_v32  ;;  %11240 = vmatpush1.bf16.msra.mxu0 %v11239_v38  ;;  %v2641_v35 = vld [vmem:[#allocation2 + $0x19c] sm:$0xff]  ;;  %v2642_v23 = vld [vmem:[#allocation2 + $0x1a4] sm:$0xff] }
 0x28f   : > { %2172 = vmatprep.mubr.f32.mxu1 %v762_v9  ;;  %11112 = vmatpush1.bf16.msra.mxu1 %v11111_v56  ;;  %v14010_v42 = vadd.f32 %v1739_v47, %v16655_v4  ;;  %v14036_v9 = vld [vmem:[#allocation2 + $0x51] sm:$0xff]  ;;  %v766_v17 = vld [vmem:[#allocation2 + $0xe3] sm:$0xff] }
 0x290   : > { %v1434_v21 = vpop.f32.mrb[4].mxu0  ;;  %11113 = vmatprep.subr.bf16.mxu1 %v16573_v0  ;;  %10009 = vmatprep.mubr.f32.mxu0 %v2641_v35  ;;  %v14046_v47 = vld [vmem:[#allocation2 + $0x50] sm:$0xff]  ;;  %v14061_v35 = vld [vmem:[#allocation2 + $0x60] sm:$0xff]  ;;  %v14173_v43 = vld [vmem:[#allocation2 + $0xd8] sm:$0xff] }
 0x291   : > { %16656 = vst [vmem:[#allocation39_spill] sm:$0xff] %v14010_v42  ;;  %v14014_v32 = vadd.f32 %v13909_v60, %v1434_v21  ;;  %v9836_v8 = vpop.f32.mrb[68].mxu1  ;;  %v1436_v31 = vpop.f32.mrb[5].mxu0  ;;  %11241 = vmatprep.subr.bf16.mxu0 %v16573_v0  ;;  %10010 = vmatmul.mubr.f32.gmra.mrb[126].mxu0 %v2642_v23  ;;  %v764_v60 = vld [vmem:[#allocation2 + $0xcb] sm:$0xff] }
 0x292   : > { %v1749_v41 = vpop.f32.mrb[69].mxu1  ;;  %2173 = vmatmul.mubr.f32.gmra.mrb[158].mxu1 %v730_v61  ;;  %v14018_v14 = vadd.f32 %v9836_v8, %v13865_v16  ;;  %11243 = vmatpush1.bf16.msra.mxu0 %v11242_v49  ;;  %v734_v49 = vld [vmem:[#allocation2 + $0xe2] sm:$0xff]  ;;  %v767_v31 = vld [vmem:[#allocation2 + $0xf3] sm:$0xff] }
 0x293   : > { %16657 = vst [vmem:[#allocation40_spill] sm:$0xff] %v14014_v32  ;;  %2177 = vmatprep.mubr.f32.mxu1 %v763_v48  ;;  %11115 = vmatpush1.bf16.msra.mxu1 %v11114_v55  ;;  %v14021_v25 = vadd.f32 %v1749_v41, %v13856_v19  ;;  %v14031_v19 = vld [vmem:[#allocation2 + $0x48] sm:$0xff]  ;;  %v733_v55 = vld [vmem:[#allocation2 + $0xda] sm:$0xff] }
 0x294   : > { %v1439_v57 = vpop.f32.mrb[6].mxu0  ;;  %11116 = vmatprep.subr.bf16.mxu1 %v16573_v0  ;;  %3737 = vmatprep.mubr.f32.mxu0 %v14024_v5  ;;  %v3628_v32 = vld [vmem:[#allocation7 + $0x898] sm:$0xff] }
 0x295   : > { %16658 = vst [vmem:[#allocation33_spill] sm:$0xff] %v14021_v25  ;;  %v14027_v26 = vadd.f32 %v13905_v13, %v1439_v57  ;;  %v9839_v54 = vpop.f32.mrb[70].mxu1  ;;  %v1441_v16 = vpop.f32.mrb[7].mxu0  ;;  %11244 = vmatprep.subr.bf16.mxu0 %v16573_v0  ;;  %3738 = vmatmul.mubr.f32.vlgmr.msra.gmra.mrb[128].mxu0 %v14031_v19  ;;  %v741_v0 = vld [vmem:[#allocation2 + $0x13a] sm:$0xff]  ;;  %v743_v25 = vld [vmem:[#allocation2 + $0x152] sm:$0xff] }
 0x296   : > { %v1759_v56 = vpop.f32.mrb[71].mxu1  ;;  %2178 = vmatmul.mubr.f32.gmra.mrb[112].mxu1 %v731_v10  ;;  %v14034_v7 = vadd.f32 %v9839_v54, %v13883_v53  ;;  %3742 = vmatprep.mubr.f32.mxu0 %v14036_v9  ;;  %v735_v16 = vld [vmem:[#allocation2 + $0xf2] sm:$0xff] }
 0x297   : > { %2182 = vmatprep.mubr.f32.mxu1 %v764_v60  ;;  %v14040_v13 = vadd.f32 %v1759_v56, %v13874_v39  ;;  %v14051_v39 = vld [vmem:[#allocation2 + $0x61] sm:$0xff] }
 0x298   : > { %v1444_v63 = vpop.f32.mrb[8].mxu0  ;;  %v14076_v60 = vld [vmem:[#allocation2 + $0x68] sm:$0xff] }
 0x299   : > { %16659 = vst [vmem:[#allocation41_spill] sm:$0xff] %v14040_v13  ;;  %v14044_v38 = vadd.f32 %v13920_v2, %v1444_v63  ;;  %v9842_v22 = vpop.f32.mrb[72].mxu1  ;;  %v1446_v45 = vpop.f32.mrb[9].mxu0  ;;  %3743 = vmatmul.mubr.f32.gmra.mrb[130].mxu0 %v14046_v47  ;;  %v14160_v13 = vld [vmem:[#allocation2 + $0xc8] sm:$0xff] }
 0x29a   : > { %v1769_v53 = vpop.f32.mrb[73].mxu1  ;;  %2183 = vmatmul.mubr.f32.gmra.mrb[160].mxu1 %v732_v20  ;;  %v14049_v61 = vadd.f32 %v9842_v22, %v13903_v58  ;;  %3747 = vmatprep.mubr.f32.mxu0 %v14051_v39  ;;  %v768_v20 = vld [vmem:[#allocation2 + $0xfb] sm:$0xff] }
 0x29b   : > { %16660 = vst [vmem:[#allocation42_spill] sm:$0xff] %v14044_v38  ;;  %2187 = vmatprep.mubr.f32.mxu1 %v765_v52  ;;  %v14055_v40 = vadd.f32 %v1769_v53, %v13892_v15  ;;  %v14066_v15 = vld [vmem:[#allocation2 + $0x69] sm:$0xff]  ;;  %v14091_v45 = vld [vmem:[#allocation2 + $0x78] sm:$0xff]  ;;  %v2678_v38 = vld [vmem:[#allocation7 + $0x610] sm:$0xff] }
 0x29c   : > { %v1449_v2 = vpop.f32.mrb[10].mxu0 }
 0x29d   : > { %16661 = vst [vmem:[#allocation43_spill] sm:$0xff] %v14055_v40  ;;  %v14059_v4 = vadd.f32 %v13916_v62, %v1449_v2  ;;  %v9845_v21 = vpop.f32.mrb[74].mxu1  ;;  %v1451_v48 = vpop.f32.mrb[11].mxu0  ;;  %3748 = vmatmul.mubr.f32.gmra.mrb[132].mxu0 %v14061_v35  ;;  %v775_v40 = vld [vmem:[#allocation2 + $0x153] sm:$0xff] }
 0x29e   : > { %v1779_v58 = vpop.f32.mrb[75].mxu1  ;;  %2188 = vmatmul.mubr.f32.gmra.mrb[116].mxu1 %v733_v55  ;;  %v14064_v23 = vadd.f32 %v9845_v21, %v13925_v33  ;;  %3752 = vmatprep.mubr.f32.mxu0 %v14066_v15  ;;  %v736_v55 = vld [vmem:[#allocation2 + $0xfa] sm:$0xff]  ;;  %v737_v21 = vld [vmem:[#allocation2 + $0x10a] sm:$0xff] }
 0x29f   : > { %2192 = vmatprep.mubr.f32.mxu1 %v766_v17  ;;  %v14070_v8 = vadd.f32 %v1779_v58, %v13914_v3  ;;  %v14081_v3 = vld [vmem:[#allocation2 + $0x79] sm:$0xff]  ;;  %v14105_v48 = vld [vmem:[#allocation2 + $0x91] sm:$0xff] }
 0x2a0   : > { %v1454_v62 = vpop.f32.mrb[12].mxu0  ;;  %v14103_v17 = vld [vmem:[#allocation2 + $0x80] sm:$0xff] }
 0x2a1   : > { %16662 = vst [vmem:[#allocation44_spill] sm:$0xff] %v14070_v8  ;;  %v14074_v41 = vadd.f32 %v13931_v29, %v1454_v62  ;;  %v9848_v10 = vpop.f32.mrb[76].mxu1  ;;  %v1456_v57 = vpop.f32.mrb[13].mxu0  ;;  %3753 = vmatmul.mubr.f32.gmra.mrb[134].mxu0 %v14076_v60  ;;  %v14112_v62 = vld [vmem:[#allocation2 + $0x90] sm:$0xff] }
 0x2a2   : > { %v1789_v33 = vpop.f32.mrb[77].mxu1  ;;  %2193 = vmatmul.mubr.f32.gmra.mrb[162].mxu1 %v734_v49  ;;  %v14079_v54 = vadd.f32 %v9848_v10, %v13949_v6  ;;  %3757 = vmatprep.mubr.f32.mxu0 %v14081_v3  ;;  %v14114_v10 = vld [vmem:[#allocation2 + $0x99] sm:$0xff]  ;;  %v14156_v8 = vld [vmem:[#allocation2 + $0xc9] sm:$0xff] }
 0x2a3   : > { %16663 = vst [vmem:[#allocation45_spill] sm:$0xff] %v14074_v41  ;;  %2197 = vmatprep.mubr.f32.mxu1 %v767_v31  ;;  %v14085_v56 = vadd.f32 %v1789_v33, %v13936_v27  ;;  %v14096_v27 = vld [vmem:[#allocation2 + $0x81] sm:$0xff]  ;;  %v738_v31 = vld [vmem:[#allocation2 + $0x112] sm:$0xff] }
 0x2a4   : > { %v1459_v29 = vpop.f32.mrb[14].mxu0  ;;  %v771_v33 = vld [vmem:[#allocation2 + $0x123] sm:$0xff]  ;;  %v2676_v41 = vld [vmem:[#allocation7 + $0x600] sm:$0xff] }
 0x2a5   : > { %16664 = vst [vmem:[#allocation46_spill] sm:$0xff] %v14085_v56  ;;  %v14089_v63 = vadd.f32 %v13927_v11, %v1459_v29  ;;  %v9851_v52 = vpop.f32.mrb[78].mxu1  ;;  %v1461_v22 = vpop.f32.mrb[15].mxu0  ;;  %3758 = vmatmul.mubr.f32.gmra.mrb[136].mxu0 %v14091_v45  ;;  %v769_v11 = vld [vmem:[#allocation2 + $0x10b] sm:$0xff]  ;;  %v739_v29 = vld [vmem:[#allocation2 + $0x122] sm:$0xff] }
 0x2a6   : > { %v1799_v6 = vpop.f32.mrb[79].mxu1  ;;  %2198 = vmatmul.mubr.f32.gmra.mrb[120].mxu1 %v735_v16  ;;  %v14094_v53 = vadd.f32 %v9851_v52, %v13975_v18  ;;  %3762 = vmatprep.mubr.f32.mxu0 %v14096_v27  ;;  %v770_v18 = vld [vmem:[#allocation2 + $0x113] sm:$0xff]  ;;  %v772_v22 = vld [vmem:[#allocation2 + $0x12b] sm:$0xff]  ;;  %v14154_v56 = vld [vmem:[#allocation2 + $0xc0] sm:$0xff] }
 0x2a7   : > { %2202 = vmatprep.mubr.f32.mxu1 %v768_v20  ;;  %v14100_v2 = vadd.f32 %v1799_v6, %v13962_v12  ;;  %v14124_v20 = vld [vmem:[#allocation2 + $0xa9] sm:$0xff] }
 0x2a9   : > { %16665 = vst [vmem:[#allocation47_spill] sm:$0xff] %v14100_v2  ;;  %3763 = vmatmul.mubr.f32.gmra.mrb[138].mxu0 %v14103_v17 }
 0x2aa   : > { %2203 = vmatmul.mubr.f32.gmra.mrb[164].mxu1 %v736_v55  ;;  %3767 = vmatprep.mubr.f32.mxu0 %v14105_v48 }
 0x2ab   : > { %2207 = vmatprep.mubr.f32.mxu1 %v769_v11  ;;  %v14116_v57 = vpop.f32.mrb[64].mxu0 }
 0x2ac   : > { %16667 = vst [vmem:[#allocation49_spill] sm:$0xff] %v14116_v57  ;;  %v14119_v16 = vpop.f32.mrb[65].mxu0  ;;  %v2680_v57 = vld [vmem:[#allocation7 + $0x620] sm:$0xff] }
 0x2ad   : > { %v1879_v58 = vpop.f32.mrb[82].mxu1  ;;  %3768 = vmatmul.mubr.f32.gmra.mrb[140].mxu0 %v14112_v62 }
 0x2ae   : > { %v14110_v49 = vadd.f32 %v1879_v58, %v14003_v44  ;;  %v1881_v12 = vpop.f32.mrb[83].mxu1  ;;  %2208 = vmatmul.mubr.f32.gmra.mrb[124].mxu1 %v737_v21  ;;  %3772 = vmatprep.mubr.f32.mxu0 %v14114_v10  ;;  %v14122_v44 = vld [vmem:[#allocation2 + $0x98] sm:$0xff]  ;;  %v740_v58 = vld [vmem:[#allocation2 + $0x12a] sm:$0xff] }
 0x2af   : > { %2212 = vmatprep.mubr.f32.mxu1 %v770_v18  ;;  %v14127_v52 = vpop.f32.mrb[66].mxu0  ;;  %v14135_v18 = vld [vmem:[#allocation2 + $0xa8] sm:$0xff]  ;;  %v14137_v12 = vld [vmem:[#allocation2 + $0xb1] sm:$0xff] }
 0x2b0   : > { %16666 = vst [vmem:[#allocation48_spill] sm:$0xff] %v14110_v49  ;;  %16668 = vst [vmem:[#allocation50_spill] sm:$0xff] %v14127_v52  ;;  %v14129_v6 = vpop.f32.mrb[67].mxu0  ;;  %v2679_v52 = vld [vmem:[#allocation7 + $0x618] sm:$0xff]  ;;  %v14215_v49 = vld [vmem:[#allocation2 + $0x111] sm:$0xff] }
 0x2b1   : > { %3773 = vmatmul.mubr.f32.gmra.mrb[142].mxu0 %v14122_v44  ;;  %16669 = vst [vmem:[#allocation51_spill] sm:$0xff] %v14129_v6  ;;  %v3627_v6 = vld [vmem:[#allocation7 + $0x890] sm:$0xff] }
 0x2b2   : > { %2213 = vmatmul.mubr.f32.gmra.mrb[166].mxu1 %v738_v31  ;;  %3777 = vmatprep.mubr.f32.mxu0 %v14124_v20  ;;  %v773_v31 = vld [vmem:[#allocation2 + $0x13b] sm:$0xff] }
 0x2b3   : > { %2217 = vmatprep.mubr.f32.mxu1 %v771_v33  ;;  %v14141_v33 = vld [vmem:[#allocation2 + $0xb0] sm:$0xff] }
 0x2b5   : > { %v1889_v55 = vpop.f32.mrb[86].mxu1  ;;  %3778 = vmatmul.mubr.f32.gmra.mrb[144].mxu0 %v14135_v18 }
 0x2b6   : > { %v14133_v11 = vadd.f32 %v1889_v55, %v14027_v26  ;;  %v1891_v21 = vpop.f32.mrb[87].mxu1  ;;  %2218 = vmatmul.mubr.f32.gmra.mrb[128].mxu1 %v739_v29  ;;  %3782 = vmatprep.mubr.f32.mxu0 %v14137_v12  ;;  %v14143_v26 = vld [vmem:[#allocation2 + $0xc1] sm:$0xff]  ;;  %v14146_v29 = vpop.f32.mrb[68].mxu0 }
 0x2b7   : > { %2222 = vmatprep.mubr.f32.mxu1 %v772_v22  ;;  %16671 = vst [vmem:[#allocation53_spill] sm:$0xff] %v14146_v29  ;;  %v774_v22 = vld [vmem:[#allocation2 + $0x143] sm:$0xff]  ;;  %v14148_v55 = vpop.f32.mrb[69].mxu0  ;;  %v2677_v29 = vld [vmem:[#allocation7 + $0x608] sm:$0xff] }
 0x2b8   : > { %16670 = vst [vmem:[#allocation52_spill] sm:$0xff] %v14133_v11  ;;  %16672 = vst [vmem:[#allocation54_spill] sm:$0xff] %v14148_v55  ;;  %v2516_v55 = vld [vmem:[#allocation2 + $0x39] sm:$0xff] }
 0x2b9   : > { %3783 = vmatmul.mubr.f32.gmra.mrb[146].mxu0 %v14141_v33 }
 0x2ba   : > { %2223 = vmatmul.mubr.f32.gmra.mrb[168].mxu1 %v740_v58  ;;  %3787 = vmatprep.mubr.f32.mxu0 %v14143_v26 }
 0x2bb   : > { %2227 = vmatprep.mubr.f32.mxu1 %v773_v31  ;;  %v742_v31 = vld [vmem:[#allocation2 + $0x142] sm:$0xff] }
 0x2bd   : > { %v1899_v21 = vpop.f32.mrb[90].mxu1  ;;  %3788 = vmatmul.mubr.f32.gmra.mrb[148].mxu0 %v14154_v56 }
 0x2be   : > { %v14152_v2 = vadd.f32 %v1899_v21, %v14059_v4  ;;  %v1901_v58 = vpop.f32.mrb[91].mxu1  ;;  %2228 = vmatmul.mubr.f32.gmra.mrb[132].mxu1 %v741_v0  ;;  %3792 = vmatprep.mubr.f32.mxu0 %v14156_v8  ;;  %v14162_v4 = vld [vmem:[#allocation2 + $0xd9] sm:$0xff]  ;;  %v14165_v0 = vpop.f32.mrb[70].mxu0 }
 0x2bf   : > { %2232 = vmatprep.mubr.f32.mxu1 %v774_v22  ;;  %16674 = vst [vmem:[#allocation56_spill] sm:$0xff] %v14165_v0  ;;  %v776_v22 = vld [vmem:[#allocation2 + $0x15b] sm:$0xff]  ;;  %v14167_v21 = vpop.f32.mrb[71].mxu0 }
 0x2c0   : > { %16673 = vst [vmem:[#allocation55_spill] sm:$0xff] %v14152_v2  ;;  %16675 = vst [vmem:[#allocation57_spill] sm:$0xff] %v14167_v21  ;;  %v14194_v21 = vld [vmem:[#allocation2 + $0xf9] sm:$0xff] }
 0x2c1   : > { %3793 = vmatmul.mubr.f32.gmra.mrb[150].mxu0 %v14160_v13 }
 0x2c2   : > { %2233 = vmatmul.mubr.f32.gmra.mrb[170].mxu1 %v742_v31  ;;  %3797 = vmatprep.mubr.f32.mxu0 %v14162_v4 }
 0x2c3   : > { %2237 = vmatprep.mubr.f32.mxu1 %v775_v40  ;;  %v744_v40 = vld [vmem:[#allocation2 + $0x15a] sm:$0xff] }
 0x2c5   : > { %v1909_v58 = vpop.f32.mrb[94].mxu1  ;;  %3798 = vmatmul.mubr.f32.gmra.mrb[152].mxu0 %v14173_v43 }
 0x2c6   : > { %v14171_v42 = vadd.f32 %v1909_v58, %v14089_v63  ;;  %v1911_v31 = vpop.f32.mrb[95].mxu1  ;;  %2238 = vmatmul.mubr.f32.gmra.mrb[136].mxu1 %v743_v25  ;;  %3802 = vmatprep.mubr.f32.mxu0 %v14175_v28  ;;  %v14181_v63 = vld [vmem:[#allocation2 + $0xf1] sm:$0xff]  ;;  %v14184_v25 = vpop.f32.mrb[72].mxu0 }
 0x2c7   : > { %2242 = vmatprep.mubr.f32.mxu1 %v776_v22  ;;  %16677 = vst [vmem:[#allocation59_spill] sm:$0xff] %v14184_v25  ;;  %v778_v22 = vld [vmem:[#allocation2 + $0x173] sm:$0xff]  ;;  %v14186_v58 = vpop.f32.mrb[73].mxu0 }
 0x2c8   : > { %16676 = vst [vmem:[#allocation58_spill] sm:$0xff] %v14171_v42  ;;  %16678 = vst [vmem:[#allocation60_spill] sm:$0xff] %v14186_v58  ;;  %v14192_v42 = vld [vmem:[#allocation2 + $0xf0] sm:$0xff]  ;;  %v14198_v58 = vld [vmem:[#allocation2 + $0xf8] sm:$0xff] }
 0x2c9   : > { %3803 = vmatmul.mubr.f32.gmra.mrb[154].mxu0 %v14179_v37  ;;  %v2515_v25 = vld [vmem:[#allocation2 + $0x31] sm:$0xff] }
 0x2ca   : > { %2243 = vmatmul.mubr.f32.gmra.mrb[172].mxu1 %v744_v40  ;;  %3807 = vmatprep.mubr.f32.mxu0 %v14181_v63 }
 0x2cb   : > { %2247 = vmatprep.mubr.f32.mxu1 %v777_v59  ;;  %v746_v59 = vld [vmem:[#allocation2 + $0x172] sm:$0xff] }
 0x2cd   : > { %v1919_v31 = vpop.f32.mrb[98].mxu1  ;;  %3808 = vmatmul.mubr.f32.gmra.mrb[156].mxu0 %v14192_v42 }
 0x2ce   : > { %v14190_v0 = vadd.f32 %v1919_v31, %v13941_v36  ;;  %v1921_v40 = vpop.f32.mrb[99].mxu1  ;;  %2248 = vmatmul.mubr.f32.gmra.mrb[140].mxu1 %v745_v51  ;;  %3812 = vmatprep.mubr.f32.mxu0 %v14194_v21  ;;  %v3625_v36 = vld [vmem:[#allocation7 + $0x880] sm:$0xff]  ;;  %v3626_v31 = vld [vmem:[#allocation7 + $0x888] sm:$0xff] }
 0x2cf   : > { %2252 = vmatprep.mubr.f32.mxu1 %v778_v22  ;;  %v2483_v51 = vld [vmem:[#allocation2 + $0x30] sm:$0xff]  ;;  %v11117_v40 = vpack.c.bf16 %v2677_v29, %v2676_v41  ;;  %v14203_v22 = vpop.f32.mrb[74].mxu0  ;;  %v11245_v2 = vpack.c.bf16 %v3626_v31, %v3625_v36  ;;  %v16682_v29 = vmov 0.0|0.0   ;;  %v2484_v36 = vld [vmem:[#allocation2 + $0x38] sm:$0xff]  ;;  %v11120_v31 = vpack.c.bf16 %v2679_v52, %v2678_v38 }
 0x2d0   : > { %16679 = vst [vmem:[#allocation61_spill] sm:$0xff] %v14190_v0  ;;  %v14200_v0 = vld [vmem:[#allocation2 + $0x109] sm:$0xff]  ;;  %16680 = vst [vmem:[#allocation62_spill] sm:$0xff] %v14203_v22  ;;  %v14205_v11 = vpop.f32.mrb[75].mxu0 }
 0x2d1   : > { %3813 = vmatmul.mubr.f32.gmra.mrb[158].mxu0 %v14198_v58  ;;  %16681 = vst [vmem:[#allocation63_spill] sm:$0xff] %v14205_v11  ;;  %v14212_v22 = vld [vmem:[#allocation2 + $0x108] sm:$0xff]  ;;  %v11248_v11 = vpack.c.bf16 %v3628_v32, %v3627_v6  ;;  %v14221_v38 = vld [vmem:[#allocation2 + $0x110] sm:$0xff] }
 0x2d2   : > { %2253 = vmatmul.mubr.f32.gmra.mrb[174].mxu1 %v746_v59  ;;  %3817 = vmatprep.mubr.f32.mxu0 %v14200_v0 }
 0x2d3   : > { %2788 = vmatprep.mubr.f32.mxu1 %v2515_v25  ;;  %11246 = vmatpush1.bf16.msra.mxu0 %v11245_v2  ;;  %v2681_v2 = vld [vmem:[#allocation7 + $0x628] sm:$0xff]  ;;  %v14223_v52 = vpop.f32.mrb[76].mxu0 }
 0x2d4   : > { %11247 = vmatprep.subr.bf16.mxu0 %v16682_v29  ;;  %v11123_v32 = vpack.c.bf16 %v2681_v2, %v2680_v57  ;;  %16683 = vst [vmem:[#allocation64_spill] sm:$0xff] %v14223_v52  ;;  %v2685_v52 = vld [vmem:[#allocation7 + $0x648] sm:$0xff] }
 0x2d5   : > { %v1929_v59 = vpop.f32.mrb[102].mxu1  ;;  %3818 = vmatmul.mubr.f32.gmra.mrb[160].mxu0 %v14212_v22 }
 0x2d6   : > { %v14209_v25 = vadd.f32 %v1929_v59, %v13954_v1  ;;  %v1931_v41 = vpop.f32.mrb[103].mxu1  ;;  %2789 = vmatmul.mubr.f32.vlgmr.msra.gmra.mrb[176].mxu1 %v2483_v51  ;;  %3822 = vmatprep.mubr.f32.mxu0 %v14215_v49  ;;  %v3629_v1 = vld [vmem:[#allocation7 + $0x8a0] sm:$0xff]  ;;  %v2682_v51 = vld [vmem:[#allocation7 + $0x630] sm:$0xff] }
 0x2d7   : > { %11118 = vmatpush1.bf16.msra.mxu1 %v11117_v40  ;;  %2793 = vmatprep.mubr.f32.mxu1 %v2516_v55  ;;  %v3630_v55 = vld [vmem:[#allocation7 + $0x8a8] sm:$0xff]  ;;  %v2683_v40 = vld [vmem:[#allocation7 + $0x638] sm:$0xff] }
 0x2d8   : > { %11119 = vmatprep.subr.bf16.mxu1 %v16682_v29  ;;  %11249 = vmatpush1.bf16.msra.mxu0 %v11248_v11  ;;  %v11251_v6 = vpack.c.bf16 %v3630_v55, %v3629_v1  ;;  %v14226_v59 = vld [vmem:[#allocation2 + $0x121] sm:$0xff]  ;;  %v14229_v11 = vpop.f32.mrb[77].mxu0  ;;  %v11126_v2 = vpack.c.bf16 %v2683_v40, %v2682_v51 }
 0x2d9   : > { %11250 = vmatprep.subr.bf16.mxu0 %v16682_v29  ;;  %3823 = vmatmul.mubr.f32.gmra.mrb[162].mxu0 %v14221_v38  ;;  %v14238_v1 = vld [vmem:[#allocation2 + $0x120] sm:$0xff]  ;;  %v14248_v51 = vld [vmem:[#allocation2 + $0x128] sm:$0xff]  ;;  %v14250_v40 = vpop.f32.mrb[78].mxu0 }
 0x2da   : > { %2794 = vmatmul.mubr.f32.gmra.mrb[178].mxu1 %v2484_v36  ;;  %3827 = vmatprep.mubr.f32.mxu0 %v14226_v59  ;;  %v3631_v36 = vld [vmem:[#allocation7 + $0x8b0] sm:$0xff]  ;;  %16684 = vst [vmem:[#allocation65_spill] sm:$0xff] %v14250_v40 }
 0x2db   : > { %2798 = vmatprep.mubr.f32.mxu1 %v14024_v5  ;;  %11121 = vmatpush1.bf16.msra.mxu1 %v11120_v31  ;;  %v3632_v31 = vld [vmem:[#allocation7 + $0x8b8] sm:$0xff] }
 0x2dc   : > { %11122 = vmatprep.subr.bf16.mxu1 %v16682_v29  ;;  %11252 = vmatpush1.bf16.msra.mxu0 %v11251_v6  ;;  %v11254_v55 = vpack.c.bf16 %v3632_v31, %v3631_v36  ;;  %v2684_v6 = vld [vmem:[#allocation7 + $0x640] sm:$0xff]  ;;  %v2687_v36 = vld [vmem:[#allocation7 + $0x658] sm:$0xff]  ;;  %v14253_v31 = vld [vmem:[#allocation2 + $0x139] sm:$0xff] }
 0x2dd   : > { %v1939_v41 = vpop.f32.mrb[106].mxu1  ;;  %11253 = vmatprep.subr.bf16.mxu0 %v16682_v29  ;;  %3828 = vmatmul.mubr.f32.gmra.mrb[164].mxu0 %v14238_v1 }
 0x2de   : > { %v14233_v5 = vadd.f32 %v1939_v41, %v13967_v30  ;;  %v1941_v57 = vpop.f32.mrb[107].mxu1  ;;  %2799 = vmatmul.mubr.f32.gmra.mrb[180].mxu1 %v14031_v19  ;;  %v14241_v30 = vld [vmem:[#allocation2 + $0x129] sm:$0xff] }
 0x2df   : > { %2803 = vmatprep.mubr.f32.mxu1 %v14036_v9  ;;  %11124 = vmatpush1.bf16.msra.mxu1 %v11123_v32  ;;  %v3633_v19 = vld [vmem:[#allocation7 + $0x8c0] sm:$0xff]  ;;  %v3634_v9 = vld [vmem:[#allocation7 + $0x8c8] sm:$0xff]  ;;  %v11129_v32 = vpack.c.bf16 %v2685_v52, %v2684_v6  ;;  %v2686_v57 = vld [vmem:[#allocation7 + $0x650] sm:$0xff] }
 0x2e0   : > { %11125 = vmatprep.subr.bf16.mxu1 %v16682_v29  ;;  %3832 = vmatprep.mubr.f32.mxu0 %v14241_v30  ;;  %v11257_v41 = vpack.c.bf16 %v3634_v9, %v3633_v19  ;;  %v3636_v6 = vld [vmem:[#allocation7 + $0x8d8] sm:$0xff]  ;;  %v11132_v19 = vpack.c.bf16 %v2687_v36, %v2686_v57  ;;  %v14265_v9 = vld [vmem:[#allocation2 + $0x138] sm:$0xff]  ;;  %v14277_v36 = vld [vmem:[#allocation2 + $0x140] sm:$0xff] }
 0x2e1   : > { %11255 = vmatpush1.bf16.msra.mxu0 %v11254_v55 }
 0x2e2   : > { %2804 = vmatmul.mubr.f32.gmra.mrb[182].mxu1 %v14046_v47  ;;  %11256 = vmatprep.subr.bf16.mxu0 %v16682_v29  ;;  %v14256_v47 = vpop.f32.mrb[79].mxu0 }
 0x2e3   : > { %2808 = vmatprep.mubr.f32.mxu1 %v14051_v39  ;;  %11127 = vmatpush1.bf16.msra.mxu1 %v11126_v2  ;;  %16685 = vst [vmem:[#allocation66_spill] sm:$0xff] %v14256_v47  ;;  %v3635_v2 = vld [vmem:[#allocation7 + $0x8d0] sm:$0xff]  ;;  %v2689_v47 = vld [vmem:[#allocation7 + $0x668] sm:$0xff] }
 0x2e4   : > { %11128 = vmatprep.subr.bf16.mxu1 %v16682_v29  ;;  %3833 = vmatmul.mubr.f32.gmra.mrb[166].mxu0 %v14248_v51  ;;  %v11260_v40 = vpack.c.bf16 %v3636_v6, %v3635_v2  ;;  %v2691_v2 = vld [vmem:[#allocation7 + $0x678] sm:$0xff] }
 0x2e5   : > { %v1949_v55 = vpop.f32.mrb[110].mxu1  ;;  %3837 = vmatprep.mubr.f32.mxu0 %v14253_v31  ;;  %11258 = vmatpush1.bf16.msra.mxu0 %v11257_v41  ;;  %v2688_v41 = vld [vmem:[#allocation7 + $0x660] sm:$0xff] }
 0x2e6   : > { %v14260_v39 = vadd.f32 %v1949_v55, %v13980_v24  ;;  %v1951_v52 = vpop.f32.mrb[111].mxu1  ;;  %2809 = vmatmul.mubr.f32.gmra.mrb[184].mxu1 %v14061_v35  ;;  %11259 = vmatprep.subr.bf16.mxu0 %v16682_v29  ;;  %v14268_v24 = vld [vmem:[#allocation2 + $0x141] sm:$0xff]  ;;  %v14273_v35 = vpop.f32.mrb[80].mxu0  ;;  %v11135_v57 = vpack.c.bf16 %v2689_v47, %v2688_v41 }
 0x2e7   : > { %2813 = vmatprep.mubr.f32.mxu1 %v14066_v15  ;;  %11130 = vmatpush1.bf16.msra.mxu1 %v11129_v32  ;;  %16686 = vst [vmem:[#allocation67_spill] sm:$0xff] %v14273_v35  ;;  %v3637_v15 = vld [vmem:[#allocation7 + $0x8e0] sm:$0xff]  ;;  %v3638_v32 = vld [vmem:[#allocation7 + $0x8e8] sm:$0xff]  ;;  %v14279_v55 = vpop.f32.mrb[81].mxu0  ;;  %v3640_v41 = vld [vmem:[#allocation7 + $0x8f8] sm:$0xff] }
 0x2e8   : > { %11131 = vmatprep.subr.bf16.mxu1 %v16682_v29  ;;  %3838 = vmatmul.mubr.f32.gmra.mrb[168].mxu0 %v14265_v9  ;;  %16687 = vst [vmem:[#allocation68_spill] sm:$0xff] %v14279_v55  ;;  %v11263_v52 = vpack.c.bf16 %v3638_v32, %v3637_v15  ;;  %v14292_v32 = vld [vmem:[#allocation2 + $0x150] sm:$0xff]  ;;  %v2693_v55 = vld [vmem:[#allocation7 + $0x688] sm:$0xff] }
 0x2e9   : > { %3842 = vmatprep.mubr.f32.mxu0 %v14268_v24  ;;  %11261 = vmatpush1.bf16.msra.mxu0 %v11260_v40  ;;  %v2690_v40 = vld [vmem:[#allocation7 + $0x670] sm:$0xff] }
 0x2ea   : > { %2814 = vmatmul.mubr.f32.gmra.mrb[186].mxu1 %v14076_v60  ;;  %11262 = vmatprep.subr.bf16.mxu0 %v16682_v29  ;;  %v14282_v60 = vld [vmem:[#allocation2 + $0x151] sm:$0xff]  ;;  %v11138_v15 = vpack.c.bf16 %v2691_v2, %v2690_v40 }
 0x2eb   : > { %2818 = vmatprep.mubr.f32.mxu1 %v14081_v3  ;;  %11133 = vmatpush1.bf16.msra.mxu1 %v11132_v19  ;;  %v3639_v19 = vld [vmem:[#allocation7 + $0x8f0] sm:$0xff]  ;;  %v14304_v2 = vld [vmem:[#allocation2 + $0x158] sm:$0xff] }
 0x2ec   : > { %11134 = vmatprep.subr.bf16.mxu1 %v16682_v29  ;;  %3843 = vmatmul.mubr.f32.gmra.mrb[170].mxu0 %v14277_v36  ;;  %v11266_v35 = vpack.c.bf16 %v3640_v41, %v3639_v19  ;;  %v2695_v19 = vld [vmem:[#allocation7 + $0x698] sm:$0xff] }
 0x2ed   : > { %v1959_v6 = vpop.f32.mrb[114].mxu1  ;;  %3847 = vmatprep.mubr.f32.mxu0 %v14282_v60  ;;  %11264 = vmatpush1.bf16.msra.mxu0 %v11263_v52  ;;  %v2692_v52 = vld [vmem:[#allocation7 + $0x680] sm:$0xff] }
 0x2ee   : > { %v14287_v3 = vadd.f32 %v1959_v6, %v13995_v34  ;;  %v1961_v47 = vpop.f32.mrb[115].mxu1  ;;  %2819 = vmatmul.mubr.f32.gmra.mrb[188].mxu1 %v14091_v45  ;;  %11265 = vmatprep.subr.bf16.mxu0 %v16682_v29  ;;  %v14295_v34 = vld [vmem:[#allocation2 + $0x159] sm:$0xff]  ;;  %v14300_v45 = vpop.f32.mrb[82].mxu0  ;;  %v11141_v40 = vpack.c.bf16 %v2693_v55, %v2692_v52 }
 0x2ef   : > { %2823 = vmatprep.mubr.f32.mxu1 %v14096_v27  ;;  %11136 = vmatpush1.bf16.msra.mxu1 %v11135_v57  ;;  %16689 = vst [vmem:[#allocation70_spill] sm:$0xff] %v14300_v45  ;;  %v3641_v27 = vld [vmem:[#allocation7 + $0x900] sm:$0xff]  ;;  %v3642_v57 = vld [vmem:[#allocation7 + $0x908] sm:$0xff]  ;;  %v14306_v6 = vpop.f32.mrb[83].mxu0 }
 0x2f0   : > { %16688 = vst [vmem:[#allocation69_spill] sm:$0xff] %v14287_v3  ;;  %11137 = vmatprep.subr.bf16.mxu1 %v16682_v29  ;;  %3848 = vmatmul.mubr.f32.gmra.mrb[172].mxu0 %v14292_v32  ;;  %16690 = vst [vmem:[#allocation71_spill] sm:$0xff] %v14306_v6  ;;  %v11269_v47 = vpack.c.bf16 %v3642_v57, %v3641_v27  ;;  %v14319_v27 = vld [vmem:[#allocation2 + $0x168] sm:$0xff]  ;;  %v2696_v45 = vld [vmem:[#allocation7 + $0x6a0] sm:$0xff] }
 0x2f1   : > { %3852 = vmatprep.mubr.f32.mxu0 %v14295_v34  ;;  %11267 = vmatpush1.bf16.msra.mxu0 %v11266_v35  ;;  %v2694_v35 = vld [vmem:[#allocation7 + $0x690] sm:$0xff]  ;;  %v3644_v57 = vld [vmem:[#allocation7 + $0x918] sm:$0xff]  ;;  %v14322_v6 = vld [vmem:[#allocation2 + $0x171] sm:$0xff] }
 0x2f2   : > { %2824 = vmatmul.mubr.f32.gmra.mrb[190].mxu1 %v14103_v17  ;;  %11268 = vmatprep.subr.bf16.mxu0 %v16682_v29  ;;  %v14309_v17 = vld [vmem:[#allocation2 + $0x169] sm:$0xff]  ;;  %v11144_v52 = vpack.c.bf16 %v2695_v19, %v2694_v35 }
 0x2f3   : > { %2828 = vmatprep.mubr.f32.mxu1 %v14105_v48  ;;  %11139 = vmatpush1.bf16.msra.mxu1 %v11138_v15  ;;  %v3643_v15 = vld [vmem:[#allocation7 + $0x910] sm:$0xff]  ;;  %v14330_v19 = vld [vmem:[#allocation2 + $0x170] sm:$0xff] }
 0x2f4   : > { %11140 = vmatprep.subr.bf16.mxu1 %v16682_v29  ;;  %3853 = vmatmul.mubr.f32.gmra.mrb[174].mxu0 %v14304_v2  ;;  %v14348_v3 = vld [vmem:[#allocation2 + $0x189] sm:$0xff] }
 0x2f5   : > { %v1969_v41 = vpop.f32.mrb[118].mxu1  ;;  %3857 = vmatprep.mubr.f32.mxu0 %v14309_v17  ;;  %11270 = vmatpush1.bf16.msra.mxu0 %v11269_v47  ;;  %v2697_v47 = vld [vmem:[#allocation7 + $0x6a8] sm:$0xff] }
 0x2f6   : > { %v14314_v48 = vadd.f32 %v1969_v41, %v14007_v50  ;;  %v1971_v55 = vpop.f32.mrb[119].mxu1  ;;  %2829 = vmatmul.mubr.f32.gmra.mrb[192].mxu1 %v14112_v62  ;;  %11271 = vmatprep.subr.bf16.mxu0 %v16682_v29  ;;  %v11272_v50 = vpack.c.bf16 %v3644_v57, %v3643_v15  ;;  %v14327_v62 = vpop.f32.mrb[84].mxu0  ;;  %v11147_v35 = vpack.c.bf16 %v2697_v47, %v2696_v45  ;;  %v2698_v15 = vld [vmem:[#allocation7 + $0x6b0] sm:$0xff]  ;;  %v2699_v57 = vld [vmem:[#allocation7 + $0x6b8] sm:$0xff] }
 0x2f7   : > { %2833 = vmatprep.mubr.f32.mxu1 %v14114_v10  ;;  %11142 = vmatpush1.bf16.msra.mxu1 %v11141_v40  ;;  %16692 = vst [vmem:[#allocation73_spill] sm:$0xff] %v14327_v62  ;;  %v3645_v10 = vld [vmem:[#allocation7 + $0x920] sm:$0xff]  ;;  %v3646_v40 = vld [vmem:[#allocation7 + $0x928] sm:$0xff]  ;;  %v14332_v41 = vpop.f32.mrb[85].mxu0  ;;  %v3648_v47 = vld [vmem:[#allocation7 + $0x938] sm:$0xff] }
 0x2f8   : > { %16691 = vst [vmem:[#allocation72_spill] sm:$0xff] %v14314_v48  ;;  %11143 = vmatprep.subr.bf16.mxu1 %v16682_v29  ;;  %3858 = vmatmul.mubr.f32.gmra.mrb[176].mxu0 %v14319_v27  ;;  %16693 = vst [vmem:[#allocation74_spill] sm:$0xff] %v14332_v41  ;;  %v11275_v55 = vpack.c.bf16 %v3646_v40, %v3645_v10  ;;  %v14335_v48 = vld [vmem:[#allocation2 + $0x181] sm:$0xff]  ;;  %v2700_v62 = vld [vmem:[#allocation7 + $0x6c0] sm:$0xff] }
 0x2f9   : > { %3862 = vmatprep.mubr.f32.mxu0 %v14322_v6  ;;  %11273 = vmatpush1.bf16.msra.mxu0 %v11272_v50  ;;  %v11150_v50 = vpack.c.bf16 %v2699_v57, %v2698_v15  ;;  %v14345_v10 = vld [vmem:[#allocation2 + $0x180] sm:$0xff]  ;;  %v2701_v41 = vld [vmem:[#allocation7 + $0x6c8] sm:$0xff] }
 0x2fa   : > { %2834 = vmatmul.mubr.f32.gmra.mrb[194].mxu1 %v14122_v44  ;;  %11274 = vmatprep.subr.bf16.mxu0 %v16682_v29 }
 0x2fb   : > { %2838 = vmatprep.mubr.f32.mxu1 %v14124_v20  ;;  %11145 = vmatpush1.bf16.msra.mxu1 %v11144_v52  ;;  %v3647_v52 = vld [vmem:[#allocation7 + $0x930] sm:$0xff] }
 0x2fc   : > { %11146 = vmatprep.subr.bf16.mxu1 %v16682_v29  ;;  %3863 = vmatmul.mubr.f32.gmra.mrb[178].mxu0 %v14330_v19  ;;  %v11278_v40 = vpack.c.bf16 %v3648_v47, %v3647_v52  ;;  %v14362_v52 = vld [vmem:[#allocation2 + $0x199] sm:$0xff] }
 0x2fd   : > { %v1979_v44 = vpop.f32.mrb[122].mxu1  ;;  %3867 = vmatprep.mubr.f32.mxu0 %v14335_v48  ;;  %11276 = vmatpush1.bf16.msra.mxu0 %v11275_v55  ;;  %v14357_v55 = vld [vmem:[#allocation2 + $0x188] sm:$0xff] }
 0x2fe   : > { %v14341_v20 = vadd.f32 %v1979_v44, %v14018_v14  ;;  %v1981_v45 = vpop.f32.mrb[123].mxu1  ;;  %2839 = vmatmul.mubr.f32.gmra.mrb[196].mxu1 %v14135_v18  ;;  %11277 = vmatprep.subr.bf16.mxu0 %v16682_v29  ;;  %v14354_v14 = vpop.f32.mrb[86].mxu0  ;;  %v3649_v18 = vld [vmem:[#allocation7 + $0x940] sm:$0xff]  ;;  %v2702_v44 = vld [vmem:[#allocation7 + $0x6d0] sm:$0xff] }
 0x2ff   : > { %2843 = vmatprep.mubr.f32.mxu1 %v14137_v12  ;;  %11148 = vmatpush1.bf16.msra.mxu1 %v11147_v35  ;;  %16694 = vst [vmem:[#allocation75_spill] sm:$0xff] %v14354_v14  ;;  %v3650_v12 = vld [vmem:[#allocation7 + $0x948] sm:$0xff]  ;;  %v11153_v35 = vpack.c.bf16 %v2701_v41, %v2700_v62  ;;  %v14359_v15 = vpop.f32.mrb[87].mxu0  ;;  %v2703_v45 = vld [vmem:[#allocation7 + $0x6d8] sm:$0xff]  ;;  %v3651_v41 = vld [vmem:[#allocation7 + $0x950] sm:$0xff] }
 0x300   : > { %11149 = vmatprep.subr.bf16.mxu1 %v16682_v29  ;;  %3868 = vmatmul.mubr.f32.gmra.mrb[180].mxu0 %v14345_v10  ;;  %v11281_v57 = vpack.c.bf16 %v3650_v12, %v3649_v18  ;;  %v11156_v47 = vpack.c.bf16 %v2703_v45, %v2702_v44  ;;  %v2704_v18 = vld [vmem:[#allocation7 + $0x6e0] sm:$0xff]  ;;  %v2705_v12 = vld [vmem:[#allocation7 + $0x6e8] sm:$0xff]  ;;  %v14375_v14 = vld [vmem:[#allocation2 + $0x1a1] sm:$0xff] }
 0x301   : > { %3872 = vmatprep.mubr.f32.mxu0 %v14348_v3  ;;  %11279 = vmatpush1.bf16.msra.mxu0 %v11278_v40  ;;  %v3652_v40 = vld [vmem:[#allocation7 + $0x958] sm:$0xff]  ;;  %v11159_v44 = vpack.c.bf16 %v2705_v12, %v2704_v18  ;;  %v14384_v45 = vld [vmem:[#allocation2 + $0x1a0] sm:$0xff] }
 0x302   : > { %2844 = vmatmul.mubr.f32.gmra.mrb[198].mxu1 %v14141_v33  ;;  %11280 = vmatprep.subr.bf16.mxu0 %v16682_v29  ;;  %v3495_v18 = vld [vmem:[#allocation2 + $0x1b9] sm:$0xff] }
 0x303   : > { %2848 = vmatprep.mubr.f32.mxu1 %v14143_v26  ;;  %11151 = vmatpush1.bf16.msra.mxu1 %v11150_v50  ;;  %v14372_v50 = vld [vmem:[#allocation2 + $0x198] sm:$0xff]  ;;  %v3655_v12 = vld [vmem:[#allocation7 + $0x970] sm:$0xff] }
 0x304   : > { %11152 = vmatprep.subr.bf16.mxu1 %v16682_v29  ;;  %3873 = vmatmul.mubr.f32.gmra.mrb[182].mxu0 %v14357_v55 }
 0x305   : > { %v1989_v33 = vpop.f32.mrb[126].mxu1  ;;  %3877 = vmatprep.mubr.f32.mxu0 %v14362_v52  ;;  %11282 = vmatpush1.bf16.msra.mxu0 %v11281_v57  ;;  %v3654_v57 = vld [vmem:[#allocation7 + $0x968] sm:$0xff] }
 0x306   : > { %v14368_v26 = vadd.f32 %v1989_v33, %v14034_v7  ;;  %v1991_v62 = vpop.f32.mrb[127].mxu1  ;;  %2849 = vmatmul.mubr.f32.gmra.mrb[200].mxu1 %v14154_v56  ;;  %v11284_v7 = vpack.c.bf16 %v3652_v40, %v3651_v41  ;;  %11283 = vmatprep.subr.bf16.mxu0 %v16682_v29  ;;  %v3494_v56 = vld [vmem:[#allocation2 + $0x1b1] sm:$0xff]  ;;  %v2706_v41 = vld [vmem:[#allocation7 + $0x6f0] sm:$0xff]  ;;  %v2707_v40 = vld [vmem:[#allocation7 + $0x6f8] sm:$0xff] }
 0x307   : > { %2853 = vmatprep.mubr.f32.mxu1 %v14156_v8  ;;  %11154 = vmatpush1.bf16.msra.mxu1 %v11153_v35  ;;  %v14381_v8 = vpop.f32.mrb[88].mxu0  ;;  %v3653_v35 = vld [vmem:[#allocation7 + $0x960] sm:$0xff] }
 0x308   : > { %16695 = vst [vmem:[#allocation76_spill] sm:$0xff] %v14368_v26  ;;  %11155 = vmatprep.subr.bf16.mxu1 %v16682_v29  ;;  %3878 = vmatmul.mubr.f32.gmra.mrb[184].mxu0 %v14372_v50  ;;  %16696 = vst [vmem:[#allocation77_spill] sm:$0xff] %v14381_v8  ;;  %v14386_v33 = vpop.f32.mrb[89].mxu0  ;;  %v11287_v62 = vpack.c.bf16 %v3654_v57, %v3653_v35  ;;  %v3658_v8 = vld [vmem:[#allocation7 + $0x988] sm:$0xff]  ;;  %v3656_v35 = vld [vmem:[#allocation7 + $0x978] sm:$0xff]  ;;  %v11162_v57 = vpack.c.bf16 %v2707_v40, %v2706_v41 }
 0x309   : > { %3882 = vmatprep.mubr.f32.mxu0 %v14375_v14  ;;  %11285 = vmatpush1.bf16.msra.mxu0 %v11284_v7  ;;  %16697 = vst [vmem:[#allocation78_spill] sm:$0xff] %v14386_v33  ;;  %v3657_v7 = vld [vmem:[#allocation7 + $0x980] sm:$0xff]  ;;  %v11290_v33 = vpack.c.bf16 %v3656_v35, %v3655_v12  ;;  %v12403_v26 = vld [vmem:[#allocation2 + $0x18] sm:$0xff] }
 0x30a   : > { %2854 = vmatmul.mubr.f32.gmra.mrb[202].mxu1 %v14160_v13  ;;  %11286 = vmatprep.subr.bf16.mxu0 %v16682_v29 }
 0x30b   : > { %2858 = vmatprep.mubr.f32.mxu1 %v14162_v4  ;;  %11157 = vmatpush1.bf16.msra.mxu1 %v11156_v47 }
 0x30c   : > { %11158 = vmatprep.subr.bf16.mxu1 %v16682_v29  ;;  %3883 = vmatmul.mubr.f32.gmra.mrb[186].mxu0 %v14384_v45 }
 0x30d   : > { %v1999_v13 = vpop.f32.mrb[130].mxu1  ;;  %3887 = vmatprep.mubr.f32.mxu0 %v3494_v56  ;;  %11288 = vmatpush1.bf16.msra.mxu0 %v11287_v62  ;;  %v14397_v56 = vpack.c.bf16 %v3658_v8, %v3657_v7  ;;  %v14427_v62 = vld [vmem:[#allocation2 + $0x63] sm:$0xff]  ;;  %v14450_v7 = vld [vmem:[#allocation2 + $0x7b] sm:$0xff] }
 0x30e   : > { %v14392_v4 = vadd.f32 %v1999_v13, %v14049_v61  ;;  %v2001_v47 = vpop.f32.mrb[131].mxu1  ;;  %2859 = vmatmul.mubr.f32.gmra.mrb[204].mxu1 %v14173_v43  ;;  %11289 = vmatprep.subr.bf16.mxu0 %v16682_v29  ;;  %v14446_v13 = vld [vmem:[#allocation2 + $0x6a] sm:$0xff] }
 0x30f   : > { %2863 = vmatprep.mubr.f32.mxu1 %v14175_v28  ;;  %11160 = vmatpush1.bf16.msra.mxu1 %v11159_v44  ;;  %v14402_v43 = vpop.f32.mrb[90].mxu0  ;;  %v14405_v28 = vld [vmem:[#allocation2 + $0x4b] sm:$0xff] }
 0x310   : > { %11161 = vmatprep.subr.bf16.mxu1 %v16682_v29  ;;  %3888 = vmatmul.mubr.f32.gmra.mrb[188].mxu0 %v12403_v26  ;;  %v14407_v61 = vpop.f32.mrb[91].mxu0 }
 0x311   : > { %3892 = vmatprep.mubr.f32.mxu0 %v3495_v18  ;;  %11291 = vmatpush1.bf16.msra.mxu0 %v11290_v33  ;;  %v14417_v33 = vld [vmem:[#allocation2 + $0x53] sm:$0xff] }
 0x312   : > { %2864 = vmatmul.mubr.f32.gmra.mrb[206].mxu1 %v14179_v37 }
 0x313   : > { %2868 = vmatprep.mubr.f32.mxu1 %v14181_v63  ;;  %11163 = vmatpush1.bf16.msra.mxu1 %v11162_v57  ;;  %v14415_v63 = vld [vmem:[#allocation2 + $0x4a] sm:$0xff] }
 0x314   : > { %11293 = vmatprep.subr.bf16.mxu1 %v14397_v56  ;;  %3893 = vmatmul.mubr.f32.gmra.mrb[190].mxu0 %v12403_v26  ;;  %v14423_v26 = vld [vmem:[#allocation2 + $0x52] sm:$0xff] }
 0x315   : > { %v2009_v8 = vpop.f32.mrb[134].mxu1  ;;  %3962 = vmatprep.mubr.f32.mxu0 %v14405_v28 }
 0x316   : > { %v14411_v44 = vadd.f32 %v2009_v8, %v14064_v23  ;;  %v2011_v37 = vpop.f32.mrb[135].mxu1  ;;  %2869 = vmatmul.mubr.f32.gmra.mrb[208].mxu1 %v14192_v42  ;;  %v14425_v23 = vpop.f32.mrb[92].mxu0 }
 0x317   : > { %2873 = vmatprep.mubr.f32.mxu1 %v14194_v21  ;;  %v14430_v42 = vpop.f32.mrb[93].mxu0  ;;  %v16702_v37 = vld [vmem:[#allocation48_spill] sm:$0xff] }
 0x318   : > { %3963 = vmatmul.mubr.f32.vlgmr.msra.gmra.mrb[128].mxu0 %v14415_v63 }
 0x319   : > { %3967 = vmatprep.mubr.f32.mxu0 %v14417_v33 }
 0x31a   : > { %2874 = vmatmul.mubr.f32.gmra.mrb[210].mxu1 %v14198_v58  ;;  %v14440_v58 = vld [vmem:[#allocation2 + $0x6b] sm:$0xff] }
 0x31b   : > { %2878 = vmatprep.mubr.f32.mxu1 %v14200_v0  ;;  %v14438_v0 = vld [vmem:[#allocation2 + $0x62] sm:$0xff] }
 0x31c   : > { %3968 = vmatmul.mubr.f32.gmra.mrb[130].mxu0 %v14423_v26 }
 0x31d   : > { %v2019_v21 = vpop.f32.mrb[138].mxu1  ;;  %3972 = vmatprep.mubr.f32.mxu0 %v14427_v62 }
 0x31e   : > { %v14434_v41 = vadd.f32 %v2019_v21, %v14079_v54  ;;  %v2021_v40 = vpop.f32.mrb[139].mxu1  ;;  %2879 = vmatmul.mubr.f32.gmra.mrb[212].mxu1 %v14212_v22  ;;  %v14448_v54 = vpop.f32.mrb[94].mxu0 }
 0x31f   : > { %2883 = vmatprep.mubr.f32.mxu1 %v14215_v49  ;;  %16698 = vst [vmem:[#allocation79_spill] sm:$0xff] %v14448_v54  ;;  %v14453_v49 = vpop.f32.mrb[95].mxu0 }
 0x320   : > { %3973 = vmatmul.mubr.f32.gmra.mrb[132].mxu0 %v14438_v0  ;;  %16699 = vst [vmem:[#allocation80_spill] sm:$0xff] %v14453_v49  ;;  %v3662_v49 = vld [vmem:[#allocation7 + $0x9a8] sm:$0xff] }
 0x321   : > { %3977 = vmatprep.mubr.f32.mxu0 %v14440_v58 }
 0x322   : > { %2884 = vmatmul.mubr.f32.gmra.mrb[214].mxu1 %v14221_v38  ;;  %v14461_v38 = vld [vmem:[#allocation2 + $0x7a] sm:$0xff] }
 0x323   : > { %2888 = vmatprep.mubr.f32.mxu1 %v14226_v59  ;;  %v14463_v59 = vld [vmem:[#allocation2 + $0x83] sm:$0xff] }
 0x324   : > { %3978 = vmatmul.mubr.f32.gmra.mrb[134].mxu0 %v14446_v13 }
 0x325   : > { %v2029_v22 = vpop.f32.mrb[142].mxu1  ;;  %3982 = vmatprep.mubr.f32.mxu0 %v14450_v7 }
 0x326   : > { %v14457_v47 = vadd.f32 %v2029_v22, %v14094_v53  ;;  %v2031_v18 = vpop.f32.mrb[143].mxu1  ;;  %2889 = vmatmul.mubr.f32.gmra.mrb[216].mxu1 %v14238_v1  ;;  %v14470_v53 = vld [vmem:[#allocation2 + $0x82] sm:$0xff] }
 0x327   : > { %2893 = vmatprep.mubr.f32.mxu1 %v14241_v30  ;;  %v14475_v30 = vld [vmem:[#allocation2 + $0x93] sm:$0xff] }
 0x328   : > { %16700 = vst [vmem:[#allocation81_spill] sm:$0xff] %v14457_v47  ;;  %3983 = vmatmul.mubr.f32.gmra.mrb[136].mxu0 %v14461_v38  ;;  %v16705_v18 = vld [vmem:[#allocation40_spill] sm:$0xff] }
 0x329   : > { %v2099_v12 = vpop.f32.mrb[80].mxu1  ;;  %3987 = vmatprep.mubr.f32.mxu0 %v14463_v59  ;;  %v3661_v47 = vld [vmem:[#allocation7 + $0x9a0] sm:$0xff] }
 0x32a   : > { %v11908_v35 = vadd.f32 %v2099_v12, %v13990_v46  ;;  %v2101_v57 = vpop.f32.mrb[81].mxu1  ;;  %2894 = vmatmul.mubr.f32.gmra.mrb[218].mxu1 %v14248_v51  ;;  %v14482_v51 = vld [vmem:[#allocation2 + $0x92] sm:$0xff] }
 0x32b   : > { %2898 = vmatprep.mubr.f32.mxu1 %v14253_v31  ;;  %v16703_v31 = vld [vmem:[#allocation49_spill] sm:$0xff] }
 0x32c   : > { %v14473_v1 = vadd.f32 %v11908_v35, %v14119_v16  ;;  %3988 = vmatmul.mubr.f32.gmra.mrb[138].mxu0 %v14470_v53  ;;  %v14487_v16 = vld [vmem:[#allocation2 + $0x9b] sm:$0xff] }
 0x32d   : > { %v2104_v8 = vpop.f32.mrb[144].mxu1  ;;  %3992 = vmatprep.mubr.f32.mxu0 %v14475_v30 }
 0x32e   : > { %16701 = vst [vmem:[#allocation82_spill] sm:$0xff] %v14473_v1  ;;  %v2105_v21 = vadd.f32 %v2104_v8, %v16702_v37  ;;  %v2106_v46 = vpop.f32.mrb[145].mxu1  ;;  %2899 = vmatmul.mubr.f32.gmra.mrb[220].mxu1 %v14265_v9  ;;  %v14494_v9 = vld [vmem:[#allocation2 + $0x9a] sm:$0xff]  ;;  %v14499_v8 = vld [vmem:[#allocation2 + $0xab] sm:$0xff] }
 0x32f   : > { %2903 = vmatprep.mubr.f32.mxu1 %v14268_v24  ;;  %v16706_v24 = vld [vmem:[#allocation51_spill] sm:$0xff] }
 0x330   : > { %v14485_v40 = vadd.f32 %v16703_v31, %v2105_v21  ;;  %3993 = vmatmul.mubr.f32.gmra.mrb[140].mxu0 %v14482_v51  ;;  %v16708_v21 = vld [vmem:[#allocation52_spill] sm:$0xff] }
 0x331   : > { %v2109_v22 = vpop.f32.mrb[84].mxu1  ;;  %3997 = vmatprep.mubr.f32.mxu0 %v14487_v16  ;;  %v14594_v1 = vld [vmem:[#allocation2 + $0x10b] sm:$0xff] }
 0x332   : > { %16704 = vst [vmem:[#allocation48_spill] sm:$0xff] %v14485_v40  ;;  %v11909_v12 = vadd.f32 %v2109_v22, %v16705_v18  ;;  %v2111_v35 = vpop.f32.mrb[85].mxu1  ;;  %2904 = vmatmul.mubr.f32.gmra.mrb[222].mxu1 %v14277_v36  ;;  %v14506_v36 = vld [vmem:[#allocation2 + $0xaa] sm:$0xff]  ;;  %v14511_v18 = vld [vmem:[#allocation2 + $0xb3] sm:$0xff] }
 0x333   : > { %2908 = vmatprep.mubr.f32.mxu1 %v14282_v60  ;;  %v16709_v60 = vld [vmem:[#allocation50_spill] sm:$0xff] }
 0x334   : > { %v14497_v57 = vadd.f32 %v11909_v12, %v16706_v24  ;;  %3998 = vmatmul.mubr.f32.gmra.mrb[142].mxu0 %v14494_v9  ;;  %v16711_v35 = vld [vmem:[#allocation42_spill] sm:$0xff] }
 0x335   : > { %v2114_v37 = vpop.f32.mrb[146].mxu1  ;;  %4002 = vmatprep.mubr.f32.mxu0 %v14499_v8 }
 0x336   : > { %16707 = vst [vmem:[#allocation49_spill] sm:$0xff] %v14497_v57  ;;  %v2115_v46 = vadd.f32 %v2114_v37, %v16708_v21  ;;  %v2116_v31 = vpop.f32.mrb[147].mxu1  ;;  %2909 = vmatmul.mubr.f32.gmra.mrb[224].mxu1 %v14292_v32  ;;  %v14518_v32 = vld [vmem:[#allocation2 + $0xb2] sm:$0xff]  ;;  %v3660_v57 = vld [vmem:[#allocation7 + $0x998] sm:$0xff] }
 0x337   : > { %2913 = vmatprep.mubr.f32.mxu1 %v14295_v34  ;;  %v16712_v34 = vld [vmem:[#allocation54_spill] sm:$0xff] }
 0x338   : > { %v14509_v22 = vadd.f32 %v16709_v60, %v2115_v46  ;;  %4003 = vmatmul.mubr.f32.gmra.mrb[144].mxu0 %v14506_v36  ;;  %v14523_v46 = vld [vmem:[#allocation2 + $0xc3] sm:$0xff] }
 0x339   : > { %v2119_v12 = vpop.f32.mrb[88].mxu1  ;;  %4007 = vmatprep.mubr.f32.mxu0 %v14511_v18  ;;  %v16714_v60 = vld [vmem:[#allocation55_spill] sm:$0xff] }
 0x33a   : > { %16710 = vst [vmem:[#allocation40_spill] sm:$0xff] %v14509_v22  ;;  %v11910_v24 = vadd.f32 %v2119_v12, %v16711_v35  ;;  %v2121_v37 = vpop.f32.mrb[89].mxu1  ;;  %2914 = vmatmul.mubr.f32.gmra.mrb[226].mxu1 %v14304_v2  ;;  %v14530_v2 = vld [vmem:[#allocation2 + $0xc2] sm:$0xff] }
 0x33b   : > { %2918 = vmatprep.mubr.f32.mxu1 %v14309_v17  ;;  %v16715_v17 = vld [vmem:[#allocation53_spill] sm:$0xff] }
 0x33c   : > { %v14521_v21 = vadd.f32 %v11910_v24, %v16712_v34  ;;  %4008 = vmatmul.mubr.f32.gmra.mrb[146].mxu0 %v14518_v32  ;;  %v14535_v24 = vld [vmem:[#allocation2 + $0xcb] sm:$0xff]  ;;  %v16717_v34 = vld [vmem:[#allocation45_spill] sm:$0xff] }
 0x33d   : > { %v2124_v31 = vpop.f32.mrb[148].mxu1  ;;  %4012 = vmatprep.mubr.f32.mxu0 %v14523_v46 }
 0x33e   : > { %16713 = vst [vmem:[#allocation51_spill] sm:$0xff] %v14521_v21  ;;  %v2125_v22 = vadd.f32 %v2124_v31, %v16714_v60  ;;  %v2126_v12 = vpop.f32.mrb[149].mxu1  ;;  %2919 = vmatmul.mubr.f32.gmra.mrb[228].mxu1 %v14319_v27  ;;  %v16718_v27 = vld [vmem:[#allocation57_spill] sm:$0xff] }
 0x33f   : > { %2923 = vmatprep.mubr.f32.mxu1 %v14322_v6  ;;  %v14542_v6 = vld [vmem:[#allocation2 + $0xca] sm:$0xff] }
 0x340   : > { %v14533_v35 = vadd.f32 %v16715_v17, %v2125_v22  ;;  %4013 = vmatmul.mubr.f32.gmra.mrb[148].mxu0 %v14530_v2  ;;  %v14547_v22 = vld [vmem:[#allocation2 + $0xdb] sm:$0xff] }
 0x341   : > { %v2129_v37 = vpop.f32.mrb[92].mxu1  ;;  %4017 = vmatprep.mubr.f32.mxu0 %v14535_v24  ;;  %v16720_v17 = vld [vmem:[#allocation58_spill] sm:$0xff] }
 0x342   : > { %16716 = vst [vmem:[#allocation52_spill] sm:$0xff] %v14533_v35  ;;  %v11911_v21 = vadd.f32 %v2129_v37, %v16717_v34  ;;  %v2131_v31 = vpop.f32.mrb[93].mxu1  ;;  %2924 = vmatmul.mubr.f32.gmra.mrb[230].mxu1 %v14330_v19  ;;  %v16721_v19 = vld [vmem:[#allocation56_spill] sm:$0xff] }
 0x343   : > { %2928 = vmatprep.mubr.f32.mxu1 %v14335_v48  ;;  %v14554_v48 = vld [vmem:[#allocation2 + $0xda] sm:$0xff] }
 0x344   : > { %v14545_v60 = vadd.f32 %v11911_v21, %v16718_v27  ;;  %4018 = vmatmul.mubr.f32.gmra.mrb[150].mxu0 %v14542_v6  ;;  %v14559_v21 = vld [vmem:[#allocation2 + $0xe3] sm:$0xff] }
 0x345   : > { %v2134_v12 = vpop.f32.mrb[150].mxu1  ;;  %4022 = vmatprep.mubr.f32.mxu0 %v14547_v22  ;;  %v16723_v27 = vld [vmem:[#allocation34_spill] sm:$0xff] }
 0x346   : > { %16719 = vst [vmem:[#allocation50_spill] sm:$0xff] %v14545_v60  ;;  %v2135_v35 = vadd.f32 %v2134_v12, %v16720_v17  ;;  %v2136_v37 = vpop.f32.mrb[151].mxu1  ;;  %2929 = vmatmul.mubr.f32.gmra.mrb[232].mxu1 %v14345_v10  ;;  %v16724_v10 = vld [vmem:[#allocation60_spill] sm:$0xff] }
 0x347   : > { %2933 = vmatprep.mubr.f32.mxu1 %v14348_v3  ;;  %v14566_v3 = vld [vmem:[#allocation2 + $0xe2] sm:$0xff] }
 0x348   : > { %v14557_v34 = vadd.f32 %v16721_v19, %v2135_v35  ;;  %4023 = vmatmul.mubr.f32.gmra.mrb[152].mxu0 %v14554_v48  ;;  %v14571_v35 = vld [vmem:[#allocation2 + $0xf3] sm:$0xff] }
 0x349   : > { %v2139_v31 = vpop.f32.mrb[96].mxu1  ;;  %4027 = vmatprep.mubr.f32.mxu0 %v14559_v21  ;;  %v16726_v19 = vld [vmem:[#allocation61_spill] sm:$0xff] }
 0x34a   : > { %16722 = vst [vmem:[#allocation42_spill] sm:$0xff] %v14557_v34  ;;  %v11912_v60 = vadd.f32 %v2139_v31, %v16723_v27  ;;  %v2141_v12 = vpop.f32.mrb[97].mxu1  ;;  %2934 = vmatmul.mubr.f32.gmra.mrb[234].mxu1 %v14357_v55  ;;  %v14578_v55 = vld [vmem:[#allocation2 + $0xf2] sm:$0xff] }
 0x34b   : > { %2938 = vmatprep.mubr.f32.mxu1 %v14362_v52  ;;  %v16727_v52 = vld [vmem:[#allocation59_spill] sm:$0xff]  ;;  %v14583_v12 = vld [vmem:[#allocation2 + $0xfb] sm:$0xff] }
 0x34c   : > { %v14569_v17 = vadd.f32 %v11912_v60, %v16724_v10  ;;  %4028 = vmatmul.mubr.f32.gmra.mrb[154].mxu0 %v14566_v3  ;;  %v2579_v60 = vld [vmem:[#allocation2 + $0x33] sm:$0xff] }
 0x34d   : > { %v2144_v37 = vpop.f32.mrb[152].mxu1  ;;  %4032 = vmatprep.mubr.f32.mxu0 %v14571_v35 }
 0x34e   : > { %16725 = vst [vmem:[#allocation54_spill] sm:$0xff] %v14569_v17  ;;  %v2145_v34 = vadd.f32 %v2144_v37, %v16726_v19  ;;  %v2146_v31 = vpop.f32.mrb[153].mxu1  ;;  %2939 = vmatmul.mubr.f32.gmra.mrb[236].mxu1 %v14372_v50  ;;  %v3659_v17 = vld [vmem:[#allocation7 + $0x990] sm:$0xff]  ;;  %v16729_v37 = vld [vmem:[#allocation35_spill] sm:$0xff] }
 0x34f   : > { %2943 = vmatprep.mubr.f32.mxu1 %v14375_v14  ;;  %v2547_v14 = vld [vmem:[#allocation2 + $0x32] sm:$0xff]  ;;  %v14589_v31 = vld [vmem:[#allocation2 + $0xfa] sm:$0xff]  ;;  %v11296_v40 = vpack.c.bf16 %v3660_v57, %v3659_v17 }
 0x350   : > { %v14581_v27 = vadd.f32 %v16727_v52, %v2145_v34  ;;  %4033 = vmatmul.mubr.f32.gmra.mrb[156].mxu0 %v14578_v55  ;;  %v16730_v34 = vld [vmem:[#allocation63_spill] sm:$0xff]  ;;  %v16732_v57 = vld [vmem:[#allocation62_spill] sm:$0xff] }
 0x351   : > { %v2149_v10 = vpop.f32.mrb[100].mxu1  ;;  %4037 = vmatprep.mubr.f32.mxu0 %v14583_v12 }
 0x352   : > { %16728 = vst [vmem:[#allocation55_spill] sm:$0xff] %v14581_v27  ;;  %v11913_v19 = vadd.f32 %v2149_v10, %v16729_v37  ;;  %v2151_v50 = vpop.f32.mrb[101].mxu1  ;;  %2944 = vmatmul.mubr.f32.gmra.mrb[238].mxu1 %v14384_v45  ;;  %v2580_v27 = vld [vmem:[#allocation2 + $0x3b] sm:$0xff]  ;;  %v14600_v37 = vld [vmem:[#allocation2 + $0x10a] sm:$0xff] }
 0x353   : > { %3013 = vmatprep.mubr.f32.mxu1 %v2579_v60  ;;  %v2548_v10 = vld [vmem:[#allocation2 + $0x3a] sm:$0xff] }
 0x354   : > { %v14592_v52 = vadd.f32 %v11913_v19, %v16730_v34  ;;  %4038 = vmatmul.mubr.f32.gmra.mrb[158].mxu0 %v14589_v31  ;;  %v11300_v19 = vpack.c.bf16 %v3662_v49, %v3661_v47  ;;  %v14605_v50 = vld [vmem:[#allocation2 + $0x113] sm:$0xff] }
 0x355   : > { %v2154_v54 = vpop.f32.mrb[154].mxu1  ;;  %4042 = vmatprep.mubr.f32.mxu0 %v14594_v1 }
 0x356   : > { %16731 = vst [vmem:[#allocation53_spill] sm:$0xff] %v14592_v52  ;;  %v2155_v45 = vadd.f32 %v2154_v54, %v14209_v25  ;;  %v2156_v60 = vpop.f32.mrb[155].mxu1  ;;  %3014 = vmatmul.mubr.f32.vlgmr.msra.gmra.mrb[176].mxu1 %v2547_v14  ;;  %v3663_v52 = vld [vmem:[#allocation7 + $0x9b0] sm:$0xff]  ;;  %v3664_v25 = vld [vmem:[#allocation7 + $0x9b8] sm:$0xff]  ;;  %v16734_v54 = vld [vmem:[#allocation36_spill] sm:$0xff] }
 0x357   : > { %11295 = vmatpush3.bf16.msra.mxu1 %v14397_v56  ;;  %3018 = vmatprep.mubr.f32.mxu1 %v2580_v27  ;;  %v14611_v14 = vld [vmem:[#allocation2 + $0x112] sm:$0xff]  ;;  %v11304_v47 = vpack.c.bf16 %v3664_v25, %v3663_v52 }
 0x358   : > { %v14603_v17 = vadd.f32 %v16732_v57, %v2155_v45  ;;  %11297 = vmatprep.subr.bf16.mxu1 %v11296_v40  ;;  %4043 = vmatmul.mubr.f32.gmra.mrb[160].mxu0 %v14600_v37  ;;  %v14616_v45 = vld [vmem:[#allocation2 + $0x123] sm:$0xff]  ;;  %v3665_v57 = vld [vmem:[#allocation7 + $0x9c0] sm:$0xff] }
 0x359   : > { %v2159_v34 = vpop.f32.mrb[104].mxu1  ;;  %4047 = vmatprep.mubr.f32.mxu0 %v14605_v50  ;;  %v14628_v25 = vld [vmem:[#allocation2 + $0x12b] sm:$0xff] }
 0x35a   : > { %16733 = vst [vmem:[#allocation45_spill] sm:$0xff] %v14603_v17  ;;  %v11914_v56 = vadd.f32 %v2159_v34, %v16734_v54  ;;  %v2161_v27 = vpop.f32.mrb[105].mxu1  ;;  %3019 = vmatmul.mubr.f32.gmra.mrb[178].mxu1 %v2548_v10  ;;  %v3666_v17 = vld [vmem:[#allocation7 + $0x9c8] sm:$0xff] }
 0x35b   : > { %3023 = vmatprep.mubr.f32.mxu1 %v14405_v28  ;;  %11299 = vmatpush3.bf16.msra.mxu1 %v11296_v40  ;;  %v16735_v40 = vld [vmem:[#allocation64_spill] sm:$0xff]  ;;  %v11308_v34 = vpack.c.bf16 %v3666_v17, %v3665_v57  ;;  %v16737_v17 = vld [vmem:[#allocation66_spill] sm:$0xff] }
 0x35c   : > { %v14614_v49 = vadd.f32 %v11914_v56, %v14229_v11  ;;  %11301 = vmatprep.subr.bf16.mxu1 %v11300_v19  ;;  %4048 = vmatmul.mubr.f32.gmra.mrb[162].mxu0 %v14611_v14  ;;  %v14623_v11 = vld [vmem:[#allocation2 + $0x122] sm:$0xff] }
 0x35d   : > { %v2164_v60 = vpop.f32.mrb[156].mxu1  ;;  %4052 = vmatprep.mubr.f32.mxu0 %v14616_v45  ;;  %v3667_v56 = vld [vmem:[#allocation7 + $0x9d0] sm:$0xff] }
 0x35e   : > { %v2165_v10 = vadd.f32 %v2164_v60, %v14233_v5  ;;  %v2166_v28 = vpop.f32.mrb[157].mxu1  ;;  %3024 = vmatmul.mubr.f32.gmra.mrb[180].mxu1 %v14415_v63  ;;  %v3668_v5 = vld [vmem:[#allocation7 + $0x9d8] sm:$0xff]  ;;  %v16736_v63 = vld [vmem:[#allocation37_spill] sm:$0xff] }
 0x35f   : > { %3028 = vmatprep.mubr.f32.mxu1 %v14417_v33  ;;  %11303 = vmatpush3.bf16.msra.mxu1 %v11300_v19  ;;  %v14635_v19 = vld [vmem:[#allocation2 + $0x12a] sm:$0xff]  ;;  %v11312_v57 = vpack.c.bf16 %v3668_v5, %v3667_v56  ;;  %v16738_v56 = vld [vmem:[#allocation65_spill] sm:$0xff] }
 0x360   : > { %v14626_v52 = vadd.f32 %v16735_v40, %v2165_v10  ;;  %11305 = vmatprep.subr.bf16.mxu1 %v11304_v47  ;;  %4053 = vmatmul.mubr.f32.gmra.mrb[164].mxu0 %v14623_v11  ;;  %v14640_v10 = vld [vmem:[#allocation2 + $0x13b] sm:$0xff]  ;;  %v3669_v40 = vld [vmem:[#allocation7 + $0x9e0] sm:$0xff] }
 0x361   : > { %v2169_v54 = vpop.f32.mrb[108].mxu1  ;;  %4057 = vmatprep.mubr.f32.mxu0 %v14628_v25 }
 0x362   : > { %v11915_v27 = vadd.f32 %v2169_v54, %v16736_v63  ;;  %v2171_v33 = vpop.f32.mrb[109].mxu1  ;;  %3029 = vmatmul.mubr.f32.gmra.mrb[182].mxu1 %v14423_v26  ;;  %v3670_v54 = vld [vmem:[#allocation7 + $0x9e8] sm:$0xff]  ;;  %v14652_v63 = vld [vmem:[#allocation2 + $0x143] sm:$0xff] }
 0x363   : > { %3033 = vmatprep.mubr.f32.mxu1 %v14427_v62  ;;  %11307 = vmatpush3.bf16.msra.mxu1 %v11304_v47  ;;  %v14647_v47 = vld [vmem:[#allocation2 + $0x13a] sm:$0xff] }
 0x364   : > { %v14638_v60 = vadd.f32 %v11915_v27, %v16737_v17  ;;  %11309 = vmatprep.subr.bf16.mxu1 %v11308_v34  ;;  %4058 = vmatmul.mubr.f32.gmra.mrb[166].mxu0 %v14635_v19  ;;  %v11316_v27 = vpack.c.bf16 %v3670_v54, %v3669_v40  ;;  %v3671_v17 = vld [vmem:[#allocation7 + $0x9f0] sm:$0xff]  ;;  %v14664_v40 = vld [vmem:[#allocation2 + $0x153] sm:$0xff] }
 0x365   : > { %v2174_v28 = vpop.f32.mrb[158].mxu1  ;;  %4062 = vmatprep.mubr.f32.mxu0 %v14640_v10 }
 0x366   : > { %v2175_v26 = vadd.f32 %v2174_v28, %v14260_v39  ;;  %v2176_v62 = vpop.f32.mrb[159].mxu1  ;;  %3034 = vmatmul.mubr.f32.gmra.mrb[184].mxu1 %v14438_v0  ;;  %v3672_v39 = vld [vmem:[#allocation7 + $0x9f8] sm:$0xff]  ;;  %v16739_v0 = vld [vmem:[#allocation38_spill] sm:$0xff] }
 0x367   : > { %3038 = vmatprep.mubr.f32.mxu1 %v14440_v58  ;;  %11311 = vmatpush3.bf16.msra.mxu1 %v11308_v34  ;;  %v14659_v34 = vld [vmem:[#allocation2 + $0x142] sm:$0xff]  ;;  %v11320_v54 = vpack.c.bf16 %v3672_v39, %v3671_v17 }
 0x368   : > { %v14650_v5 = vadd.f32 %v16738_v56, %v2175_v26  ;;  %11313 = vmatprep.subr.bf16.mxu1 %v11312_v57  ;;  %4063 = vmatmul.mubr.f32.gmra.mrb[168].mxu0 %v14647_v47  ;;  %v16740_v26 = vld [vmem:[#allocation68_spill] sm:$0xff]  ;;  %v16742_v17 = vld [vmem:[#allocation67_spill] sm:$0xff] }
 0x369   : > { %v2179_v33 = vpop.f32.mrb[112].mxu1  ;;  %4067 = vmatprep.mubr.f32.mxu0 %v14652_v63 }
 0x36a   : > { %v11916_v28 = vadd.f32 %v2179_v33, %v16739_v0  ;;  %v2181_v58 = vpop.f32.mrb[113].mxu1  ;;  %3039 = vmatmul.mubr.f32.gmra.mrb[186].mxu1 %v14446_v13  ;;  %v16741_v33 = vld [vmem:[#allocation69_spill] sm:$0xff] }
 0x36b   : > { %3043 = vmatprep.mubr.f32.mxu1 %v14450_v7  ;;  %11315 = vmatpush3.bf16.msra.mxu1 %v11312_v57  ;;  %v14671_v7 = vld [vmem:[#allocation2 + $0x152] sm:$0xff]  ;;  %v14673_v57 = vld [vmem:[#allocation2 + $0x15b] sm:$0xff]  ;;  %v16743_v58 = vld [vmem:[#allocation39_spill] sm:$0xff] }
 0x36c   : > { %v14662_v62 = vadd.f32 %v11916_v28, %v16740_v26  ;;  %11317 = vmatprep.subr.bf16.mxu1 %v11316_v27  ;;  %4068 = vmatmul.mubr.f32.gmra.mrb[170].mxu0 %v14659_v34 }
 0x36d   : > { %v2184_v56 = vpop.f32.mrb[160].mxu1  ;;  %4072 = vmatprep.mubr.f32.mxu0 %v14664_v40 }
 0x36e   : > { %v2185_v0 = vadd.f32 %v2184_v56, %v16741_v33  ;;  %v2186_v13 = vpop.f32.mrb[161].mxu1  ;;  %3044 = vmatmul.mubr.f32.gmra.mrb[188].mxu1 %v14461_v38  ;;  %v14683_v38 = vld [vmem:[#allocation2 + $0x15a] sm:$0xff]  ;;  %v14688_v33 = vld [vmem:[#allocation2 + $0x16b] sm:$0xff] }
 0x36f   : > { %3048 = vmatprep.mubr.f32.mxu1 %v14463_v59  ;;  %11319 = vmatpush3.bf16.msra.mxu1 %v11316_v27  ;;  %v16744_v59 = vld [vmem:[#allocation71_spill] sm:$0xff]  ;;  %v16745_v13 = vld [vmem:[#allocation72_spill] sm:$0xff] }
 0x370   : > { %11321 = vmatprep.subr.bf16.mxu1 %v11320_v54  ;;  %4073 = vmatmul.mubr.f32.gmra.mrb[172].mxu0 %v14671_v7  ;;  %v14677_v39 = vadd.f32 %v16742_v17, %v2185_v0 }
 0x371   : > { %v2189_v28 = vpop.f32.mrb[116].mxu1  ;;  %4077 = vmatprep.mubr.f32.mxu0 %v14673_v57 }
 0x372   : > { %v11917_v26 = vadd.f32 %v2189_v28, %v16743_v58  ;;  %v2191_v56 = vpop.f32.mrb[117].mxu1  ;;  %3049 = vmatmul.mubr.f32.gmra.mrb[190].mxu1 %v14470_v53  ;;  %v16746_v28 = vld [vmem:[#allocation70_spill] sm:$0xff] }
 0x373   : > { %3053 = vmatprep.mubr.f32.mxu1 %v14475_v30  ;;  %11323 = vmatpush3.bf16.msra.mxu1 %v11320_v54  ;;  %v14696_v30 = vld [vmem:[#allocation2 + $0x16a] sm:$0xff]  ;;  %v14698_v54 = vld [vmem:[#allocation2 + $0x173] sm:$0xff] }
 0x374   : > { %v14686_v27 = vadd.f32 %v11917_v26, %v16744_v59  ;;  %11324 = vmatprep.subr.bf16.mxu1 %v16682_v29  ;;  %4078 = vmatmul.mubr.f32.gmra.mrb[174].mxu0 %v14683_v38  ;;  %v16747_v56 = vld [vmem:[#allocation33_spill] sm:$0xff] }
 0x375   : > { %v2194_v0 = vpop.f32.mrb[162].mxu1  ;;  %4082 = vmatprep.mubr.f32.mxu0 %v14688_v33 }
 0x376   : > { %v2195_v17 = vadd.f32 %v2194_v0, %v16745_v13  ;;  %v2196_v53 = vpop.f32.mrb[163].mxu1  ;;  %3054 = vmatmul.mubr.f32.gmra.mrb[192].mxu1 %v14482_v51  ;;  %v14708_v51 = vld [vmem:[#allocation2 + $0x172] sm:$0xff] }
 0x377   : > { %3058 = vmatprep.mubr.f32.mxu1 %v14487_v16  ;;  %v16748_v16 = vld [vmem:[#allocation74_spill] sm:$0xff] }
 0x378   : > { %4083 = vmatmul.mubr.f32.gmra.mrb[176].mxu0 %v14696_v30  ;;  %v14702_v58 = vadd.f32 %v16746_v28, %v2195_v17  ;;  %v14713_v53 = vld [vmem:[#allocation2 + $0x183] sm:$0xff] }
 0x379   : > { %v2199_v26 = vpop.f32.mrb[120].mxu1  ;;  %4087 = vmatprep.mubr.f32.mxu0 %v14698_v54 }
 0x37a   : > { %v11918_v59 = vadd.f32 %v2199_v26, %v16747_v56  ;;  %v2201_v0 = vpop.f32.mrb[121].mxu1  ;;  %3059 = vmatmul.mubr.f32.gmra.mrb[194].mxu1 %v14494_v9  ;;  %v14720_v9 = vld [vmem:[#allocation2 + $0x182] sm:$0xff]  ;;  %v16750_v56 = vld [vmem:[#allocation73_spill] sm:$0xff] }
 0x37b   : > { %3063 = vmatprep.mubr.f32.mxu1 %v14499_v8  ;;  %v14722_v8 = vld [vmem:[#allocation2 + $0x18b] sm:$0xff] }
 0x37c   : > { %v14711_v13 = vadd.f32 %v11918_v59, %v16748_v16  ;;  %4088 = vmatmul.mubr.f32.gmra.mrb[178].mxu0 %v14708_v51  ;;  %v16752_v16 = vld [vmem:[#allocation41_spill] sm:$0xff] }
 0x37d   : > { %v2204_v17 = vpop.f32.mrb[164].mxu1  ;;  %4092 = vmatprep.mubr.f32.mxu0 %v14713_v53 }
 0x37e   : > { %16749 = vst [vmem:[#allocation57_spill] sm:$0xff] %v14711_v13  ;;  %v2205_v28 = vadd.f32 %v2204_v17, %v14341_v20  ;;  %v2206_v26 = vpop.f32.mrb[165].mxu1  ;;  %3064 = vmatmul.mubr.f32.gmra.mrb[196].mxu1 %v14506_v36  ;;  %v14732_v36 = vld [vmem:[#allocation2 + $0x18a] sm:$0xff]  ;;  %v14737_v17 = vld [vmem:[#allocation2 + $0x19b] sm:$0xff] }
 0x37f   : > { %3068 = vmatprep.mubr.f32.mxu1 %v14511_v18  ;;  %v16754_v26 = vld [vmem:[#allocation76_spill] sm:$0xff] }
 0x380   : > { %4093 = vmatmul.mubr.f32.gmra.mrb[180].mxu0 %v14720_v9  ;;  %v14726_v59 = vadd.f32 %v16750_v56, %v2205_v28 }
 0x381   : > { %v2209_v0 = vpop.f32.mrb[124].mxu1  ;;  %4097 = vmatprep.mubr.f32.mxu0 %v14722_v8 }
 0x382   : > { %16751 = vst [vmem:[#allocation58_spill] sm:$0xff] %v14726_v59  ;;  %v11919_v13 = vadd.f32 %v2209_v0, %v16752_v16  ;;  %v2211_v20 = vpop.f32.mrb[125].mxu1  ;;  %3069 = vmatmul.mubr.f32.gmra.mrb[198].mxu1 %v14518_v32  ;;  %v14744_v32 = vld [vmem:[#allocation2 + $0x19a] sm:$0xff] }
 0x383   : > { %3073 = vmatprep.mubr.f32.mxu1 %v14523_v46  ;;  %v14746_v46 = vld [vmem:[#allocation2 + $0x1a3] sm:$0xff] }
 0x384   : > { %v14735_v18 = vadd.f32 %v11919_v13, %v14359_v15  ;;  %4098 = vmatmul.mubr.f32.gmra.mrb[182].mxu0 %v14732_v36  ;;  %v16755_v15 = vld [vmem:[#allocation75_spill] sm:$0xff] }
 0x385   : > { %v2214_v28 = vpop.f32.mrb[166].mxu1  ;;  %4102 = vmatprep.mubr.f32.mxu0 %v14737_v17  ;;  %v16757_v20 = vld [vmem:[#allocation43_spill] sm:$0xff] }
 0x386   : > { %16753 = vst [vmem:[#allocation56_spill] sm:$0xff] %v14735_v18  ;;  %v2215_v56 = vadd.f32 %v2214_v28, %v16754_v26  ;;  %v2216_v0 = vpop.f32.mrb[167].mxu1  ;;  %3074 = vmatmul.mubr.f32.gmra.mrb[200].mxu1 %v14530_v2  ;;  %v3558_v2 = vld [vmem:[#allocation2 + $0x1b3] sm:$0xff]  ;;  %v16758_v26 = vld [vmem:[#allocation78_spill] sm:$0xff] }
 0x387   : > { %3078 = vmatprep.mubr.f32.mxu1 %v14535_v24  ;;  %v14756_v24 = vld [vmem:[#allocation2 + $0x1a2] sm:$0xff] }
 0x388   : > { %4103 = vmatmul.mubr.f32.gmra.mrb[184].mxu0 %v14744_v32  ;;  %v14750_v13 = vadd.f32 %v16755_v15, %v2215_v56  ;;  %v3526_v15 = vld [vmem:[#allocation2 + $0x1b2] sm:$0xff] }
 0x389   : > { %v2219_v16 = vpop.f32.mrb[128].mxu1  ;;  %4107 = vmatprep.mubr.f32.mxu0 %v14746_v46 }
 0x38a   : > { %16756 = vst [vmem:[#allocation34_spill] sm:$0xff] %v14750_v13  ;;  %v11920_v18 = vadd.f32 %v2219_v16, %v16757_v20  ;;  %v2221_v28 = vpop.f32.mrb[129].mxu1  ;;  %3079 = vmatmul.mubr.f32.gmra.mrb[202].mxu1 %v14542_v6  ;;  %v3559_v16 = vld [vmem:[#allocation2 + $0x1bb] sm:$0xff] }
 0x38b   : > { %3083 = vmatprep.mubr.f32.mxu1 %v14547_v22  ;;  %v16760_v6 = vld [vmem:[#allocation77_spill] sm:$0xff]  ;;  %v16761_v28 = vld [vmem:[#allocation44_spill] sm:$0xff] }
 0x38c   : > { %v14759_v0 = vadd.f32 %v11920_v18, %v16758_v26  ;;  %4108 = vmatmul.mubr.f32.gmra.mrb[186].mxu0 %v14756_v24  ;;  %v3527_v18 = vld [vmem:[#allocation2 + $0x1ba] sm:$0xff] }
 0x38d   : > { %v2224_v56 = vpop.f32.mrb[168].mxu1  ;;  %4112 = vmatprep.mubr.f32.mxu0 %v3558_v2 }
 0x38e   : > { %16759 = vst [vmem:[#allocation60_spill] sm:$0xff] %v14759_v0  ;;  %v2225_v13 = vadd.f32 %v2224_v56, %v14392_v4  ;;  %v2226_v59 = vpop.f32.mrb[169].mxu1  ;;  %3084 = vmatmul.mubr.f32.gmra.mrb[204].mxu1 %v14554_v48  ;;  %v4606_v4 = vld [vmem:[#allocation7 + $0xc00] sm:$0xff] }
 0x38f   : > { %3088 = vmatprep.mubr.f32.mxu1 %v14559_v21  ;;  %v4607_v59 = vld [vmem:[#allocation7 + $0xc08] sm:$0xff] }
 0x390   : > { %4113 = vmatmul.mubr.f32.gmra.mrb[188].mxu0 %v3526_v15  ;;  %v14766_v22 = vadd.f32 %v16760_v6, %v2225_v13  ;;  %v11420_v21 = vpack.c.bf16 %v4607_v59, %v4606_v4  ;;  %v16766_v4 = vld [vmem:[#allocation81_spill] sm:$0xff] }
 0x391   : > { %v2229_v20 = vpop.f32.mrb[132].mxu1  ;;  %4117 = vmatprep.mubr.f32.mxu0 %v3559_v16 }
 0x392   : > { %v11921_v26 = vadd.f32 %v2229_v20, %v16761_v28  ;;  %v2231_v0 = vpop.f32.mrb[133].mxu1  ;;  %3089 = vmatmul.mubr.f32.gmra.mrb[206].mxu1 %v14566_v3  ;;  %11421 = vmatprep.subr.bf16.mxu0 %v11420_v21  ;;  %v16763_v20 = vld [vmem:[#allocation47_spill] sm:$0xff]  ;;  %v16764_v28 = vld [vmem:[#allocation80_spill] sm:$0xff] }
 0x393   : > { %3093 = vmatprep.mubr.f32.mxu1 %v14571_v35  ;;  %11423 = vmatpush3.bf16.msra.mxu0 %v11420_v21  ;;  %v16762_v0 = vld [vmem:[#allocation46_spill] sm:$0xff] }
 0x394   : > { %v14772_v48 = vadd.f32 %v11921_v26, %v14407_v61  ;;  %4118 = vmatmul.mubr.f32.gmra.mrb[190].mxu0 %v3527_v18 }
 0x395   : > { %v2234_v2 = vpop.f32.mrb[170].mxu1 }
 0x396   : > { %v2235_v13 = vadd.f32 %v2234_v2, %v14411_v44  ;;  %v2236_v56 = vpop.f32.mrb[171].mxu1  ;;  %3094 = vmatmul.mubr.f32.gmra.mrb[208].mxu1 %v14578_v55 }
 0x397   : > { %3098 = vmatprep.mubr.f32.mxu1 %v14583_v12 }
 0x398   : > { %v14778_v3 = vadd.f32 %v14402_v43, %v2235_v13 }
 0x399   : > { %v2239_v35 = vpop.f32.mrb[136].mxu1 }
 0x39a   : > { %v11922_v15 = vadd.f32 %v2239_v35, %v16762_v0  ;;  %v2241_v61 = vpop.f32.mrb[137].mxu1  ;;  %3099 = vmatmul.mubr.f32.gmra.mrb[210].mxu1 %v14589_v31  ;;  %v4611_v35 = vld [vmem:[#allocation7 + $0xc28] sm:$0xff] }
 0x39b   : > { %3103 = vmatprep.mubr.f32.mxu1 %v14594_v1  ;;  %v4609_v1 = vld [vmem:[#allocation7 + $0xc18] sm:$0xff] }
 0x39c   : > { %v14784_v44 = vadd.f32 %v11922_v15, %v14430_v42  ;;  %v4608_v42 = vld [vmem:[#allocation7 + $0xc10] sm:$0xff]  ;;  %v4613_v61 = vld [vmem:[#allocation7 + $0xc38] sm:$0xff] }
 0x39d   : > { %v2244_v16 = vpop.f32.mrb[172].mxu1  ;;  %v11424_v26 = vpack.c.bf16 %v4609_v1, %v4608_v42  ;;  %v4545_v42 = vld [vmem:[#allocation7 + $0xa18] sm:$0xff]  ;;  %v4614_v1 = vld [vmem:[#allocation7 + $0xc40] sm:$0xff] }
 0x39e   : > { %v2245_v55 = vadd.f32 %v2244_v16, %v14434_v41  ;;  %v2246_v6 = vpop.f32.mrb[173].mxu1  ;;  %3104 = vmatmul.mubr.f32.gmra.mrb[212].mxu1 %v14600_v37 }
 0x39f   : > { %3108 = vmatprep.mubr.f32.mxu1 %v14605_v50  ;;  %11425 = vmatprep.subr.bf16.mxu0 %v11424_v26  ;;  %v4543_v6 = vld [vmem:[#allocation7 + $0xa08] sm:$0xff] }
 0x3a0   : > { %v14790_v43 = vadd.f32 %v14425_v23, %v2245_v55  ;;  %v14800_v23 = vpop.f32.mrb[96].mxu0  ;;  %11427 = vmatpush3.bf16.msra.mxu0 %v11424_v26  ;;  %v4542_v55 = vld [vmem:[#allocation7 + $0xa00] sm:$0xff] }
 0x3a1   : > { %v2249_v12 = vpop.f32.mrb[140].mxu1  ;;  %v3563_v26 = vld [vmem:[#allocation2 + $0x6c] sm:$0xff] }
 0x3a2   : > { %v11923_v18 = vadd.f32 %v2249_v12, %v16763_v20  ;;  %v2251_v31 = vpop.f32.mrb[141].mxu1  ;;  %3109 = vmatmul.mubr.f32.gmra.mrb[214].mxu1 %v14611_v14  ;;  %v14803_v14 = vpop.f32.mrb[97].mxu0  ;;  %v3561_v20 = vld [vmem:[#allocation2 + $0x54] sm:$0xff] }
 0x3a3   : > { %3113 = vmatprep.mubr.f32.mxu1 %v14616_v45  ;;  %v16767_v45 = vld [vmem:[#allocation79_spill] sm:$0xff]  ;;  %v14809_v2 = vpop.f32.mrb[98].mxu0  ;;  %v4544_v31 = vld [vmem:[#allocation7 + $0xa10] sm:$0xff] }
 0x3a4   : > { %v14796_v41 = vadd.f32 %v11923_v18, %v16764_v28  ;;  %v14812_v13 = vpop.f32.mrb[99].mxu0  ;;  %v3562_v18 = vld [vmem:[#allocation2 + $0x64] sm:$0xff] }
 0x3a5   : > { %v2254_v37 = vpop.f32.mrb[174].mxu1 }
 0x3a6   : > { %16765 = vst [vmem:[#allocation61_spill] sm:$0xff] %v14796_v41  ;;  %v2255_v50 = vadd.f32 %v2254_v37, %v16766_v4  ;;  %v2256_v59 = vpop.f32.mrb[175].mxu1  ;;  %3114 = vmatmul.mubr.f32.gmra.mrb[216].mxu1 %v14623_v11  ;;  %v14815_v11 = vpop.f32.mrb[100].mxu0  ;;  %v11328_v37 = vpack.c.bf16 %v4545_v42, %v4544_v31  ;;  %v3564_v4 = vld [vmem:[#allocation2 + $0x7c] sm:$0xff] }
 0x3a7   : > { %3118 = vmatprep.mubr.f32.mxu1 %v14628_v25  ;;  %v14818_v25 = vpop.f32.mrb[101].mxu0  ;;  %v4547_v59 = vld [vmem:[#allocation7 + $0xa28] sm:$0xff] }
 0x3a8   : > { %v14806_v21 = vadd.f32 %v16767_v45, %v2255_v50  ;;  %v14821_v56 = vpop.f32.mrb[102].mxu0  ;;  %v4546_v50 = vld [vmem:[#allocation7 + $0xa20] sm:$0xff]  ;;  %v4551_v31 = vld [vmem:[#allocation7 + $0xa48] sm:$0xff] }
 0x3aa   : > { %16768 = vst [vmem:[#allocation59_spill] sm:$0xff] %v14806_v21  ;;  %3119 = vmatmul.mubr.f32.gmra.mrb[218].mxu1 %v14635_v19  ;;  %v14824_v19 = vpop.f32.mrb[103].mxu0  ;;  %v4383_v21 = vld [vmem:[#allocation2 + $0x78] sm:$0xff] }
 0x3ab   : > { %3123 = vmatprep.mubr.f32.mxu1 %v14640_v10  ;;  %v4610_v10 = vld [vmem:[#allocation7 + $0xc20] sm:$0xff]  ;;  %v14827_v0 = vpop.f32.mrb[104].mxu0 }
 0x3ae   : > { %3124 = vmatmul.mubr.f32.gmra.mrb[220].mxu1 %v14647_v47  ;;  %v11428_v47 = vpack.c.bf16 %v4611_v35, %v4610_v10  ;;  %v3565_v35 = vld [vmem:[#allocation2 + $0x84] sm:$0xff] }
 0x3af   : > { %3128 = vmatprep.mubr.f32.mxu1 %v14652_v63  ;;  %v14830_v63 = vpop.f32.mrb[105].mxu0 }
 0x3b0   : > { %11429 = vmatprep.subr.bf16.mxu0 %v11428_v47 }
 0x3b1   : > { %11431 = vmatpush3.bf16.msra.mxu0 %v11428_v47  ;;  %v11331_v47 = vpack.c.bf16 %v4547_v59, %v4546_v50  ;;  %v4616_v59 = vld [vmem:[#allocation7 + $0xc50] sm:$0xff] }
 0x3b2   : > { %3129 = vmatmul.mubr.f32.gmra.mrb[222].mxu1 %v14659_v34  ;;  %v14833_v34 = vpop.f32.mrb[106].mxu0 }
 0x3b3   : > { %3133 = vmatprep.mubr.f32.mxu1 %v14664_v40  ;;  %v14836_v40 = vpop.f32.mrb[107].mxu0 }
 0x3b6   : > { %3134 = vmatmul.mubr.f32.gmra.mrb[224].mxu1 %v14671_v7  ;;  %v14839_v7 = vpop.f32.mrb[108].mxu0 }
 0x3b7   : > { %3138 = vmatprep.mubr.f32.mxu1 %v14673_v57  ;;  %v14842_v57 = vpop.f32.mrb[109].mxu0 }
 0x3b8   : > { %v14845_v15 = vpop.f32.mrb[110].mxu0 }
 0x3ba   : > { %3139 = vmatmul.mubr.f32.gmra.mrb[226].mxu1 %v14683_v38  ;;  %v14848_v38 = vpop.f32.mrb[111].mxu0 }
 0x3bb   : > { %3143 = vmatprep.mubr.f32.mxu1 %v14688_v33  ;;  %v4612_v33 = vld [vmem:[#allocation7 + $0xc30] sm:$0xff]  ;;  %v14851_v16 = vpop.f32.mrb[112].mxu0 }
 0x3be   : > { %3144 = vmatmul.mubr.f32.gmra.mrb[228].mxu1 %v14696_v30  ;;  %v11432_v30 = vpack.c.bf16 %v4613_v61, %v4612_v33  ;;  %v3566_v33 = vld [vmem:[#allocation2 + $0x94] sm:$0xff]  ;;  %v4548_v61 = vld [vmem:[#allocation7 + $0xa30] sm:$0xff] }
 0x3bf   : > { %3148 = vmatprep.mubr.f32.mxu1 %v14698_v54  ;;  %v14854_v54 = vpop.f32.mrb[113].mxu0 }
 0x3c0   : > { %11433 = vmatprep.subr.bf16.mxu0 %v11432_v30 }
 0x3c1   : > { %11435 = vmatpush3.bf16.msra.mxu0 %v11432_v30  ;;  %v4549_v30 = vld [vmem:[#allocation7 + $0xa38] sm:$0xff] }
 0x3c2   : > { %3149 = vmatmul.mubr.f32.gmra.mrb[230].mxu1 %v14708_v51  ;;  %v14857_v51 = vpop.f32.mrb[114].mxu0 }
 0x3c3   : > { %3153 = vmatprep.mubr.f32.mxu1 %v14713_v53  ;;  %v14860_v53 = vpop.f32.mrb[115].mxu0 }
 0x3c6   : > { %3154 = vmatmul.mubr.f32.gmra.mrb[232].mxu1 %v14720_v9  ;;  %v14863_v9 = vpop.f32.mrb[116].mxu0 }
 0x3c7   : > { %3158 = vmatprep.mubr.f32.mxu1 %v14722_v8  ;;  %v3560_v8 = vld [vmem:[#allocation2 + $0x4c] sm:$0xff]  ;;  %v14866_v12 = vpop.f32.mrb[117].mxu0 }
 0x3ca   : > { %3159 = vmatmul.mubr.f32.gmra.mrb[234].mxu1 %v14732_v36  ;;  %v14869_v36 = vpop.f32.mrb[118].mxu0 }
 0x3cb   : > { %3163 = vmatprep.mubr.f32.mxu1 %v14737_v17  ;;  %v11325_v17 = vpack.c.bf16 %v4543_v6, %v4542_v55  ;;  %v3567_v6 = vld [vmem:[#allocation2 + $0x9c] sm:$0xff] }
 0x3ce   : > { %3164 = vmatmul.mubr.f32.gmra.mrb[236].mxu1 %v14744_v32  ;;  %v14871_v32 = vpop.f32.mrb[119].mxu0 }
 0x3cf   : > { %3168 = vmatprep.mubr.f32.mxu1 %v14746_v46  ;;  %v4615_v46 = vld [vmem:[#allocation7 + $0xc48] sm:$0xff]  ;;  %v14873_v28 = vpop.f32.mrb[120].mxu0 }
 0x3d0   : > { %v14876_v45 = vpop.f32.mrb[121].mxu0 }
 0x3d1   : > { %v14878_v10 = vpop.f32.mrb[122].mxu0 }
 0x3d2   : > { %3169 = vmatmul.mubr.f32.gmra.mrb[238].mxu1 %v14756_v24  ;;  %v11436_v24 = vpack.c.bf16 %v4615_v46, %v4614_v1  ;;  %v3569_v46 = vld [vmem:[#allocation2 + $0xb4] sm:$0xff] }
 0x3d3   : > { %10044 = vmatprep.mubr.f32.mxu1 %v3560_v8  ;;  %v14881_v8 = vpop.f32.mrb[123].mxu0 }
 0x3d4   : > { %11437 = vmatprep.subr.bf16.mxu0 %v11436_v24  ;;  %v14883_v55 = vpop.f32.mrb[124].mxu0 }
 0x3d5   : > { %11439 = vmatpush3.bf16.msra.mxu0 %v11436_v24  ;;  %v14886_v42 = vpop.f32.mrb[125].mxu0  ;;  %v4552_v24 = vld [vmem:[#allocation7 + $0xa50] sm:$0xff] }
 0x3d6   : > { %10045 = vmatmul.mubr.f32.vlgmr.msra.gmra.mrb[240].mxu1 %v3561_v20  ;;  %v11334_v20 = vpack.c.bf16 %v4549_v30, %v4548_v61  ;;  %v14888_v1 = vpop.f32.mrb[126].mxu0  ;;  %v3572_v30 = vld [vmem:[#allocation2 + $0xdc] sm:$0xff] }
 0x3d7   : > { %11326 = vmatpush1.bf16.msra.mxu1 %v11325_v17  ;;  %10047 = vmatprep.mubr.f32.mxu1 %v3562_v18  ;;  %v3568_v17 = vld [vmem:[#allocation2 + $0xac] sm:$0xff]  ;;  %16769 = vst [vmem:[#allocation35_spill] sm:$0xff] %v14888_v1  ;;  %v14891_v50 = vpop.f32.mrb[127].mxu0 }
 0x3d8   : > { %11327 = vmatprep.subr.bf16.mxu1 %v16682_v29  ;;  %v4550_v18 = vld [vmem:[#allocation7 + $0xa40] sm:$0xff] }
 0x3da   : > { %10048 = vmatmul.mubr.f32.gmra.mrb[242].mxu1 %v3563_v26  ;;  %v11337_v26 = vpack.c.bf16 %v4551_v31, %v4550_v18 }
 0x3db   : > { %11329 = vmatpush1.bf16.msra.mxu1 %v11328_v37  ;;  %10050 = vmatprep.mubr.f32.mxu1 %v3564_v4  ;;  %v3570_v37 = vld [vmem:[#allocation2 + $0xc4] sm:$0xff] }
 0x3dc   : > { %11330 = vmatprep.subr.bf16.mxu1 %v16682_v29  ;;  %v4553_v4 = vld [vmem:[#allocation7 + $0xa58] sm:$0xff] }
 0x3de   : > { %10051 = vmatmul.mubr.f32.gmra.mrb[244].mxu1 %v3565_v35  ;;  %v4617_v35 = vld [vmem:[#allocation7 + $0xc58] sm:$0xff] }
 0x3df   : > { %11332 = vmatpush1.bf16.msra.mxu1 %v11331_v47  ;;  %10053 = vmatprep.mubr.f32.mxu1 %v3566_v33  ;;  %v3571_v47 = vld [vmem:[#allocation2 + $0xcc] sm:$0xff]  ;;  %v11340_v33 = vpack.c.bf16 %v4553_v4, %v4552_v24  ;;  %v11440_v61 = vpack.c.bf16 %v4617_v35, %v4616_v59  ;;  %v3575_v4 = vld [vmem:[#allocation2 + $0xfc] sm:$0xff] }
 0x3e0   : > { %11333 = vmatprep.subr.bf16.mxu1 %v16682_v29 }
 0x3e1   : > { %11441 = vmatprep.subr.bf16.mxu0 %v11440_v61 }
 0x3e2   : > { %10054 = vmatmul.mubr.f32.gmra.mrb[246].mxu1 %v3567_v6  ;;  %v4554_v6 = vld [vmem:[#allocation7 + $0xa60] sm:$0xff]  ;;  %11443 = vmatpush3.bf16.msra.mxu0 %v11440_v61  ;;  %v4559_v61 = vld [vmem:[#allocation7 + $0xa88] sm:$0xff] }
 0x3e3   : > { %11335 = vmatpush1.bf16.msra.mxu1 %v11334_v20  ;;  %10056 = vmatprep.mubr.f32.mxu1 %v3568_v17  ;;  %v4555_v20 = vld [vmem:[#allocation7 + $0xa68] sm:$0xff]  ;;  %v3573_v17 = vld [vmem:[#allocation2 + $0xe4] sm:$0xff] }
 0x3e4   : > { %11336 = vmatprep.subr.bf16.mxu1 %v16682_v29  ;;  %v11343_v18 = vpack.c.bf16 %v4555_v20, %v4554_v6  ;;  %v3577_v6 = vld [vmem:[#allocation2 + $0x114] sm:$0xff] }
 0x3e6   : > { %10057 = vmatmul.mubr.f32.gmra.mrb[248].mxu1 %v3569_v46  ;;  %v3574_v46 = vld [vmem:[#allocation2 + $0xf4] sm:$0xff] }
 0x3e7   : > { %11338 = vmatpush1.bf16.msra.mxu1 %v11337_v26  ;;  %10059 = vmatprep.mubr.f32.mxu1 %v3570_v37  ;;  %v4556_v26 = vld [vmem:[#allocation7 + $0xa70] sm:$0xff]  ;;  %v4557_v37 = vld [vmem:[#allocation7 + $0xa78] sm:$0xff] }
 0x3e8   : > { %11339 = vmatprep.subr.bf16.mxu1 %v16682_v29  ;;  %v11346_v59 = vpack.c.bf16 %v4557_v37, %v4556_v26  ;;  %v3579_v37 = vld [vmem:[#allocation2 + $0x12c] sm:$0xff] }
 0x3ea   : > { %10060 = vmatmul.mubr.f32.gmra.mrb[250].mxu1 %v3571_v47  ;;  %v3576_v47 = vld [vmem:[#allocation2 + $0x10c] sm:$0xff] }
 0x3eb   : > { %11341 = vmatpush1.bf16.msra.mxu1 %v11340_v33  ;;  %10062 = vmatprep.mubr.f32.mxu1 %v3572_v30  ;;  %v14894_v31 = vpop.f32.mrb[128].mxu0  ;;  %v4558_v33 = vld [vmem:[#allocation7 + $0xa80] sm:$0xff] }
 0x3ec   : > { %16770 = vst [vmem:[#allocation63_spill] sm:$0xff] %v14894_v31  ;;  %11342 = vmatprep.subr.bf16.mxu1 %v16682_v29  ;;  %v3966_v24 = vpop.f32.mrb[129].mxu0  ;;  %v11349_v20 = vpack.c.bf16 %v4559_v61, %v4558_v33  ;;  %v4618_v33 = vld [vmem:[#allocation7 + $0xc60] sm:$0xff]  ;;  %v4619_v61 = vld [vmem:[#allocation7 + $0xc68] sm:$0xff] }
 0x3ee   : > { %10063 = vmatmul.mubr.f32.gmra.mrb[252].mxu1 %v3573_v17  ;;  %v3578_v17 = vld [vmem:[#allocation2 + $0x124] sm:$0xff] }
 0x3ef   : > { %11344 = vmatpush1.bf16.msra.mxu1 %v11343_v18  ;;  %10065 = vmatprep.mubr.f32.mxu1 %v3574_v46  ;;  %v14897_v35 = vpop.f32.mrb[130].mxu0  ;;  %v4560_v18 = vld [vmem:[#allocation7 + $0xa90] sm:$0xff]  ;;  %v4561_v46 = vld [vmem:[#allocation7 + $0xa98] sm:$0xff] }
 0x3f0   : > { %16771 = vst [vmem:[#allocation62_spill] sm:$0xff] %v14897_v35  ;;  %11345 = vmatprep.subr.bf16.mxu1 %v16682_v29  ;;  %v3971_v30 = vpop.f32.mrb[131].mxu0  ;;  %v11352_v24 = vpack.c.bf16 %v4561_v46, %v4560_v18  ;;  %v3580_v35 = vld [vmem:[#allocation2 + $0x13c] sm:$0xff]  ;;  %v4565_v46 = vld [vmem:[#allocation7 + $0xab8] sm:$0xff] }
 0x3f1   : > { %v4562_v30 = vld [vmem:[#allocation7 + $0xaa0] sm:$0xff]  ;;  %v4564_v18 = vld [vmem:[#allocation7 + $0xab0] sm:$0xff] }
 0x3f2   : > { %10066 = vmatmul.mubr.f32.gmra.mrb[254].mxu1 %v3575_v4 }
 0x3f3   : > { %11347 = vmatpush1.bf16.msra.mxu1 %v11346_v59  ;;  %10068 = vmatprep.mubr.f32.mxu1 %v3576_v47  ;;  %v14900_v31 = vpop.f32.mrb[132].mxu0  ;;  %v4563_v59 = vld [vmem:[#allocation7 + $0xaa8] sm:$0xff] }
 0x3f4   : > { %16772 = vst [vmem:[#allocation36_spill] sm:$0xff] %v14900_v31  ;;  %11348 = vmatprep.subr.bf16.mxu1 %v16682_v29  ;;  %v3976_v26 = vpop.f32.mrb[133].mxu0  ;;  %v11444_v31 = vpack.c.bf16 %v4619_v61, %v4618_v33  ;;  %v11358_v33 = vpack.c.bf16 %v4565_v46, %v4564_v18  ;;  %v3585_v61 = vld [vmem:[#allocation2 + $0x174] sm:$0xff]  ;;  %v3587_v18 = vld [vmem:[#allocation2 + $0x18c] sm:$0xff] }
 0x3f5   : > { %v3581_v26 = vld [vmem:[#allocation2 + $0x144] sm:$0xff] }
 0x3f6   : > { %10069 = vmatmul.mubr.f32.gmra.mrb[0].mxu1 %v3577_v6  ;;  %v11355_v6 = vpack.c.bf16 %v4563_v59, %v4562_v30  ;;  %11445 = vmatprep.subr.bf16.mxu0 %v11444_v31  ;;  %v4567_v30 = vld [vmem:[#allocation7 + $0xac8] sm:$0xff] }
 0x3f7   : > { %11350 = vmatpush1.bf16.msra.mxu1 %v11349_v20  ;;  %10071 = vmatprep.mubr.f32.mxu1 %v3578_v17  ;;  %v14903_v4 = vpop.f32.mrb[134].mxu0  ;;  %v3582_v17 = vld [vmem:[#allocation2 + $0x154] sm:$0xff] }
 0x3f8   : > { %16773 = vst [vmem:[#allocation64_spill] sm:$0xff] %v14903_v4  ;;  %11351 = vmatprep.subr.bf16.mxu1 %v16682_v29  ;;  %v3981_v47 = vpop.f32.mrb[135].mxu0  ;;  %11447 = vmatpush3.bf16.msra.mxu0 %v11444_v31  ;;  %v3586_v31 = vld [vmem:[#allocation2 + $0x184] sm:$0xff] }
 0x3f9   : > { %v3583_v47 = vld [vmem:[#allocation2 + $0x15c] sm:$0xff] }
 0x3fa   : > { %10072 = vmatmul.mubr.f32.gmra.mrb[2].mxu1 %v3579_v37 }
 0x3fb   : > { %11353 = vmatpush1.bf16.msra.mxu1 %v11352_v24  ;;  %10074 = vmatprep.mubr.f32.mxu1 %v3580_v35  ;;  %v14906_v20 = vpop.f32.mrb[136].mxu0  ;;  %v3584_v35 = vld [vmem:[#allocation2 + $0x16c] sm:$0xff] }
 0x3fc   : > { %16774 = vst [vmem:[#allocation37_spill] sm:$0xff] %v14906_v20  ;;  %11354 = vmatprep.subr.bf16.mxu1 %v16682_v29  ;;  %v3986_v4 = vpop.f32.mrb[137].mxu0  ;;  %v4566_v24 = vld [vmem:[#allocation7 + $0xac0] sm:$0xff] }
 0x3fd   : > { %v11361_v20 = vpack.c.bf16 %v4567_v30, %v4566_v24  ;;  %v4620_v24 = vld [vmem:[#allocation7 + $0xc70] sm:$0xff]  ;;  %v4621_v30 = vld [vmem:[#allocation7 + $0xc78] sm:$0xff] }
 0x3fe   : > { %10075 = vmatmul.mubr.f32.gmra.mrb[4].mxu1 %v3581_v26  ;;  %v4568_v26 = vld [vmem:[#allocation7 + $0xad0] sm:$0xff] }
 0x3ff   : > { %11356 = vmatpush1.bf16.msra.mxu1 %v11355_v6  ;;  %10077 = vmatprep.mubr.f32.mxu1 %v3582_v17  ;;  %v14909_v37 = vpop.f32.mrb[138].mxu0  ;;  %v4569_v6 = vld [vmem:[#allocation7 + $0xad8] sm:$0xff] }
 0x400   : > { %16775 = vst [vmem:[#allocation66_spill] sm:$0xff] %v14909_v37  ;;  %11357 = vmatprep.subr.bf16.mxu1 %v16682_v29  ;;  %v3991_v59 = vpop.f32.mrb[139].mxu0  ;;  %v11364_v46 = vpack.c.bf16 %v4569_v6, %v4568_v26  ;;  %v3588_v37 = vld [vmem:[#allocation2 + $0x19c] sm:$0xff]  ;;  %v4573_v6 = vld [vmem:[#allocation7 + $0xaf8] sm:$0xff] }
 0x401   : > { %v4570_v59 = vld [vmem:[#allocation7 + $0xae0] sm:$0xff]  ;;  %v4572_v26 = vld [vmem:[#allocation7 + $0xaf0] sm:$0xff] }
 0x402   : > { %10078 = vmatmul.mubr.f32.gmra.mrb[6].mxu1 %v3583_v47 }
 0x403   : > { %11359 = vmatpush1.bf16.msra.mxu1 %v11358_v33  ;;  %10080 = vmatprep.mubr.f32.mxu1 %v3584_v35  ;;  %v14912_v4 = vpop.f32.mrb[140].mxu0  ;;  %v4571_v33 = vld [vmem:[#allocation7 + $0xae8] sm:$0xff] }
 0x404   : > { %16776 = vst [vmem:[#allocation65_spill] sm:$0xff] %v14912_v4  ;;  %11360 = vmatprep.subr.bf16.mxu1 %v16682_v29  ;;  %v3996_v17 = vpop.f32.mrb[141].mxu0  ;;  %v11448_v4 = vpack.c.bf16 %v4621_v30, %v4620_v24  ;;  %v4509_v30 = vld [vmem:[#allocation2 + $0x64] sm:$0xff] }
 0x405   : > { %v3589_v17 = vld [vmem:[#allocation2 + $0x1a4] sm:$0xff]  ;;  %10124 = vmatprep.mubr.f32.mxu0 %v4509_v30 }
 0x406   : > { %10081 = vmatmul.mubr.f32.gmra.mrb[8].mxu1 %v3585_v61  ;;  %v11367_v61 = vpack.c.bf16 %v4571_v33, %v4570_v59  ;;  %11449 = vmatprep.subr.bf16.mxu0 %v11448_v4  ;;  %v4413_v59 = vld [vmem:[#allocation2 + $0x61] sm:$0xff]  ;;  %v4574_v33 = vld [vmem:[#allocation7 + $0xb00] sm:$0xff] }
 0x407   : > { %11362 = vmatpush1.bf16.msra.mxu1 %v11361_v20  ;;  %10083 = vmatprep.mubr.f32.mxu1 %v3586_v31  ;;  %v14915_v47 = vpop.f32.mrb[142].mxu0  ;;  %v3590_v31 = vld [vmem:[#allocation2 + $0x1b4] sm:$0xff] }
 0x408   : > { %16777 = vst [vmem:[#allocation38_spill] sm:$0xff] %v14915_v47  ;;  %11363 = vmatprep.subr.bf16.mxu1 %v16682_v29  ;;  %v4001_v35 = vpop.f32.mrb[143].mxu0  ;;  %11451 = vmatpush3.bf16.msra.mxu0 %v11448_v4  ;;  %v4381_v4 = vld [vmem:[#allocation2 + $0x60] sm:$0xff] }
 0x409   : > { %11452 = vmatprep.subr.bf16.mxu0 %v16682_v29  ;;  %v4575_v35 = vld [vmem:[#allocation7 + $0xb08] sm:$0xff] }
 0x40a   : > { %10084 = vmatmul.mubr.f32.gmra.mrb[10].mxu1 %v3587_v18  ;;  %v3591_v18 = vld [vmem:[#allocation2 + $0x1bc] sm:$0xff] }
 0x40b   : > { %11365 = vmatpush1.bf16.msra.mxu1 %v11364_v46  ;;  %10086 = vmatprep.mubr.f32.mxu1 %v3588_v37  ;;  %v14918_v20 = vpop.f32.mrb[144].mxu0  ;;  %v11370_v46 = vpack.c.bf16 %v4573_v6, %v4572_v26  ;;  %v4576_v26 = vld [vmem:[#allocation7 + $0xb10] sm:$0xff]  ;;  %v4577_v6 = vld [vmem:[#allocation7 + $0xb18] sm:$0xff] }
 0x40c   : > { %16778 = vst [vmem:[#allocation68_spill] sm:$0xff] %v14918_v20  ;;  %11366 = vmatprep.subr.bf16.mxu1 %v16682_v29  ;;  %v4006_v47 = vpop.f32.mrb[145].mxu0 }
 0x40d   : > { %v11373_v47 = vpack.c.bf16 %v4575_v35, %v4574_v33  ;;  %v4578_v33 = vld [vmem:[#allocation7 + $0xb20] sm:$0xff]  ;;  %v4579_v35 = vld [vmem:[#allocation7 + $0xb28] sm:$0xff] }
 0x40e   : > { %10087 = vmatmul.mubr.f32.gmra.mrb[12].mxu1 %v3589_v17 }
 0x40f   : > { %11368 = vmatpush1.bf16.msra.mxu1 %v11367_v61  ;;  %10089 = vmatprep.mubr.f32.mxu1 %v3590_v31  ;;  %v14922_v37 = vpop.f32.mrb[146].mxu0  ;;  %v4510_v61 = vld [vmem:[#allocation2 + $0x6c] sm:$0xff] }
 0x410   : > { %16779 = vst [vmem:[#allocation69_spill] sm:$0xff] %v14922_v37  ;;  %11369 = vmatprep.subr.bf16.mxu1 %v16682_v29  ;;  %v4011_v24 = vpop.f32.mrb[147].mxu0  ;;  %v4414_v31 = vld [vmem:[#allocation2 + $0x69] sm:$0xff]  ;;  %10125 = vmatmul.mubr.f32.vlgmr.msra.gmra.mrb[192].mxu0 %v4510_v61  ;;  %v4511_v37 = vld [vmem:[#allocation2 + $0x7c] sm:$0xff] }
 0x411   : > { %v11376_v24 = vpack.c.bf16 %v4577_v6, %v4576_v26  ;;  %v4580_v61 = vld [vmem:[#allocation7 + $0xb30] sm:$0xff]  ;;  %10127 = vmatprep.mubr.f32.mxu0 %v4511_v37 }
 0x412   : > { %10090 = vmatmul.mubr.f32.gmra.mrb[14].mxu1 %v3591_v18  ;;  %v4382_v18 = vld [vmem:[#allocation2 + $0x68] sm:$0xff] }
 0x413   : > { %11371 = vmatpush1.bf16.msra.mxu1 %v11370_v46  ;;  %4686 = vmatprep.mubr.f32.mxu1 %v4413_v59  ;;  %v14925_v17 = vpop.f32.mrb[148].mxu0  ;;  %v4415_v59 = vld [vmem:[#allocation2 + $0x79] sm:$0xff] }
 0x414   : > { %16780 = vst [vmem:[#allocation67_spill] sm:$0xff] %v14925_v17  ;;  %11372 = vmatprep.subr.bf16.mxu1 %v16682_v29  ;;  %v4016_v20 = vpop.f32.mrb[149].mxu0 }
 0x415   : > { %v11379_v20 = vpack.c.bf16 %v4579_v35, %v4578_v33  ;;  %v4583_v33 = vld [vmem:[#allocation7 + $0xb48] sm:$0xff] }
 0x416   : > { %4687 = vmatmul.mubr.f32.vlgmr.msra.gmra.mrb[16].mxu1 %v4381_v4  ;;  %v4512_v4 = vld [vmem:[#allocation2 + $0x84] sm:$0xff] }
 0x417   : > { %11374 = vmatpush1.bf16.msra.mxu1 %v11373_v47  ;;  %4691 = vmatprep.mubr.f32.mxu1 %v4414_v31  ;;  %v14928_v46 = vpop.f32.mrb[150].mxu0  ;;  %v4416_v47 = vld [vmem:[#allocation2 + $0x81] sm:$0xff] }
 0x418   : > { %16781 = vst [vmem:[#allocation39_spill] sm:$0xff] %v14928_v46  ;;  %11375 = vmatprep.subr.bf16.mxu1 %v16682_v29  ;;  %v4021_v17 = vpop.f32.mrb[151].mxu0  ;;  %v4581_v31 = vld [vmem:[#allocation7 + $0xb38] sm:$0xff]  ;;  %10128 = vmatmul.mubr.f32.gmra.mrb[194].mxu0 %v4512_v4  ;;  %v4385_v46 = vld [vmem:[#allocation2 + $0x90] sm:$0xff] }
 0x419   : > { %v4384_v17 = vld [vmem:[#allocation2 + $0x80] sm:$0xff]  ;;  %v11382_v6 = vpack.c.bf16 %v4581_v31, %v4580_v61  ;;  %v4585_v61 = vld [vmem:[#allocation7 + $0xb58] sm:$0xff] }
 0x41a   : > { %4692 = vmatmul.mubr.f32.gmra.mrb[18].mxu1 %v4382_v18 }
 0x41b   : > { %4696 = vmatprep.mubr.f32.mxu1 %v4415_v59  ;;  %11377 = vmatpush1.bf16.msra.mxu1 %v11376_v24  ;;  %v14931_v30 = vpop.f32.mrb[152].mxu0  ;;  %v4417_v24 = vld [vmem:[#allocation2 + $0x91] sm:$0xff] }
 0x41c   : > { %16782 = vst [vmem:[#allocation71_spill] sm:$0xff] %v14931_v30  ;;  %11378 = vmatprep.subr.bf16.mxu1 %v16682_v29  ;;  %v4026_v26 = vpop.f32.mrb[153].mxu0  ;;  %v4582_v59 = vld [vmem:[#allocation7 + $0xb40] sm:$0xff] }
 0x41d   : > { %v4513_v30 = vld [vmem:[#allocation2 + $0x94] sm:$0xff]  ;;  %v11385_v37 = vpack.c.bf16 %v4583_v33, %v4582_v59 }
 0x41e   : > { %4697 = vmatmul.mubr.f32.gmra.mrb[20].mxu1 %v4383_v21  ;;  %v4514_v21 = vld [vmem:[#allocation2 + $0x9c] sm:$0xff]  ;;  %10130 = vmatprep.mubr.f32.mxu0 %v4513_v30  ;;  %v4586_v59 = vld [vmem:[#allocation7 + $0xb60] sm:$0xff] }
 0x41f   : > { %4701 = vmatprep.mubr.f32.mxu1 %v4416_v47  ;;  %11380 = vmatpush1.bf16.msra.mxu1 %v11379_v20  ;;  %v14934_v18 = vpop.f32.mrb[154].mxu0  ;;  %v4418_v47 = vld [vmem:[#allocation2 + $0x99] sm:$0xff]  ;;  %v4515_v30 = vld [vmem:[#allocation2 + $0xac] sm:$0xff] }
 0x420   : > { %16783 = vst [vmem:[#allocation72_spill] sm:$0xff] %v14934_v18  ;;  %11381 = vmatprep.subr.bf16.mxu1 %v16682_v29  ;;  %v4031_v35 = vpop.f32.mrb[155].mxu0  ;;  %v4584_v20 = vld [vmem:[#allocation7 + $0xb50] sm:$0xff]  ;;  %10131 = vmatmul.mubr.f32.gmra.mrb[196].mxu0 %v4514_v21  ;;  %v4386_v26 = vld [vmem:[#allocation2 + $0x98] sm:$0xff] }
 0x421   : > { %v4587_v33 = vld [vmem:[#allocation7 + $0xb68] sm:$0xff]  ;;  %10133 = vmatprep.mubr.f32.mxu0 %v4515_v30 }
 0x422   : > { %4702 = vmatmul.mubr.f32.gmra.mrb[22].mxu1 %v4384_v17  ;;  %v11388_v17 = vpack.c.bf16 %v4585_v61, %v4584_v20  ;;  %v11391_v21 = vpack.c.bf16 %v4587_v33, %v4586_v59  ;;  %v4420_v20 = vld [vmem:[#allocation2 + $0xb1] sm:$0xff]  ;;  %v4588_v61 = vld [vmem:[#allocation7 + $0xb70] sm:$0xff] }
 0x423   : > { %4706 = vmatprep.mubr.f32.mxu1 %v4417_v24  ;;  %11383 = vmatpush1.bf16.msra.mxu1 %v11382_v6  ;;  %v14937_v4 = vpop.f32.mrb[156].mxu0  ;;  %v4419_v6 = vld [vmem:[#allocation2 + $0xa9] sm:$0xff]  ;;  %v4421_v59 = vld [vmem:[#allocation2 + $0xc1] sm:$0xff]  ;;  %v4591_v33 = vld [vmem:[#allocation7 + $0xb88] sm:$0xff] }
 0x424   : > { %16784 = vst [vmem:[#allocation70_spill] sm:$0xff] %v14937_v4  ;;  %11384 = vmatprep.subr.bf16.mxu1 %v16682_v29  ;;  %v4036_v31 = vpop.f32.mrb[157].mxu0 }
 0x425   : > { %v4589_v31 = vld [vmem:[#allocation7 + $0xb78] sm:$0xff] }
 0x426   : > { %4707 = vmatmul.mubr.f32.gmra.mrb[24].mxu1 %v4385_v46  ;;  %v4387_v46 = vld [vmem:[#allocation2 + $0xa8] sm:$0xff] }
 0x427   : > { %4711 = vmatprep.mubr.f32.mxu1 %v4418_v47  ;;  %11386 = vmatpush1.bf16.msra.mxu1 %v11385_v37  ;;  %v14940_v24 = vpop.f32.mrb[158].mxu0  ;;  %v4516_v47 = vld [vmem:[#allocation2 + $0xb4] sm:$0xff] }
 0x428   : > { %16785 = vst [vmem:[#allocation33_spill] sm:$0xff] %v14940_v24  ;;  %11387 = vmatprep.subr.bf16.mxu1 %v16682_v29  ;;  %v4041_v35 = vpop.f32.mrb[159].mxu0  ;;  %10134 = vmatmul.mubr.f32.gmra.mrb[198].mxu0 %v4516_v47 }
 0x429   : > { %v3015_v4 = vpop.f32.mrb[176].mxu1  ;;  %v16787_v35 = vld [vmem:[#allocation82_spill] sm:$0xff] }
 0x42a   : > { %v3241_v18 = vadd.f32 %v14803_v14, %v3015_v4  ;;  %v3017_v1 = vpop.f32.mrb[177].mxu1  ;;  %4712 = vmatmul.mubr.f32.gmra.mrb[26].mxu1 %v4386_v26  ;;  %v4388_v26 = vld [vmem:[#allocation2 + $0xb0] sm:$0xff] }
 0x42b   : > { %4716 = vmatprep.mubr.f32.mxu1 %v4419_v6  ;;  %11389 = vmatpush1.bf16.msra.mxu1 %v11388_v17  ;;  %v14944_v37 = vpop.f32.mrb[160].mxu0  ;;  %v11394_v17 = vpack.c.bf16 %v4589_v31, %v4588_v61  ;;  %v4518_v31 = vld [vmem:[#allocation2 + $0xcc] sm:$0xff] }
 0x42c   : > { %16786 = vst [vmem:[#allocation74_spill] sm:$0xff] %v14944_v37  ;;  %11390 = vmatprep.subr.bf16.mxu1 %v16682_v29  ;;  %v4046_v24 = vpop.f32.mrb[161].mxu0  ;;  %v14948_v41 = vadd.f32 %v3241_v18, %v16787_v35  ;;  %v16789_v18 = vld [vmem:[#allocation48_spill] sm:$0xff]  ;;  %v4592_v37 = vld [vmem:[#allocation7 + $0xb90] sm:$0xff] }
 0x42d   : > { %v3020_v14 = vpop.f32.mrb[178].mxu1  ;;  %v4590_v24 = vld [vmem:[#allocation7 + $0xb80] sm:$0xff] }
 0x42e   : > { %v3246_v1 = vadd.f32 %v14800_v23, %v3020_v14  ;;  %v3022_v4 = vpop.f32.mrb[179].mxu1  ;;  %4717 = vmatmul.mubr.f32.gmra.mrb[28].mxu1 %v4387_v46  ;;  %v4517_v46 = vld [vmem:[#allocation2 + $0xc4] sm:$0xff] }
 0x42f   : > { %4721 = vmatprep.mubr.f32.mxu1 %v4420_v20  ;;  %11392 = vmatpush1.bf16.msra.mxu1 %v11391_v21  ;;  %v14951_v6 = vpop.f32.mrb[162].mxu0  ;;  %v4389_v21 = vld [vmem:[#allocation2 + $0xc0] sm:$0xff]  ;;  %v11397_v20 = vpack.c.bf16 %v4591_v33, %v4590_v24  ;;  %v4422_v4 = vld [vmem:[#allocation2 + $0xc9] sm:$0xff] }
 0x430   : > { %16788 = vst [vmem:[#allocation73_spill] sm:$0xff] %v14951_v6  ;;  %11393 = vmatprep.subr.bf16.mxu1 %v16682_v29  ;;  %v14955_v35 = vadd.f32 %v3246_v1, %v16789_v18  ;;  %v4051_v30 = vpop.f32.mrb[163].mxu0  ;;  %v4593_v1 = vld [vmem:[#allocation7 + $0xb98] sm:$0xff]  ;;  %v16791_v18 = vld [vmem:[#allocation49_spill] sm:$0xff]  ;;  %10136 = vmatprep.mubr.f32.mxu0 %v4517_v46 }
 0x431   : > { %v3025_v47 = vpop.f32.mrb[180].mxu1  ;;  %10137 = vmatmul.mubr.f32.gmra.mrb[200].mxu0 %v4518_v31  ;;  %v11400_v24 = vpack.c.bf16 %v4593_v1, %v4592_v37  ;;  %v4520_v1 = vld [vmem:[#allocation2 + $0xe4] sm:$0xff] }
 0x432   : > { %v3251_v23 = vadd.f32 %v14812_v13, %v3025_v47  ;;  %v3027_v14 = vpop.f32.mrb[181].mxu1  ;;  %4722 = vmatmul.mubr.f32.gmra.mrb[30].mxu1 %v4388_v26  ;;  %v4423_v47 = vld [vmem:[#allocation2 + $0xd9] sm:$0xff] }
 0x433   : > { %4726 = vmatprep.mubr.f32.mxu1 %v4421_v59  ;;  %11395 = vmatpush1.bf16.msra.mxu1 %v11394_v17  ;;  %v14958_v61 = vpop.f32.mrb[164].mxu0  ;;  %v4390_v17 = vld [vmem:[#allocation2 + $0xc8] sm:$0xff]  ;;  %v4594_v14 = vld [vmem:[#allocation7 + $0xba0] sm:$0xff] }
 0x434   : > { %16790 = vst [vmem:[#allocation41_spill] sm:$0xff] %v14958_v61  ;;  %11396 = vmatprep.subr.bf16.mxu1 %v16682_v29  ;;  %v14962_v30 = vadd.f32 %v3251_v23, %v16791_v18  ;;  %v4056_v6 = vpop.f32.mrb[165].mxu0  ;;  %v4595_v23 = vld [vmem:[#allocation7 + $0xba8] sm:$0xff]  ;;  %v16793_v18 = vld [vmem:[#allocation40_spill] sm:$0xff]  ;;  %v4596_v61 = vld [vmem:[#allocation7 + $0xbb0] sm:$0xff] }
 0x435   : > { %v3030_v13 = vpop.f32.mrb[182].mxu1  ;;  %v11403_v37 = vpack.c.bf16 %v4595_v23, %v4594_v14 }
 0x436   : > { %v3256_v26 = vadd.f32 %v14809_v2, %v3030_v13  ;;  %v3032_v59 = vpop.f32.mrb[183].mxu1  ;;  %4727 = vmatmul.mubr.f32.gmra.mrb[32].mxu1 %v4389_v21  ;;  %v4519_v21 = vld [vmem:[#allocation2 + $0xdc] sm:$0xff] }
 0x437   : > { %4731 = vmatprep.mubr.f32.mxu1 %v4422_v4  ;;  %11398 = vmatpush1.bf16.msra.mxu1 %v11397_v20  ;;  %v14965_v33 = vpop.f32.mrb[166].mxu0  ;;  %v4391_v20 = vld [vmem:[#allocation2 + $0xd8] sm:$0xff]  ;;  %v4424_v59 = vld [vmem:[#allocation2 + $0xe1] sm:$0xff] }
 0x438   : > { %16792 = vst [vmem:[#allocation76_spill] sm:$0xff] %v14965_v33  ;;  %11399 = vmatprep.subr.bf16.mxu1 %v16682_v29  ;;  %v14969_v6 = vadd.f32 %v3256_v26, %v16793_v18  ;;  %v4061_v46 = vpop.f32.mrb[167].mxu0  ;;  %v4597_v26 = vld [vmem:[#allocation7 + $0xbb8] sm:$0xff]  ;;  %10139 = vmatprep.mubr.f32.mxu0 %v4519_v21 }
 0x439   : > { %v3035_v31 = vpop.f32.mrb[184].mxu1  ;;  %v16795_v18 = vld [vmem:[#allocation51_spill] sm:$0xff]  ;;  %10140 = vmatmul.mubr.f32.gmra.mrb[202].mxu0 %v4520_v1  ;;  %v11406_v14 = vpack.c.bf16 %v4597_v26, %v4596_v61  ;;  %v4522_v26 = vld [vmem:[#allocation2 + $0xfc] sm:$0xff] }
 0x43a   : > { %v3261_v2 = vadd.f32 %v14818_v25, %v3035_v31  ;;  %v3037_v13 = vpop.f32.mrb[185].mxu1  ;;  %4732 = vmatmul.mubr.f32.gmra.mrb[34].mxu1 %v4390_v17  ;;  %v4425_v31 = vld [vmem:[#allocation2 + $0xf1] sm:$0xff] }
 0x43b   : > { %4736 = vmatprep.mubr.f32.mxu1 %v4423_v47  ;;  %11401 = vmatpush1.bf16.msra.mxu1 %v11400_v24  ;;  %v14972_v4 = vpop.f32.mrb[168].mxu0  ;;  %v4392_v24 = vld [vmem:[#allocation2 + $0xe0] sm:$0xff]  ;;  %v4598_v13 = vld [vmem:[#allocation7 + $0xbc0] sm:$0xff] }
 0x43c   : > { %16794 = vst [vmem:[#allocation75_spill] sm:$0xff] %v14972_v4  ;;  %11402 = vmatprep.subr.bf16.mxu1 %v16682_v29  ;;  %v14976_v46 = vadd.f32 %v3261_v2, %v16795_v18  ;;  %v4066_v33 = vpop.f32.mrb[169].mxu0  ;;  %v4599_v2 = vld [vmem:[#allocation7 + $0xbc8] sm:$0xff]  ;;  %v16797_v18 = vld [vmem:[#allocation52_spill] sm:$0xff]  ;;  %v4600_v4 = vld [vmem:[#allocation7 + $0xbd0] sm:$0xff] }
 0x43d   : > { %v3040_v25 = vpop.f32.mrb[186].mxu1  ;;  %v11409_v61 = vpack.c.bf16 %v4599_v2, %v4598_v13 }
 0x43e   : > { %v3266_v17 = vadd.f32 %v14815_v11, %v3040_v25  ;;  %v3042_v47 = vpop.f32.mrb[187].mxu1  ;;  %4737 = vmatmul.mubr.f32.gmra.mrb[36].mxu1 %v4391_v20  ;;  %v4521_v20 = vld [vmem:[#allocation2 + $0xf4] sm:$0xff] }
 0x43f   : > { %4741 = vmatprep.mubr.f32.mxu1 %v4424_v59  ;;  %11404 = vmatpush1.bf16.msra.mxu1 %v11403_v37  ;;  %v14979_v23 = vpop.f32.mrb[170].mxu0  ;;  %v4393_v37 = vld [vmem:[#allocation2 + $0xf0] sm:$0xff]  ;;  %v4426_v47 = vld [vmem:[#allocation2 + $0xf9] sm:$0xff] }
 0x440   : > { %16796 = vst [vmem:[#allocation43_spill] sm:$0xff] %v14979_v23  ;;  %11405 = vmatprep.subr.bf16.mxu1 %v16682_v29  ;;  %v14983_v33 = vadd.f32 %v3266_v17, %v16797_v18  ;;  %v4071_v21 = vpop.f32.mrb[171].mxu0  ;;  %v4601_v17 = vld [vmem:[#allocation7 + $0xbd8] sm:$0xff]  ;;  %v16799_v18 = vld [vmem:[#allocation50_spill] sm:$0xff]  ;;  %10142 = vmatprep.mubr.f32.mxu0 %v4521_v20 }
 0x441   : > { %v3045_v1 = vpop.f32.mrb[188].mxu1  ;;  %10143 = vmatmul.mubr.f32.gmra.mrb[204].mxu0 %v4522_v26  ;;  %v11412_v13 = vpack.c.bf16 %v4601_v17, %v4600_v4  ;;  %v4524_v17 = vld [vmem:[#allocation2 + $0x114] sm:$0xff] }
 0x442   : > { %v3271_v11 = vadd.f32 %v14824_v19, %v3045_v1  ;;  %v3047_v25 = vpop.f32.mrb[189].mxu1  ;;  %4742 = vmatmul.mubr.f32.gmra.mrb[38].mxu1 %v4392_v24  ;;  %v4427_v1 = vld [vmem:[#allocation2 + $0x109] sm:$0xff] }
 0x443   : > { %4746 = vmatprep.mubr.f32.mxu1 %v4425_v31  ;;  %11407 = vmatpush1.bf16.msra.mxu1 %v11406_v14  ;;  %v14986_v59 = vpop.f32.mrb[172].mxu0  ;;  %v4394_v14 = vld [vmem:[#allocation2 + $0xf8] sm:$0xff]  ;;  %v4602_v25 = vld [vmem:[#allocation7 + $0xbe0] sm:$0xff] }
 0x444   : > { %16798 = vst [vmem:[#allocation78_spill] sm:$0xff] %v14986_v59  ;;  %11408 = vmatprep.subr.bf16.mxu1 %v16682_v29  ;;  %v14990_v21 = vadd.f32 %v3271_v11, %v16799_v18  ;;  %v4076_v23 = vpop.f32.mrb[173].mxu0  ;;  %v4603_v11 = vld [vmem:[#allocation7 + $0xbe8] sm:$0xff]  ;;  %v16801_v18 = vld [vmem:[#allocation42_spill] sm:$0xff] }
 0x445   : > { %v3050_v19 = vpop.f32.mrb[190].mxu1  ;;  %v11415_v4 = vpack.c.bf16 %v4603_v11, %v4602_v25  ;;  %v4604_v59 = vld [vmem:[#allocation7 + $0xbf0] sm:$0xff] }
 0x446   : > { %v3276_v24 = vadd.f32 %v14821_v56, %v3050_v19  ;;  %v3052_v31 = vpop.f32.mrb[191].mxu1  ;;  %4747 = vmatmul.mubr.f32.gmra.mrb[40].mxu1 %v4393_v37  ;;  %v4523_v37 = vld [vmem:[#allocation2 + $0x10c] sm:$0xff] }
 0x447   : > { %4751 = vmatprep.mubr.f32.mxu1 %v4426_v47  ;;  %11410 = vmatpush1.bf16.msra.mxu1 %v11409_v61  ;;  %v14993_v2 = vpop.f32.mrb[174].mxu0  ;;  %v4395_v61 = vld [vmem:[#allocation2 + $0x108] sm:$0xff]  ;;  %v4428_v31 = vld [vmem:[#allocation2 + $0x111] sm:$0xff] }
 0x448   : > { %16800 = vst [vmem:[#allocation77_spill] sm:$0xff] %v14993_v2  ;;  %11411 = vmatprep.subr.bf16.mxu1 %v16682_v29  ;;  %v14997_v23 = vadd.f32 %v3276_v24, %v16801_v18  ;;  %v4081_v20 = vpop.f32.mrb[175].mxu0  ;;  %v4605_v24 = vld [vmem:[#allocation7 + $0xbf8] sm:$0xff]  ;;  %v16802_v18 = vld [vmem:[#allocation54_spill] sm:$0xff]  ;;  %10145 = vmatprep.mubr.f32.mxu0 %v4523_v37 }
 0x449   : > { %v3055_v26 = vpop.f32.mrb[192].mxu1  ;;  %10146 = vmatmul.mubr.f32.gmra.mrb[206].mxu0 %v4524_v17  ;;  %v11418_v25 = vpack.c.bf16 %v4605_v24, %v4604_v59  ;;  %v4526_v59 = vld [vmem:[#allocation2 + $0x12c] sm:$0xff]  ;;  %v16804_v24 = vld [vmem:[#allocation53_spill] sm:$0xff] }
 0x44a   : > { %v3281_v56 = vadd.f32 %v14830_v63, %v3055_v26  ;;  %v3057_v19 = vpop.f32.mrb[193].mxu1  ;;  %4752 = vmatmul.mubr.f32.gmra.mrb[42].mxu1 %v4394_v14  ;;  %v4429_v26 = vld [vmem:[#allocation2 + $0x121] sm:$0xff] }
 0x44b   : > { %4756 = vmatprep.mubr.f32.mxu1 %v4427_v1  ;;  %11413 = vmatpush1.bf16.msra.mxu1 %v11412_v13  ;;  %v15000_v47 = vpop.f32.mrb[176].mxu0  ;;  %v4396_v13 = vld [vmem:[#allocation2 + $0x110] sm:$0xff]  ;;  %v16803_v19 = vld [vmem:[#allocation55_spill] sm:$0xff] }
 0x44c   : > { %11414 = vmatprep.subr.bf16.mxu1 %v16682_v29  ;;  %v15004_v20 = vadd.f32 %v3281_v56, %v16802_v18  ;;  %v4086_v2 = vpop.f32.mrb[177].mxu0 }
 0x44d   : > { %v3060_v63 = vpop.f32.mrb[194].mxu1 }
 0x44e   : > { %v3286_v14 = vadd.f32 %v14827_v0, %v3060_v63  ;;  %v3062_v1 = vpop.f32.mrb[195].mxu1  ;;  %4757 = vmatmul.mubr.f32.gmra.mrb[44].mxu1 %v4395_v61  ;;  %v4525_v0 = vld [vmem:[#allocation2 + $0x124] sm:$0xff] }
 0x44f   : > { %4761 = vmatprep.mubr.f32.mxu1 %v4428_v31  ;;  %11416 = vmatpush1.bf16.msra.mxu1 %v11415_v4  ;;  %v15007_v11 = vpop.f32.mrb[178].mxu0  ;;  %v4397_v61 = vld [vmem:[#allocation2 + $0x120] sm:$0xff]  ;;  %v4430_v31 = vld [vmem:[#allocation2 + $0x129] sm:$0xff] }
 0x450   : > { %11417 = vmatprep.subr.bf16.mxu1 %v16682_v29  ;;  %v15011_v56 = vadd.f32 %v3286_v14, %v16803_v19  ;;  %v4091_v2 = vpop.f32.mrb[179].mxu0  ;;  %10148 = vmatprep.mubr.f32.mxu0 %v4525_v0  ;;  %v4431_v19 = vld [vmem:[#allocation2 + $0x139] sm:$0xff] }
 0x451   : > { %v3065_v37 = vpop.f32.mrb[196].mxu1  ;;  %10149 = vmatmul.mubr.f32.gmra.mrb[208].mxu0 %v4526_v59  ;;  %v16805_v2 = vld [vmem:[#allocation45_spill] sm:$0xff] }
 0x452   : > { %v3291_v17 = vadd.f32 %v14836_v40, %v3065_v37  ;;  %v3067_v18 = vpop.f32.mrb[197].mxu1  ;;  %4762 = vmatmul.mubr.f32.gmra.mrb[46].mxu1 %v4396_v13  ;;  %v4399_v59 = vld [vmem:[#allocation2 + $0x138] sm:$0xff] }
 0x453   : > { %4766 = vmatprep.mubr.f32.mxu1 %v4429_v26  ;;  %11419 = vmatpush1.bf16.msra.mxu1 %v11418_v25  ;;  %v15014_v4 = vpop.f32.mrb[180].mxu0  ;;  %v4398_v26 = vld [vmem:[#allocation2 + $0x128] sm:$0xff] }
 0x454   : > { %v15017_v63 = vadd.f32 %v3291_v17, %v16804_v24  ;;  %v4096_v1 = vpop.f32.mrb[181].mxu0  ;;  %11532 = vmatprep.subr.bf16.mxu1 %v16682_v29 }
 0x455   : > { %v3070_v14 = vpop.f32.mrb[198].mxu1  ;;  %v4527_v1 = vld [vmem:[#allocation2 + $0x13c] sm:$0xff] }
 0x456   : > { %v3296_v40 = vadd.f32 %v14833_v34, %v3070_v14  ;;  %v3072_v13 = vpop.f32.mrb[199].mxu1  ;;  %4767 = vmatmul.mubr.f32.gmra.mrb[48].mxu1 %v4397_v61  ;;  %10151 = vmatprep.mubr.f32.mxu0 %v4527_v1  ;;  %v4528_v61 = vld [vmem:[#allocation2 + $0x144] sm:$0xff] }
 0x457   : > { %4771 = vmatprep.mubr.f32.mxu1 %v4430_v31  ;;  %v15021_v25 = vpop.f32.mrb[182].mxu0  ;;  %v4432_v31 = vld [vmem:[#allocation2 + $0x141] sm:$0xff]  ;;  %10152 = vmatmul.mubr.f32.gmra.mrb[210].mxu0 %v4528_v61  ;;  %v4529_v61 = vld [vmem:[#allocation2 + $0x154] sm:$0xff] }
 0x458   : > { %v15024_v37 = vadd.f32 %v3296_v40, %v16805_v2  ;;  %v4101_v17 = vpop.f32.mrb[183].mxu0  ;;  %10154 = vmatprep.mubr.f32.mxu0 %v4529_v61 }
 0x459   : > { %v3075_v18 = vpop.f32.mrb[200].mxu1 }
 0x45a   : > { %v3301_v0 = vadd.f32 %v14842_v57, %v3075_v18  ;;  %v3077_v24 = vpop.f32.mrb[201].mxu1  ;;  %4772 = vmatmul.mubr.f32.gmra.mrb[50].mxu1 %v4398_v26  ;;  %v4400_v57 = vld [vmem:[#allocation2 + $0x140] sm:$0xff] }
 0x45b   : > { %4776 = vmatprep.mubr.f32.mxu1 %v4431_v19  ;;  %v15027_v34 = vpop.f32.mrb[184].mxu0  ;;  %v4433_v19 = vld [vmem:[#allocation2 + $0x151] sm:$0xff] }
 0x45c   : > { %v15030_v14 = vadd.f32 %v3301_v0, %v14614_v49  ;;  %v4106_v13 = vpop.f32.mrb[185].mxu0 }
 0x45d   : > { %v3080_v40 = vpop.f32.mrb[202].mxu1  ;;  %v4401_v13 = vld [vmem:[#allocation2 + $0x150] sm:$0xff] }
 0x45e   : > { %v3306_v2 = vadd.f32 %v14839_v7, %v3080_v40  ;;  %v3082_v17 = vpop.f32.mrb[203].mxu1  ;;  %4777 = vmatmul.mubr.f32.gmra.mrb[52].mxu1 %v4399_v59  ;;  %v4530_v59 = vld [vmem:[#allocation2 + $0x15c] sm:$0xff] }
 0x45f   : > { %4781 = vmatprep.mubr.f32.mxu1 %v4432_v31  ;;  %v15033_v26 = vpop.f32.mrb[186].mxu0  ;;  %v4434_v31 = vld [vmem:[#allocation2 + $0x159] sm:$0xff]  ;;  %10155 = vmatmul.mubr.f32.gmra.mrb[212].mxu0 %v4530_v59  ;;  %v4531_v59 = vld [vmem:[#allocation2 + $0x16c] sm:$0xff] }
 0x460   : > { %v15036_v18 = vadd.f32 %v3306_v2, %v14626_v52  ;;  %v4111_v24 = vpop.f32.mrb[187].mxu0  ;;  %10157 = vmatprep.mubr.f32.mxu0 %v4531_v59  ;;  %v4438_v59 = vld [vmem:[#allocation2 + $0x189] sm:$0xff] }
 0x461   : > { %v3085_v1 = vpop.f32.mrb[204].mxu1 }
 0x462   : > { %v3311_v49 = vadd.f32 %v14848_v38, %v3085_v1  ;;  %v3087_v0 = vpop.f32.mrb[205].mxu1  ;;  %4782 = vmatmul.mubr.f32.gmra.mrb[54].mxu1 %v4400_v57  ;;  %v4402_v38 = vld [vmem:[#allocation2 + $0x158] sm:$0xff] }
 0x463   : > { %4786 = vmatprep.mubr.f32.mxu1 %v4433_v19  ;;  %v15039_v7 = vpop.f32.mrb[188].mxu0  ;;  %v4435_v19 = vld [vmem:[#allocation2 + $0x169] sm:$0xff] }
 0x464   : > { %v15042_v40 = vadd.f32 %v3311_v49, %v14638_v60  ;;  %v4116_v17 = vpop.f32.mrb[189].mxu0 }
 0x465   : > { %v3090_v52 = vpop.f32.mrb[206].mxu1  ;;  %v4403_v17 = vld [vmem:[#allocation2 + $0x168] sm:$0xff] }
 0x466   : > { %v3316_v2 = vadd.f32 %v14845_v15, %v3090_v52  ;;  %v3092_v24 = vpop.f32.mrb[207].mxu1  ;;  %4787 = vmatmul.mubr.f32.gmra.mrb[56].mxu1 %v4401_v13  ;;  %v4532_v15 = vld [vmem:[#allocation2 + $0x174] sm:$0xff] }
 0x467   : > { %4791 = vmatprep.mubr.f32.mxu1 %v4434_v31  ;;  %v15045_v57 = vpop.f32.mrb[190].mxu0  ;;  %v4436_v31 = vld [vmem:[#allocation2 + $0x171] sm:$0xff]  ;;  %10158 = vmatmul.mubr.f32.gmra.mrb[214].mxu0 %v4532_v15 }
 0x468   : > { %v15048_v1 = vadd.f32 %v3316_v2, %v14650_v5  ;;  %v4121_v0 = vpop.f32.mrb[191].mxu0  ;;  %v4404_v24 = vld [vmem:[#allocation2 + $0x170] sm:$0xff] }
 0x469   : > { %v3095_v61 = vpop.f32.mrb[208].mxu1 }
 0x46a   : > { %v3321_v60 = vadd.f32 %v14854_v54, %v3095_v61  ;;  %v3097_v49 = vpop.f32.mrb[209].mxu1  ;;  %4792 = vmatmul.mubr.f32.gmra.mrb[58].mxu1 %v4402_v38  ;;  %v4437_v38 = vld [vmem:[#allocation2 + $0x181] sm:$0xff] }
 0x46b   : > { %4796 = vmatprep.mubr.f32.mxu1 %v4435_v19  ;;  %v4534_v49 = vld [vmem:[#allocation2 + $0x18c] sm:$0xff] }
 0x46c   : > { %v15052_v13 = vadd.f32 %v3321_v60, %v14662_v62  ;;  %v4533_v62 = vld [vmem:[#allocation2 + $0x184] sm:$0xff] }
 0x46d   : > { %v3100_v52 = vpop.f32.mrb[210].mxu1  ;;  %v4405_v60 = vld [vmem:[#allocation2 + $0x180] sm:$0xff]  ;;  %10160 = vmatprep.mubr.f32.mxu0 %v4533_v62 }
 0x46e   : > { %v3326_v5 = vadd.f32 %v14851_v16, %v3100_v52  ;;  %v3102_v2 = vpop.f32.mrb[211].mxu1  ;;  %4797 = vmatmul.mubr.f32.gmra.mrb[60].mxu1 %v4403_v17  ;;  %10161 = vmatmul.mubr.f32.gmra.mrb[216].mxu0 %v4534_v49  ;;  %v4439_v52 = vld [vmem:[#allocation2 + $0x199] sm:$0xff] }
 0x46f   : > { %4801 = vmatprep.mubr.f32.mxu1 %v4436_v31  ;;  %v4406_v31 = vld [vmem:[#allocation2 + $0x188] sm:$0xff]  ;;  %v4408_v49 = vld [vmem:[#allocation2 + $0x1a0] sm:$0xff] }
 0x470   : > { %v15056_v54 = vadd.f32 %v3326_v5, %v14677_v39 }
 0x471   : > { %v3105_v19 = vpop.f32.mrb[212].mxu1 }
 0x472   : > { %v3331_v0 = vadd.f32 %v14860_v53, %v3105_v19  ;;  %v3107_v61 = vpop.f32.mrb[213].mxu1  ;;  %4802 = vmatmul.mubr.f32.gmra.mrb[62].mxu1 %v4404_v24  ;;  %v4536_v19 = vld [vmem:[#allocation2 + $0x1a4] sm:$0xff] }
 0x473   : > { %4806 = vmatprep.mubr.f32.mxu1 %v4437_v38  ;;  %v4407_v38 = vld [vmem:[#allocation2 + $0x198] sm:$0xff]  ;;  %v4440_v61 = vld [vmem:[#allocation2 + $0x1a1] sm:$0xff] }
 0x474   : > { %v15060_v16 = vadd.f32 %v3331_v0, %v14686_v27  ;;  %v4535_v27 = vld [vmem:[#allocation2 + $0x19c] sm:$0xff] }
 0x475   : > { %v3110_v17 = vpop.f32.mrb[214].mxu1  ;;  %10163 = vmatprep.mubr.f32.mxu0 %v4535_v27  ;;  %v16806_v0 = vld [vmem:[#allocation57_spill] sm:$0xff] }
 0x476   : > { %v3336_v39 = vadd.f32 %v14857_v51, %v3110_v17  ;;  %v3112_v15 = vpop.f32.mrb[215].mxu1  ;;  %4807 = vmatmul.mubr.f32.gmra.mrb[64].mxu1 %v4405_v60  ;;  %10164 = vmatmul.mubr.f32.gmra.mrb[218].mxu0 %v4536_v19  ;;  %v4441_v17 = vld [vmem:[#allocation2 + $0x1b1] sm:$0xff] }
 0x477   : > { %4811 = vmatprep.mubr.f32.mxu1 %v4438_v59 }
 0x478   : > { %v15064_v53 = vadd.f32 %v3336_v39, %v14702_v58 }
 0x479   : > { %v3115_v5 = vpop.f32.mrb[216].mxu1 }
 0x47a   : > { %v3341_v2 = vadd.f32 %v14866_v12, %v3115_v5  ;;  %v3117_v24 = vpop.f32.mrb[217].mxu1  ;;  %4812 = vmatmul.mubr.f32.gmra.mrb[66].mxu1 %v4406_v31  ;;  %v16807_v12 = vld [vmem:[#allocation58_spill] sm:$0xff] }
 0x47b   : > { %4816 = vmatprep.mubr.f32.mxu1 %v4439_v52  ;;  %v4537_v52 = vld [vmem:[#allocation2 + $0x1b4] sm:$0xff]  ;;  %v4538_v5 = vld [vmem:[#allocation2 + $0x1bc] sm:$0xff] }
 0x47c   : > { %v15068_v51 = vadd.f32 %v3341_v2, %v16806_v0  ;;  %10166 = vmatprep.mubr.f32.mxu0 %v4537_v52  ;;  %v16808_v2 = vld [vmem:[#allocation56_spill] sm:$0xff]  ;;  %v15079_v0 = vld [vmem:[#allocation2 + $0x18] sm:$0xff] }
 0x47d   : > { %v3120_v62 = vpop.f32.mrb[218].mxu1  ;;  %10167 = vmatmul.mubr.f32.gmra.mrb[220].mxu0 %v4538_v5 }
 0x47e   : > { %v3346_v58 = vadd.f32 %v14863_v9, %v3120_v62  ;;  %v3122_v60 = vpop.f32.mrb[219].mxu1  ;;  %4817 = vmatmul.mubr.f32.gmra.mrb[68].mxu1 %v4407_v38  ;;  %v4442_v9 = vld [vmem:[#allocation2 + $0x1b9] sm:$0xff]  ;;  %v4443_v62 = vld [vmem:[#allocation2 + $0x1c9] sm:$0xff] }
 0x47f   : > { %4821 = vmatprep.mubr.f32.mxu1 %v4440_v61 }
 0x480   : > { %v15072_v59 = vadd.f32 %v3346_v58, %v16807_v12  ;;  %v4539_v12 = vld [vmem:[#allocation2 + $0x1cc] sm:$0xff] }
 0x481   : > { %v3125_v39 = vpop.f32.mrb[220].mxu1  ;;  %10169 = vmatprep.mubr.f32.mxu0 %v4539_v12 }
 0x482   : > { %v3351_v15 = vadd.f32 %v14871_v32, %v3125_v39  ;;  %v3127_v31 = vpop.f32.mrb[221].mxu1  ;;  %4822 = vmatmul.mubr.f32.gmra.mrb[70].mxu1 %v4408_v49  ;;  %v16809_v32 = vld [vmem:[#allocation34_spill] sm:$0xff] }
 0x483   : > { %4826 = vmatprep.mubr.f32.mxu1 %v4441_v17  ;;  %v16810_v17 = vld [vmem:[#allocation60_spill] sm:$0xff] }
 0x484   : > { %v15076_v24 = vadd.f32 %v3351_v15, %v16808_v2  ;;  %v4444_v15 = vld [vmem:[#allocation2 + $0x1d1] sm:$0xff]  ;;  %v4477_v2 = vld [vmem:[#allocation2 + $0x63] sm:$0xff] }
 0x485   : > { %v3130_v27 = vpop.f32.mrb[222].mxu1 }
 0x486   : > { %v3356_v38 = vadd.f32 %v14869_v36, %v3130_v27  ;;  %v3132_v19 = vpop.f32.mrb[223].mxu1  ;;  %4827 = vmatmul.mubr.f32.gmra.mrb[72].mxu1 %v15079_v0  ;;  %v4540_v36 = vld [vmem:[#allocation2 + $0x1d4] sm:$0xff] }
 0x487   : > { %4831 = vmatprep.mubr.f32.mxu1 %v4442_v9  ;;  %10170 = vmatmul.mubr.f32.gmra.mrb[222].mxu0 %v4540_v36  ;;  %v4445_v19 = vld [vmem:[#allocation2 + $0x62] sm:$0xff] }
 0x488   : > { %v15083_v61 = vadd.f32 %v3356_v38, %v16809_v32  ;;  %v5593_v32 = vld [vmem:[#allocation10] sm:$0xff]  ;;  %v5596_v36 = vld [vmem:[#allocation10 + $0x18] sm:$0xff] }
 0x489   : > { %v3135_v58 = vpop.f32.mrb[224].mxu1 }
 0x48a   : > { %v3361_v60 = vadd.f32 %v14876_v45, %v3135_v58  ;;  %v3137_v49 = vpop.f32.mrb[225].mxu1  ;;  %4832 = vmatmul.mubr.f32.gmra.mrb[74].mxu1 %v15079_v0  ;;  %v4478_v58 = vld [vmem:[#allocation2 + $0x6b] sm:$0xff] }
 0x48b   : > { %4836 = vmatprep.mubr.f32.mxu1 %v4443_v62  ;;  %v5594_v62 = vld [vmem:[#allocation10 + $0x8] sm:$0xff] }
 0x48c   : > { %v15088_v39 = vadd.f32 %v3361_v60, %v16810_v17  ;;  %v5738_v60 = vld [vmem:[#allocation10 + $0x180] sm:$0xff]  ;;  %v5739_v49 = vld [vmem:[#allocation10 + $0x188] sm:$0xff] }
 0x48d   : > { %v3140_v31 = vpop.f32.mrb[226].mxu1  ;;  %v11453_v17 = vpack.c.bf16 %v5739_v49, %v5738_v60  ;;  %v5597_v60 = vld [vmem:[#allocation10 + $0x20] sm:$0xff]  ;;  %v5598_v49 = vld [vmem:[#allocation10 + $0x28] sm:$0xff] }
 0x48e   : > { %v3366_v52 = vadd.f32 %v14873_v28, %v3140_v31  ;;  %v3142_v5 = vpop.f32.mrb[227].mxu1  ;;  %4837 = vmatmul.mubr.f32.gmra.mrb[76].mxu1 %v15079_v0  ;;  %v11533_v28 = vpack.c.bf16 %v5594_v62, %v5593_v32  ;;  %v5742_v32 = vld [vmem:[#allocation10 + $0x1a0] sm:$0xff]  ;;  %v5743_v62 = vld [vmem:[#allocation10 + $0x1a8] sm:$0xff] }
 0x48f   : > { %4841 = vmatprep.mubr.f32.mxu1 %v4444_v15  ;;  %v5740_v15 = vld [vmem:[#allocation10 + $0x190] sm:$0xff]  ;;  %11454 = vmatpush1.bf16.msra.mxu0 %v11453_v17 }
 0x490   : > { %v15093_v45 = vadd.f32 %v3366_v52, %v14766_v22  ;;  %v5595_v22 = vld [vmem:[#allocation10 + $0x10] sm:$0xff]  ;;  %11455 = vmatprep.subr.bf16.mxu0 %v16682_v29 }
 0x491   : > { %v3145_v9 = vpop.f32.mrb[228].mxu1 }
 0x492   : > { %v3371_v27 = vadd.f32 %v14881_v8, %v3145_v9  ;;  %v3147_v38 = vpop.f32.mrb[229].mxu1  ;;  %4842 = vmatmul.mubr.f32.gmra.mrb[78].mxu1 %v15079_v0  ;;  %v5741_v8 = vld [vmem:[#allocation10 + $0x198] sm:$0xff] }
 0x493   : > { %4911 = vmatprep.mubr.f32.mxu1 %v4477_v2  ;;  %v11456_v9 = vpack.c.bf16 %v5741_v8, %v5740_v15  ;;  %v4446_v2 = vld [vmem:[#allocation2 + $0x6a] sm:$0xff]  ;;  %v11536_v38 = vpack.c.bf16 %v5596_v36, %v5595_v22  ;;  %v11539_v22 = vpack.c.bf16 %v5598_v49, %v5597_v60  ;;  %v5599_v8 = vld [vmem:[#allocation10 + $0x30] sm:$0xff]  ;;  %v4481_v60 = vld [vmem:[#allocation2 + $0x93] sm:$0xff] }
 0x494   : > { %v15098_v12 = vadd.f32 %v3371_v27, %v14772_v48  ;;  %v4479_v27 = vld [vmem:[#allocation2 + $0x7b] sm:$0xff]  ;;  %v5745_v36 = vld [vmem:[#allocation10 + $0x1b8] sm:$0xff]  ;;  %v5601_v49 = vld [vmem:[#allocation10 + $0x40] sm:$0xff] }
 0x495   : > { %v3150_v31 = vpop.f32.mrb[230].mxu1  ;;  %11457 = vmatpush1.bf16.msra.mxu0 %v11456_v9 }
 0x496   : > { %v3376_v52 = vadd.f32 %v14878_v10, %v3150_v31  ;;  %v3152_v5 = vpop.f32.mrb[231].mxu1  ;;  %4912 = vmatmul.mubr.f32.vlgmr.msra.gmra.mrb[16].mxu1 %v4445_v19  ;;  %v4480_v31 = vld [vmem:[#allocation2 + $0x83] sm:$0xff]  ;;  %11458 = vmatprep.subr.bf16.mxu0 %v16682_v29 }
 0x497   : > { %4916 = vmatprep.mubr.f32.mxu1 %v4478_v58  ;;  %11534 = vmatpush1.bf16.msra.mxu1 %v11533_v28  ;;  %v11459_v58 = vpack.c.bf16 %v5743_v62, %v5742_v32  ;;  %v4447_v28 = vld [vmem:[#allocation2 + $0x7a] sm:$0xff] }
 0x498   : > { %v15102_v48 = vadd.f32 %v3376_v52, %v14778_v3  ;;  %11535 = vmatprep.subr.bf16.mxu1 %v16682_v29  ;;  %v5744_v3 = vld [vmem:[#allocation10 + $0x1b0] sm:$0xff]  ;;  %v5600_v52 = vld [vmem:[#allocation10 + $0x38] sm:$0xff]  ;;  %v5747_v62 = vld [vmem:[#allocation10 + $0x1c8] sm:$0xff] }
 0x499   : > { %v3155_v10 = vpop.f32.mrb[232].mxu1  ;;  %11460 = vmatpush1.bf16.msra.mxu0 %v11459_v58  ;;  %v11542_v32 = vpack.c.bf16 %v5600_v52, %v5599_v8  ;;  %v4482_v8 = vld [vmem:[#allocation2 + $0x9b] sm:$0xff] }
 0x49a   : > { %v3381_v19 = vadd.f32 %v14886_v42, %v3155_v10  ;;  %v3157_v17 = vpop.f32.mrb[233].mxu1  ;;  %4917 = vmatmul.mubr.f32.gmra.mrb[18].mxu1 %v4446_v2  ;;  %v11462_v2 = vpack.c.bf16 %v5745_v36, %v5744_v3  ;;  %v5602_v10 = vld [vmem:[#allocation10 + $0x48] sm:$0xff]  ;;  %11461 = vmatprep.subr.bf16.mxu0 %v16682_v29  ;;  %v5749_v3 = vld [vmem:[#allocation10 + $0x1d8] sm:$0xff]  ;;  %v5603_v52 = vld [vmem:[#allocation10 + $0x50] sm:$0xff] }
 0x49b   : > { %4921 = vmatprep.mubr.f32.mxu1 %v4479_v27  ;;  %11537 = vmatpush1.bf16.msra.mxu1 %v11536_v38  ;;  %v4448_v38 = vld [vmem:[#allocation2 + $0x82] sm:$0xff]  ;;  %v16811_v36 = vld [vmem:[#allocation61_spill] sm:$0xff] }
 0x49c   : > { %v15108_v15 = vadd.f32 %v3381_v19, %v14784_v44  ;;  %11538 = vmatprep.subr.bf16.mxu1 %v16682_v29  ;;  %v5746_v44 = vld [vmem:[#allocation10 + $0x1c0] sm:$0xff] }
 0x49d   : > { %v3160_v42 = vpop.f32.mrb[234].mxu1  ;;  %11463 = vmatpush1.bf16.msra.mxu0 %v11462_v2  ;;  %v11465_v58 = vpack.c.bf16 %v5747_v62, %v5746_v44  ;;  %v5750_v62 = vld [vmem:[#allocation10 + $0x1e0] sm:$0xff] }
 0x49e   : > { %v3386_v5 = vadd.f32 %v14883_v55, %v3160_v42  ;;  %v3162_v9 = vpop.f32.mrb[235].mxu1  ;;  %4922 = vmatmul.mubr.f32.gmra.mrb[20].mxu1 %v4447_v28  ;;  %v4449_v28 = vld [vmem:[#allocation2 + $0x92] sm:$0xff]  ;;  %v5604_v42 = vld [vmem:[#allocation10 + $0x58] sm:$0xff]  ;;  %11464 = vmatprep.subr.bf16.mxu0 %v16682_v29 }
 0x49f   : > { %4926 = vmatprep.mubr.f32.mxu1 %v4480_v31  ;;  %11540 = vmatpush1.bf16.msra.mxu1 %v11539_v22  ;;  %v11545_v22 = vpack.c.bf16 %v5602_v10, %v5601_v49  ;;  %v11548_v44 = vpack.c.bf16 %v5604_v42, %v5603_v52  ;;  %v16813_v49 = vld [vmem:[#allocation59_spill] sm:$0xff] }
 0x4a0   : > { %v15114_v27 = vadd.f32 %v3386_v5, %v14790_v43  ;;  %11541 = vmatprep.subr.bf16.mxu1 %v16682_v29  ;;  %v5748_v43 = vld [vmem:[#allocation10 + $0x1d0] sm:$0xff]  ;;  %v16812_v5 = vld [vmem:[#allocation35_spill] sm:$0xff] }
 0x4a1   : > { %v3165_v55 = vpop.f32.mrb[236].mxu1  ;;  %11466 = vmatpush1.bf16.msra.mxu0 %v11465_v58  ;;  %v4451_v52 = vld [vmem:[#allocation2 + $0xaa] sm:$0xff] }
 0x4a2   : > { %v3391_v19 = vadd.f32 %v14891_v50, %v3165_v55  ;;  %v3167_v17 = vpop.f32.mrb[237].mxu1  ;;  %4927 = vmatmul.mubr.f32.gmra.mrb[22].mxu1 %v4448_v38  ;;  %v11468_v38 = vpack.c.bf16 %v5749_v3, %v5748_v43  ;;  %v4483_v55 = vld [vmem:[#allocation2 + $0xab] sm:$0xff]  ;;  %11467 = vmatprep.subr.bf16.mxu0 %v16682_v29 }
 0x4a3   : > { %4931 = vmatprep.mubr.f32.mxu1 %v4481_v60  ;;  %11543 = vmatpush1.bf16.msra.mxu1 %v11542_v32  ;;  %v4450_v32 = vld [vmem:[#allocation2 + $0x9a] sm:$0xff]  ;;  %v16815_v3 = vld [vmem:[#allocation63_spill] sm:$0xff] }
 0x4a4   : > { %v15120_v31 = vadd.f32 %v3391_v19, %v16811_v36  ;;  %11544 = vmatprep.subr.bf16.mxu1 %v16682_v29  ;;  %v5751_v60 = vld [vmem:[#allocation10 + $0x1e8] sm:$0xff]  ;;  %v5605_v19 = vld [vmem:[#allocation10 + $0x60] sm:$0xff] }
 0x4a5   : > { %v3170_v50 = vpop.f32.mrb[238].mxu1  ;;  %v5606_v17 = vld [vmem:[#allocation10 + $0x68] sm:$0xff]  ;;  %11469 = vmatpush1.bf16.msra.mxu0 %v11468_v38 }
 0x4a6   : > { %v3396_v9 = vadd.f32 %v16812_v5, %v3170_v50  ;;  %v3172_v2 = vpop.f32.mrb[239].mxu1  ;;  %4932 = vmatmul.mubr.f32.gmra.mrb[24].mxu1 %v4449_v28  ;;  %v16814_v28 = vld [vmem:[#allocation62_spill] sm:$0xff]  ;;  %v11551_v42 = vpack.c.bf16 %v5606_v17, %v5605_v19  ;;  %v5753_v5 = vld [vmem:[#allocation10 + $0x1f8] sm:$0xff]  ;;  %11470 = vmatprep.subr.bf16.mxu0 %v16682_v29  ;;  %v16817_v19 = vld [vmem:[#allocation36_spill] sm:$0xff] }
 0x4a7   : > { %4936 = vmatprep.mubr.f32.mxu1 %v4482_v8  ;;  %11546 = vmatpush1.bf16.msra.mxu1 %v11545_v22  ;;  %v11471_v22 = vpack.c.bf16 %v5751_v60, %v5750_v62  ;;  %v5752_v50 = vld [vmem:[#allocation10 + $0x1f0] sm:$0xff]  ;;  %v4484_v2 = vld [vmem:[#allocation2 + $0xb3] sm:$0xff] }
 0x4a8   : > { %v15126_v10 = vadd.f32 %v3396_v9, %v16813_v49  ;;  %11547 = vmatprep.subr.bf16.mxu1 %v16682_v29  ;;  %v5607_v49 = vld [vmem:[#allocation10 + $0x70] sm:$0xff]  ;;  %v16816_v62 = vld [vmem:[#allocation64_spill] sm:$0xff] }
 0x4a9   : > { %v10046_v36 = vpop.f32.mrb[240].mxu1  ;;  %11472 = vmatpush1.bf16.msra.mxu0 %v11471_v22  ;;  %v4452_v17 = vld [vmem:[#allocation2 + $0xb2] sm:$0xff] }
 0x4aa   : > { %v4195_v58 = vadd.f32 %v10046_v36, %v16814_v28  ;;  %v4189_v43 = vpop.f32.mrb[241].mxu1  ;;  %4937 = vmatmul.mubr.f32.gmra.mrb[26].mxu1 %v4450_v32  ;;  %v5608_v36 = vld [vmem:[#allocation10 + $0x78] sm:$0xff]  ;;  %11473 = vmatprep.subr.bf16.mxu0 %v16682_v29 }
 0x4ab   : > { %v4190_v8 = vadd.f32 %v4189_v43, %v16815_v3  ;;  %4941 = vmatprep.mubr.f32.mxu1 %v4483_v55  ;;  %11549 = vmatpush1.bf16.msra.mxu1 %v11548_v44  ;;  %v11474_v55 = vpack.c.bf16 %v5753_v5, %v5752_v50  ;;  %v11554_v28 = vpack.c.bf16 %v5608_v36, %v5607_v49  ;;  %v5755_v43 = vld [vmem:[#allocation10 + $0x208] sm:$0xff]  ;;  %v16818_v50 = vld [vmem:[#allocation66_spill] sm:$0xff] }
 0x4ac   : > { %v15133_v9 = vadd.f32 %v4195_v58, %v14955_v35  ;;  %11550 = vmatprep.subr.bf16.mxu1 %v16682_v29  ;;  %v5754_v58 = vld [vmem:[#allocation10 + $0x200] sm:$0xff]  ;;  %v16819_v49 = vld [vmem:[#allocation37_spill] sm:$0xff]  ;;  %v4453_v36 = vld [vmem:[#allocation2 + $0xc2] sm:$0xff] }
 0x4ad   : > { %v15138_v38 = vadd.f32 %v4190_v8, %v14948_v41  ;;  %v10049_v32 = vpop.f32.mrb[242].mxu1  ;;  %v4485_v41 = vld [vmem:[#allocation2 + $0xc3] sm:$0xff]  ;;  %v5609_v8 = vld [vmem:[#allocation10 + $0x80] sm:$0xff]  ;;  %11475 = vmatpush1.bf16.msra.mxu0 %v11474_v55 }
 0x4ae   : > { %v4205_v60 = vadd.f32 %v10049_v32, %v16816_v62  ;;  %v4199_v44 = vpop.f32.mrb[243].mxu1  ;;  %4942 = vmatmul.mubr.f32.gmra.mrb[28].mxu1 %v4451_v52  ;;  %v5610_v32 = vld [vmem:[#allocation10 + $0x88] sm:$0xff]  ;;  %11476 = vmatprep.subr.bf16.mxu0 %v16682_v29 }
 0x4af   : > { %v4200_v35 = vadd.f32 %v4199_v44, %v16817_v19  ;;  %4946 = vmatprep.mubr.f32.mxu1 %v4484_v2  ;;  %11552 = vmatpush1.bf16.msra.mxu1 %v11551_v42  ;;  %v11477_v2 = vpack.c.bf16 %v5755_v43, %v5754_v58  ;;  %v11557_v62 = vpack.c.bf16 %v5610_v32, %v5609_v8  ;;  %v5757_v44 = vld [vmem:[#allocation10 + $0x218] sm:$0xff]  ;;  %v16820_v58 = vld [vmem:[#allocation38_spill] sm:$0xff]  ;;  %v16821_v8 = vld [vmem:[#allocation65_spill] sm:$0xff] }
 0x4b0   : > { %v15143_v3 = vadd.f32 %v4205_v60, %v14969_v6  ;;  %11553 = vmatprep.subr.bf16.mxu1 %v16682_v29  ;;  %v5756_v60 = vld [vmem:[#allocation10 + $0x210] sm:$0xff]  ;;  %v4454_v32 = vld [vmem:[#allocation2 + $0xca] sm:$0xff] }
 0x4b1   : > { %v15148_v22 = vadd.f32 %v4200_v35, %v14962_v30  ;;  %v10052_v52 = vpop.f32.mrb[244].mxu1  ;;  %v4486_v30 = vld [vmem:[#allocation2 + $0xcb] sm:$0xff]  ;;  %v5611_v35 = vld [vmem:[#allocation10 + $0x90] sm:$0xff]  ;;  %11478 = vmatpush1.bf16.msra.mxu0 %v11477_v2 }
 0x4b2   : > { %v4215_v5 = vadd.f32 %v10052_v52, %v16818_v50  ;;  %v4209_v42 = vpop.f32.mrb[245].mxu1  ;;  %4947 = vmatmul.mubr.f32.gmra.mrb[30].mxu1 %v4452_v17  ;;  %v5612_v52 = vld [vmem:[#allocation10 + $0x98] sm:$0xff]  ;;  %11479 = vmatprep.subr.bf16.mxu0 %v16682_v29 }
 0x4b3   : > { %v4210_v6 = vadd.f32 %v4209_v42, %v16819_v49  ;;  %4951 = vmatprep.mubr.f32.mxu1 %v4485_v41  ;;  %11555 = vmatpush1.bf16.msra.mxu1 %v11554_v28  ;;  %v11480_v41 = vpack.c.bf16 %v5757_v44, %v5756_v60  ;;  %v11560_v50 = vpack.c.bf16 %v5612_v52, %v5611_v35  ;;  %v5759_v42 = vld [vmem:[#allocation10 + $0x228] sm:$0xff]  ;;  %v16823_v35 = vld [vmem:[#allocation68_spill] sm:$0xff] }
 0x4b4   : > { %v15153_v19 = vadd.f32 %v4215_v5, %v14983_v33  ;;  %11556 = vmatprep.subr.bf16.mxu1 %v16682_v29  ;;  %v5758_v5 = vld [vmem:[#allocation10 + $0x220] sm:$0xff]  ;;  %v16822_v60 = vld [vmem:[#allocation69_spill] sm:$0xff] }
 0x4b5   : > { %v15158_v55 = vadd.f32 %v4210_v6, %v14976_v46  ;;  %v10055_v17 = vpop.f32.mrb[246].mxu1  ;;  %v4487_v46 = vld [vmem:[#allocation2 + $0xdb] sm:$0xff]  ;;  %v5613_v6 = vld [vmem:[#allocation10 + $0xa0] sm:$0xff]  ;;  %11481 = vmatpush1.bf16.msra.mxu0 %v11480_v41 }
 0x4b6   : > { %v4225_v43 = vadd.f32 %v10055_v17, %v16820_v58  ;;  %v4219_v28 = vpop.f32.mrb[247].mxu1  ;;  %4952 = vmatmul.mubr.f32.gmra.mrb[32].mxu1 %v4453_v36  ;;  %v5614_v17 = vld [vmem:[#allocation10 + $0xa8] sm:$0xff]  ;;  %11482 = vmatprep.subr.bf16.mxu0 %v16682_v29 }
 0x4b7   : > { %v4220_v33 = vadd.f32 %v4219_v28, %v16821_v8  ;;  %4956 = vmatprep.mubr.f32.mxu1 %v4486_v30  ;;  %11558 = vmatpush1.bf16.msra.mxu1 %v11557_v62  ;;  %v11483_v30 = vpack.c.bf16 %v5759_v42, %v5758_v5  ;;  %v4455_v52 = vld [vmem:[#allocation2 + $0xda] sm:$0xff]  ;;  %v11563_v58 = vpack.c.bf16 %v5614_v17, %v5613_v6  ;;  %v5761_v28 = vld [vmem:[#allocation10 + $0x238] sm:$0xff] }
 0x4b8   : > { %v15163_v49 = vadd.f32 %v4225_v43, %v14997_v23  ;;  %11559 = vmatprep.subr.bf16.mxu1 %v16682_v29  ;;  %v5760_v43 = vld [vmem:[#allocation10 + $0x230] sm:$0xff]  ;;  %v16824_v5 = vld [vmem:[#allocation39_spill] sm:$0xff] }
 0x4b9   : > { %v15168_v2 = vadd.f32 %v4220_v33, %v14990_v21  ;;  %v10058_v36 = vpop.f32.mrb[248].mxu1  ;;  %v4488_v21 = vld [vmem:[#allocation2 + $0xe3] sm:$0xff]  ;;  %11484 = vmatpush1.bf16.msra.mxu0 %v11483_v30 }
 0x4ba   : > { %v4235_v44 = vadd.f32 %v10058_v36, %v16822_v60  ;;  %v4229_v62 = vpop.f32.mrb[249].mxu1  ;;  %4957 = vmatmul.mubr.f32.gmra.mrb[34].mxu1 %v4454_v32  ;;  %v5615_v33 = vld [vmem:[#allocation10 + $0xb0] sm:$0xff]  ;;  %v5616_v36 = vld [vmem:[#allocation10 + $0xb8] sm:$0xff]  ;;  %11485 = vmatprep.subr.bf16.mxu0 %v16682_v29 }
 0x4bb   : > { %v4230_v23 = vadd.f32 %v4229_v62, %v16823_v35  ;;  %4961 = vmatprep.mubr.f32.mxu1 %v4487_v46  ;;  %11561 = vmatpush1.bf16.msra.mxu1 %v11560_v50  ;;  %v11486_v46 = vpack.c.bf16 %v5761_v28, %v5760_v43  ;;  %v16825_v6 = vld [vmem:[#allocation67_spill] sm:$0xff]  ;;  %v11566_v60 = vpack.c.bf16 %v5616_v36, %v5615_v33  ;;  %v4489_v62 = vld [vmem:[#allocation2 + $0xf3] sm:$0xff] }
 0x4bc   : > { %v15173_v8 = vadd.f32 %v4235_v44, %v15011_v56  ;;  %11562 = vmatprep.subr.bf16.mxu1 %v16682_v29  ;;  %v4456_v17 = vld [vmem:[#allocation2 + $0xe2] sm:$0xff]  ;;  %v5618_v35 = vld [vmem:[#allocation10 + $0xc8] sm:$0xff] }
 0x4bd   : > { %v15178_v41 = vadd.f32 %v4230_v23, %v15004_v20  ;;  %v10061_v32 = vpop.f32.mrb[250].mxu1  ;;  %v5617_v20 = vld [vmem:[#allocation10 + $0xc0] sm:$0xff]  ;;  %11487 = vmatpush1.bf16.msra.mxu0 %v11486_v46  ;;  %v16828_v46 = vld [vmem:[#allocation33_spill] sm:$0xff] }
 0x4be   : > { %v4245_v42 = vadd.f32 %v10061_v32, %v16824_v5  ;;  %v4239_v50 = vpop.f32.mrb[251].mxu1  ;;  %4962 = vmatmul.mubr.f32.gmra.mrb[36].mxu1 %v4455_v52  ;;  %v16826_v52 = vld [vmem:[#allocation72_spill] sm:$0xff]  ;;  %v11569_v33 = vpack.c.bf16 %v5618_v35, %v5617_v20  ;;  %v4490_v32 = vld [vmem:[#allocation2 + $0xfb] sm:$0xff]  ;;  %v5620_v5 = vld [vmem:[#allocation10 + $0xd8] sm:$0xff]  ;;  %11488 = vmatprep.subr.bf16.mxu0 %v16682_v29 }
 0x4bf   : > { %v4240_v56 = vadd.f32 %v4239_v50, %v16825_v6  ;;  %4966 = vmatprep.mubr.f32.mxu1 %v4488_v21  ;;  %11564 = vmatpush1.bf16.msra.mxu1 %v11563_v58  ;;  %v16827_v58 = vld [vmem:[#allocation71_spill] sm:$0xff] }
 0x4c0   : > { %v15183_v44 = vadd.f32 %v4245_v42, %v15024_v37  ;;  %11565 = vmatprep.subr.bf16.mxu1 %v16682_v29  ;;  %v4457_v37 = vld [vmem:[#allocation2 + $0xf2] sm:$0xff] }
 0x4c1   : > { %v15188_v23 = vadd.f32 %v4240_v56, %v15017_v63  ;;  %v10064_v30 = vpop.f32.mrb[252].mxu1  ;;  %v5619_v63 = vld [vmem:[#allocation10 + $0xd0] sm:$0xff]  ;;  %v4491_v35 = vld [vmem:[#allocation2 + $0x10b] sm:$0xff] }
 0x4c2   : > { %v4255_v43 = vadd.f32 %v10064_v30, %v16826_v52  ;;  %v4249_v28 = vpop.f32.mrb[253].mxu1  ;;  %4967 = vmatmul.mubr.f32.gmra.mrb[38].mxu1 %v4456_v17  ;;  %v16829_v17 = vld [vmem:[#allocation70_spill] sm:$0xff]  ;;  %v16830_v52 = vld [vmem:[#allocation73_spill] sm:$0xff] }
 0x4c3   : > { %v4250_v21 = vadd.f32 %v4249_v28, %v16827_v58  ;;  %4971 = vmatprep.mubr.f32.mxu1 %v4489_v62  ;;  %11567 = vmatpush1.bf16.msra.mxu1 %v11566_v60  ;;  %v11572_v62 = vpack.c.bf16 %v5620_v5, %v5619_v63  ;;  %v16831_v58 = vld [vmem:[#allocation74_spill] sm:$0xff]  ;;  %v16832_v63 = vld [vmem:[#allocation76_spill] sm:$0xff] }
 0x4c4   : > { %v15193_v36 = vadd.f32 %v4255_v43, %v15036_v18  ;;  %11568 = vmatprep.subr.bf16.mxu1 %v16682_v29  ;;  %v4458_v18 = vld [vmem:[#allocation2 + $0xfa] sm:$0xff] }
 0x4c5   : > { %v15198_v42 = vadd.f32 %v4250_v21, %v15030_v14  ;;  %v10067_v50 = vpop.f32.mrb[254].mxu1 }
 0x4c6   : > { %v4265_v6 = vadd.f32 %v10067_v50, %v16828_v46  ;;  %v4259_v56 = vpop.f32.mrb[255].mxu1  ;;  %4972 = vmatmul.mubr.f32.gmra.mrb[40].mxu1 %v4457_v37  ;;  %v4459_v37 = vld [vmem:[#allocation2 + $0x10a] sm:$0xff]  ;;  %v16833_v46 = vld [vmem:[#allocation41_spill] sm:$0xff] }
 0x4c7   : > { %v4260_v60 = vadd.f32 %v4259_v56, %v16829_v17  ;;  %4976 = vmatprep.mubr.f32.mxu1 %v4490_v32  ;;  %11570 = vmatpush1.bf16.msra.mxu1 %v11569_v33  ;;  %v4460_v56 = vld [vmem:[#allocation2 + $0x112] sm:$0xff] }
 0x4c8   : > { %v15203_v20 = vadd.f32 %v4265_v6, %v15048_v1  ;;  %11571 = vmatprep.subr.bf16.mxu1 %v16682_v29  ;;  %v4492_v1 = vld [vmem:[#allocation2 + $0x113] sm:$0xff] }
 0x4c9   : > { %v15207_v14 = vadd.f32 %v4260_v60, %v15042_v40  ;;  %v10070_v30 = vpop.f32.mrb[0].mxu1 }
 0x4ca   : > { %v4275_v43 = vadd.f32 %v10070_v30, %v16830_v52  ;;  %v4269_v28 = vpop.f32.mrb[1].mxu1  ;;  %4977 = vmatmul.mubr.f32.gmra.mrb[42].mxu1 %v4458_v18  ;;  %v16835_v30 = vld [vmem:[#allocation75_spill] sm:$0xff] }
 0x4cb   : > { %v4270_v21 = vadd.f32 %v4269_v28, %v16831_v58  ;;  %4981 = vmatprep.mubr.f32.mxu1 %v4491_v35  ;;  %11573 = vmatpush1.bf16.msra.mxu1 %v11572_v62  ;;  %v16834_v62 = vld [vmem:[#allocation43_spill] sm:$0xff] }
 0x4cc   : > { %v15212_v33 = vadd.f32 %v4275_v43, %v15056_v54  ;;  %11574 = vmatprep.subr.bf16.mxu1 %v16682_v29  ;;  %v4493_v54 = vld [vmem:[#allocation2 + $0x123] sm:$0xff]  ;;  %v4494_v58 = vld [vmem:[#allocation2 + $0x12b] sm:$0xff] }
 0x4cd   : > { %v15216_v32 = vadd.f32 %v4270_v21, %v15052_v13  ;;  %v10073_v40 = vpop.f32.mrb[2].mxu1  ;;  %v4461_v43 = vld [vmem:[#allocation2 + $0x122] sm:$0xff] }
 0x4ce   : > { %v4285_v5 = vadd.f32 %v10073_v40, %v16832_v63  ;;  %v4279_v50 = vpop.f32.mrb[3].mxu1  ;;  %4982 = vmatmul.mubr.f32.gmra.mrb[44].mxu1 %v4459_v37  ;;  %v16836_v37 = vld [vmem:[#allocation77_spill] sm:$0xff]  ;;  %v16837_v40 = vld [vmem:[#allocation78_spill] sm:$0xff] }
 0x4cf   : > { %v4280_v6 = vadd.f32 %v4279_v50, %v16833_v46  ;;  %4986 = vmatprep.mubr.f32.mxu1 %v4492_v1  ;;  %v4495_v46 = vld [vmem:[#allocation2 + $0x13b] sm:$0xff] }
 0x4d0   : > { %v15221_v17 = vadd.f32 %v4285_v5, %v15064_v53  ;;  %v4462_v5 = vld [vmem:[#allocation2 + $0x12a] sm:$0xff] }
 0x4d1   : > { %v15224_v60 = vadd.f32 %v4280_v6, %v15060_v16  ;;  %v10076_v18 = vpop.f32.mrb[4].mxu1 }
 0x4d2   : > { %v4295_v13 = vadd.f32 %v10076_v18, %v16834_v62  ;;  %v4289_v35 = vpop.f32.mrb[5].mxu1  ;;  %4987 = vmatmul.mubr.f32.gmra.mrb[46].mxu1 %v4460_v56  ;;  %v4463_v18 = vld [vmem:[#allocation2 + $0x13a] sm:$0xff] }
 0x4d3   : > { %v4290_v52 = vadd.f32 %v4289_v35, %v16835_v30  ;;  %4991 = vmatprep.mubr.f32.mxu1 %v4493_v54 }
 0x4d4   : > { %v15229_v28 = vadd.f32 %v4295_v13, %v15072_v59  ;;  %v4496_v13 = vld [vmem:[#allocation2 + $0x143] sm:$0xff] }
 0x4d5   : > { %v15232_v53 = vadd.f32 %v4290_v52, %v15068_v51  ;;  %v10079_v21 = vpop.f32.mrb[6].mxu1  ;;  %v4464_v52 = vld [vmem:[#allocation2 + $0x142] sm:$0xff] }
 0x4d6   : > { %v4305_v16 = vadd.f32 %v10079_v21, %v16836_v37  ;;  %v4299_v1 = vpop.f32.mrb[7].mxu1  ;;  %4992 = vmatmul.mubr.f32.gmra.mrb[48].mxu1 %v4461_v43  ;;  %v4497_v43 = vld [vmem:[#allocation2 + $0x153] sm:$0xff] }
 0x4d7   : > { %v4300_v63 = vadd.f32 %v4299_v1, %v16837_v40  ;;  %4996 = vmatprep.mubr.f32.mxu1 %v4494_v58  ;;  %v4465_v37 = vld [vmem:[#allocation2 + $0x152] sm:$0xff] }
 0x4d8   : > { %v15237_v50 = vadd.f32 %v4305_v16, %v15083_v61  ;;  %v5621_v16 = vld [vmem:[#allocation10 + $0xe0] sm:$0xff] }
 0x4d9   : > { %v15240_v59 = vadd.f32 %v4300_v63, %v15076_v24  ;;  %v10082_v6 = vpop.f32.mrb[8].mxu1 }
 0x4da   : > { %v4315_v51 = vadd.f32 %v10082_v6, %v15007_v11  ;;  %v4309_v56 = vpop.f32.mrb[9].mxu1  ;;  %4997 = vmatmul.mubr.f32.gmra.mrb[50].mxu1 %v4462_v5  ;;  %v5623_v6 = vld [vmem:[#allocation10 + $0xf0] sm:$0xff] }
 0x4db   : > { %v4310_v54 = vadd.f32 %v4309_v56, %v15000_v47  ;;  %5001 = vmatprep.mubr.f32.mxu1 %v4495_v46  ;;  %v4499_v56 = vld [vmem:[#allocation2 + $0x16b] sm:$0xff] }
 0x4dc   : > { %v15245_v62 = vadd.f32 %v4315_v51, %v15093_v45  ;;  %v5624_v51 = vld [vmem:[#allocation10 + $0xf8] sm:$0xff] }
 0x4dd   : > { %v15248_v61 = vadd.f32 %v4310_v54, %v15088_v39  ;;  %v10085_v35 = vpop.f32.mrb[10].mxu1 }
 0x4de   : > { %16838 = vst [vmem:[#allocation44_spill] sm:$0xff] %v15245_v62  ;;  %v4325_v24 = vadd.f32 %v10085_v35, %v15021_v25  ;;  %v4319_v30 = vpop.f32.mrb[11].mxu1  ;;  %5002 = vmatmul.mubr.f32.gmra.mrb[52].mxu1 %v4463_v18  ;;  %v5763_v18 = vld [vmem:[#allocation10 + $0x248] sm:$0xff] }
 0x4df   : > { %16839 = vst [vmem:[#allocation46_spill] sm:$0xff] %v15248_v61  ;;  %v4320_v11 = vadd.f32 %v4319_v30, %v15014_v4  ;;  %5006 = vmatprep.mubr.f32.mxu1 %v4496_v13  ;;  %v5622_v4 = vld [vmem:[#allocation10 + $0xe8] sm:$0xff]  ;;  %v5764_v30 = vld [vmem:[#allocation10 + $0x250] sm:$0xff]  ;;  %v6823_v61 = vld [vmem:[#allocation10 + $0x438] sm:$0xff] }
 0x4e0   : > { %v15253_v47 = vadd.f32 %v4325_v24, %v15102_v48  ;;  %v4498_v48 = vld [vmem:[#allocation2 + $0x15b] sm:$0xff]  ;;  %v11575_v40 = vpack.c.bf16 %v5622_v4, %v5621_v16  ;;  %v4467_v24 = vld [vmem:[#allocation2 + $0x16a] sm:$0xff] }
 0x4e1   : > { %v15256_v45 = vadd.f32 %v4320_v11, %v15098_v12  ;;  %v10088_v58 = vpop.f32.mrb[12].mxu1  ;;  %v5765_v11 = vld [vmem:[#allocation10 + $0x258] sm:$0xff] }
 0x4e2   : > { %16840 = vst [vmem:[#allocation47_spill] sm:$0xff] %v15253_v47  ;;  %v4335_v39 = vadd.f32 %v10088_v58, %v15033_v26  ;;  %v4329_v21 = vpop.f32.mrb[13].mxu1  ;;  %5007 = vmatmul.mubr.f32.gmra.mrb[54].mxu1 %v4464_v52  ;;  %v11492_v52 = vpack.c.bf16 %v5765_v11, %v5764_v30  ;;  %v4469_v16 = vld [vmem:[#allocation2 + $0x182] sm:$0xff]  ;;  %v4502_v4 = vld [vmem:[#allocation2 + $0x18b] sm:$0xff] }
 0x4e3   : > { %16841 = vst [vmem:[#allocation80_spill] sm:$0xff] %v15256_v45  ;;  %v4330_v25 = vadd.f32 %v4329_v21, %v15027_v34  ;;  %5011 = vmatprep.mubr.f32.mxu1 %v4497_v43  ;;  %v4466_v34 = vld [vmem:[#allocation2 + $0x15a] sm:$0xff]  ;;  %11576 = vmatpush1.bf16.msra.mxu1 %v11575_v40  ;;  %v15271_v54 = vpop.f32.mrb[192].mxu0  ;;  %v4468_v43 = vld [vmem:[#allocation2 + $0x172] sm:$0xff]  ;;  %v5769_v40 = vld [vmem:[#allocation10 + $0x278] sm:$0xff] }
 0x4e4   : > { %v15261_v1 = vadd.f32 %v4335_v39, %v15114_v27  ;;  %11577 = vmatprep.subr.bf16.mxu1 %v16682_v29  ;;  %v5766_v39 = vld [vmem:[#allocation10 + $0x260] sm:$0xff]  ;;  %v5767_v21 = vld [vmem:[#allocation10 + $0x268] sm:$0xff] }
 0x4e5   : > { %v15264_v63 = vadd.f32 %v4330_v25, %v15108_v15  ;;  %v10091_v12 = vpop.f32.mrb[14].mxu1  ;;  %v5762_v15 = vld [vmem:[#allocation10 + $0x240] sm:$0xff]  ;;  %v4506_v11 = vld [vmem:[#allocation2 + $0x1bb] sm:$0xff] }
 0x4e6   : > { %16842 = vst [vmem:[#allocation81_spill] sm:$0xff] %v15261_v1  ;;  %v4345_v5 = vadd.f32 %v10091_v12, %v15045_v57  ;;  %v4339_v26 = vpop.f32.mrb[15].mxu1  ;;  %5012 = vmatmul.mubr.f32.gmra.mrb[56].mxu1 %v4465_v37  ;;  %v11578_v57 = vpack.c.bf16 %v5624_v51, %v5623_v6  ;;  %v11489_v35 = vpack.c.bf16 %v5763_v18, %v5762_v15  ;;  %v4471_v6 = vld [vmem:[#allocation2 + $0x19a] sm:$0xff]  ;;  %v4504_v51 = vld [vmem:[#allocation2 + $0x1a3] sm:$0xff]  ;;  %v6820_v47 = vld [vmem:[#allocation10 + $0x420] sm:$0xff] }
 0x4e7   : > { %16843 = vst [vmem:[#allocation79_spill] sm:$0xff] %v15264_v63  ;;  %v4340_v46 = vadd.f32 %v4339_v26, %v15039_v7  ;;  %5016 = vmatprep.mubr.f32.mxu1 %v4498_v48  ;;  %v15277_v7 = vpop.f32.mrb[193].mxu0  ;;  %v11495_v37 = vpack.c.bf16 %v5767_v21, %v5766_v39  ;;  %v5768_v48 = vld [vmem:[#allocation10 + $0x270] sm:$0xff]  ;;  %v4505_v15 = vld [vmem:[#allocation2 + $0x1b3] sm:$0xff]  ;;  %v4475_v21 = vld [vmem:[#allocation2 + $0x1ca] sm:$0xff] }
 0x4e8   : > { %v15269_v27 = vadd.f32 %v4345_v5, %v15126_v10  ;;  %11490 = vmatpush1.bf16.msra.mxu0 %v11489_v35  ;;  %v4500_v10 = vld [vmem:[#allocation2 + $0x173] sm:$0xff]  ;;  %11579 = vmatpush1.bf16.msra.mxu1 %v11578_v57  ;;  %v11498_v12 = vpack.c.bf16 %v5769_v40, %v5768_v48  ;;  %v4470_v5 = vld [vmem:[#allocation2 + $0x18a] sm:$0xff]  ;;  %v4503_v26 = vld [vmem:[#allocation2 + $0x19b] sm:$0xff] }
 0x4e9   : > { %v15275_v13 = vadd.f32 %v4340_v46, %v15120_v31  ;;  %11491 = vmatprep.subr.bf16.mxu0 %v16682_v29  ;;  %v4501_v31 = vld [vmem:[#allocation2 + $0x183] sm:$0xff]  ;;  %v5770_v35 = vld [vmem:[#allocation10 + $0x280] sm:$0xff]  ;;  %v6821_v45 = vld [vmem:[#allocation10 + $0x428] sm:$0xff] }
 0x4ea   : > { %16844 = vst [vmem:[#allocation82_spill] sm:$0xff] %v15269_v27  ;;  %5017 = vmatmul.mubr.f32.gmra.mrb[58].mxu1 %v4466_v34  ;;  %v6818_v27 = vld [vmem:[#allocation10 + $0x410] sm:$0xff] }
 0x4eb   : > { %16845 = vst [vmem:[#allocation48_spill] sm:$0xff] %v15275_v13  ;;  %5021 = vmatprep.mubr.f32.mxu1 %v4499_v56  ;;  %v15280_v58 = vpop.f32.mrb[194].mxu0  ;;  %v4472_v56 = vld [vmem:[#allocation2 + $0x1a2] sm:$0xff] }
 0x4ec   : > { %11493 = vmatpush1.bf16.msra.mxu0 %v11492_v52  ;;  %v15283_v25 = vpop.f32.mrb[195].mxu0  ;;  %v4474_v52 = vld [vmem:[#allocation2 + $0x1ba] sm:$0xff]  ;;  %v6819_v13 = vld [vmem:[#allocation10 + $0x418] sm:$0xff] }
 0x4ed   : > { %11494 = vmatprep.subr.bf16.mxu0 %v16682_v29  ;;  %v11664_v1 = vpack.c.bf16 %v6819_v13, %v6818_v27  ;;  %v6825_v27 = vld [vmem:[#allocation10 + $0x448] sm:$0xff] }
 0x4ee   : > { %5022 = vmatmul.mubr.f32.gmra.mrb[60].mxu1 %v4467_v24  ;;  %v5771_v24 = vld [vmem:[#allocation10 + $0x288] sm:$0xff] }
 0x4ef   : > { %5026 = vmatprep.mubr.f32.mxu1 %v4500_v10  ;;  %v4473_v10 = vld [vmem:[#allocation2 + $0x1b2] sm:$0xff]  ;;  %v15294_v30 = vpack.c.bf16 %v5771_v24, %v5770_v35 }
 0x4f0   : > { %11496 = vmatpush1.bf16.msra.mxu0 %v11495_v37  ;;  %v4508_v37 = vld [vmem:[#allocation2 + $0x1d3] sm:$0xff] }
 0x4f1   : > { %11497 = vmatprep.subr.bf16.mxu0 %v16682_v29 }
 0x4f2   : > { %5027 = vmatmul.mubr.f32.gmra.mrb[62].mxu1 %v4468_v43  ;;  %v4507_v43 = vld [vmem:[#allocation2 + $0x1cb] sm:$0xff] }
 0x4f3   : > { %5031 = vmatprep.mubr.f32.mxu1 %v4501_v31  ;;  %v15286_v46 = vpop.f32.mrb[196].mxu0 }
 0x4f4   : > { %11499 = vmatpush1.bf16.msra.mxu0 %v11498_v12  ;;  %v15288_v34 = vpop.f32.mrb[197].mxu0  ;;  %v5530_v12 = vld [vmem:[#allocation3 + $0x9] sm:$0xff] }
 0x4f5   : > { %11501 = vmatprep.subr.bf16.mxu0 %v15294_v30 }
 0x4f6   : > { %5032 = vmatmul.mubr.f32.gmra.mrb[64].mxu1 %v4469_v16  ;;  %v4476_v16 = vld [vmem:[#allocation2 + $0x1d2] sm:$0xff] }
 0x4f7   : > { %5036 = vmatprep.mubr.f32.mxu1 %v4502_v4  ;;  %v5529_v4 = vld [vmem:[#allocation3 + $0x1] sm:$0xff] }
 0x4fa   : > { %5037 = vmatmul.mubr.f32.gmra.mrb[66].mxu1 %v4470_v5 }
 0x4fb   : > { %5041 = vmatprep.mubr.f32.mxu1 %v4503_v26  ;;  %v15290_v18 = vpop.f32.mrb[198].mxu0 }
 0x4fc   : > { %v15292_v57 = vpop.f32.mrb[199].mxu0 }
 0x4fe   : > { %5042 = vmatmul.mubr.f32.gmra.mrb[68].mxu1 %v4471_v6 }
 0x4ff   : > { %5046 = vmatprep.mubr.f32.mxu1 %v4504_v51 }
 0x502   : > { %5047 = vmatmul.mubr.f32.gmra.mrb[70].mxu1 %v4472_v56 }
 0x503   : > { %5051 = vmatprep.mubr.f32.mxu1 %v4505_v15 }
 0x504   : > { %v15297_v31 = vpop.f32.mrb[200].mxu0 }
 0x505   : > { %v15299_v39 = vpop.f32.mrb[201].mxu0 }
 0x506   : > { %5052 = vmatmul.mubr.f32.gmra.mrb[72].mxu1 %v4473_v10 }
 0x507   : > { %5056 = vmatprep.mubr.f32.mxu1 %v4506_v11 }
 0x50a   : > { %5057 = vmatmul.mubr.f32.gmra.mrb[74].mxu1 %v4474_v52 }
 0x50b   : > { %5061 = vmatprep.mubr.f32.mxu1 %v4507_v43 }
 0x50c   : > { %v15301_v48 = vpop.f32.mrb[202].mxu0 }
 0x50d   : > { %v15303_v40 = vpop.f32.mrb[203].mxu0 }
 0x50e   : > { %5062 = vmatmul.mubr.f32.gmra.mrb[76].mxu1 %v4475_v21 }
 0x50f   : > { %5066 = vmatprep.mubr.f32.mxu1 %v4508_v37 }
 0x512   : > { %5067 = vmatmul.mubr.f32.gmra.mrb[78].mxu1 %v4476_v16  ;;  %v6816_v16 = vld [vmem:[#allocation10 + $0x400] sm:$0xff] }
 0x513   : > { %6300 = vmatprep.mubr.f32.mxu1 %v5529_v4  ;;  %v6817_v4 = vld [vmem:[#allocation10 + $0x408] sm:$0xff] }
 0x514   : > { %v15306_v5 = vpop.f32.mrb[204].mxu0  ;;  %v11660_v29 = vpack.c.bf16 %v6817_v4, %v6816_v16 }
 0x515   : > { %v15308_v26 = vpop.f32.mrb[205].mxu0 }
 0x516   : > { %6301 = vmatmul.mubr.f32.vlgmr.msra.gmra.mrb[82].mxu1 %v15079_v0  ;;  %11661 = vmatprep.subr.bf16.mxu1 %v11660_v29 }
 0x517   : > { %6305 = vmatprep.mubr.f32.mxu1 %v5530_v12  ;;  %11663 = vmatpush3.bf16.msra.mxu1 %v11660_v29  ;;  %v6824_v29 = vld [vmem:[#allocation10 + $0x440] sm:$0xff] }
 0x518   : > { %11665 = vmatprep.subr.bf16.mxu1 %v11664_v1  ;;  %v11676_v4 = vpack.c.bf16 %v6825_v27, %v6824_v29  ;;  %v6830_v29 = vld [vmem:[#allocation10 + $0x470] sm:$0xff]  ;;  %v6831_v27 = vld [vmem:[#allocation10 + $0x478] sm:$0xff] }
 0x51a   : > { %6306 = vmatmul.mubr.f32.gmra.mrb[86].mxu1 %v15079_v0 }
 0x51b   : > { %11667 = vmatpush3.bf16.msra.mxu1 %v11664_v1  ;;  %v6826_v1 = vld [vmem:[#allocation10 + $0x450] sm:$0xff] }
 0x51c   : > { %v15311_v6 = vpop.f32.mrb[206].mxu0 }
 0x51d   : > { %v15313_v51 = vpop.f32.mrb[207].mxu0 }
 0x524   : > { %v15315_v56 = vpop.f32.mrb[208].mxu0 }
 0x525   : > { %v15317_v15 = vpop.f32.mrb[209].mxu0 }
 0x52a   : > { %v15319_v35 = vpop.f32.mrb[210].mxu0 }
 0x52b   : > { %v15321_v24 = vpop.f32.mrb[211].mxu0 }
 0x532   : > { %v15323_v10 = vpop.f32.mrb[212].mxu0 }
 0x533   : > { %v15325_v11 = vpop.f32.mrb[213].mxu0 }
 0x53a   : > { %v15327_v52 = vpop.f32.mrb[214].mxu0 }
 0x53b   : > { %v15329_v43 = vpop.f32.mrb[215].mxu0 }
 0x541   : > { %v15331_v0 = vpop.f32.mrb[216].mxu0 }
 0x542   : > { %16846 = vst [vmem:[#allocation49_spill] sm:$0xff] %v15331_v0  ;;  %v15333_v21 = vpop.f32.mrb[217].mxu0  ;;  %v11668_v0 = vpack.c.bf16 %v6821_v45, %v6820_v47  ;;  %v6828_v47 = vld [vmem:[#allocation10 + $0x460] sm:$0xff]  ;;  %v6829_v45 = vld [vmem:[#allocation10 + $0x468] sm:$0xff] }
 0x543   : > { %16847 = vst [vmem:[#allocation40_spill] sm:$0xff] %v15333_v21  ;;  %v11688_v21 = vpack.c.bf16 %v6831_v27, %v6830_v29  ;;  %v5772_v27 = vld [vmem:[#allocation10 + $0x290] sm:$0xff] }
 0x544   : > { %11669 = vmatprep.subr.bf16.mxu1 %v11668_v0 }
 0x545   : > { %11671 = vmatpush3.bf16.msra.mxu1 %v11668_v0 }
 0x549   : > { %v15335_v37 = vpop.f32.mrb[218].mxu0 }
 0x54a   : > { %16848 = vst [vmem:[#allocation51_spill] sm:$0xff] %v15335_v37  ;;  %v15337_v12 = vpop.f32.mrb[219].mxu0  ;;  %v6822_v37 = vld [vmem:[#allocation10 + $0x430] sm:$0xff] }
 0x54b   : > { %16849 = vst [vmem:[#allocation52_spill] sm:$0xff] %v15337_v12  ;;  %v11672_v12 = vpack.c.bf16 %v6823_v61, %v6822_v37  ;;  %v11684_v61 = vpack.c.bf16 %v6829_v45, %v6828_v47  ;;  %v12405_v47 = vld [vmem:[#allocation2 + $0x32] sm:$0xff] }
 0x54d   : > { %11673 = vmatprep.subr.bf16.mxu1 %v11672_v12 }
 0x54e   : > { %11675 = vmatpush3.bf16.msra.mxu1 %v11672_v12  ;;  %v15348_v12 = vld [vmem:[#allocation15] ss:$0 sm:$0xff] }
 0x54f   : > { %11677 = vmatprep.subr.bf16.mxu1 %v11676_v4 }
 0x550   : > { %v15339_v63 = vpop.f32.mrb[220].mxu0 }
 0x551   : > { %16850 = vst [vmem:[#allocation50_spill] sm:$0xff] %v15339_v63  ;;  %v15341_v62 = vpop.f32.mrb[221].mxu0  ;;  %v6827_v63 = vld [vmem:[#allocation10 + $0x458] sm:$0xff] }
 0x552   : > { %16851 = vst [vmem:[#allocation42_spill] sm:$0xff] %v15341_v62  ;;  %11679 = vmatpush3.bf16.msra.mxu1 %v11676_v4  ;;  %v11680_v62 = vpack.c.bf16 %v6827_v63, %v6826_v1 }
 0x554   : > { %11681 = vmatprep.subr.bf16.mxu1 %v11680_v62 }
 0x556   : > { %11683 = vmatpush3.bf16.msra.mxu1 %v11680_v62 }
 0x557   : > { %11685 = vmatprep.subr.bf16.mxu1 %v11684_v61 }
 0x55a   : > { %v15343_v16 = vpop.f32.mrb[222].mxu0  ;;  %11687 = vmatpush3.bf16.msra.mxu1 %v11684_v61 }
 0x55b   : > { %16852 = vst [vmem:[#allocation54_spill] sm:$0xff] %v15343_v16  ;;  %v15345_v13 = vpop.f32.mrb[223].mxu0  ;;  %11689 = vmatprep.subr.bf16.mxu1 %v11688_v21 }
 0x55c   : > { %16853 = vst [vmem:[#allocation55_spill] sm:$0xff] %v15345_v13 }
 0x55e   : > { %11691 = vmatpush3.bf16.msra.mxu1 %v11688_v21 }
 0x569   : > { %v4913_v0 = vpop.f32.mrb[16].mxu1 }
 0x56a   : > { %v5139_v37 = vadd.f32 %v15277_v7, %v4913_v0  ;;  %v4915_v16 = vpop.f32.mrb[17].mxu1 }
 0x56c   : > { %v5297_v13 = vadd.f32 %v5139_v37, %v15138_v38 }
 0x56d   : > { %v4918_v4 = vpop.f32.mrb[18].mxu1 }
 0x56e   : > { %v15352_v63 = vadd.f32 %v15348_v12, %v5297_v13  ;;  %v5144_v62 = vadd.f32 %v15271_v54, %v4918_v4  ;;  %v4920_v1 = vpop.f32.mrb[19].mxu1  ;;  %v12406_v13 = vld [vmem:[#allocation2 + $0x3a] sm:$0xff]  ;;  %v5773_v4 = vld [vmem:[#allocation10 + $0x298] sm:$0xff] }
 0x56f   : > { %v12407_v1 = vld [vmem:[#allocation2 + $0x4a] sm:$0xff] }
 0x570   : > { %16854 = vst [vmem:[#allocation53_spill] sm:$0xff] %v15352_v63  ;;  %v5432_v7 = vadd.f32 %v12405_v47, %v15352_v63  ;;  %v5298_v16 = vadd.f32 %v5144_v62, %v15133_v9 }
 0x571   : > { %v4923_v45 = vpop.f32.mrb[20].mxu1 }
 0x572   : > { %5465 = vst [vmem:[#allocation3 + $0x19] sm:$0xff] %v5432_v7  ;;  %v15358_v38 = vadd.f32 %v15348_v12, %v5298_v16  ;;  %v5149_v0 = vadd.f32 %v15283_v25, %v4923_v45  ;;  %v4925_v61 = vpop.f32.mrb[21].mxu1  ;;  %5850 = vmatprep.mubr.f32.mxu0 %v5432_v7  ;;  %6310 = vmatprep.mubr.f32.mxu1 %v5432_v7 }
 0x573   : > { %v11504_v7 = vpack.c.bf16 %v5773_v4, %v5772_v27 }
 0x574   : > { %16855 = vst [vmem:[#allocation45_spill] sm:$0xff] %v15358_v38  ;;  %v5433_v54 = vadd.f32 %v12406_v13, %v15358_v38  ;;  %v5299_v37 = vadd.f32 %v5149_v0, %v15148_v22  ;;  %v5774_v13 = vld [vmem:[#allocation10 + $0x2a0] sm:$0xff] }
 0x575   : > { %v4928_v29 = vpop.f32.mrb[22].mxu1 }
 0x576   : > { %5466 = vst [vmem:[#allocation3 + $0x21] sm:$0xff] %v5433_v54  ;;  %v15364_v9 = vadd.f32 %v15348_v12, %v5299_v37  ;;  %v5154_v21 = vadd.f32 %v15280_v58, %v4928_v29  ;;  %v4930_v62 = vpop.f32.mrb[23].mxu1  ;;  %v5775_v58 = vld [vmem:[#allocation10 + $0x2a8] sm:$0xff] }
 0x577   : > { %v12408_v37 = vld [vmem:[#allocation2 + $0x52] sm:$0xff] }
 0x578   : > { %16856 = vst [vmem:[#allocation57_spill] sm:$0xff] %v15364_v9  ;;  %v5434_v25 = vadd.f32 %v12407_v1, %v15364_v9  ;;  %v5300_v47 = vadd.f32 %v5154_v21, %v15143_v3  ;;  %v11508_v21 = vpack.c.bf16 %v5775_v58, %v5774_v13 }
 0x579   : > { %v4933_v16 = vpop.f32.mrb[24].mxu1  ;;  %v5641_v45 = vld [vmem:[#allocation3 + $0x18] sm:$0xff] }
 0x57a   : > { %5467 = vst [vmem:[#allocation3 + $0x31] sm:$0xff] %v5434_v25  ;;  %v15370_v22 = vadd.f32 %v15348_v12, %v5300_v47  ;;  %v5159_v0 = vadd.f32 %v15288_v34, %v4933_v16  ;;  %v4935_v61 = vpop.f32.mrb[25].mxu1  ;;  %5851 = vmatmul.mubr.f32.vlgmr.msra.gmra.mrb[224].mxu0 %v5641_v45  ;;  %6311 = vmatmul.mubr.f32.gmra.mrb[90].mxu1 %v5641_v45  ;;  %v5777_v47 = vld [vmem:[#allocation10 + $0x2b8] sm:$0xff] }
 0x57b   : > { %11503 = vmatpush3.bf16.msra.mxu0 %v15294_v30  ;;  %5855 = vmatprep.mubr.f32.mxu0 %v5433_v54  ;;  %v5776_v30 = vld [vmem:[#allocation10 + $0x2b0] sm:$0xff] }
 0x57c   : > { %16857 = vst [vmem:[#allocation58_spill] sm:$0xff] %v15370_v22  ;;  %v5435_v3 = vadd.f32 %v12408_v37, %v15370_v22  ;;  %v5301_v29 = vadd.f32 %v5159_v0, %v15158_v55  ;;  %6315 = vmatprep.mubr.f32.mxu1 %v5433_v54  ;;  %11505 = vmatprep.subr.bf16.mxu0 %v11504_v7  ;;  %v12409_v16 = vld [vmem:[#allocation2 + $0x62] sm:$0xff]  ;;  %v5779_v37 = vld [vmem:[#allocation10 + $0x2c8] sm:$0xff] }
 0x57d   : > { %v4938_v27 = vpop.f32.mrb[26].mxu1  ;;  %v5642_v4 = vld [vmem:[#allocation3 + $0x20] sm:$0xff]  ;;  %v11512_v61 = vpack.c.bf16 %v5777_v47, %v5776_v30  ;;  %v5781_v47 = vld [vmem:[#allocation10 + $0x2d8] sm:$0xff] }
 0x57e   : > { %5468 = vst [vmem:[#allocation3 + $0x39] sm:$0xff] %v5435_v3  ;;  %v15377_v34 = vadd.f32 %v15348_v12, %v5301_v29  ;;  %v5164_v62 = vadd.f32 %v15286_v46, %v4938_v27  ;;  %v4940_v1 = vpop.f32.mrb[27].mxu1  ;;  %5856 = vmatmul.mubr.f32.gmra.mrb[226].mxu0 %v5642_v4  ;;  %6316 = vmatmul.mubr.f32.gmra.mrb[94].mxu1 %v5642_v4  ;;  %v12410_v29 = vld [vmem:[#allocation2 + $0x6a] sm:$0xff] }
 0x57f   : > { %5860 = vmatprep.mubr.f32.mxu0 %v5434_v25  ;;  %6320 = vmatprep.mubr.f32.mxu1 %v5434_v25  ;;  %v5778_v25 = vld [vmem:[#allocation10 + $0x2c0] sm:$0xff] }
 0x580   : > { %16858 = vst [vmem:[#allocation56_spill] sm:$0xff] %v15377_v34  ;;  %v5436_v55 = vadd.f32 %v12409_v16, %v15377_v34  ;;  %v5302_v54 = vadd.f32 %v5164_v62, %v15153_v19  ;;  %11507 = vmatpush3.bf16.msra.mxu0 %v11504_v7  ;;  %v11516_v62 = vpack.c.bf16 %v5779_v37, %v5778_v25  ;;  %v12411_v16 = vld [vmem:[#allocation2 + $0x7a] sm:$0xff]  ;;  %v12412_v37 = vld [vmem:[#allocation2 + $0x82] sm:$0xff] }
 0x581   : > { %v4943_v45 = vpop.f32.mrb[28].mxu1  ;;  %v5643_v0 = vld [vmem:[#allocation3 + $0x30] sm:$0xff]  ;;  %11509 = vmatprep.subr.bf16.mxu0 %v11508_v21  ;;  %v5783_v25 = vld [vmem:[#allocation10 + $0x2e8] sm:$0xff] }
 0x582   : > { %5469 = vst [vmem:[#allocation3 + $0x49] sm:$0xff] %v5436_v55  ;;  %v15383_v46 = vadd.f32 %v15348_v12, %v5302_v54  ;;  %v5169_v13 = vadd.f32 %v15292_v57, %v4943_v45  ;;  %v4945_v58 = vpop.f32.mrb[29].mxu1  ;;  %5861 = vmatmul.mubr.f32.gmra.mrb[228].mxu0 %v5643_v0  ;;  %6321 = vmatmul.mubr.f32.gmra.mrb[98].mxu1 %v5643_v0 }
 0x583   : > { %5865 = vmatprep.mubr.f32.mxu0 %v5435_v3  ;;  %6325 = vmatprep.mubr.f32.mxu1 %v5435_v3  ;;  %v5780_v3 = vld [vmem:[#allocation10 + $0x2d0] sm:$0xff] }
 0x584   : > { %16859 = vst [vmem:[#allocation34_spill] sm:$0xff] %v15383_v46  ;;  %v5437_v19 = vadd.f32 %v12410_v29, %v15383_v46  ;;  %v5303_v7 = vadd.f32 %v5169_v13, %v15168_v2  ;;  %11511 = vmatpush3.bf16.msra.mxu0 %v11508_v21  ;;  %v11520_v0 = vpack.c.bf16 %v5781_v47, %v5780_v3  ;;  %v12413_v3 = vld [vmem:[#allocation2 + $0x92] sm:$0xff] }
 0x585   : > { %v4948_v27 = vpop.f32.mrb[30].mxu1  ;;  %v5644_v4 = vld [vmem:[#allocation3 + $0x38] sm:$0xff]  ;;  %11513 = vmatprep.subr.bf16.mxu0 %v11512_v61 }
 0x586   : > { %5470 = vst [vmem:[#allocation3 + $0x51] sm:$0xff] %v5437_v19  ;;  %v15389_v57 = vadd.f32 %v15348_v12, %v5303_v7  ;;  %v5174_v1 = vadd.f32 %v15290_v18, %v4948_v27  ;;  %v4950_v30 = vpop.f32.mrb[31].mxu1  ;;  %5866 = vmatmul.mubr.f32.gmra.mrb[230].mxu0 %v5644_v4  ;;  %6326 = vmatmul.mubr.f32.gmra.mrb[102].mxu1 %v5644_v4 }
 0x587   : > { %5870 = vmatprep.mubr.f32.mxu0 %v5436_v55  ;;  %6330 = vmatprep.mubr.f32.mxu1 %v5436_v55  ;;  %v5782_v55 = vld [vmem:[#allocation10 + $0x2e0] sm:$0xff]  ;;  %v5785_v30 = vld [vmem:[#allocation10 + $0x2f8] sm:$0xff] }
 0x588   : > { %16860 = vst [vmem:[#allocation60_spill] sm:$0xff] %v15389_v57  ;;  %v5438_v2 = vadd.f32 %v12411_v16, %v15389_v57  ;;  %v5304_v21 = vadd.f32 %v5174_v1, %v15163_v49  ;;  %11515 = vmatpush3.bf16.msra.mxu0 %v11512_v61  ;;  %v11524_v27 = vpack.c.bf16 %v5783_v25, %v5782_v55 }
 0x589   : > { %v4953_v54 = vpop.f32.mrb[32].mxu1  ;;  %v5645_v45 = vld [vmem:[#allocation3 + $0x48] sm:$0xff]  ;;  %11517 = vmatprep.subr.bf16.mxu0 %v11516_v62 }
 0x58a   : > { %5471 = vst [vmem:[#allocation3 + $0x61] sm:$0xff] %v5438_v2  ;;  %v15395_v18 = vadd.f32 %v15348_v12, %v5304_v21  ;;  %v5179_v13 = vadd.f32 %v15299_v39, %v4953_v54  ;;  %v4955_v58 = vpop.f32.mrb[33].mxu1  ;;  %5871 = vmatmul.mubr.f32.gmra.mrb[232].mxu0 %v5645_v45  ;;  %6331 = vmatmul.mubr.f32.gmra.mrb[106].mxu1 %v5645_v45 }
 0x58b   : > { %5875 = vmatprep.mubr.f32.mxu0 %v5437_v19  ;;  %6335 = vmatprep.mubr.f32.mxu1 %v5437_v19  ;;  %v5784_v19 = vld [vmem:[#allocation10 + $0x2f0] sm:$0xff] }
 0x58c   : > { %16861 = vst [vmem:[#allocation61_spill] sm:$0xff] %v15395_v18  ;;  %v5439_v49 = vadd.f32 %v12412_v37, %v15395_v18  ;;  %v5305_v61 = vadd.f32 %v5179_v13, %v15178_v41  ;;  %11519 = vmatpush3.bf16.msra.mxu0 %v11516_v62  ;;  %v11528_v21 = vpack.c.bf16 %v5785_v30, %v5784_v19  ;;  %v5626_v13 = vld [vmem:[#allocation10 + $0x108] sm:$0xff] }
 0x58d   : > { %v4958_v29 = vpop.f32.mrb[34].mxu1  ;;  %v5646_v7 = vld [vmem:[#allocation3 + $0x50] sm:$0xff]  ;;  %11521 = vmatprep.subr.bf16.mxu0 %v11520_v0  ;;  %v12414_v58 = vld [vmem:[#allocation2 + $0x9a] sm:$0xff] }
 0x58e   : > { %5472 = vst [vmem:[#allocation3 + $0x69] sm:$0xff] %v5439_v49  ;;  %v15401_v39 = vadd.f32 %v15348_v12, %v5305_v61  ;;  %v5184_v4 = vadd.f32 %v15297_v31, %v4958_v29  ;;  %v4960_v1 = vpop.f32.mrb[35].mxu1  ;;  %5876 = vmatmul.mubr.f32.gmra.mrb[234].mxu0 %v5646_v7  ;;  %6336 = vmatmul.mubr.f32.gmra.mrb[110].mxu1 %v5646_v7  ;;  %v12416_v30 = vld [vmem:[#allocation2 + $0xb2] sm:$0xff] }
 0x58f   : > { %5880 = vmatprep.mubr.f32.mxu0 %v5438_v2  ;;  %6340 = vmatprep.mubr.f32.mxu1 %v5438_v2  ;;  %v5625_v2 = vld [vmem:[#allocation10 + $0x100] sm:$0xff] }
 0x590   : > { %16862 = vst [vmem:[#allocation35_spill] sm:$0xff] %v15401_v39  ;;  %v5440_v41 = vadd.f32 %v12413_v3, %v15401_v39  ;;  %v5306_v62 = vadd.f32 %v5184_v4, %v15173_v8  ;;  %11523 = vmatpush3.bf16.msra.mxu0 %v11520_v0  ;;  %v15412_v37 = vpack.c.bf16 %v5626_v13, %v5625_v2 }
 0x591   : > { %v4963_v47 = vpop.f32.mrb[36].mxu1  ;;  %v5647_v16 = vld [vmem:[#allocation3 + $0x60] sm:$0xff]  ;;  %11525 = vmatprep.subr.bf16.mxu0 %v11524_v27 }
 0x592   : > { %5473 = vst [vmem:[#allocation3 + $0x79] sm:$0xff] %v5440_v41  ;;  %v15407_v31 = vadd.f32 %v15348_v12, %v5306_v62  ;;  %v5189_v54 = vadd.f32 %v15303_v40, %v4963_v47  ;;  %v4965_v45 = vpop.f32.mrb[37].mxu1  ;;  %5881 = vmatmul.mubr.f32.gmra.mrb[236].mxu0 %v5647_v16  ;;  %6341 = vmatmul.mubr.f32.gmra.mrb[114].mxu1 %v5647_v16 }
 0x593   : > { %5885 = vmatprep.mubr.f32.mxu0 %v5439_v49  ;;  %6345 = vmatprep.mubr.f32.mxu1 %v5439_v49  ;;  %v12415_v49 = vld [vmem:[#allocation2 + $0xaa] sm:$0xff] }
 0x594   : > { %16863 = vst [vmem:[#allocation59_spill] sm:$0xff] %v15407_v31  ;;  %v5441_v8 = vadd.f32 %v12414_v58, %v15407_v31  ;;  %v5307_v0 = vadd.f32 %v5189_v54, %v15188_v23  ;;  %11527 = vmatpush3.bf16.msra.mxu0 %v11524_v27 }
 0x595   : > { %v4968_v55 = vpop.f32.mrb[38].mxu1  ;;  %v5648_v25 = vld [vmem:[#allocation3 + $0x68] sm:$0xff]  ;;  %11529 = vmatprep.subr.bf16.mxu0 %v11528_v21 }
 0x596   : > { %5474 = vst [vmem:[#allocation3 + $0x81] sm:$0xff] %v5441_v8  ;;  %v15415_v40 = vadd.f32 %v15348_v12, %v5307_v0  ;;  %v5194_v61 = vadd.f32 %v15301_v48, %v4968_v55  ;;  %v4970_v29 = vpop.f32.mrb[39].mxu1  ;;  %5886 = vmatmul.mubr.f32.gmra.mrb[238].mxu0 %v5648_v25  ;;  %6346 = vmatmul.mubr.f32.gmra.mrb[118].mxu1 %v5648_v25 }
 0x597   : > { %5890 = vmatprep.mubr.f32.mxu0 %v5440_v41  ;;  %6350 = vmatprep.mubr.f32.mxu1 %v5440_v41 }
 0x598   : > { %16864 = vst [vmem:[#allocation62_spill] sm:$0xff] %v15415_v40  ;;  %v5442_v23 = vadd.f32 %v12415_v49, %v15415_v40  ;;  %v5308_v7 = vadd.f32 %v5194_v61, %v15183_v44  ;;  %11531 = vmatpush3.bf16.msra.mxu0 %v11528_v21 }
 0x599   : > { %v4973_v27 = vpop.f32.mrb[40].mxu1  ;;  %v5649_v4 = vld [vmem:[#allocation3 + $0x78] sm:$0xff]  ;;  %11581 = vmatprep.subr.bf16.mxu0 %v15412_v37 }
 0x59a   : > { %5475 = vst [vmem:[#allocation3 + $0x91] sm:$0xff] %v5442_v23  ;;  %v15422_v1 = vadd.f32 %v15348_v12, %v5308_v7  ;;  %v5199_v48 = vadd.f32 %v15308_v26, %v4973_v27  ;;  %v4975_v19 = vpop.f32.mrb[41].mxu1  ;;  %5891 = vmatmul.mubr.f32.gmra.mrb[240].mxu0 %v5649_v4  ;;  %6351 = vmatmul.mubr.f32.gmra.mrb[122].mxu1 %v5649_v4  ;;  %v12417_v26 = vld [vmem:[#allocation2 + $0xc2] sm:$0xff] }
 0x59b   : > { %5895 = vmatprep.mubr.f32.mxu0 %v5441_v8  ;;  %6355 = vmatprep.mubr.f32.mxu1 %v5441_v8 }
 0x59c   : > { %16865 = vst [vmem:[#allocation63_spill] sm:$0xff] %v15422_v1  ;;  %v5443_v3 = vadd.f32 %v12416_v30, %v15422_v1  ;;  %v5309_v44 = vadd.f32 %v5199_v48, %v15198_v42 }
 0x59d   : > { %v4978_v41 = vpop.f32.mrb[42].mxu1  ;;  %v5650_v62 = vld [vmem:[#allocation3 + $0x80] sm:$0xff] }
 0x59e   : > { %5476 = vst [vmem:[#allocation3 + $0x99] sm:$0xff] %v5443_v3  ;;  %v15428_v47 = vadd.f32 %v15348_v12, %v5309_v44  ;;  %v5204_v16 = vadd.f32 %v15306_v5, %v4978_v41  ;;  %v4980_v21 = vpop.f32.mrb[43].mxu1  ;;  %5896 = vmatmul.mubr.f32.gmra.mrb[242].mxu0 %v5650_v62  ;;  %6356 = vmatmul.mubr.f32.gmra.mrb[126].mxu1 %v5650_v62  ;;  %v12418_v5 = vld [vmem:[#allocation2 + $0xca] sm:$0xff] }
 0x59f   : > { %5900 = vmatprep.mubr.f32.mxu0 %v5442_v23  ;;  %6360 = vmatprep.mubr.f32.mxu1 %v5442_v23 }
 0x5a0   : > { %16866 = vst [vmem:[#allocation64_spill] sm:$0xff] %v15428_v47  ;;  %v5444_v54 = vadd.f32 %v12417_v26, %v15428_v47  ;;  %v5310_v45 = vadd.f32 %v5204_v16, %v15193_v36 }
 0x5a1   : > { %v4983_v2 = vpop.f32.mrb[44].mxu1  ;;  %v5651_v42 = vld [vmem:[#allocation3 + $0x90] sm:$0xff] }
 0x5a2   : > { %5477 = vst [vmem:[#allocation3 + $0xa9] sm:$0xff] %v5444_v54  ;;  %v15434_v13 = vadd.f32 %v15348_v12, %v5310_v45  ;;  %v5209_v58 = vadd.f32 %v15313_v51, %v4983_v2  ;;  %v4985_v8 = vpop.f32.mrb[45].mxu1  ;;  %5901 = vmatmul.mubr.f32.gmra.mrb[244].mxu0 %v5651_v42  ;;  %6361 = vmatmul.mubr.f32.gmra.mrb[130].mxu1 %v5651_v42  ;;  %v12419_v51 = vld [vmem:[#allocation2 + $0xda] sm:$0xff] }
 0x5a3   : > { %5905 = vmatprep.mubr.f32.mxu0 %v5443_v3  ;;  %6365 = vmatprep.mubr.f32.mxu1 %v5443_v3 }
 0x5a4   : > { %16867 = vst [vmem:[#allocation36_spill] sm:$0xff] %v15434_v13  ;;  %v5445_v0 = vadd.f32 %v12418_v5, %v15434_v13  ;;  %v5311_v55 = vadd.f32 %v5209_v58, %v15207_v14  ;;  %v6695_v13 = vld [vmem:[#allocation3 + $0x90] sm:$0xff] }
 0x5a5   : > { %v4988_v25 = vpop.f32.mrb[46].mxu1  ;;  %v5652_v36 = vld [vmem:[#allocation3 + $0x98] sm:$0xff] }
 0x5a6   : > { %5478 = vst [vmem:[#allocation3 + $0xb1] sm:$0xff] %v5445_v0  ;;  %v15440_v61 = vadd.f32 %v15348_v12, %v5311_v55  ;;  %v5214_v29 = vadd.f32 %v15311_v6, %v4988_v25  ;;  %v4990_v49 = vpop.f32.mrb[47].mxu1  ;;  %5906 = vmatmul.mubr.f32.gmra.mrb[246].mxu0 %v5652_v36  ;;  %6366 = vmatmul.mubr.f32.gmra.mrb[134].mxu1 %v5652_v36  ;;  %v12420_v6 = vld [vmem:[#allocation2 + $0xe2] sm:$0xff]  ;;  %v6696_v1 = vld [vmem:[#allocation3 + $0x98] sm:$0xff] }
 0x5a7   : > { %5910 = vmatprep.mubr.f32.mxu0 %v5444_v54  ;;  %6370 = vmatprep.mubr.f32.mxu1 %v5444_v54 }
 0x5a8   : > { %16868 = vst [vmem:[#allocation66_spill] sm:$0xff] %v15440_v61  ;;  %v5446_v23 = vadd.f32 %v12419_v51, %v15440_v61  ;;  %v5312_v7 = vadd.f32 %v5214_v29, %v15203_v20 }
 0x5a9   : > { %v4993_v27 = vpop.f32.mrb[48].mxu1  ;;  %v5653_v14 = vld [vmem:[#allocation3 + $0xa8] sm:$0xff] }
 0x5aa   : > { %5479 = vst [vmem:[#allocation3 + $0xc1] sm:$0xff] %v5446_v23  ;;  %v15446_v4 = vadd.f32 %v15348_v12, %v5312_v7  ;;  %v5219_v48 = vadd.f32 %v15317_v15, %v4993_v27  ;;  %v4995_v19 = vpop.f32.mrb[49].mxu1  ;;  %5911 = vmatmul.mubr.f32.gmra.mrb[248].mxu0 %v5653_v14  ;;  %6371 = vmatmul.mubr.f32.gmra.mrb[138].mxu1 %v5653_v14  ;;  %v12421_v15 = vld [vmem:[#allocation2 + $0xf2] sm:$0xff]  ;;  %v6697_v31 = vld [vmem:[#allocation3 + $0xa8] sm:$0xff] }
 0x5ab   : > { %5915 = vmatprep.mubr.f32.mxu0 %v5445_v0  ;;  %6375 = vmatprep.mubr.f32.mxu1 %v5445_v0 }
 0x5ac   : > { %16869 = vst [vmem:[#allocation37_spill] sm:$0xff] %v15446_v4  ;;  %v5447_v30 = vadd.f32 %v12420_v6, %v15446_v4  ;;  %v5313_v3 = vadd.f32 %v5219_v48, %v15216_v32  ;;  %v6694_v4 = vld [vmem:[#allocation3 + $0x80] sm:$0xff] }
 0x5ad   : > { %v4998_v44 = vpop.f32.mrb[50].mxu1  ;;  %v5654_v20 = vld [vmem:[#allocation3 + $0xb0] sm:$0xff] }
 0x5ae   : > { %5480 = vst [vmem:[#allocation3 + $0xc9] sm:$0xff] %v5447_v30  ;;  %v15452_v41 = vadd.f32 %v15348_v12, %v5313_v3  ;;  %v5224_v62 = vadd.f32 %v15315_v56, %v4998_v44  ;;  %v5000_v16 = vpop.f32.mrb[51].mxu1  ;;  %5916 = vmatmul.mubr.f32.gmra.mrb[250].mxu0 %v5654_v20  ;;  %6376 = vmatmul.mubr.f32.gmra.mrb[142].mxu1 %v5654_v20  ;;  %v12422_v56 = vld [vmem:[#allocation2 + $0xfa] sm:$0xff]  ;;  %v6698_v18 = vld [vmem:[#allocation3 + $0xb0] sm:$0xff] }
 0x5af   : > { %5920 = vmatprep.mubr.f32.mxu0 %v5446_v23  ;;  %6380 = vmatprep.mubr.f32.mxu1 %v5446_v23 }
 0x5b0   : > { %16870 = vst [vmem:[#allocation38_spill] sm:$0xff] %v15452_v41  ;;  %v5448_v21 = vadd.f32 %v12421_v15, %v15452_v41  ;;  %v5314_v26 = vadd.f32 %v5224_v62, %v15212_v33 }
 0x5b1   : > { %v5003_v54 = vpop.f32.mrb[52].mxu1  ;;  %v5655_v32 = vld [vmem:[#allocation3 + $0xc0] sm:$0xff] }
 0x5b2   : > { %5481 = vst [vmem:[#allocation3 + $0xd9] sm:$0xff] %v5448_v21  ;;  %v15458_v45 = vadd.f32 %v15348_v12, %v5314_v26  ;;  %v5229_v2 = vadd.f32 %v15321_v24, %v5003_v54  ;;  %v5005_v42 = vpop.f32.mrb[53].mxu1  ;;  %5921 = vmatmul.mubr.f32.gmra.mrb[252].mxu0 %v5655_v32  ;;  %6381 = vmatmul.mubr.f32.gmra.mrb[80].mxu1 %v5655_v32  ;;  %v12423_v24 = vld [vmem:[#allocation2 + $0x10a] sm:$0xff]  ;;  %v6699_v46 = vld [vmem:[#allocation3 + $0xc0] sm:$0xff] }
 0x5b3   : > { %5925 = vmatprep.mubr.f32.mxu0 %v5447_v30  ;;  %6385 = vmatprep.mubr.f32.mxu1 %v5447_v30 }
 0x5b4   : > { %16871 = vst [vmem:[#allocation65_spill] sm:$0xff] %v15458_v45  ;;  %v5449_v58 = vadd.f32 %v12422_v56, %v15458_v45  ;;  %v5315_v8 = vadd.f32 %v5229_v2, %v15224_v60  ;;  %v6693_v45 = vld [vmem:[#allocation3 + $0x78] sm:$0xff] }
 0x5b5   : > { %v5008_v5 = vpop.f32.mrb[54].mxu1  ;;  %v5656_v33 = vld [vmem:[#allocation3 + $0xc8] sm:$0xff] }
 0x5b6   : > { %5482 = vst [vmem:[#allocation3 + $0xe1] sm:$0xff] %v5449_v58  ;;  %v15464_v0 = vadd.f32 %v15348_v12, %v5315_v8  ;;  %v5234_v55 = vadd.f32 %v15319_v35, %v5008_v5  ;;  %v5010_v25 = vpop.f32.mrb[55].mxu1  ;;  %5926 = vmatmul.mubr.f32.gmra.mrb[254].mxu0 %v5656_v33  ;;  %6386 = vmatmul.mubr.f32.gmra.mrb[144].mxu1 %v5656_v33  ;;  %v12424_v35 = vld [vmem:[#allocation2 + $0x112] sm:$0xff]  ;;  %v6700_v22 = vld [vmem:[#allocation3 + $0xc8] sm:$0xff] }
 0x5b7   : > { %5930 = vmatprep.mubr.f32.mxu0 %v5448_v21  ;;  %6390 = vmatprep.mubr.f32.mxu1 %v5448_v21  ;;  %v16878_v33 = vld [vmem:[#allocation40_spill] sm:$0xff] }
 0x5b8   : > { %16872 = vst [vmem:[#allocation69_spill] sm:$0xff] %v15464_v0  ;;  %v5450_v36 = vadd.f32 %v12423_v24, %v15464_v0  ;;  %v5316_v29 = vadd.f32 %v5234_v55, %v15221_v17 }
 0x5b9   : > { %v5013_v49 = vpop.f32.mrb[56].mxu1  ;;  %v5657_v60 = vld [vmem:[#allocation3 + $0xd8] sm:$0xff] }
 0x5ba   : > { %5483 = vst [vmem:[#allocation3 + $0xf1] sm:$0xff] %v5450_v36  ;;  %v15470_v51 = vadd.f32 %v15348_v12, %v5316_v29  ;;  %v5239_v23 = vadd.f32 %v15325_v11, %v5013_v49  ;;  %v5015_v7 = vpop.f32.mrb[57].mxu1  ;;  %5931 = vmatmul.mubr.f32.gmra.mrb[0].mxu0 %v5657_v60  ;;  %6391 = vmatmul.mubr.f32.gmra.mrb[84].mxu1 %v5657_v60  ;;  %v12425_v11 = vld [vmem:[#allocation2 + $0x122] sm:$0xff]  ;;  %v6701_v38 = vld [vmem:[#allocation3 + $0xd8] sm:$0xff] }
 0x5bb   : > { %5935 = vmatprep.mubr.f32.mxu0 %v5449_v58  ;;  %6395 = vmatprep.mubr.f32.mxu1 %v5449_v58 }
 0x5bc   : > { %16873 = vst [vmem:[#allocation68_spill] sm:$0xff] %v15470_v51  ;;  %v5451_v27 = vadd.f32 %v12424_v35, %v15470_v51  ;;  %v5317_v14 = vadd.f32 %v5239_v23, %v15232_v53  ;;  %v16881_v23 = vld [vmem:[#allocation49_spill] sm:$0xff] }
 0x5bd   : > { %v5018_v48 = vpop.f32.mrb[58].mxu1  ;;  %v5658_v17 = vld [vmem:[#allocation3 + $0xe0] sm:$0xff]  ;;  %v6789_v51 = vld [vmem:[#allocation10 + $0x328] sm:$0xff] }
 0x5be   : > { %5484 = vst [vmem:[#allocation3 + $0xf9] sm:$0xff] %v5451_v27  ;;  %v15476_v19 = vadd.f32 %v15348_v12, %v5317_v14  ;;  %v5244_v6 = vadd.f32 %v15323_v10, %v5018_v48  ;;  %v5020_v30 = vpop.f32.mrb[59].mxu1  ;;  %5936 = vmatmul.mubr.f32.gmra.mrb[2].mxu0 %v5658_v17  ;;  %6396 = vmatmul.mubr.f32.gmra.mrb[146].mxu1 %v5658_v17  ;;  %v12426_v10 = vld [vmem:[#allocation2 + $0x12a] sm:$0xff] }
 0x5bf   : > { %5940 = vmatprep.mubr.f32.mxu0 %v5450_v36  ;;  %6400 = vmatprep.mubr.f32.mxu1 %v5450_v36  ;;  %v16879_v36 = vld [vmem:[#allocation46_spill] sm:$0xff]  ;;  %v16882_v48 = vld [vmem:[#allocation44_spill] sm:$0xff] }
 0x5c0   : > { %16874 = vst [vmem:[#allocation39_spill] sm:$0xff] %v15476_v19  ;;  %v5452_v3 = vadd.f32 %v12425_v11, %v15476_v19  ;;  %v5318_v44 = vadd.f32 %v5244_v6, %v15229_v28  ;;  %v6788_v19 = vld [vmem:[#allocation10 + $0x320] sm:$0xff] }
 0x5c1   : > { %v5023_v20 = vpop.f32.mrb[60].mxu1  ;;  %v5659_v53 = vld [vmem:[#allocation3 + $0xf0] sm:$0xff] }
 0x5c2   : > { %5485 = vst [vmem:[#allocation3 + $0x109] sm:$0xff] %v5452_v3  ;;  %v15482_v62 = vadd.f32 %v15348_v12, %v5318_v44  ;;  %v5249_v16 = vadd.f32 %v15329_v43, %v5023_v20  ;;  %v5025_v15 = vpop.f32.mrb[61].mxu1  ;;  %5941 = vmatmul.mubr.f32.gmra.mrb[4].mxu0 %v5659_v53  ;;  %6401 = vmatmul.mubr.f32.gmra.mrb[88].mxu1 %v5659_v53  ;;  %v12427_v43 = vld [vmem:[#allocation2 + $0x13a] sm:$0xff] }
 0x5c3   : > { %5945 = vmatprep.mubr.f32.mxu0 %v5451_v27  ;;  %6405 = vmatprep.mubr.f32.mxu1 %v5451_v27  ;;  %v12429_v27 = vld [vmem:[#allocation2 + $0x152] sm:$0xff]  ;;  %v12430_v53 = vld [vmem:[#allocation2 + $0x15a] sm:$0xff] }
 0x5c4   : > { %16875 = vst [vmem:[#allocation67_spill] sm:$0xff] %v15482_v62  ;;  %v5453_v21 = vadd.f32 %v12426_v10, %v15482_v62  ;;  %v5319_v26 = vadd.f32 %v5249_v16, %v15240_v59  ;;  %v16885_v15 = vld [vmem:[#allocation80_spill] sm:$0xff] }
 0x5c5   : > { %v5028_v54 = vpop.f32.mrb[62].mxu1  ;;  %v5660_v28 = vld [vmem:[#allocation3 + $0xf8] sm:$0xff] }
 0x5c6   : > { %5486 = vst [vmem:[#allocation3 + $0x111] sm:$0xff] %v5453_v21  ;;  %v15488_v32 = vadd.f32 %v15348_v12, %v5319_v26  ;;  %v5254_v2 = vadd.f32 %v15327_v52, %v5028_v54  ;;  %v5030_v42 = vpop.f32.mrb[63].mxu1  ;;  %5946 = vmatmul.mubr.f32.gmra.mrb[6].mxu0 %v5660_v28  ;;  %6406 = vmatmul.mubr.f32.gmra.mrb[148].mxu1 %v5660_v28  ;;  %v12428_v52 = vld [vmem:[#allocation2 + $0x142] sm:$0xff] }
 0x5c7   : > { %5950 = vmatprep.mubr.f32.mxu0 %v5452_v3  ;;  %6410 = vmatprep.mubr.f32.mxu1 %v5452_v3  ;;  %v16884_v3 = vld [vmem:[#allocation52_spill] sm:$0xff]  ;;  %v16887_v28 = vld [vmem:[#allocation51_spill] sm:$0xff] }
 0x5c8   : > { %16876 = vst [vmem:[#allocation72_spill] sm:$0xff] %v15488_v32  ;;  %v5454_v56 = vadd.f32 %v12427_v43, %v15488_v32  ;;  %v5320_v58 = vadd.f32 %v5254_v2, %v15237_v50  ;;  %v12431_v43 = vld [vmem:[#allocation2 + $0x16a] sm:$0xff] }
 0x5c9   : > { %v5033_v8 = vpop.f32.mrb[64].mxu1  ;;  %v5661_v59 = vld [vmem:[#allocation3 + $0x108] sm:$0xff] }
 0x5ca   : > { %5487 = vst [vmem:[#allocation3 + $0x121] sm:$0xff] %v5454_v56  ;;  %v15494_v5 = vadd.f32 %v15348_v12, %v5320_v58  ;;  %v5259_v55 = vadd.f32 %v16878_v33, %v5033_v8  ;;  %v5035_v25 = vpop.f32.mrb[65].mxu1  ;;  %5951 = vmatmul.mubr.f32.gmra.mrb[8].mxu0 %v5661_v59  ;;  %6411 = vmatmul.mubr.f32.gmra.mrb[92].mxu1 %v5661_v59  ;;  %v16888_v58 = vld [vmem:[#allocation47_spill] sm:$0xff] }
 0x5cb   : > { %5955 = vmatprep.mubr.f32.mxu0 %v5453_v21  ;;  %6415 = vmatprep.mubr.f32.mxu1 %v5453_v21  ;;  %v16890_v25 = vld [vmem:[#allocation42_spill] sm:$0xff]  ;;  %v6787_v32 = vld [vmem:[#allocation10 + $0x318] sm:$0xff] }
 0x5cc   : > { %16877 = vst [vmem:[#allocation71_spill] sm:$0xff] %v15494_v5  ;;  %v5455_v24 = vadd.f32 %v12428_v52, %v15494_v5  ;;  %v5321_v29 = vadd.f32 %v5259_v55, %v16879_v36  ;;  %v12432_v36 = vld [vmem:[#allocation2 + $0x172] sm:$0xff]  ;;  %v6786_v5 = vld [vmem:[#allocation10 + $0x310] sm:$0xff] }
 0x5cd   : > { %v5038_v49 = vpop.f32.mrb[66].mxu1  ;;  %v5662_v50 = vld [vmem:[#allocation3 + $0x110] sm:$0xff]  ;;  %v11616_v62 = vpack.c.bf16 %v6787_v32, %v6786_v5 }
 0x5ce   : > { %5488 = vst [vmem:[#allocation3 + $0x129] sm:$0xff] %v5455_v24  ;;  %v15500_v60 = vadd.f32 %v15348_v12, %v5321_v29  ;;  %v5264_v7 = vadd.f32 %v16881_v23, %v5038_v49  ;;  %v5040_v35 = vpop.f32.mrb[67].mxu1  ;;  %5956 = vmatmul.mubr.f32.gmra.mrb[10].mxu0 %v5662_v50  ;;  %6416 = vmatmul.mubr.f32.gmra.mrb[150].mxu1 %v5662_v50  ;;  %v16891_v49 = vld [vmem:[#allocation79_spill] sm:$0xff]  ;;  %v6792_v5 = vld [vmem:[#allocation10 + $0x340] sm:$0xff] }
 0x5cf   : > { %5960 = vmatprep.mubr.f32.mxu0 %v5454_v56  ;;  %6420 = vmatprep.mubr.f32.mxu1 %v5454_v56 }
 0x5d0   : > { %16880 = vst [vmem:[#allocation33_spill] sm:$0xff] %v15500_v60  ;;  %v5456_v14 = vadd.f32 %v12429_v27, %v15500_v60  ;;  %v5322_v17 = vadd.f32 %v5264_v7, %v16882_v48  ;;  %v16893_v27 = vld [vmem:[#allocation50_spill] sm:$0xff] }
 0x5d1   : > { %v5043_v6 = vpop.f32.mrb[68].mxu1  ;;  %v5663_v30 = vld [vmem:[#allocation3 + $0x120] sm:$0xff] }
 0x5d2   : > { %5489 = vst [vmem:[#allocation3 + $0x139] sm:$0xff] %v5456_v14  ;;  %v15506_v11 = vadd.f32 %v15348_v12, %v5322_v17  ;;  %v5269_v44 = vadd.f32 %v16884_v3, %v5043_v6  ;;  %v5045_v20 = vpop.f32.mrb[69].mxu1  ;;  %5961 = vmatmul.mubr.f32.gmra.mrb[12].mxu0 %v5663_v30  ;;  %6421 = vmatmul.mubr.f32.gmra.mrb[96].mxu1 %v5663_v30  ;;  %v12433_v17 = vld [vmem:[#allocation2 + $0x182] sm:$0xff]  ;;  %v16894_v30 = vld [vmem:[#allocation81_spill] sm:$0xff] }
 0x5d3   : > { %5965 = vmatprep.mubr.f32.mxu0 %v5455_v24  ;;  %6425 = vmatprep.mubr.f32.mxu1 %v5455_v24 }
 0x5d4   : > { %16883 = vst [vmem:[#allocation70_spill] sm:$0xff] %v15506_v11  ;;  %v5457_v16 = vadd.f32 %v12430_v53, %v15506_v11  ;;  %v5323_v10 = vadd.f32 %v5269_v44, %v16885_v15  ;;  %v5562_v11 = vld [vmem:[#allocation3 + $0xa] sm:$0xff] }
 0x5d5   : > { %v5048_v21 = vpop.f32.mrb[70].mxu1  ;;  %v5664_v26 = vld [vmem:[#allocation3 + $0x128] sm:$0xff] }
 0x5d6   : > { %5490 = vst [vmem:[#allocation3 + $0x141] sm:$0xff] %v5457_v16  ;;  %v15512_v54 = vadd.f32 %v15348_v12, %v5323_v10  ;;  %v5274_v2 = vadd.f32 %v16887_v28, %v5048_v21  ;;  %v5050_v42 = vpop.f32.mrb[71].mxu1  ;;  %5966 = vmatmul.mubr.f32.gmra.mrb[16].mxu0 %v5664_v26  ;;  %6426 = vmatmul.mubr.f32.gmra.mrb[152].mxu1 %v5664_v26  ;;  %v12434_v21 = vld [vmem:[#allocation2 + $0x18a] sm:$0xff] }
 0x5d7   : > { %5970 = vmatprep.mubr.f32.mxu0 %v5456_v14  ;;  %6430 = vmatprep.mubr.f32.mxu1 %v5456_v14  ;;  %v16897_v28 = vld [vmem:[#allocation48_spill] sm:$0xff] }
 0x5d8   : > { %16886 = vst [vmem:[#allocation73_spill] sm:$0xff] %v15512_v54  ;;  %v5458_v56 = vadd.f32 %v12431_v43, %v15512_v54  ;;  %v5324_v8 = vadd.f32 %v5274_v2, %v16888_v58  ;;  %v16899_v58 = vld [vmem:[#allocation54_spill] sm:$0xff]  ;;  %v6785_v54 = vld [vmem:[#allocation10 + $0x308] sm:$0xff] }
 0x5d9   : > { %v5053_v59 = vpop.f32.mrb[72].mxu1  ;;  %v5665_v33 = vld [vmem:[#allocation3 + $0x138] sm:$0xff] }
 0x5da   : > { %5491 = vst [vmem:[#allocation3 + $0x151] sm:$0xff] %v5458_v56  ;;  %v15518_v55 = vadd.f32 %v15348_v12, %v5324_v8  ;;  %v5279_v52 = vadd.f32 %v16890_v25, %v5053_v59  ;;  %v5055_v24 = vpop.f32.mrb[73].mxu1  ;;  %5971 = vmatmul.mubr.f32.gmra.mrb[14].mxu0 %v5665_v33  ;;  %6431 = vmatmul.mubr.f32.gmra.mrb[100].mxu1 %v5665_v33  ;;  %v12435_v33 = vld [vmem:[#allocation2 + $0x19a] sm:$0xff] }
 0x5db   : > { %5975 = vmatprep.mubr.f32.mxu0 %v5457_v16  ;;  %6435 = vmatprep.mubr.f32.mxu1 %v5457_v16  ;;  %v16896_v16 = vld [vmem:[#allocation55_spill] sm:$0xff] }
 0x5dc   : > { %16889 = vst [vmem:[#allocation74_spill] sm:$0xff] %v15518_v55  ;;  %v5459_v29 = vadd.f32 %v12432_v36, %v15518_v55  ;;  %v5325_v50 = vadd.f32 %v5279_v52, %v16891_v49  ;;  %v16900_v52 = vld [vmem:[#allocation82_spill] sm:$0xff]  ;;  %v6784_v55 = vld [vmem:[#allocation10 + $0x300] sm:$0xff] }
 0x5dd   : > { %v5058_v23 = vpop.f32.mrb[74].mxu1  ;;  %v5666_v7 = vld [vmem:[#allocation3 + $0x140] sm:$0xff]  ;;  %v11613_v60 = vpack.c.bf16 %v6785_v54, %v6784_v55  ;;  %v6791_v55 = vld [vmem:[#allocation10 + $0x338] sm:$0xff] }
 0x5de   : > { %5492 = vst [vmem:[#allocation3 + $0x159] sm:$0xff] %v5459_v29  ;;  %v15524_v35 = vadd.f32 %v15348_v12, %v5325_v50  ;;  %v5284_v14 = vadd.f32 %v16893_v27, %v5058_v23  ;;  %v5060_v48 = vpop.f32.mrb[75].mxu1  ;;  %5976 = vmatmul.mubr.f32.gmra.mrb[18].mxu0 %v5666_v7  ;;  %6436 = vmatmul.mubr.f32.gmra.mrb[154].mxu1 %v5666_v7  ;;  %v12436_v23 = vld [vmem:[#allocation2 + $0x1a2] sm:$0xff] }
 0x5df   : > { %5980 = vmatprep.mubr.f32.mxu0 %v5458_v56  ;;  %6440 = vmatprep.mubr.f32.mxu1 %v5458_v56  ;;  %v15549_v48 = vld [vmem:[#allocation3 + $0x32] sm:$0xff]  ;;  %v6790_v54 = vld [vmem:[#allocation10 + $0x330] sm:$0xff] }
 0x5e0   : > { %16892 = vst [vmem:[#allocation76_spill] sm:$0xff] %v15524_v35  ;;  %v5460_v6 = vadd.f32 %v12433_v17, %v15524_v35  ;;  %v5326_v3 = vadd.f32 %v5284_v14, %v16894_v30  ;;  %v15555_v30 = vld [vmem:[#allocation3 + $0x4a] sm:$0xff]  ;;  %v5561_v35 = vld [vmem:[#allocation3 + $0x2] sm:$0xff]  ;;  %v11622_v32 = vpack.c.bf16 %v6791_v55, %v6790_v54  ;;  %v6801_v55 = vld [vmem:[#allocation10 + $0x388] sm:$0xff] }
 0x5e1   : > { %v5063_v44 = vpop.f32.mrb[76].mxu1  ;;  %v5667_v20 = vld [vmem:[#allocation3 + $0x150] sm:$0xff] }
 0x5e2   : > { %5493 = vst [vmem:[#allocation3 + $0x169] sm:$0xff] %v5460_v6  ;;  %v15530_v53 = vadd.f32 %v15348_v12, %v5326_v3  ;;  %v5289_v15 = vadd.f32 %v16896_v16, %v5063_v44  ;;  %v5065_v10 = vpop.f32.mrb[77].mxu1  ;;  %5981 = vmatmul.mubr.f32.gmra.mrb[20].mxu0 %v5667_v20  ;;  %6441 = vmatmul.mubr.f32.gmra.mrb[104].mxu1 %v5667_v20  ;;  %v5627_v3 = vld [vmem:[#allocation10 + $0x110] sm:$0xff]  ;;  %v15558_v20 = vld [vmem:[#allocation3 + $0x52] sm:$0xff]  ;;  %v5628_v16 = vld [vmem:[#allocation10 + $0x118] sm:$0xff] }
 0x5e3   : > { %5985 = vmatprep.mubr.f32.mxu0 %v5459_v29  ;;  %6445 = vmatprep.mubr.f32.mxu1 %v5459_v29  ;;  %v15563_v10 = vld [vmem:[#allocation3 + $0x62] sm:$0xff] }
 0x5e4   : > { %16895 = vst [vmem:[#allocation41_spill] sm:$0xff] %v15530_v53  ;;  %v5461_v26 = vadd.f32 %v12434_v21, %v15530_v53  ;;  %v5327_v2 = vadd.f32 %v5289_v15, %v16897_v28  ;;  %v15561_v15 = vld [vmem:[#allocation3 + $0x1a] sm:$0xff]  ;;  %v11584_v21 = vpack.c.bf16 %v5628_v16, %v5627_v3  ;;  %v15569_v28 = vld [vmem:[#allocation3 + $0x6a] sm:$0xff] }
 0x5e5   : > { %v5068_v42 = vpop.f32.mrb[78].mxu1  ;;  %v5668_v43 = vld [vmem:[#allocation3 + $0x158] sm:$0xff]  ;;  %v15602_v3 = vld [vmem:[#allocation3 + $0xca] sm:$0xff] }
 0x5e6   : > { %5494 = vst [vmem:[#allocation3 + $0x171] sm:$0xff] %v5461_v26  ;;  %v15536_v56 = vadd.f32 %v15348_v12, %v5327_v2  ;;  %v5294_v8 = vadd.f32 %v16899_v58, %v5068_v42  ;;  %v5070_v59 = vpop.f32.mrb[79].mxu1  ;;  %5986 = vmatmul.mubr.f32.gmra.mrb[22].mxu0 %v5668_v43  ;;  %6446 = vmatmul.mubr.f32.gmra.mrb[156].mxu1 %v5668_v43  ;;  %v5629_v2 = vld [vmem:[#allocation10 + $0x120] sm:$0xff]  ;;  %v5630_v42 = vld [vmem:[#allocation10 + $0x128] sm:$0xff]  ;;  %v15578_v58 = vld [vmem:[#allocation3 + $0x82] sm:$0xff] }
 0x5e7   : > { %5990 = vmatprep.mubr.f32.mxu0 %v5460_v6  ;;  %6450 = vmatprep.mubr.f32.mxu1 %v5460_v6  ;;  %v15552_v6 = vld [vmem:[#allocation3 + $0x3a] sm:$0xff]  ;;  %v15582_v59 = vld [vmem:[#allocation3 + $0x92] sm:$0xff] }
 0x5e8   : > { %16898 = vst [vmem:[#allocation43_spill] sm:$0xff] %v15536_v56  ;;  %v5462_v25 = vadd.f32 %v12435_v33, %v15536_v56  ;;  %v5328_v24 = vadd.f32 %v5294_v8, %v16900_v52  ;;  %v15575_v43 = vld [vmem:[#allocation3 + $0x7a] sm:$0xff]  ;;  %v11588_v8 = vpack.c.bf16 %v5630_v42, %v5629_v2  ;;  %v15610_v42 = vld [vmem:[#allocation3 + $0xe2] sm:$0xff] }
 0x5e9   : > { %v5669_v36 = vld [vmem:[#allocation3 + $0x168] sm:$0xff]  ;;  %v15541_v29 = vpop.f32.mrb[82].mxu1  ;;  %v5631_v33 = vld [vmem:[#allocation10 + $0x130] sm:$0xff]  ;;  %v5638_v2 = vld [vmem:[#allocation10 + $0x168] sm:$0xff] }
 0x5ea   : > { %5495 = vst [vmem:[#allocation3 + $0x181] sm:$0xff] %v5462_v25  ;;  %v15544_v49 = vadd.f32 %v15348_v12, %v5328_v24  ;;  %5991 = vmatmul.mubr.f32.gmra.mrb[24].mxu0 %v5669_v36  ;;  %6451 = vmatmul.mubr.f32.gmra.mrb[108].mxu1 %v5669_v36  ;;  %v6304_v50 = vpop.f32.mrb[83].mxu1  ;;  %v15590_v24 = vld [vmem:[#allocation3 + $0xaa] sm:$0xff]  ;;  %v15606_v16 = vld [vmem:[#allocation3 + $0xda] sm:$0xff] }
 0x5eb   : > { %5995 = vmatprep.mubr.f32.mxu0 %v5461_v26  ;;  %6455 = vmatprep.mubr.f32.mxu1 %v5461_v26  ;;  %v15567_v26 = vld [vmem:[#allocation3 + $0x22] sm:$0xff]  ;;  %v5633_v36 = vld [vmem:[#allocation10 + $0x140] sm:$0xff]  ;;  %v5634_v50 = vld [vmem:[#allocation10 + $0x148] sm:$0xff] }
 0x5ec   : > { %16901 = vst [vmem:[#allocation75_spill] sm:$0xff] %v15544_v49  ;;  %v5463_v7 = vadd.f32 %v12436_v23, %v15544_v49  ;;  %v15594_v23 = vld [vmem:[#allocation3 + $0xb2] sm:$0xff] }
 0x5ed   : > { %v5670_v27 = vld [vmem:[#allocation3 + $0x170] sm:$0xff]  ;;  %v15547_v14 = vpop.f32.mrb[86].mxu1 }
 0x5ee   : > { %5496 = vst [vmem:[#allocation3 + $0x189] sm:$0xff] %v5463_v7  ;;  %5996 = vmatmul.mubr.f32.gmra.mrb[26].mxu0 %v5670_v27  ;;  %6456 = vmatmul.mubr.f32.gmra.mrb[158].mxu1 %v5670_v27  ;;  %v6309_v17 = vpop.f32.mrb[87].mxu1  ;;  %v15598_v27 = vld [vmem:[#allocation3 + $0xc2] sm:$0xff]  ;;  %v15659_v49 = vld [vmem:[#allocation3 + $0x172] sm:$0xff] }
 0x5ef   : > { %10364 = vmatprep.mubr.f32.mxu1 %v15549_v48  ;;  %6000 = vmatprep.mubr.f32.mxu0 %v5462_v25  ;;  %v5632_v25 = vld [vmem:[#allocation10 + $0x138] sm:$0xff]  ;;  %v5635_v17 = vld [vmem:[#allocation10 + $0x150] sm:$0xff] }
 0x5f0   : > { %v11592_v52 = vpack.c.bf16 %v5632_v25, %v5631_v33  ;;  %v15614_v33 = vld [vmem:[#allocation3 + $0xf2] sm:$0xff]  ;;  %v5639_v25 = vld [vmem:[#allocation10 + $0x170] sm:$0xff] }
 0x5f1   : > { %v5671_v12 = vld [vmem:[#allocation3 + $0x180] sm:$0xff] }
 0x5f2   : > { %6001 = vmatmul.mubr.f32.gmra.mrb[28].mxu0 %v5671_v12  ;;  %10365 = vmatmul.mubr.f32.vlgmr.msra.gmra.mrb[112].mxu1 %v15552_v6  ;;  %v5636_v12 = vld [vmem:[#allocation10 + $0x158] sm:$0xff] }
 0x5f3   : > { %10367 = vmatprep.mubr.f32.mxu1 %v15555_v30  ;;  %6005 = vmatprep.mubr.f32.mxu0 %v5463_v7  ;;  %v11596_v7 = vpack.c.bf16 %v5634_v50, %v5633_v36  ;;  %v15618_v36 = vld [vmem:[#allocation3 + $0xfa] sm:$0xff] }
 0x5f5   : > { %v5672_v44 = vld [vmem:[#allocation3 + $0x188] sm:$0xff] }
 0x5f6   : > { %6006 = vmatmul.mubr.f32.gmra.mrb[30].mxu0 %v5672_v44  ;;  %10368 = vmatmul.mubr.f32.gmra.mrb[160].mxu1 %v15558_v20  ;;  %v11600_v44 = vpack.c.bf16 %v5636_v12, %v5635_v17  ;;  %v15626_v17 = vld [vmem:[#allocation3 + $0x112] sm:$0xff]  ;;  %v15630_v12 = vld [vmem:[#allocation3 + $0x122] sm:$0xff]  ;;  %v6780_v53 = vld [vmem:[#allocation3 + $0x18a] sm:$0xff] }
 0x5f7   : > { %10204 = vmatprep.mubr.f32.mxu0 %v15561_v15  ;;  %10370 = vmatprep.mubr.f32.mxu1 %v15563_v10  ;;  %v6779_v56 = vld [vmem:[#allocation3 + $0x182] sm:$0xff] }
 0x5fa   : > { %10205 = vmatmul.mubr.f32.vlgmr.msra.gmra.mrb[32].mxu0 %v15567_v26  ;;  %10371 = vmatmul.mubr.f32.gmra.mrb[116].mxu1 %v15569_v28 }
 0x5fb   : > { %10207 = vmatprep.mubr.f32.mxu0 %v15549_v48  ;;  %11583 = vmatpush3.bf16.msra.mxu0 %v15412_v37  ;;  %v15586_v37 = vld [vmem:[#allocation3 + $0x9a] sm:$0xff] }
 0x5fc   : > { %10373 = vmatprep.mubr.f32.mxu1 %v15575_v43  ;;  %11585 = vmatprep.subr.bf16.mxu0 %v11584_v21 }
 0x5fe   : > { %10208 = vmatmul.mubr.f32.gmra.mrb[34].mxu0 %v15552_v6  ;;  %10374 = vmatmul.mubr.f32.gmra.mrb[162].mxu1 %v15578_v58 }
 0x5ff   : > { %10210 = vmatprep.mubr.f32.mxu0 %v15555_v30  ;;  %10376 = vmatprep.mubr.f32.mxu1 %v15582_v59 }
 0x600   : > { %11587 = vmatpush3.bf16.msra.mxu0 %v11584_v21  ;;  %v5637_v21 = vld [vmem:[#allocation10 + $0x160] sm:$0xff] }
 0x601   : > { %11589 = vmatprep.subr.bf16.mxu0 %v11588_v8 }
 0x602   : > { %10211 = vmatmul.mubr.f32.gmra.mrb[36].mxu0 %v15558_v20  ;;  %10377 = vmatmul.mubr.f32.gmra.mrb[120].mxu1 %v15586_v37 }
 0x603   : > { %10213 = vmatprep.mubr.f32.mxu0 %v15563_v10  ;;  %10379 = vmatprep.mubr.f32.mxu1 %v15590_v24 }
 0x604   : > { %11591 = vmatpush3.bf16.msra.mxu0 %v11588_v8  ;;  %v11604_v8 = vpack.c.bf16 %v5638_v2, %v5637_v21  ;;  %v16902_v21 = vmov 0.0|0.0   ;;  %v15639_v2 = vld [vmem:[#allocation3 + $0x13a] sm:$0xff] }
 0x605   : > { %11593 = vmatprep.subr.bf16.mxu0 %v11592_v52 }
 0x606   : > { %10214 = vmatmul.mubr.f32.gmra.mrb[38].mxu0 %v15569_v28  ;;  %10380 = vmatmul.mubr.f32.gmra.mrb[164].mxu1 %v15594_v23 }
 0x607   : > { %10216 = vmatprep.mubr.f32.mxu0 %v15575_v43  ;;  %10382 = vmatprep.mubr.f32.mxu1 %v15598_v27 }
 0x608   : > { %11595 = vmatpush3.bf16.msra.mxu0 %v11592_v52  ;;  %v5640_v52 = vld [vmem:[#allocation10 + $0x178] sm:$0xff] }
 0x609   : > { %11597 = vmatprep.subr.bf16.mxu0 %v11596_v7  ;;  %v11608_v50 = vpack.c.bf16 %v5640_v52, %v5639_v25  ;;  %v15647_v25 = vld [vmem:[#allocation3 + $0x152] sm:$0xff]  ;;  %v15651_v52 = vld [vmem:[#allocation3 + $0x15a] sm:$0xff] }
 0x60a   : > { %10217 = vmatmul.mubr.f32.gmra.mrb[40].mxu0 %v15578_v58  ;;  %10383 = vmatmul.mubr.f32.gmra.mrb[124].mxu1 %v15602_v3 }
 0x60b   : > { %10219 = vmatprep.mubr.f32.mxu0 %v15582_v59  ;;  %10385 = vmatprep.mubr.f32.mxu1 %v15606_v16 }
 0x60c   : > { %11599 = vmatpush3.bf16.msra.mxu0 %v11596_v7  ;;  %v15622_v7 = vld [vmem:[#allocation3 + $0x10a] sm:$0xff] }
 0x60d   : > { %11601 = vmatprep.subr.bf16.mxu0 %v11600_v44 }
 0x60e   : > { %10220 = vmatmul.mubr.f32.gmra.mrb[42].mxu0 %v15586_v37  ;;  %10386 = vmatmul.mubr.f32.gmra.mrb[166].mxu1 %v15610_v42 }
 0x60f   : > { %10222 = vmatprep.mubr.f32.mxu0 %v15590_v24  ;;  %10388 = vmatprep.mubr.f32.mxu1 %v15614_v33 }
 0x610   : > { %11603 = vmatpush3.bf16.msra.mxu0 %v11600_v44  ;;  %v15634_v44 = vld [vmem:[#allocation3 + $0x12a] sm:$0xff] }
 0x611   : > { %11605 = vmatprep.subr.bf16.mxu0 %v11604_v8 }
 0x612   : > { %10223 = vmatmul.mubr.f32.gmra.mrb[44].mxu0 %v15594_v23  ;;  %10389 = vmatmul.mubr.f32.gmra.mrb[128].mxu1 %v15618_v36 }
 0x613   : > { %10225 = vmatprep.mubr.f32.mxu0 %v15598_v27  ;;  %10391 = vmatprep.mubr.f32.mxu1 %v15622_v7 }
 0x614   : > { %11607 = vmatpush3.bf16.msra.mxu0 %v11604_v8  ;;  %v15643_v8 = vld [vmem:[#allocation3 + $0x142] sm:$0xff] }
 0x615   : > { %11609 = vmatprep.subr.bf16.mxu0 %v11608_v50 }
 0x616   : > { %10226 = vmatmul.mubr.f32.gmra.mrb[46].mxu0 %v15602_v3  ;;  %10392 = vmatmul.mubr.f32.gmra.mrb[168].mxu1 %v15626_v17 }
 0x617   : > { %10228 = vmatprep.mubr.f32.mxu0 %v15606_v16  ;;  %10394 = vmatprep.mubr.f32.mxu1 %v15630_v12 }
 0x618   : > { %11611 = vmatpush3.bf16.msra.mxu0 %v11608_v50  ;;  %v15655_v50 = vld [vmem:[#allocation3 + $0x16a] sm:$0xff] }
 0x619   : > { %11612 = vmatprep.subr.bf16.mxu0 %v16902_v21 }
 0x61a   : > { %10229 = vmatmul.mubr.f32.gmra.mrb[48].mxu0 %v15610_v42  ;;  %10395 = vmatmul.mubr.f32.gmra.mrb[132].mxu1 %v15634_v44 }
 0x61b   : > { %10231 = vmatprep.mubr.f32.mxu0 %v15614_v33  ;;  %10397 = vmatprep.mubr.f32.mxu1 %v15639_v2 }
 0x61e   : > { %10232 = vmatmul.mubr.f32.gmra.mrb[50].mxu0 %v15618_v36  ;;  %10398 = vmatmul.mubr.f32.gmra.mrb[170].mxu1 %v15643_v8 }
 0x61f   : > { %10234 = vmatprep.mubr.f32.mxu0 %v15622_v7  ;;  %10400 = vmatprep.mubr.f32.mxu1 %v15647_v25 }
 0x622   : > { %10235 = vmatmul.mubr.f32.gmra.mrb[52].mxu0 %v15626_v17  ;;  %10401 = vmatmul.mubr.f32.gmra.mrb[136].mxu1 %v15651_v52 }
 0x623   : > { %10237 = vmatprep.mubr.f32.mxu0 %v15630_v12  ;;  %10403 = vmatprep.mubr.f32.mxu1 %v15655_v50 }
 0x626   : > { %10238 = vmatmul.mubr.f32.gmra.mrb[54].mxu0 %v15634_v44  ;;  %10404 = vmatmul.mubr.f32.gmra.mrb[172].mxu1 %v15659_v49 }
 0x627   : > { %10240 = vmatprep.mubr.f32.mxu0 %v15639_v2  ;;  %10406 = vmatprep.mubr.f32.mxu1 %v6779_v56 }
 0x62a   : > { %10241 = vmatmul.mubr.f32.gmra.mrb[56].mxu0 %v15643_v8  ;;  %10407 = vmatmul.mubr.f32.gmra.mrb[140].mxu1 %v6780_v53 }
 0x62b   : > { %10243 = vmatprep.mubr.f32.mxu0 %v15647_v25 }
 0x62e   : > { %10244 = vmatmul.mubr.f32.gmra.mrb[58].mxu0 %v15651_v52 }
 0x62f   : > { %10246 = vmatprep.mubr.f32.mxu0 %v15655_v50 }
 0x632   : > { %10247 = vmatmul.mubr.f32.gmra.mrb[60].mxu0 %v15659_v49 }
 0x633   : > { %10249 = vmatprep.mubr.f32.mxu0 %v6779_v56  ;;  %v6797_v56 = vld [vmem:[#allocation10 + $0x368] sm:$0xff] }
 0x636   : > { %10250 = vmatmul.mubr.f32.gmra.mrb[62].mxu0 %v6780_v53  ;;  %v11619_v53 = vpack.c.bf16 %v6789_v51, %v6788_v19  ;;  %v6794_v19 = vld [vmem:[#allocation10 + $0x350] sm:$0xff] }
 0x637   : > { %10284 = vmatprep.mubr.f32.mxu0 %v5561_v35  ;;  %v6796_v35 = vld [vmem:[#allocation10 + $0x360] sm:$0xff] }
 0x63a   : > { %10285 = vmatmul.mubr.f32.vlgmr.msra.gmra.mrb[64].mxu0 %v5562_v11 }
 0x63b   : > { %10287 = vmatprep.mubr.f32.mxu0 %v15561_v15  ;;  %11614 = vmatpush1.bf16.msra.mxu0 %v11613_v60  ;;  %v6793_v60 = vld [vmem:[#allocation10 + $0x348] sm:$0xff]  ;;  %v11631_v15 = vpack.c.bf16 %v6797_v56, %v6796_v35 }
 0x63c   : > { %11615 = vmatprep.subr.bf16.mxu0 %v16902_v21  ;;  %v11625_v51 = vpack.c.bf16 %v6793_v60, %v6792_v5 }
 0x63e   : > { %10288 = vmatmul.mubr.f32.gmra.mrb[66].mxu0 %v15567_v26  ;;  %v6799_v26 = vld [vmem:[#allocation10 + $0x378] sm:$0xff] }
 0x63f   : > { %10290 = vmatprep.mubr.f32.mxu0 %v15549_v48  ;;  %11617 = vmatpush1.bf16.msra.mxu0 %v11616_v62  ;;  %v6795_v62 = vld [vmem:[#allocation10 + $0x358] sm:$0xff] }
 0x640   : > { %11618 = vmatprep.subr.bf16.mxu0 %v16902_v21  ;;  %v11628_v11 = vpack.c.bf16 %v6795_v62, %v6794_v19  ;;  %v6803_v19 = vld [vmem:[#allocation10 + $0x398] sm:$0xff] }
 0x642   : > { %10291 = vmatmul.mubr.f32.gmra.mrb[68].mxu0 %v15552_v6 }
 0x643   : > { %10293 = vmatprep.mubr.f32.mxu0 %v15555_v30  ;;  %11620 = vmatpush1.bf16.msra.mxu0 %v11619_v53 }
 0x644   : > { %11621 = vmatprep.subr.bf16.mxu0 %v16902_v21 }
 0x646   : > { %10294 = vmatmul.mubr.f32.gmra.mrb[70].mxu0 %v15558_v20 }
 0x647   : > { %10296 = vmatprep.mubr.f32.mxu0 %v15563_v10  ;;  %11623 = vmatpush1.bf16.msra.mxu0 %v11622_v32  ;;  %v6798_v10 = vld [vmem:[#allocation10 + $0x370] sm:$0xff] }
 0x648   : > { %11624 = vmatprep.subr.bf16.mxu0 %v16902_v21 }
 0x64a   : > { %10297 = vmatmul.mubr.f32.gmra.mrb[72].mxu0 %v15569_v28 }
 0x64b   : > { %10299 = vmatprep.mubr.f32.mxu0 %v15575_v43  ;;  %11626 = vmatpush1.bf16.msra.mxu0 %v11625_v51 }
 0x64c   : > { %11627 = vmatprep.subr.bf16.mxu0 %v16902_v21 }
 0x64d   : > { %v15683_v48 = vpop.f32.mrb[224].mxu0  ;;  %v15685_v6 = vpop.f32.mrb[90].mxu1 }
 0x64e   : > { %v5854_v30 = vpop.f32.mrb[225].mxu0  ;;  %v6314_v20 = vpop.f32.mrb[91].mxu1  ;;  %10300 = vmatmul.mubr.f32.gmra.mrb[74].mxu0 %v15578_v58  ;;  %v11634_v58 = vpack.c.bf16 %v6799_v26, %v6798_v10 }
 0x64f   : > { %10302 = vmatprep.mubr.f32.mxu0 %v15582_v59  ;;  %11629 = vmatpush1.bf16.msra.mxu0 %v11628_v11  ;;  %v6800_v59 = vld [vmem:[#allocation10 + $0x380] sm:$0xff]  ;;  %v6805_v30 = vld [vmem:[#allocation10 + $0x3a8] sm:$0xff] }
 0x650   : > { %11630 = vmatprep.subr.bf16.mxu0 %v16902_v21 }
 0x651   : > { %v15690_v28 = vpop.f32.mrb[226].mxu0  ;;  %v15692_v43 = vpop.f32.mrb[94].mxu1 }
 0x652   : > { %v5859_v53 = vpop.f32.mrb[227].mxu0  ;;  %v6319_v54 = vpop.f32.mrb[95].mxu1  ;;  %10303 = vmatmul.mubr.f32.gmra.mrb[76].mxu0 %v15586_v37  ;;  %v11637_v37 = vpack.c.bf16 %v6801_v55, %v6800_v59 }
 0x653   : > { %10305 = vmatprep.mubr.f32.mxu0 %v15590_v24  ;;  %11632 = vmatpush1.bf16.msra.mxu0 %v11631_v15  ;;  %v6802_v24 = vld [vmem:[#allocation10 + $0x390] sm:$0xff]  ;;  %v6807_v53 = vld [vmem:[#allocation10 + $0x3b8] sm:$0xff] }
 0x654   : > { %11633 = vmatprep.subr.bf16.mxu0 %v16902_v21 }
 0x655   : > { %v15697_v32 = vpop.f32.mrb[228].mxu0  ;;  %v15699_v5 = vpop.f32.mrb[98].mxu1 }
 0x656   : > { %v5864_v60 = vpop.f32.mrb[229].mxu0  ;;  %v6324_v51 = vpop.f32.mrb[99].mxu1  ;;  %10306 = vmatmul.mubr.f32.gmra.mrb[78].mxu0 %v15594_v23  ;;  %v11640_v23 = vpack.c.bf16 %v6803_v19, %v6802_v24 }
 0x657   : > { %10308 = vmatprep.mubr.f32.mxu0 %v15598_v27  ;;  %11635 = vmatpush1.bf16.msra.mxu0 %v11634_v58  ;;  %v6804_v27 = vld [vmem:[#allocation10 + $0x3a0] sm:$0xff]  ;;  %v6809_v60 = vld [vmem:[#allocation10 + $0x3c8] sm:$0xff] }
 0x658   : > { %11636 = vmatprep.subr.bf16.mxu0 %v16902_v21 }
 0x659   : > { %v15704_v62 = vpop.f32.mrb[230].mxu0  ;;  %v15706_v11 = vpop.f32.mrb[102].mxu1 }
 0x65a   : > { %v5869_v35 = vpop.f32.mrb[231].mxu0  ;;  %v6329_v56 = vpop.f32.mrb[103].mxu1  ;;  %10309 = vmatmul.mubr.f32.gmra.mrb[80].mxu0 %v15602_v3  ;;  %v11643_v3 = vpack.c.bf16 %v6805_v30, %v6804_v27 }
 0x65b   : > { %10311 = vmatprep.mubr.f32.mxu0 %v15606_v16  ;;  %11638 = vmatpush1.bf16.msra.mxu0 %v11637_v37  ;;  %v6806_v16 = vld [vmem:[#allocation10 + $0x3b0] sm:$0xff]  ;;  %v6811_v35 = vld [vmem:[#allocation10 + $0x3d8] sm:$0xff] }
 0x65c   : > { %11639 = vmatprep.subr.bf16.mxu0 %v16902_v21 }
 0x65d   : > { %v15711_v20 = vpop.f32.mrb[232].mxu0  ;;  %v15713_v15 = vpop.f32.mrb[106].mxu1 }
 0x65e   : > { %v5874_v10 = vpop.f32.mrb[233].mxu0  ;;  %v6334_v26 = vpop.f32.mrb[107].mxu1  ;;  %10312 = vmatmul.mubr.f32.gmra.mrb[82].mxu0 %v15610_v42  ;;  %v11646_v42 = vpack.c.bf16 %v6807_v53, %v6806_v16 }
 0x65f   : > { %10314 = vmatprep.mubr.f32.mxu0 %v15614_v33  ;;  %11641 = vmatpush1.bf16.msra.mxu0 %v11640_v23  ;;  %v6808_v33 = vld [vmem:[#allocation10 + $0x3c0] sm:$0xff]  ;;  %v6813_v10 = vld [vmem:[#allocation10 + $0x3e8] sm:$0xff] }
 0x660   : > { %11642 = vmatprep.subr.bf16.mxu0 %v16902_v21 }
 0x661   : > { %v15718_v54 = vpop.f32.mrb[234].mxu0  ;;  %v15720_v58 = vpop.f32.mrb[110].mxu1 }
 0x662   : > { %v5879_v59 = vpop.f32.mrb[235].mxu0  ;;  %v6339_v55 = vpop.f32.mrb[111].mxu1  ;;  %10315 = vmatmul.mubr.f32.gmra.mrb[84].mxu0 %v15618_v36  ;;  %v11649_v36 = vpack.c.bf16 %v6809_v60, %v6808_v33 }
 0x663   : > { %10317 = vmatprep.mubr.f32.mxu0 %v15622_v7  ;;  %11644 = vmatpush1.bf16.msra.mxu0 %v11643_v3  ;;  %v6810_v7 = vld [vmem:[#allocation10 + $0x3d0] sm:$0xff]  ;;  %v6815_v55 = vld [vmem:[#allocation10 + $0x3f8] sm:$0xff] }
 0x664   : > { %11645 = vmatprep.subr.bf16.mxu0 %v16902_v21  ;;  %v6781_v59 = vld [vmem:[#allocation3 + $0x19a] sm:$0xff] }
 0x665   : > { %v15725_v51 = vpop.f32.mrb[236].mxu0  ;;  %v15727_v37 = vpop.f32.mrb[114].mxu1  ;;  %10409 = vmatprep.mubr.f32.mxu1 %v6781_v59  ;;  %v6721_v59 = vld [vmem:[#allocation3 + $0x49] sm:$0xff] }
 0x666   : > { %v5884_v24 = vpop.f32.mrb[237].mxu0  ;;  %v6344_v19 = vpop.f32.mrb[115].mxu1  ;;  %10318 = vmatmul.mubr.f32.gmra.mrb[86].mxu0 %v15626_v17  ;;  %v11652_v17 = vpack.c.bf16 %v6811_v35, %v6810_v7 }
 0x667   : > { %10320 = vmatprep.mubr.f32.mxu0 %v15630_v12  ;;  %11647 = vmatpush1.bf16.msra.mxu0 %v11646_v42  ;;  %v6812_v12 = vld [vmem:[#allocation10 + $0x3e0] sm:$0xff]  ;;  %v6782_v19 = vld [vmem:[#allocation3 + $0x1a2] sm:$0xff] }
 0x668   : > { %11648 = vmatprep.subr.bf16.mxu0 %v16902_v21  ;;  %10410 = vmatmul.mubr.f32.gmra.mrb[174].mxu1 %v6782_v19 }
 0x669   : > { %v15732_v56 = vpop.f32.mrb[238].mxu0  ;;  %v15734_v23 = vpop.f32.mrb[118].mxu1 }
 0x66a   : > { %v5889_v27 = vpop.f32.mrb[239].mxu0  ;;  %v6349_v30 = vpop.f32.mrb[119].mxu1  ;;  %10321 = vmatmul.mubr.f32.gmra.mrb[88].mxu0 %v15634_v44  ;;  %v11655_v44 = vpack.c.bf16 %v6813_v10, %v6812_v12 }
 0x66b   : > { %10323 = vmatprep.mubr.f32.mxu0 %v15639_v2  ;;  %11650 = vmatpush1.bf16.msra.mxu0 %v11649_v36  ;;  %v6814_v2 = vld [vmem:[#allocation10 + $0x3f0] sm:$0xff]  ;;  %v6719_v27 = vld [vmem:[#allocation3 + $0x31] sm:$0xff] }
 0x66c   : > { %11651 = vmatprep.subr.bf16.mxu0 %v16902_v21 }
 0x66d   : > { %v15739_v26 = vpop.f32.mrb[240].mxu0  ;;  %v15741_v3 = vpop.f32.mrb[122].mxu1 }
 0x66e   : > { %v5894_v16 = vpop.f32.mrb[241].mxu0  ;;  %v6354_v53 = vpop.f32.mrb[123].mxu1  ;;  %10324 = vmatmul.mubr.f32.gmra.mrb[90].mxu0 %v15643_v8  ;;  %v11658_v8 = vpack.c.bf16 %v6815_v55, %v6814_v2 }
 0x66f   : > { %10326 = vmatprep.mubr.f32.mxu0 %v15647_v25  ;;  %11653 = vmatpush1.bf16.msra.mxu0 %v11652_v17  ;;  %v6688_v53 = vld [vmem:[#allocation3 + $0x38] sm:$0xff] }
 0x670   : > { %11654 = vmatprep.subr.bf16.mxu0 %v16902_v21 }
 0x671   : > { %v15746_v42 = vpop.f32.mrb[242].mxu0  ;;  %v15748_v33 = vpop.f32.mrb[126].mxu1 }
 0x672   : > { %v5899_v60 = vpop.f32.mrb[243].mxu0  ;;  %v6359_v24 = vpop.f32.mrb[127].mxu1  ;;  %10327 = vmatmul.mubr.f32.gmra.mrb[92].mxu0 %v15651_v52 }
 0x673   : > { %10329 = vmatprep.mubr.f32.mxu0 %v15655_v50  ;;  %11656 = vmatpush1.bf16.msra.mxu0 %v11655_v44  ;;  %v6687_v50 = vld [vmem:[#allocation3 + $0x30] sm:$0xff]  ;;  %v6689_v60 = vld [vmem:[#allocation3 + $0x48] sm:$0xff] }
 0x674   : > { %11657 = vmatprep.subr.bf16.mxu0 %v16902_v21  ;;  %v6720_v21 = vld [vmem:[#allocation3 + $0x39] sm:$0xff] }
 0x675   : > { %v15753_v25 = vpop.f32.mrb[244].mxu0  ;;  %v15755_v36 = vpop.f32.mrb[130].mxu1 }
 0x676   : > { %v5904_v7 = vpop.f32.mrb[245].mxu0  ;;  %v6364_v35 = vpop.f32.mrb[131].mxu1  ;;  %10330 = vmatmul.mubr.f32.gmra.mrb[94].mxu0 %v15659_v49 }
 0x677   : > { %11659 = vmatpush1.bf16.msra.mxu0 %v11658_v8  ;;  %6896 = vmatprep.mubr.f32.mxu0 %v6719_v27  ;;  %v6722_v8 = vld [vmem:[#allocation3 + $0x51] sm:$0xff] }
 0x678   : > { %v6690_v27 = vld [vmem:[#allocation3 + $0x50] sm:$0xff] }
 0x679   : > { %v15758_v52 = vpop.f32.mrb[246].mxu0  ;;  %v15760_v30 = vpop.f32.mrb[134].mxu1 }
 0x67a   : > { %v5909_v17 = vpop.f32.mrb[247].mxu0  ;;  %v6369_v12 = vpop.f32.mrb[135].mxu1  ;;  %6897 = vmatmul.mubr.f32.vlgmr.msra.gmra.mrb[96].mxu0 %v6687_v50 }
 0x67b   : > { %6901 = vmatprep.mubr.f32.mxu0 %v6720_v21  ;;  %v6723_v12 = vld [vmem:[#allocation3 + $0x61] sm:$0xff] }
 0x67d   : > { %v15762_v10 = vpop.f32.mrb[248].mxu0  ;;  %v15764_v16 = vpop.f32.mrb[138].mxu1 }
 0x67e   : > { %v5914_v44 = vpop.f32.mrb[249].mxu0  ;;  %v6374_v49 = vpop.f32.mrb[139].mxu1  ;;  %6902 = vmatmul.mubr.f32.gmra.mrb[98].mxu0 %v6688_v53 }
 0x67f   : > { %6906 = vmatprep.mubr.f32.mxu0 %v6721_v59  ;;  %v6691_v44 = vld [vmem:[#allocation3 + $0x60] sm:$0xff] }
 0x681   : > { %v15766_v2 = vpop.f32.mrb[250].mxu0  ;;  %v15768_v55 = vpop.f32.mrb[142].mxu1 }
 0x682   : > { %v5919_v24 = vpop.f32.mrb[251].mxu0  ;;  %v6379_v19 = vpop.f32.mrb[143].mxu1  ;;  %6907 = vmatmul.mubr.f32.gmra.mrb[100].mxu0 %v6689_v60  ;;  %v6724_v60 = vld [vmem:[#allocation3 + $0x69] sm:$0xff] }
 0x683   : > { %6911 = vmatprep.mubr.f32.mxu0 %v6722_v8  ;;  %v6692_v8 = vld [vmem:[#allocation3 + $0x68] sm:$0xff] }
 0x685   : > { %v15770_v7 = vpop.f32.mrb[252].mxu0  ;;  %v15772_v35 = vpop.f32.mrb[80].mxu1 }
 0x686   : > { %v5924_v50 = vpop.f32.mrb[253].mxu0  ;;  %v6384_v17 = vpop.f32.mrb[81].mxu1  ;;  %6912 = vmatmul.mubr.f32.gmra.mrb[102].mxu0 %v6690_v27  ;;  %v6725_v27 = vld [vmem:[#allocation3 + $0x79] sm:$0xff] }
 0x687   : > { %6916 = vmatprep.mubr.f32.mxu0 %v6723_v12 }
 0x689   : > { %v15774_v21 = vpop.f32.mrb[254].mxu0  ;;  %v15776_v53 = vpop.f32.mrb[144].mxu1 }
 0x68a   : > { %v5929_v49 = vpop.f32.mrb[255].mxu0  ;;  %v6389_v59 = vpop.f32.mrb[145].mxu1  ;;  %6917 = vmatmul.mubr.f32.gmra.mrb[104].mxu0 %v6691_v44  ;;  %v6726_v44 = vld [vmem:[#allocation3 + $0x81] sm:$0xff] }
 0x68b   : > { %6921 = vmatprep.mubr.f32.mxu0 %v6724_v60 }
 0x68d   : > { %v15778_v24 = vpop.f32.mrb[0].mxu0  ;;  %v15780_v19 = vpop.f32.mrb[84].mxu1 }
 0x68e   : > { %v5934_v50 = vpop.f32.mrb[1].mxu0  ;;  %v6394_v17 = vpop.f32.mrb[85].mxu1  ;;  %6922 = vmatmul.mubr.f32.gmra.mrb[106].mxu0 %v6692_v8  ;;  %v6727_v8 = vld [vmem:[#allocation3 + $0x91] sm:$0xff] }
 0x68f   : > { %6926 = vmatprep.mubr.f32.mxu0 %v6725_v27 }
 0x691   : > { %v15782_v12 = vpop.f32.mrb[2].mxu0  ;;  %v15784_v0 = vpop.f32.mrb[146].mxu1 }
 0x692   : > { %v5939_v49 = vpop.f32.mrb[3].mxu0  ;;  %v6399_v59 = vpop.f32.mrb[147].mxu1  ;;  %6927 = vmatmul.mubr.f32.gmra.mrb[108].mxu0 %v6693_v45  ;;  %v6728_v45 = vld [vmem:[#allocation3 + $0x99] sm:$0xff] }
 0x693   : > { %6931 = vmatprep.mubr.f32.mxu0 %v6726_v44 }
 0x695   : > { %v15786_v60 = vpop.f32.mrb[4].mxu0  ;;  %v15788_v41 = vpop.f32.mrb[88].mxu1 }
 0x696   : > { %v5944_v50 = vpop.f32.mrb[5].mxu0  ;;  %v6404_v17 = vpop.f32.mrb[89].mxu1  ;;  %6932 = vmatmul.mubr.f32.gmra.mrb[110].mxu0 %v6694_v4  ;;  %v6729_v4 = vld [vmem:[#allocation3 + $0xa9] sm:$0xff] }
 0x697   : > { %6936 = vmatprep.mubr.f32.mxu0 %v6727_v8 }
 0x699   : > { %v15790_v27 = vpop.f32.mrb[6].mxu0  ;;  %v15792_v61 = vpop.f32.mrb[148].mxu1 }
 0x69a   : > { %v5949_v49 = vpop.f32.mrb[7].mxu0  ;;  %v6409_v59 = vpop.f32.mrb[149].mxu1  ;;  %6937 = vmatmul.mubr.f32.gmra.mrb[112].mxu0 %v6695_v13  ;;  %v6730_v13 = vld [vmem:[#allocation3 + $0xb1] sm:$0xff] }
 0x69b   : > { %6941 = vmatprep.mubr.f32.mxu0 %v6728_v45 }
 0x69d   : > { %v15794_v44 = vpop.f32.mrb[8].mxu0  ;;  %v15796_v47 = vpop.f32.mrb[92].mxu1 }
 0x69e   : > { %v5954_v50 = vpop.f32.mrb[9].mxu0  ;;  %v6414_v17 = vpop.f32.mrb[93].mxu1  ;;  %6942 = vmatmul.mubr.f32.gmra.mrb[114].mxu0 %v6696_v1  ;;  %v6731_v1 = vld [vmem:[#allocation3 + $0xc1] sm:$0xff] }
 0x69f   : > { %6946 = vmatprep.mubr.f32.mxu0 %v6729_v4 }
 0x6a1   : > { %v15798_v8 = vpop.f32.mrb[10].mxu0  ;;  %v15800_v40 = vpop.f32.mrb[150].mxu1 }
 0x6a2   : > { %v5959_v49 = vpop.f32.mrb[11].mxu0  ;;  %v6419_v59 = vpop.f32.mrb[151].mxu1  ;;  %6947 = vmatmul.mubr.f32.gmra.mrb[116].mxu0 %v6697_v31  ;;  %v6732_v31 = vld [vmem:[#allocation3 + $0xc9] sm:$0xff] }
 0x6a3   : > { %6951 = vmatprep.mubr.f32.mxu0 %v6730_v13 }
 0x6a5   : > { %v15802_v45 = vpop.f32.mrb[12].mxu0  ;;  %v15804_v39 = vpop.f32.mrb[96].mxu1 }
 0x6a6   : > { %16903 = vst [vmem:[#allocation77_spill] sm:$0xff] %v15804_v39  ;;  %v5964_v50 = vpop.f32.mrb[13].mxu0  ;;  %v6424_v17 = vpop.f32.mrb[97].mxu1  ;;  %6952 = vmatmul.mubr.f32.gmra.mrb[118].mxu0 %v6698_v18  ;;  %v6733_v18 = vld [vmem:[#allocation3 + $0xd9] sm:$0xff] }
 0x6a7   : > { %6956 = vmatprep.mubr.f32.mxu0 %v6731_v1  ;;  %v7779_v39 = vld [vmem:[#allocation13 + $0x88] sm:$0xff] }
 0x6a9   : > { %v15806_v4 = vpop.f32.mrb[16].mxu0  ;;  %v15808_v57 = vpop.f32.mrb[152].mxu1 }
 0x6aa   : > { %16904 = vst [vmem:[#allocation78_spill] sm:$0xff] %v15808_v57  ;;  %v5969_v49 = vpop.f32.mrb[17].mxu0  ;;  %v6429_v59 = vpop.f32.mrb[153].mxu1  ;;  %6957 = vmatmul.mubr.f32.gmra.mrb[120].mxu0 %v6699_v46  ;;  %v6734_v46 = vld [vmem:[#allocation3 + $0xe1] sm:$0xff] }
 0x6ab   : > { %6961 = vmatprep.mubr.f32.mxu0 %v6732_v31 }
 0x6ad   : > { %v15810_v13 = vpop.f32.mrb[14].mxu0  ;;  %v15812_v34 = vpop.f32.mrb[100].mxu1 }
 0x6ae   : > { %16905 = vst [vmem:[#allocation40_spill] sm:$0xff] %v15810_v13  ;;  %16906 = vst [vmem:[#allocation46_spill] sm:$0xff] %v15812_v34  ;;  %v5974_v50 = vpop.f32.mrb[15].mxu0  ;;  %v6434_v17 = vpop.f32.mrb[101].mxu1  ;;  %6962 = vmatmul.mubr.f32.gmra.mrb[122].mxu0 %v6700_v22  ;;  %v6702_v34 = vld [vmem:[#allocation3 + $0xe0] sm:$0xff]  ;;  %v6735_v22 = vld [vmem:[#allocation3 + $0xf1] sm:$0xff] }
 0x6af   : > { %6966 = vmatprep.mubr.f32.mxu0 %v6733_v18  ;;  %v7778_v18 = vld [vmem:[#allocation13 + $0x80] sm:$0xff] }
 0x6b0   : > { %v11724_v57 = vpack.c.bf16 %v7779_v39, %v7778_v18 }
 0x6b1   : > { %v15814_v1 = vpop.f32.mrb[18].mxu0  ;;  %v15816_v9 = vpop.f32.mrb[154].mxu1 }
 0x6b2   : > { %16907 = vst [vmem:[#allocation49_spill] sm:$0xff] %v15814_v1  ;;  %16908 = vst [vmem:[#allocation44_spill] sm:$0xff] %v15816_v9  ;;  %v5979_v49 = vpop.f32.mrb[19].mxu0  ;;  %v6439_v59 = vpop.f32.mrb[155].mxu1  ;;  %6967 = vmatmul.mubr.f32.gmra.mrb[124].mxu0 %v6701_v38  ;;  %v6703_v38 = vld [vmem:[#allocation3 + $0xf0] sm:$0xff]  ;;  %11725 = vmatprep.subr.bf16.mxu0 %v11724_v57  ;;  %v7452_v1 = vld [vmem:[#allocation12 + $0x18] sm:$0xff] }
 0x6b3   : > { %6971 = vmatprep.mubr.f32.mxu0 %v6734_v46  ;;  %v7449_v59 = vld [vmem:[#allocation12] sm:$0xff]  ;;  %v7450_v46 = vld [vmem:[#allocation12 + $0x8] sm:$0xff]  ;;  %11727 = vmatpush3.bf16.msra.mxu0 %v11724_v57 }
 0x6b4   : > { %v7783_v57 = vld [vmem:[#allocation13 + $0xa8] sm:$0xff] }
 0x6b5   : > { %v15818_v31 = vpop.f32.mrb[20].mxu0  ;;  %v15820_v63 = vpop.f32.mrb[104].mxu1 }
 0x6b6   : > { %16909 = vst [vmem:[#allocation52_spill] sm:$0xff] %v15818_v31  ;;  %16910 = vst [vmem:[#allocation80_spill] sm:$0xff] %v15820_v63  ;;  %v5984_v50 = vpop.f32.mrb[21].mxu0  ;;  %v6444_v17 = vpop.f32.mrb[105].mxu1  ;;  %6972 = vmatmul.mubr.f32.gmra.mrb[126].mxu0 %v6702_v34  ;;  %v6736_v63 = vld [vmem:[#allocation3 + $0xf9] sm:$0xff] }
 0x6b7   : > { %6976 = vmatprep.mubr.f32.mxu0 %v6735_v22  ;;  %v11692_v50 = vpack.c.bf16 %v7450_v46, %v7449_v59  ;;  %v7780_v34 = vld [vmem:[#allocation13 + $0x90] sm:$0xff]  ;;  %v7781_v17 = vld [vmem:[#allocation13 + $0x98] sm:$0xff] }
 0x6b8   : > { %v11728_v22 = vpack.c.bf16 %v7781_v17, %v7780_v34 }
 0x6b9   : > { %v15822_v9 = vpop.f32.mrb[22].mxu0  ;;  %v15824_v49 = vpop.f32.mrb[156].mxu1  ;;  %11693 = vmatprep.subr.bf16.mxu1 %v11692_v50 }
 0x6ba   : > { %16911 = vst [vmem:[#allocation51_spill] sm:$0xff] %v15822_v9  ;;  %16912 = vst [vmem:[#allocation47_spill] sm:$0xff] %v15824_v49  ;;  %v5989_v13 = vpop.f32.mrb[23].mxu0  ;;  %v6449_v31 = vpop.f32.mrb[157].mxu1  ;;  %6977 = vmatmul.mubr.f32.gmra.mrb[128].mxu0 %v6703_v38  ;;  %v6704_v49 = vld [vmem:[#allocation3 + $0xf8] sm:$0xff]  ;;  %11695 = vmatpush3.bf16.msra.mxu1 %v11692_v50  ;;  %v7451_v9 = vld [vmem:[#allocation12 + $0x10] sm:$0xff] }
 0x6bb   : > { %6981 = vmatprep.mubr.f32.mxu0 %v6736_v63  ;;  %v6737_v38 = vld [vmem:[#allocation3 + $0x109] sm:$0xff]  ;;  %11729 = vmatprep.subr.bf16.mxu0 %v11728_v22  ;;  %v11696_v59 = vpack.c.bf16 %v7452_v1, %v7451_v9  ;;  %v7784_v1 = vld [vmem:[#allocation13 + $0xb0] sm:$0xff] }
 0x6bc   : > { %11731 = vmatpush3.bf16.msra.mxu0 %v11728_v22  ;;  %v7782_v63 = vld [vmem:[#allocation13 + $0xa0] sm:$0xff]  ;;  %v7785_v22 = vld [vmem:[#allocation13 + $0xb8] sm:$0xff] }
 0x6bd   : > { %v15826_v39 = vpop.f32.mrb[24].mxu0  ;;  %v15828_v18 = vpop.f32.mrb[108].mxu1  ;;  %11697 = vmatprep.subr.bf16.mxu1 %v11696_v59  ;;  %v11732_v46 = vpack.c.bf16 %v7783_v57, %v7782_v63  ;;  %v7453_v50 = vld [vmem:[#allocation12 + $0x20] sm:$0xff] }
 0x6be   : > { %16913 = vst [vmem:[#allocation42_spill] sm:$0xff] %v15826_v39  ;;  %16914 = vst [vmem:[#allocation79_spill] sm:$0xff] %v15828_v18  ;;  %v5994_v13 = vpop.f32.mrb[25].mxu0  ;;  %v6454_v31 = vpop.f32.mrb[109].mxu1  ;;  %6982 = vmatmul.mubr.f32.gmra.mrb[130].mxu0 %v6704_v49  ;;  %v6705_v18 = vld [vmem:[#allocation3 + $0x108] sm:$0xff]  ;;  %11699 = vmatpush3.bf16.msra.mxu1 %v11696_v59  ;;  %v7454_v39 = vld [vmem:[#allocation12 + $0x28] sm:$0xff] }
 0x6bf   : > { %6986 = vmatprep.mubr.f32.mxu0 %v6737_v38  ;;  %v6738_v49 = vld [vmem:[#allocation3 + $0x111] sm:$0xff]  ;;  %11733 = vmatprep.subr.bf16.mxu0 %v11732_v46  ;;  %v11700_v9 = vpack.c.bf16 %v7454_v39, %v7453_v50  ;;  %v11736_v38 = vpack.c.bf16 %v7785_v22, %v7784_v1  ;;  %v7455_v59 = vld [vmem:[#allocation12 + $0x30] sm:$0xff] }
 0x6c0   : > { %11735 = vmatpush3.bf16.msra.mxu0 %v11732_v46  ;;  %v7786_v46 = vld [vmem:[#allocation13 + $0xc0] sm:$0xff]  ;;  %v7787_v50 = vld [vmem:[#allocation13 + $0xc8] sm:$0xff] }
 0x6c1   : > { %v15830_v34 = vpop.f32.mrb[26].mxu0  ;;  %v15832_v17 = vpop.f32.mrb[158].mxu1  ;;  %11701 = vmatprep.subr.bf16.mxu1 %v11700_v9  ;;  %11737 = vmatprep.subr.bf16.mxu0 %v11736_v38 }
 0x6c2   : > { %16915 = vst [vmem:[#allocation50_spill] sm:$0xff] %v15830_v34  ;;  %16916 = vst [vmem:[#allocation81_spill] sm:$0xff] %v15832_v17  ;;  %v5999_v13 = vpop.f32.mrb[27].mxu0  ;;  %v6459_v31 = vpop.f32.mrb[159].mxu1  ;;  %6987 = vmatmul.mubr.f32.gmra.mrb[132].mxu0 %v6705_v18  ;;  %v6706_v17 = vld [vmem:[#allocation3 + $0x110] sm:$0xff]  ;;  %11703 = vmatpush3.bf16.msra.mxu1 %v11700_v9  ;;  %v7456_v34 = vld [vmem:[#allocation12 + $0x38] sm:$0xff] }
 0x6c3   : > { %6991 = vmatprep.mubr.f32.mxu0 %v6738_v49  ;;  %v6739_v31 = vld [vmem:[#allocation3 + $0x121] sm:$0xff]  ;;  %v11704_v39 = vpack.c.bf16 %v7456_v34, %v7455_v59  ;;  %v11740_v49 = vpack.c.bf16 %v7787_v50, %v7786_v46 }
 0x6c4   : > { %11739 = vmatpush3.bf16.msra.mxu0 %v11736_v38  ;;  %v6707_v9 = vld [vmem:[#allocation3 + $0x120] sm:$0xff]  ;;  %v7789_v59 = vld [vmem:[#allocation13 + $0xd8] sm:$0xff] }
 0x6c5   : > { %v15834_v63 = vpop.f32.mrb[28].mxu0  ;;  %v15836_v57 = vpop.f32.mrb[112].mxu1  ;;  %11705 = vmatprep.subr.bf16.mxu1 %v11704_v39  ;;  %11741 = vmatprep.subr.bf16.mxu0 %v11740_v49  ;;  %v7788_v38 = vld [vmem:[#allocation13 + $0xd0] sm:$0xff] }
 0x6c6   : > { %16917 = vst [vmem:[#allocation55_spill] sm:$0xff] %v15834_v63  ;;  %16918 = vst [vmem:[#allocation48_spill] sm:$0xff] %v15836_v57  ;;  %v6004_v13 = vpop.f32.mrb[29].mxu0  ;;  %6992 = vmatmul.mubr.f32.gmra.mrb[134].mxu0 %v6706_v17  ;;  %v15838_v18 = vpop.f32.mrb[113].mxu1  ;;  %11707 = vmatpush3.bf16.msra.mxu1 %v11704_v39  ;;  %v7457_v57 = vld [vmem:[#allocation12 + $0x40] sm:$0xff]  ;;  %v7459_v39 = vld [vmem:[#allocation12 + $0x50] sm:$0xff] }
 0x6c7   : > { %16919 = vst [vmem:[#allocation54_spill] sm:$0xff] %v15838_v18  ;;  %6996 = vmatprep.mubr.f32.mxu0 %v6739_v31  ;;  %v7458_v13 = vld [vmem:[#allocation12 + $0x48] sm:$0xff]  ;;  %v6740_v63 = vld [vmem:[#allocation3 + $0x129] sm:$0xff]  ;;  %v11744_v31 = vpack.c.bf16 %v7789_v59, %v7788_v38 }
 0x6c8   : > { %v11708_v34 = vpack.c.bf16 %v7458_v13, %v7457_v57  ;;  %11743 = vmatpush3.bf16.msra.mxu0 %v11740_v49  ;;  %v6741_v57 = vld [vmem:[#allocation3 + $0x139] sm:$0xff]  ;;  %v7790_v13 = vld [vmem:[#allocation13 + $0xe0] sm:$0xff] }
 0x6c9   : > { %v15840_v1 = vpop.f32.mrb[30].mxu0  ;;  %v15842_v22 = vpop.f32.mrb[160].mxu1  ;;  %11745 = vmatprep.subr.bf16.mxu0 %v11744_v31  ;;  %v7791_v38 = vld [vmem:[#allocation13 + $0xe8] sm:$0xff] }
 0x6ca   : > { %16920 = vst [vmem:[#allocation82_spill] sm:$0xff] %v15840_v1  ;;  %16921 = vst [vmem:[#allocation83_spill] sm:$0xff] %v15842_v22  ;;  %v6009_v17 = vpop.f32.mrb[31].mxu0  ;;  %6997 = vmatmul.mubr.f32.gmra.mrb[136].mxu0 %v6707_v9  ;;  %v15844_v18 = vpop.f32.mrb[161].mxu1  ;;  %11709 = vmatprep.subr.bf16.mxu1 %v11708_v34  ;;  %v6708_v22 = vld [vmem:[#allocation3 + $0x128] sm:$0xff] }
 0x6cb   : > { %16922 = vst [vmem:[#allocation84_spill] sm:$0xff] %v15844_v18  ;;  %7001 = vmatprep.mubr.f32.mxu0 %v6740_v63  ;;  %11711 = vmatpush3.bf16.msra.mxu1 %v11708_v34  ;;  %v7460_v1 = vld [vmem:[#allocation12 + $0x58] sm:$0xff]  ;;  %v11748_v34 = vpack.c.bf16 %v7791_v38, %v7790_v13  ;;  %v7792_v13 = vld [vmem:[#allocation13 + $0xf0] sm:$0xff] }
 0x6cc   : > { %v11712_v63 = vpack.c.bf16 %v7460_v1, %v7459_v39  ;;  %11747 = vmatpush3.bf16.msra.mxu0 %v11744_v31  ;;  %v7461_v1 = vld [vmem:[#allocation12 + $0x60] sm:$0xff]  ;;  %v7462_v39 = vld [vmem:[#allocation12 + $0x68] sm:$0xff]  ;;  %v7793_v38 = vld [vmem:[#allocation13 + $0xf8] sm:$0xff] }
 0x6cd   : > { %v10206_v46 = vpop.f32.mrb[32].mxu0  ;;  %v15846_v50 = vpop.f32.mrb[116].mxu1  ;;  %11749 = vmatprep.subr.bf16.mxu0 %v11748_v34 }
 0x6ce   : > { %16923 = vst [vmem:[#allocation85_spill] sm:$0xff] %v15846_v50  ;;  %v6083_v9 = vadd.f32 %v10206_v46, %v15690_v28  ;;  %v6077_v17 = vpop.f32.mrb[33].mxu0  ;;  %7002 = vmatmul.mubr.f32.gmra.mrb[138].mxu0 %v6708_v22  ;;  %v15849_v18 = vpop.f32.mrb[117].mxu1  ;;  %11713 = vmatprep.subr.bf16.mxu1 %v11712_v63  ;;  %v6709_v22 = vld [vmem:[#allocation3 + $0x138] sm:$0xff] }
 0x6cf   : > { %v6078_v49 = vadd.f32 %v6077_v17, %v15683_v48  ;;  %7006 = vmatprep.mubr.f32.mxu0 %v6741_v57  ;;  %11715 = vmatpush3.bf16.msra.mxu1 %v11712_v63  ;;  %v11752_v63 = vpack.c.bf16 %v7793_v38, %v7792_v13 }
 0x6d0   : > { %v15853_v59 = vadd.f32 %v15547_v14, %v6083_v9  ;;  %v6742_v14 = vld [vmem:[#allocation3 + $0x141] sm:$0xff]  ;;  %v11716_v9 = vpack.c.bf16 %v7462_v39, %v7461_v1  ;;  %11751 = vmatpush3.bf16.msra.mxu0 %v11748_v34 }
 0x6d1   : > { %v10209_v50 = vpop.f32.mrb[34].mxu0  ;;  %v15855_v28 = vpop.f32.mrb[162].mxu1  ;;  %v15858_v46 = vadd.f32 %v15541_v29, %v6078_v49  ;;  %v7463_v1 = vld [vmem:[#allocation12 + $0x70] sm:$0xff]  ;;  %v7464_v39 = vld [vmem:[#allocation12 + $0x78] sm:$0xff]  ;;  %11753 = vmatprep.subr.bf16.mxu0 %v11752_v63 }
 0x6d2   : > { %v6093_v48 = vadd.f32 %v10209_v50, %v15704_v62  ;;  %v6087_v31 = vpop.f32.mrb[35].mxu0  ;;  %7007 = vmatmul.mubr.f32.gmra.mrb[140].mxu0 %v6709_v22  ;;  %v15861_v17 = vpop.f32.mrb[163].mxu1  ;;  %11717 = vmatprep.subr.bf16.mxu1 %v11716_v9  ;;  %v6710_v50 = vld [vmem:[#allocation3 + $0x140] sm:$0xff] }
 0x6d3   : > { %v6088_v57 = vadd.f32 %v6087_v31, %v15697_v32  ;;  %7011 = vmatprep.mubr.f32.mxu0 %v6742_v14  ;;  %11719 = vmatpush3.bf16.msra.mxu1 %v11716_v9 }
 0x6d4   : > { %v15865_v29 = vadd.f32 %v15692_v43, %v6093_v48  ;;  %v6743_v43 = vld [vmem:[#allocation3 + $0x151] sm:$0xff]  ;;  %v11720_v48 = vpack.c.bf16 %v7464_v39, %v7463_v1  ;;  %11755 = vmatpush3.bf16.msra.mxu0 %v11752_v63 }
 0x6d5   : > { %v10212_v49 = vpop.f32.mrb[36].mxu0  ;;  %v15867_v62 = vpop.f32.mrb[120].mxu1  ;;  %v15870_v22 = vadd.f32 %v15685_v6, %v6088_v57  ;;  %v6711_v57 = vld [vmem:[#allocation3 + $0x150] sm:$0xff] }
 0x6d6   : > { %v6103_v32 = vadd.f32 %v10212_v49, %v15718_v54  ;;  %v6097_v34 = vpop.f32.mrb[37].mxu0  ;;  %7012 = vmatmul.mubr.f32.gmra.mrb[142].mxu0 %v6710_v50  ;;  %v15873_v31 = vpop.f32.mrb[121].mxu1  ;;  %11721 = vmatprep.subr.bf16.mxu1 %v11720_v48 }
 0x6d7   : > { %v6098_v14 = vadd.f32 %v6097_v34, %v15711_v20  ;;  %7016 = vmatprep.mubr.f32.mxu0 %v6743_v43  ;;  %11723 = vmatpush3.bf16.msra.mxu1 %v11720_v48  ;;  %v6744_v20 = vld [vmem:[#allocation3 + $0x159] sm:$0xff]  ;;  %v6745_v48 = vld [vmem:[#allocation3 + $0x169] sm:$0xff] }
 0x6d8   : > { %v15877_v13 = vadd.f32 %v15706_v11, %v6103_v32  ;;  %v6712_v32 = vld [vmem:[#allocation3 + $0x158] sm:$0xff] }
 0x6d9   : > { %v10215_v6 = vpop.f32.mrb[38].mxu0  ;;  %v15879_v9 = vpop.f32.mrb[164].mxu1  ;;  %v15882_v54 = vadd.f32 %v15699_v5, %v6098_v14 }
 0x6da   : > { %v6113_v38 = vadd.f32 %v10215_v6, %v15732_v56  ;;  %v6107_v49 = vpop.f32.mrb[39].mxu0  ;;  %7017 = vmatmul.mubr.f32.gmra.mrb[144].mxu0 %v6711_v57  ;;  %v15885_v50 = vpop.f32.mrb[165].mxu1  ;;  %v6713_v57 = vld [vmem:[#allocation3 + $0x168] sm:$0xff] }
 0x6db   : > { %v6108_v63 = vadd.f32 %v6107_v49, %v15725_v51  ;;  %7021 = vmatprep.mubr.f32.mxu0 %v6744_v20  ;;  %v6746_v20 = vld [vmem:[#allocation3 + $0x171] sm:$0xff] }
 0x6dc   : > { %v15889_v11 = vadd.f32 %v15720_v58, %v6113_v38 }
 0x6dd   : > { %v10218_v1 = vpop.f32.mrb[40].mxu0  ;;  %v15891_v39 = vpop.f32.mrb[124].mxu1  ;;  %v15894_v5 = vadd.f32 %v15713_v15, %v6108_v63 }
 0x6de   : > { %v6123_v56 = vadd.f32 %v10218_v1, %v15746_v42  ;;  %v6117_v34 = vpop.f32.mrb[41].mxu0  ;;  %7022 = vmatmul.mubr.f32.gmra.mrb[146].mxu0 %v6712_v32  ;;  %v15897_v43 = vpop.f32.mrb[125].mxu1  ;;  %v6714_v32 = vld [vmem:[#allocation3 + $0x170] sm:$0xff] }
 0x6df   : > { %v6118_v51 = vadd.f32 %v6117_v34, %v15739_v26  ;;  %7026 = vmatprep.mubr.f32.mxu0 %v6745_v48  ;;  %v6747_v48 = vld [vmem:[#allocation3 + $0x181] sm:$0xff] }
 0x6e0   : > { %v15901_v58 = vadd.f32 %v15734_v23, %v6123_v56 }
 0x6e1   : > { %v10221_v14 = vpop.f32.mrb[42].mxu0  ;;  %v15903_v6 = vpop.f32.mrb[166].mxu1  ;;  %v15906_v15 = vadd.f32 %v15727_v37, %v6118_v51 }
 0x6e2   : > { %v6133_v42 = vadd.f32 %v10221_v14, %v15758_v52  ;;  %v6127_v38 = vpop.f32.mrb[43].mxu0  ;;  %7027 = vmatmul.mubr.f32.gmra.mrb[148].mxu0 %v6713_v57  ;;  %v15909_v49 = vpop.f32.mrb[167].mxu1  ;;  %v6715_v57 = vld [vmem:[#allocation3 + $0x180] sm:$0xff] }
 0x6e3   : > { %v6128_v26 = vadd.f32 %v6127_v38, %v15753_v25  ;;  %7031 = vmatprep.mubr.f32.mxu0 %v6746_v20  ;;  %v6748_v20 = vld [vmem:[#allocation3 + $0x189] sm:$0xff] }
 0x6e4   : > { %v15913_v23 = vadd.f32 %v15748_v33, %v6133_v42 }
 0x6e5   : > { %v10224_v63 = vpop.f32.mrb[44].mxu0  ;;  %v15915_v1 = vpop.f32.mrb[128].mxu1  ;;  %v15918_v37 = vadd.f32 %v15741_v3, %v6128_v26  ;;  %v6749_v26 = vld [vmem:[#allocation3 + $0x199] sm:$0xff] }
 0x6e6   : > { %v6143_v52 = vadd.f32 %v10224_v63, %v15766_v2  ;;  %v6137_v56 = vpop.f32.mrb[45].mxu0  ;;  %7032 = vmatmul.mubr.f32.gmra.mrb[150].mxu0 %v6714_v32  ;;  %v15921_v34 = vpop.f32.mrb[129].mxu1 }
 0x6e7   : > { %v6138_v25 = vadd.f32 %v6137_v56, %v15762_v10  ;;  %7036 = vmatprep.mubr.f32.mxu0 %v6747_v48 }
 0x6e8   : > { %v15925_v33 = vadd.f32 %v15760_v30, %v6143_v52  ;;  %v6716_v52 = vld [vmem:[#allocation3 + $0x188] sm:$0xff] }
 0x6e9   : > { %v10227_v51 = vpop.f32.mrb[46].mxu0  ;;  %v15927_v14 = vpop.f32.mrb[168].mxu1  ;;  %v15930_v3 = vadd.f32 %v15755_v36, %v6138_v25  ;;  %v6750_v25 = vld [vmem:[#allocation3 + $0x1a1] sm:$0xff] }
 0x6ea   : > { %v6153_v2 = vadd.f32 %v10227_v51, %v15774_v21  ;;  %v6147_v42 = vpop.f32.mrb[47].mxu0  ;;  %7037 = vmatmul.mubr.f32.gmra.mrb[152].mxu0 %v6715_v57  ;;  %v15933_v38 = vpop.f32.mrb[169].mxu1 }
 0x6eb   : > { %v6148_v10 = vadd.f32 %v6147_v42, %v15770_v7  ;;  %7041 = vmatprep.mubr.f32.mxu0 %v6748_v20  ;;  %v12437_v42 = vld [vmem:[#allocation2 + $0x18] sm:$0xff] }
 0x6ec   : > { %v15937_v30 = vadd.f32 %v15768_v55, %v6153_v2 }
 0x6ed   : > { %v10230_v63 = vpop.f32.mrb[48].mxu0  ;;  %v15939_v32 = vpop.f32.mrb[132].mxu1  ;;  %v15942_v36 = vadd.f32 %v15764_v16, %v6148_v10 }
 0x6ee   : > { %v6163_v21 = vadd.f32 %v10230_v63, %v15782_v12  ;;  %v6157_v56 = vpop.f32.mrb[49].mxu0  ;;  %7042 = vmatmul.mubr.f32.gmra.mrb[154].mxu0 %v6716_v52  ;;  %v15945_v48 = vpop.f32.mrb[133].mxu1 }
 0x6ef   : > { %v6158_v7 = vadd.f32 %v6157_v56, %v15778_v24  ;;  %7046 = vmatprep.mubr.f32.mxu0 %v6749_v26 }
 0x6f0   : > { %v15949_v55 = vadd.f32 %v15776_v53, %v6163_v21 }
 0x6f1   : > { %v10233_v51 = vpop.f32.mrb[50].mxu0  ;;  %v15951_v57 = vpop.f32.mrb[170].mxu1  ;;  %v15954_v2 = vadd.f32 %v15772_v35, %v6158_v7 }
 0x6f2   : > { %16924 = vst [vmem:[#allocation86_spill] sm:$0xff] %v15951_v57  ;;  %v6173_v16 = vadd.f32 %v10233_v51, %v15790_v27  ;;  %v6167_v12 = vpop.f32.mrb[51].mxu0  ;;  %7047 = vmatmul.mubr.f32.gmra.mrb[156].mxu0 %v12437_v42  ;;  %v15957_v20 = vpop.f32.mrb[171].mxu1 }
 0x6f3   : > { %16925 = vst [vmem:[#allocation87_spill] sm:$0xff] %v15957_v20  ;;  %v6168_v24 = vadd.f32 %v6167_v12, %v15786_v60  ;;  %7051 = vmatprep.mubr.f32.mxu0 %v6750_v25  ;;  %v16946_v20 = vld [vmem:[#allocation81_spill] sm:$0xff] }
 0x6f4   : > { %v15961_v10 = vadd.f32 %v15784_v0, %v6173_v16 }
 0x6f5   : > { %v10236_v53 = vpop.f32.mrb[52].mxu0  ;;  %v15963_v26 = vpop.f32.mrb[136].mxu1  ;;  %v15966_v63 = vadd.f32 %v15780_v19, %v6168_v24 }
 0x6f6   : > { %16926 = vst [vmem:[#allocation88_spill] sm:$0xff] %v15963_v26  ;;  %v6183_v35 = vadd.f32 %v10236_v53, %v15798_v8  ;;  %v6177_v27 = vpop.f32.mrb[53].mxu0  ;;  %7052 = vmatmul.mubr.f32.gmra.mrb[158].mxu0 %v12437_v42  ;;  %v15969_v52 = vpop.f32.mrb[137].mxu1  ;;  %v16931_v42 = vld [vmem:[#allocation49_spill] sm:$0xff] }
 0x6f7   : > { %16927 = vst [vmem:[#allocation89_spill] sm:$0xff] %v15969_v52  ;;  %v6178_v21 = vadd.f32 %v6177_v27, %v15794_v44  ;;  %v16934_v27 = vld [vmem:[#allocation78_spill] sm:$0xff]  ;;  %v16942_v52 = vld [vmem:[#allocation47_spill] sm:$0xff] }
 0x6f8   : > { %v15973_v60 = vadd.f32 %v15792_v61, %v6183_v35 }
 0x6f9   : > { %v10239_v56 = vpop.f32.mrb[54].mxu0  ;;  %v15975_v0 = vpop.f32.mrb[172].mxu1  ;;  %v15978_v7 = vadd.f32 %v15788_v41, %v6178_v21 }
 0x6fa   : > { %16928 = vst [vmem:[#allocation90_spill] sm:$0xff] %v15975_v0  ;;  %v6193_v19 = vadd.f32 %v10239_v56, %v15806_v4  ;;  %v6187_v25 = vpop.f32.mrb[55].mxu0  ;;  %v15981_v51 = vpop.f32.mrb[173].mxu1  ;;  %v16933_v4 = vld [vmem:[#allocation40_spill] sm:$0xff]  ;;  %v16935_v56 = vld [vmem:[#allocation77_spill] sm:$0xff] }
 0x6fb   : > { %16929 = vst [vmem:[#allocation91_spill] sm:$0xff] %v15981_v51  ;;  %v6188_v8 = vadd.f32 %v6187_v25, %v15802_v45  ;;  %v16937_v0 = vld [vmem:[#allocation52_spill] sm:$0xff] }
 0x6fc   : > { %v15985_v16 = vadd.f32 %v15800_v40, %v6193_v19  ;;  %v16936_v19 = vld [vmem:[#allocation51_spill] sm:$0xff] }
 0x6fd   : > { %v10242_v44 = vpop.f32.mrb[56].mxu0  ;;  %v15987_v12 = vpop.f32.mrb[140].mxu1  ;;  %v15990_v61 = vadd.f32 %v15796_v47, %v6188_v8  ;;  %v16938_v8 = vld [vmem:[#allocation44_spill] sm:$0xff] }
 0x6fe   : > { %16930 = vst [vmem:[#allocation92_spill] sm:$0xff] %v15987_v12  ;;  %v6203_v24 = vadd.f32 %v10242_v44, %v16931_v42  ;;  %v6197_v41 = vpop.f32.mrb[57].mxu0  ;;  %v15993_v53 = vpop.f32.mrb[141].mxu1  ;;  %v16939_v42 = vld [vmem:[#allocation46_spill] sm:$0xff] }
 0x6ff   : > { %16932 = vst [vmem:[#allocation49_spill] sm:$0xff] %v15993_v53  ;;  %v6198_v35 = vadd.f32 %v6197_v41, %v16933_v4  ;;  %v16940_v41 = vld [vmem:[#allocation50_spill] sm:$0xff] }
 0x700   : > { %v15997_v21 = vadd.f32 %v16934_v27, %v6203_v24  ;;  %v16941_v27 = vld [vmem:[#allocation42_spill] sm:$0xff] }
 0x701   : > { %v10245_v45 = vpop.f32.mrb[58].mxu0  ;;  %v16000_v40 = vadd.f32 %v16935_v56, %v6198_v35 }
 0x702   : > { %v6213_v25 = vadd.f32 %v10245_v45, %v16936_v19  ;;  %v6207_v12 = vpop.f32.mrb[59].mxu0  ;;  %v16943_v45 = vld [vmem:[#allocation80_spill] sm:$0xff] }
 0x703   : > { %v6208_v47 = vadd.f32 %v6207_v12, %v16937_v0  ;;  %v16944_v0 = vld [vmem:[#allocation82_spill] sm:$0xff] }
 0x704   : > { %v16005_v51 = vadd.f32 %v16938_v8, %v6213_v25  ;;  %v16945_v8 = vld [vmem:[#allocation55_spill] sm:$0xff] }
 0x705   : > { %v10248_v44 = vpop.f32.mrb[60].mxu0  ;;  %v16008_v53 = vadd.f32 %v16939_v42, %v6208_v47 }
 0x706   : > { %v6223_v4 = vadd.f32 %v10248_v44, %v16940_v41  ;;  %v6217_v24 = vpop.f32.mrb[61].mxu0  ;;  %v16947_v44 = vld [vmem:[#allocation79_spill] sm:$0xff] }
 0x707   : > { %v6218_v26 = vadd.f32 %v6217_v24, %v16941_v27 }
 0x708   : > { %v16013_v35 = vadd.f32 %v16942_v52, %v6223_v4 }
 0x709   : > { %v10251_v56 = vpop.f32.mrb[62].mxu0  ;;  %v16016_v19 = vadd.f32 %v16943_v45, %v6218_v26 }
 0x70a   : > { %v6233_v12 = vadd.f32 %v10251_v56, %v16944_v0  ;;  %v6227_v25 = vpop.f32.mrb[63].mxu0 }
 0x70b   : > { %v6228_v57 = vadd.f32 %v6227_v25, %v16945_v8 }
 0x70c   : > { %v16021_v47 = vadd.f32 %v16946_v20, %v6233_v12 }
 0x70d   : > { %v10286_v42 = vpop.f32.mrb[64].mxu0  ;;  %v16024_v41 = vadd.f32 %v16947_v44, %v6228_v57 }
 0x70e   : > { %v16027_v24 = vadd.f32 %v10286_v42, %v15853_v59  ;;  %v6527_v52 = vpop.f32.mrb[65].mxu0 }
 0x70f   : > { %v16030_v4 = vadd.f32 %v6527_v52, %v15858_v46 }
 0x711   : > { %v10289_v26 = vpop.f32.mrb[66].mxu0 }
 0x712   : > { %v16033_v27 = vadd.f32 %v10289_v26, %v15865_v29  ;;  %v6537_v56 = vpop.f32.mrb[67].mxu0 }
 0x713   : > { %v16036_v45 = vadd.f32 %v6537_v56, %v15870_v22 }
 0x715   : > { %v10292_v20 = vpop.f32.mrb[68].mxu0 }
 0x716   : > { %v16039_v0 = vadd.f32 %v10292_v20, %v15877_v13  ;;  %v6547_v57 = vpop.f32.mrb[69].mxu0 }
 0x717   : > { %v16042_v59 = vadd.f32 %v6547_v57, %v15882_v54 }
 0x719   : > { %v10295_v12 = vpop.f32.mrb[70].mxu0 }
 0x71a   : > { %v16045_v46 = vadd.f32 %v10295_v12, %v15889_v11  ;;  %v6557_v25 = vpop.f32.mrb[71].mxu0 }
 0x71b   : > { %v16048_v29 = vadd.f32 %v6557_v25, %v15894_v5 }
 0x71d   : > { %v10298_v8 = vpop.f32.mrb[72].mxu0 }
 0x71e   : > { %v16051_v22 = vadd.f32 %v10298_v8, %v15901_v58  ;;  %v6567_v42 = vpop.f32.mrb[73].mxu0 }
 0x71f   : > { %v16054_v13 = vadd.f32 %v6567_v42, %v15906_v15 }
 0x721   : > { %v10301_v44 = vpop.f32.mrb[74].mxu0 }
 0x722   : > { %v16057_v54 = vadd.f32 %v10301_v44, %v15913_v23  ;;  %v6577_v52 = vpop.f32.mrb[75].mxu0  ;;  %v7729_v44 = vld [vmem:[#allocation13] sm:$0xff] }
 0x723   : > { %v16060_v11 = vadd.f32 %v6577_v52, %v15918_v37  ;;  %v7730_v52 = vld [vmem:[#allocation13 + $0x8] sm:$0xff] }
 0x725   : > { %v10304_v26 = vpop.f32.mrb[76].mxu0 }
 0x726   : > { %v16063_v5 = vadd.f32 %v10304_v26, %v15925_v33  ;;  %v6587_v56 = vpop.f32.mrb[77].mxu0 }
 0x727   : > { %v16066_v58 = vadd.f32 %v6587_v56, %v15930_v3 }
 0x729   : > { %v10307_v20 = vpop.f32.mrb[78].mxu0 }
 0x72a   : > { %v16069_v15 = vadd.f32 %v10307_v20, %v15937_v30  ;;  %v6597_v57 = vpop.f32.mrb[79].mxu0 }
 0x72b   : > { %v16072_v23 = vadd.f32 %v6597_v57, %v15942_v36  ;;  %v11756_v36 = vpack.c.bf16 %v7730_v52, %v7729_v44 }
 0x72d   : > { %v10310_v12 = vpop.f32.mrb[80].mxu0  ;;  %11757 = vmatprep.subr.bf16.mxu0 %v11756_v36 }
 0x72e   : > { %v16075_v37 = vadd.f32 %v10310_v12, %v15949_v55  ;;  %v6607_v25 = vpop.f32.mrb[81].mxu0 }
 0x72f   : > { %v16078_v33 = vadd.f32 %v6607_v25, %v15954_v2 }
 0x731   : > { %v10313_v8 = vpop.f32.mrb[82].mxu0 }
 0x732   : > { %v16081_v3 = vadd.f32 %v10313_v8, %v15961_v10  ;;  %v6617_v42 = vpop.f32.mrb[83].mxu0 }
 0x733   : > { %v16084_v30 = vadd.f32 %v6617_v42, %v15966_v63 }
 0x735   : > { %v10316_v26 = vpop.f32.mrb[84].mxu0 }
 0x736   : > { %v16087_v56 = vadd.f32 %v10316_v26, %v15973_v60  ;;  %v6627_v55 = vpop.f32.mrb[85].mxu0 }
 0x737   : > { %v16090_v2 = vadd.f32 %v6627_v55, %v15978_v7 }
 0x739   : > { %v10319_v20 = vpop.f32.mrb[86].mxu0 }
 0x73a   : > { %v16093_v10 = vadd.f32 %v10319_v20, %v15985_v16  ;;  %v6637_v57 = vpop.f32.mrb[87].mxu0 }
 0x73b   : > { %v16096_v63 = vadd.f32 %v6637_v57, %v15990_v61  ;;  %v16116_v55 = vpop.f32.mrb[174].mxu1 }
 0x73c   : > { %16950 = vst [vmem:[#allocation77_spill] sm:$0xff] %v16116_v55 }
 0x73d   : > { %v10322_v12 = vpop.f32.mrb[88].mxu0 }
 0x73e   : > { %v16099_v25 = vadd.f32 %v10322_v12, %v15997_v21  ;;  %v6647_v8 = vpop.f32.mrb[89].mxu0 }
 0x73f   : > { %v16102_v60 = vadd.f32 %v6647_v8, %v16000_v40  ;;  %v16118_v40 = vpop.f32.mrb[175].mxu1  ;;  %v16954_v8 = vld [vmem:[#allocation54_spill] sm:$0xff] }
 0x740   : > { %16951 = vst [vmem:[#allocation51_spill] sm:$0xff] %v16118_v40 }
 0x741   : > { %v10325_v42 = vpop.f32.mrb[90].mxu0 }
 0x742   : > { %v16105_v7 = vadd.f32 %v10325_v42, %v16005_v51  ;;  %v6657_v44 = vpop.f32.mrb[91].mxu0 }
 0x743   : > { %v16108_v16 = vadd.f32 %v6657_v44, %v16008_v53  ;;  %v16127_v44 = vld [vmem:[#allocation16] ss:$0 sm:$0xff] }
 0x745   : > { %v10328_v52 = vpop.f32.mrb[92].mxu0 }
 0x746   : > { %v16111_v61 = vadd.f32 %v10328_v52, %v16013_v35  ;;  %v6667_v26 = vpop.f32.mrb[93].mxu0 }
 0x747   : > { %v16114_v21 = vadd.f32 %v6667_v26, %v16016_v19  ;;  %v16955_v26 = vld [vmem:[#allocation48_spill] sm:$0xff] }
 0x748   : > { %16948 = vst [vmem:[#allocation40_spill] sm:$0xff] %v16111_v61 }
 0x749   : > { %16949 = vst [vmem:[#allocation78_spill] sm:$0xff] %v16114_v21  ;;  %v10331_v20 = vpop.f32.mrb[94].mxu0 }
 0x74a   : > { %v16121_v51 = vadd.f32 %v10331_v20, %v16021_v47  ;;  %v6677_v57 = vpop.f32.mrb[95].mxu0  ;;  %v7731_v47 = vld [vmem:[#allocation13 + $0x10] sm:$0xff]  ;;  %v7732_v20 = vld [vmem:[#allocation13 + $0x18] sm:$0xff] }
 0x74b   : > { %v16124_v53 = vadd.f32 %v6677_v57, %v16024_v41  ;;  %v16133_v41 = vld [vmem:[#allocation2 + $0x32] sm:$0xff] }
 0x74c   : > { %16952 = vst [vmem:[#allocation52_spill] sm:$0xff] %v16121_v51  ;;  %16956 = vst [vmem:[#allocation46_spill] sm:$0xff] %v16133_v41 }
 0x74d   : > { %16953 = vst [vmem:[#allocation44_spill] sm:$0xff] %v16124_v53  ;;  %v6898_v12 = vpop.f32.mrb[96].mxu0 }
 0x74e   : > { %v7124_v35 = vadd.f32 %v16954_v8, %v6898_v12  ;;  %v6900_v42 = vpop.f32.mrb[97].mxu0 }
 0x74f   : > { %v16957_v42 = vld [vmem:[#allocation84_spill] sm:$0xff] }
 0x750   : > { %v7282_v19 = vadd.f32 %v7124_v35, %v16030_v4 }
 0x751   : > { %v6903_v52 = vpop.f32.mrb[98].mxu0 }
 0x752   : > { %v7129_v55 = vadd.f32 %v16955_v26, %v6903_v52  ;;  %v6905_v40 = vpop.f32.mrb[99].mxu0  ;;  %v7321_v61 = vadd.f32 %v16127_v44, %v7282_v19  ;;  %v11760_v52 = vpack.c.bf16 %v7732_v20, %v7731_v47  ;;  %v7734_v26 = vld [vmem:[#allocation13 + $0x28] sm:$0xff]  ;;  %v7735_v47 = vld [vmem:[#allocation13 + $0x30] sm:$0xff]  ;;  %v7736_v20 = vld [vmem:[#allocation13 + $0x38] sm:$0xff] }
 0x753   : > { %v7733_v40 = vld [vmem:[#allocation13 + $0x20] sm:$0xff]  ;;  %v16138_v19 = vld [vmem:[#allocation2 + $0x3a] sm:$0xff] }
 0x754   : > { %v7283_v51 = vadd.f32 %v7129_v55, %v16027_v24  ;;  %10524 = vmatprep.mubr.f32.mxu0 %v7321_v61  ;;  %v7417_v57 = vadd.f32 %v16133_v41, %v7321_v61  ;;  %v16958_v61 = vld [vmem:[#allocation83_spill] sm:$0xff] }
 0x755   : > { %v6908_v12 = vpop.f32.mrb[100].mxu0 }
 0x756   : > { %v7322_v8 = vadd.f32 %v16127_v44, %v7283_v51  ;;  %v7134_v4 = vadd.f32 %v16957_v42, %v6908_v12  ;;  %v6910_v35 = vpop.f32.mrb[101].mxu0  ;;  %10444 = vmatprep.mubr.f32.mxu1 %v7417_v57  ;;  %v11764_v57 = vpack.c.bf16 %v7734_v26, %v7733_v40  ;;  %v16145_v42 = vld [vmem:[#allocation2 + $0x4a] sm:$0xff]  ;;  %v7738_v40 = vld [vmem:[#allocation13 + $0x48] sm:$0xff] }
 0x757   : > { %v7737_v35 = vld [vmem:[#allocation13 + $0x40] sm:$0xff] }
 0x758   : > { %v7418_v53 = vadd.f32 %v16138_v19, %v7322_v8  ;;  %v7284_v24 = vadd.f32 %v7134_v4, %v16036_v45  ;;  %10525 = vmatmul.mubr.f32.vlgmr.msra.gmra.mrb[160].mxu0 %v7322_v8  ;;  %v11768_v4 = vpack.c.bf16 %v7736_v20, %v7735_v47  ;;  %v16150_v26 = vld [vmem:[#allocation2 + $0x52] sm:$0xff]  ;;  %v7739_v47 = vld [vmem:[#allocation13 + $0x50] sm:$0xff]  ;;  %v7740_v20 = vld [vmem:[#allocation13 + $0x58] sm:$0xff] }
 0x759   : > { %v6913_v55 = vpop.f32.mrb[102].mxu0  ;;  %11759 = vmatpush3.bf16.msra.mxu0 %v11756_v36 }
 0x75a   : > { %v7139_v41 = vadd.f32 %v16958_v61, %v6913_v55  ;;  %v6915_v21 = vpop.f32.mrb[103].mxu0  ;;  %10445 = vmatmul.mubr.f32.vlgmr.msra.gmra.mrb[176].mxu1 %v7418_v53  ;;  %v7323_v51 = vadd.f32 %v16127_v44, %v7284_v24  ;;  %11761 = vmatprep.subr.bf16.mxu0 %v11760_v52 }
 0x75c   : > { %v7285_v12 = vadd.f32 %v7139_v41, %v16033_v27  ;;  %10527 = vmatprep.mubr.f32.mxu0 %v7323_v51  ;;  %v7419_v45 = vadd.f32 %v16145_v42, %v7323_v51  ;;  %v11772_v51 = vpack.c.bf16 %v7738_v40, %v7737_v35  ;;  %v7741_v35 = vld [vmem:[#allocation13 + $0x60] sm:$0xff]  ;;  %v7742_v40 = vld [vmem:[#allocation13 + $0x68] sm:$0xff] }
 0x75d   : > { %v6918_v8 = vpop.f32.mrb[104].mxu0  ;;  %11763 = vmatpush3.bf16.msra.mxu0 %v11760_v52  ;;  %v16959_v52 = vld [vmem:[#allocation85_spill] sm:$0xff] }
 0x75e   : > { %v7324_v36 = vadd.f32 %v16127_v44, %v7285_v12  ;;  %v7144_v21 = vadd.f32 %v15849_v18, %v6918_v8  ;;  %v6920_v53 = vpop.f32.mrb[105].mxu0  ;;  %10447 = vmatprep.mubr.f32.mxu1 %v7419_v45  ;;  %11765 = vmatprep.subr.bf16.mxu0 %v11764_v57  ;;  %v16157_v45 = vld [vmem:[#allocation2 + $0x62] sm:$0xff] }
 0x75f   : > { %v11776_v53 = vpack.c.bf16 %v7740_v20, %v7739_v47  ;;  %v16169_v20 = vld [vmem:[#allocation2 + $0x7a] sm:$0xff] }
 0x760   : > { %v7420_v27 = vadd.f32 %v16150_v26, %v7324_v36  ;;  %v7286_v41 = vadd.f32 %v7144_v21, %v16042_v59  ;;  %10528 = vmatmul.mubr.f32.gmra.mrb[162].mxu0 %v7324_v36 }
 0x761   : > { %v6923_v24 = vpop.f32.mrb[106].mxu0  ;;  %11767 = vmatpush3.bf16.msra.mxu0 %v11764_v57 }
 0x762   : > { %v7149_v55 = vadd.f32 %v16959_v52, %v6923_v24  ;;  %v6925_v61 = vpop.f32.mrb[107].mxu0  ;;  %10448 = vmatmul.mubr.f32.gmra.mrb[178].mxu1 %v7420_v27  ;;  %v7325_v18 = vadd.f32 %v16127_v44, %v7286_v41  ;;  %11769 = vmatprep.subr.bf16.mxu0 %v11768_v4  ;;  %v16162_v27 = vld [vmem:[#allocation2 + $0x6a] sm:$0xff] }
 0x763   : > { %v7743_v61 = vld [vmem:[#allocation13 + $0x70] sm:$0xff] }
 0x764   : > { %v7287_v12 = vadd.f32 %v7149_v55, %v16039_v0  ;;  %10530 = vmatprep.mubr.f32.mxu0 %v7325_v18  ;;  %v7421_v59 = vadd.f32 %v16157_v45, %v7325_v18  ;;  %v11780_v55 = vpack.c.bf16 %v7742_v40, %v7741_v35  ;;  %v7744_v18 = vld [vmem:[#allocation13 + $0x78] sm:$0xff] }
 0x765   : > { %v6928_v8 = vpop.f32.mrb[108].mxu0  ;;  %11771 = vmatpush3.bf16.msra.mxu0 %v11768_v4 }
 0x766   : > { %v7326_v57 = vadd.f32 %v16127_v44, %v7287_v12  ;;  %v7154_v36 = vadd.f32 %v15861_v17, %v6928_v8  ;;  %v6930_v21 = vpop.f32.mrb[109].mxu0  ;;  %10450 = vmatprep.mubr.f32.mxu1 %v7421_v59  ;;  %11773 = vmatprep.subr.bf16.mxu0 %v11772_v51  ;;  %v11784_v8 = vpack.c.bf16 %v7744_v18, %v7743_v61 }
 0x768   : > { %v7422_v0 = vadd.f32 %v16162_v27, %v7326_v57  ;;  %v7288_v41 = vadd.f32 %v7154_v36, %v16048_v29  ;;  %10531 = vmatmul.mubr.f32.gmra.mrb[164].mxu0 %v7326_v57  ;;  %v16174_v57 = vld [vmem:[#allocation2 + $0x82] sm:$0xff] }
 0x769   : > { %v6933_v24 = vpop.f32.mrb[110].mxu0  ;;  %11775 = vmatpush3.bf16.msra.mxu0 %v11772_v51 }
 0x76a   : > { %v7159_v4 = vadd.f32 %v15855_v28, %v6933_v24  ;;  %v6935_v52 = vpop.f32.mrb[111].mxu0  ;;  %10451 = vmatmul.mubr.f32.gmra.mrb[180].mxu1 %v7422_v0  ;;  %v7327_v17 = vadd.f32 %v16127_v44, %v7288_v41  ;;  %11777 = vmatprep.subr.bf16.mxu0 %v11776_v53  ;;  %v16181_v0 = vld [vmem:[#allocation2 + $0x92] sm:$0xff] }
 0x76c   : > { %v7289_v47 = vadd.f32 %v7159_v4, %v16045_v46  ;;  %10533 = vmatprep.mubr.f32.mxu0 %v7327_v17  ;;  %v7423_v29 = vadd.f32 %v16169_v20, %v7327_v17 }
 0x76d   : > { %v6938_v12 = vpop.f32.mrb[112].mxu0  ;;  %11779 = vmatpush3.bf16.msra.mxu0 %v11776_v53 }
 0x76e   : > { %v7328_v51 = vadd.f32 %v16127_v44, %v7289_v47  ;;  %v7164_v28 = vadd.f32 %v15873_v31, %v6938_v12  ;;  %v6940_v59 = vpop.f32.mrb[113].mxu0  ;;  %10453 = vmatprep.mubr.f32.mxu1 %v7423_v29  ;;  %11781 = vmatprep.subr.bf16.mxu0 %v11780_v55 }
 0x770   : > { %v7424_v36 = vadd.f32 %v16174_v57, %v7328_v51  ;;  %v7290_v46 = vadd.f32 %v7164_v28, %v16054_v13  ;;  %10534 = vmatmul.mubr.f32.gmra.mrb[166].mxu0 %v7328_v51 }
 0x771   : > { %v6943_v21 = vpop.f32.mrb[114].mxu0  ;;  %11783 = vmatpush3.bf16.msra.mxu0 %v11780_v55 }
 0x772   : > { %v7169_v35 = vadd.f32 %v15867_v62, %v6943_v21  ;;  %v6945_v53 = vpop.f32.mrb[115].mxu0  ;;  %10454 = vmatmul.mubr.f32.gmra.mrb[182].mxu1 %v7424_v36  ;;  %v7329_v40 = vadd.f32 %v16127_v44, %v7290_v46  ;;  %11785 = vmatprep.subr.bf16.mxu0 %v11784_v8  ;;  %v16186_v62 = vld [vmem:[#allocation2 + $0x9a] sm:$0xff] }
 0x774   : > { %v7291_v31 = vadd.f32 %v7169_v35, %v16051_v22  ;;  %10536 = vmatprep.mubr.f32.mxu0 %v7329_v40  ;;  %v7425_v41 = vadd.f32 %v16181_v0, %v7329_v40 }
 0x775   : > { %v6948_v24 = vpop.f32.mrb[116].mxu0  ;;  %11787 = vmatpush3.bf16.msra.mxu0 %v11784_v8  ;;  %v16198_v8 = vld [vmem:[#allocation2 + $0xb2] sm:$0xff] }
 0x776   : > { %v7330_v13 = vadd.f32 %v16127_v44, %v7291_v31  ;;  %v7174_v4 = vadd.f32 %v15885_v50, %v6948_v24  ;;  %v6950_v52 = vpop.f32.mrb[117].mxu0  ;;  %10456 = vmatprep.mubr.f32.mxu1 %v7425_v41  ;;  %v16193_v50 = vld [vmem:[#allocation2 + $0xaa] sm:$0xff] }
 0x778   : > { %v7426_v17 = vadd.f32 %v16186_v62, %v7330_v13  ;;  %v7292_v55 = vadd.f32 %v7174_v4, %v16060_v11  ;;  %10537 = vmatmul.mubr.f32.gmra.mrb[168].mxu0 %v7330_v13  ;;  %v16210_v13 = vld [vmem:[#allocation2 + $0xca] sm:$0xff] }
 0x779   : > { %v6953_v22 = vpop.f32.mrb[118].mxu0 }
 0x77a   : > { %v7179_v61 = vadd.f32 %v15879_v9, %v6953_v22  ;;  %v6955_v18 = vpop.f32.mrb[119].mxu0  ;;  %10457 = vmatmul.mubr.f32.gmra.mrb[184].mxu1 %v7426_v17  ;;  %v7331_v47 = vadd.f32 %v16127_v44, %v7292_v55 }
 0x77c   : > { %v7293_v29 = vadd.f32 %v7179_v61, %v16057_v54  ;;  %10539 = vmatprep.mubr.f32.mxu0 %v7331_v47  ;;  %v7427_v12 = vadd.f32 %v16193_v50, %v7331_v47 }
 0x77d   : > { %v6958_v51 = vpop.f32.mrb[120].mxu0 }
 0x77e   : > { %v7332_v28 = vadd.f32 %v16127_v44, %v7293_v29  ;;  %v7184_v11 = vadd.f32 %v15897_v43, %v6958_v51  ;;  %v6960_v59 = vpop.f32.mrb[121].mxu0  ;;  %10459 = vmatprep.mubr.f32.mxu1 %v7427_v12  ;;  %v16205_v43 = vld [vmem:[#allocation2 + $0xc2] sm:$0xff] }
 0x77f   : > { %v16222_v12 = vld [vmem:[#allocation2 + $0xe2] sm:$0xff] }
 0x780   : > { %v7428_v9 = vadd.f32 %v16198_v8, %v7332_v28  ;;  %v7294_v36 = vadd.f32 %v7184_v11, %v16066_v58  ;;  %10540 = vmatmul.mubr.f32.gmra.mrb[170].mxu0 %v7332_v28  ;;  %v8246_v28 = vld [vmem:[#allocation13 + $0x108] sm:$0xff] }
 0x781   : > { %v6963_v54 = vpop.f32.mrb[122].mxu0 }
 0x782   : > { %v7189_v46 = vadd.f32 %v15891_v39, %v6963_v54  ;;  %v6965_v21 = vpop.f32.mrb[123].mxu0  ;;  %10460 = vmatmul.mubr.f32.gmra.mrb[186].mxu1 %v7428_v9  ;;  %v7333_v35 = vadd.f32 %v16127_v44, %v7294_v36 }
 0x784   : > { %v7295_v53 = vadd.f32 %v7189_v46, %v16063_v5  ;;  %10542 = vmatprep.mubr.f32.mxu0 %v7333_v35  ;;  %v7429_v40 = vadd.f32 %v16205_v43, %v7333_v35  ;;  %v16232_v46 = vld [vmem:[#allocation2 + $0xf2] sm:$0xff] }
 0x785   : > { %v6968_v31 = vpop.f32.mrb[124].mxu0 }
 0x786   : > { %v7334_v41 = vadd.f32 %v16127_v44, %v7295_v53  ;;  %v7194_v58 = vadd.f32 %v15909_v49, %v6968_v31  ;;  %v6970_v24 = vpop.f32.mrb[125].mxu0  ;;  %10462 = vmatprep.mubr.f32.mxu1 %v7429_v40  ;;  %v16217_v49 = vld [vmem:[#allocation2 + $0xda] sm:$0xff] }
 0x788   : > { %v7430_v39 = vadd.f32 %v16210_v13, %v7334_v41  ;;  %v7296_v4 = vadd.f32 %v7194_v58, %v16072_v23  ;;  %10543 = vmatmul.mubr.f32.gmra.mrb[172].mxu0 %v7334_v41 }
 0x789   : > { %v6973_v5 = vpop.f32.mrb[126].mxu0 }
 0x78a   : > { %v7199_v52 = vadd.f32 %v15903_v6, %v6973_v5  ;;  %v6975_v17 = vpop.f32.mrb[127].mxu0  ;;  %10463 = vmatmul.mubr.f32.gmra.mrb[188].mxu1 %v7430_v39  ;;  %v7335_v55 = vadd.f32 %v16127_v44, %v7296_v4 }
 0x78c   : > { %v7297_v22 = vadd.f32 %v7199_v52, %v16069_v15  ;;  %10545 = vmatprep.mubr.f32.mxu0 %v7335_v55  ;;  %v7431_v61 = vadd.f32 %v16217_v49, %v7335_v55  ;;  %v8245_v15 = vld [vmem:[#allocation13 + $0x100] sm:$0xff] }
 0x78d   : > { %v6978_v18 = vpop.f32.mrb[128].mxu0  ;;  %v16226_v59 = vpack.c.bf16 %v8246_v28, %v8245_v15  ;;  %v16960_v28 = vld [vmem:[#allocation87_spill] sm:$0xff] }
 0x78e   : > { %v7336_v47 = vadd.f32 %v16127_v44, %v7297_v22  ;;  %v7204_v23 = vadd.f32 %v15921_v34, %v6978_v18  ;;  %v6980_v29 = vpop.f32.mrb[129].mxu0  ;;  %10465 = vmatprep.mubr.f32.mxu1 %v7431_v61  ;;  %v16249_v22 = vld [vmem:[#allocation2 + $0x112] sm:$0xff] }
 0x78f   : > { %11789 = vmatprep.subr.bf16.mxu0 %v16226_v59 }
 0x790   : > { %v7432_v6 = vadd.f32 %v16222_v12, %v7336_v47  ;;  %v7298_v51 = vadd.f32 %v7204_v23, %v16078_v33  ;;  %10546 = vmatmul.mubr.f32.gmra.mrb[174].mxu0 %v7336_v47 }
 0x791   : > { %v6983_v11 = vpop.f32.mrb[130].mxu0 }
 0x792   : > { %v7209_v9 = vadd.f32 %v15915_v1, %v6983_v11  ;;  %v6985_v36 = vpop.f32.mrb[131].mxu0  ;;  %10466 = vmatmul.mubr.f32.gmra.mrb[190].mxu1 %v7432_v6  ;;  %v7337_v34 = vadd.f32 %v16127_v44, %v7298_v51  ;;  %v16237_v1 = vld [vmem:[#allocation2 + $0xfa] sm:$0xff] }
 0x794   : > { %v7299_v54 = vadd.f32 %v7209_v9, %v16075_v37  ;;  %10548 = vmatprep.mubr.f32.mxu0 %v7337_v34  ;;  %v7433_v33 = vadd.f32 %v16232_v46, %v7337_v34  ;;  %v16261_v9 = vld [vmem:[#allocation2 + $0x12a] sm:$0xff]  ;;  %v16961_v34 = vld [vmem:[#allocation86_spill] sm:$0xff] }
 0x795   : > { %v6988_v21 = vpop.f32.mrb[132].mxu0 }
 0x796   : > { %v7338_v35 = vadd.f32 %v16127_v44, %v7299_v54  ;;  %v7214_v53 = vadd.f32 %v15933_v38, %v6988_v21  ;;  %v6990_v40 = vpop.f32.mrb[133].mxu0  ;;  %10468 = vmatprep.mubr.f32.mxu1 %v7433_v33  ;;  %v16244_v38 = vld [vmem:[#allocation2 + $0x10a] sm:$0xff] }
 0x798   : > { %v7434_v31 = vadd.f32 %v16237_v1, %v7338_v35  ;;  %v7300_v41 = vadd.f32 %v7214_v53, %v16084_v30  ;;  %10549 = vmatmul.mubr.f32.gmra.mrb[176].mxu0 %v7338_v35  ;;  %v16268_v53 = vld [vmem:[#allocation2 + $0x13a] sm:$0xff] }
 0x799   : > { %v6993_v37 = vpop.f32.mrb[134].mxu0 }
 0x79a   : > { %v7219_v58 = vadd.f32 %v15927_v14, %v6993_v37  ;;  %v6995_v24 = vpop.f32.mrb[135].mxu0  ;;  %10469 = vmatmul.mubr.f32.gmra.mrb[192].mxu1 %v7434_v31  ;;  %v7339_v39 = vadd.f32 %v16127_v44, %v7300_v41  ;;  %v16962_v37 = vld [vmem:[#allocation89_spill] sm:$0xff] }
 0x79b   : > { %v16273_v24 = vld [vmem:[#allocation2 + $0x142] sm:$0xff] }
 0x79c   : > { %v7301_v4 = vadd.f32 %v7219_v58, %v16081_v3  ;;  %10551 = vmatprep.mubr.f32.mxu0 %v7339_v39  ;;  %v7435_v5 = vadd.f32 %v16244_v38, %v7339_v39 }
 0x79d   : > { %v6998_v52 = vpop.f32.mrb[136].mxu0 }
 0x79e   : > { %v7340_v17 = vadd.f32 %v16127_v44, %v7301_v4  ;;  %v7224_v30 = vadd.f32 %v15945_v48, %v6998_v52  ;;  %v7000_v55 = vpop.f32.mrb[137].mxu0  ;;  %10471 = vmatprep.mubr.f32.mxu1 %v7435_v5  ;;  %v16256_v48 = vld [vmem:[#allocation2 + $0x122] sm:$0xff]  ;;  %v16963_v5 = vld [vmem:[#allocation88_spill] sm:$0xff] }
 0x7a0   : > { %v7436_v14 = vadd.f32 %v16249_v22, %v7340_v17  ;;  %v7302_v61 = vadd.f32 %v7224_v30, %v16090_v2  ;;  %10552 = vmatmul.mubr.f32.gmra.mrb[178].mxu0 %v7340_v17 }
 0x7a1   : > { %v7003_v3 = vpop.f32.mrb[138].mxu0 }
 0x7a2   : > { %v7229_v18 = vadd.f32 %v15939_v32, %v7003_v3  ;;  %v7005_v47 = vpop.f32.mrb[139].mxu0  ;;  %10472 = vmatmul.mubr.f32.gmra.mrb[194].mxu1 %v7436_v14  ;;  %v7341_v23 = vadd.f32 %v16127_v44, %v7302_v61  ;;  %v16280_v14 = vld [vmem:[#allocation2 + $0x152] sm:$0xff] }
 0x7a3   : > { %v16964_v47 = vld [vmem:[#allocation91_spill] sm:$0xff] }
 0x7a4   : > { %v7303_v29 = vadd.f32 %v7229_v18, %v16087_v56  ;;  %10554 = vmatprep.mubr.f32.mxu0 %v7341_v23  ;;  %v7437_v6 = vadd.f32 %v16256_v48, %v7341_v23 }
 0x7a5   : > { %v7008_v51 = vpop.f32.mrb[140].mxu0 }
 0x7a6   : > { %v7342_v15 = vadd.f32 %v16127_v44, %v7303_v29  ;;  %v7234_v2 = vadd.f32 %v16960_v28, %v7008_v51  ;;  %v7010_v11 = vpop.f32.mrb[141].mxu0  ;;  %10474 = vmatprep.mubr.f32.mxu1 %v7437_v6  ;;  %v16285_v29 = vld [vmem:[#allocation2 + $0x15a] sm:$0xff] }
 0x7a8   : > { %v7438_v32 = vadd.f32 %v16261_v9, %v7342_v15  ;;  %v7304_v36 = vadd.f32 %v7234_v2, %v16096_v63  ;;  %10555 = vmatmul.mubr.f32.gmra.mrb[180].mxu0 %v7342_v15  ;;  %v16965_v15 = vld [vmem:[#allocation90_spill] sm:$0xff] }
 0x7a9   : > { %v7013_v56 = vpop.f32.mrb[142].mxu0 }
 0x7aa   : > { %v7239_v54 = vadd.f32 %v16961_v34, %v7013_v56  ;;  %v7015_v33 = vpop.f32.mrb[143].mxu0  ;;  %10475 = vmatmul.mubr.f32.gmra.mrb[196].mxu1 %v7438_v32  ;;  %v7343_v21 = vadd.f32 %v16127_v44, %v7304_v36  ;;  %v16292_v36 = vld [vmem:[#allocation2 + $0x16a] sm:$0xff] }
 0x7ab   : > { %v16966_v33 = vld [vmem:[#allocation49_spill] sm:$0xff] }
 0x7ac   : > { %v7305_v35 = vadd.f32 %v7239_v54, %v16093_v10  ;;  %10557 = vmatprep.mubr.f32.mxu0 %v7343_v21  ;;  %v7439_v40 = vadd.f32 %v16268_v53, %v7343_v21 }
 0x7ad   : > { %v7018_v31 = vpop.f32.mrb[144].mxu0 }
 0x7ae   : > { %v7344_v41 = vadd.f32 %v16127_v44, %v7305_v35  ;;  %v7244_v63 = vadd.f32 %v16962_v37, %v7018_v31  ;;  %v7020_v58 = vpop.f32.mrb[145].mxu0  ;;  %10477 = vmatprep.mubr.f32.mxu1 %v7439_v40  ;;  %v16297_v35 = vld [vmem:[#allocation2 + $0x172] sm:$0xff]  ;;  %v16967_v31 = vld [vmem:[#allocation78_spill] sm:$0xff] }
 0x7af   : > { %v16968_v37 = vld [vmem:[#allocation92_spill] sm:$0xff] }
 0x7b0   : > { %v7440_v39 = vadd.f32 %v16273_v24, %v7344_v41  ;;  %v7306_v4 = vadd.f32 %v7244_v63, %v16102_v60  ;;  %10558 = vmatmul.mubr.f32.gmra.mrb[182].mxu0 %v7344_v41 }
 0x7b1   : > { %v7023_v10 = vpop.f32.mrb[146].mxu0 }
 0x7b2   : > { %v7249_v52 = vadd.f32 %v16963_v5, %v7023_v10  ;;  %v7025_v17 = vpop.f32.mrb[147].mxu0  ;;  %10478 = vmatmul.mubr.f32.gmra.mrb[198].mxu1 %v7440_v39  ;;  %v7345_v30 = vadd.f32 %v16127_v44, %v7306_v4  ;;  %v16969_v4 = vld [vmem:[#allocation40_spill] sm:$0xff]  ;;  %v16304_v5 = vld [vmem:[#allocation2 + $0x182] sm:$0xff] }
 0x7b4   : > { %v7307_v55 = vadd.f32 %v7249_v52, %v16099_v25  ;;  %10560 = vmatprep.mubr.f32.mxu0 %v7345_v30  ;;  %v7441_v61 = vadd.f32 %v16280_v14, %v7345_v30 }
 0x7b5   : > { %v7028_v3 = vpop.f32.mrb[148].mxu0 }
 0x7b6   : > { %v7346_v18 = vadd.f32 %v16127_v44, %v7307_v55  ;;  %v7254_v60 = vadd.f32 %v16964_v47, %v7028_v3  ;;  %v7030_v23 = vpop.f32.mrb[149].mxu0  ;;  %10480 = vmatprep.mubr.f32.mxu1 %v7441_v61  ;;  %v16970_v55 = vld [vmem:[#allocation51_spill] sm:$0xff] }
 0x7b8   : > { %v7442_v6 = vadd.f32 %v16285_v29, %v7346_v18  ;;  %v7308_v51 = vadd.f32 %v7254_v60, %v16108_v16  ;;  %10561 = vmatmul.mubr.f32.gmra.mrb[184].mxu0 %v7346_v18  ;;  %v16309_v18 = vld [vmem:[#allocation2 + $0x18a] sm:$0xff] }
 0x7b9   : > { %v7033_v25 = vpop.f32.mrb[150].mxu0  ;;  %v16971_v60 = vld [vmem:[#allocation44_spill] sm:$0xff] }
 0x7ba   : > { %v7259_v28 = vadd.f32 %v16965_v15, %v7033_v25  ;;  %v7035_v2 = vpop.f32.mrb[151].mxu0  ;;  %10481 = vmatmul.mubr.f32.gmra.mrb[200].mxu1 %v7442_v6  ;;  %v7347_v11 = vadd.f32 %v16127_v44, %v7308_v51  ;;  %v16972_v51 = vld [vmem:[#allocation77_spill] sm:$0xff] }
 0x7bb   : > { %v16973_v2 = vld [vmem:[#allocation52_spill] sm:$0xff] }
 0x7bc   : > { %v7309_v32 = vadd.f32 %v7259_v28, %v16105_v7  ;;  %10563 = vmatprep.mubr.f32.mxu0 %v7347_v11  ;;  %v7443_v56 = vadd.f32 %v16292_v36, %v7347_v11 }
 0x7bd   : > { %v7038_v34 = vpop.f32.mrb[152].mxu0 }
 0x7be   : > { %v7348_v54 = vadd.f32 %v16127_v44, %v7309_v32  ;;  %v7264_v16 = vadd.f32 %v16966_v33, %v7038_v34  ;;  %v7040_v21 = vpop.f32.mrb[153].mxu0  ;;  %10483 = vmatprep.mubr.f32.mxu1 %v7443_v56  ;;  %v16316_v32 = vld [vmem:[#allocation2 + $0x19a] sm:$0xff]  ;;  %v8248_v33 = vld [vmem:[#allocation13 + $0x118] sm:$0xff] }
 0x7c0   : > { %v7444_v40 = vadd.f32 %v16297_v35, %v7348_v54  ;;  %v7310_v41 = vadd.f32 %v7264_v16, %v16967_v31  ;;  %10564 = vmatmul.mubr.f32.gmra.mrb[186].mxu0 %v7348_v54  ;;  %v8247_v54 = vld [vmem:[#allocation13 + $0x110] sm:$0xff] }
 0x7c1   : > { %v7043_v7 = vpop.f32.mrb[154].mxu0  ;;  %v16320_v16 = vld [vmem:[#allocation2 + $0x1a2] sm:$0xff]  ;;  %v11792_v31 = vpack.c.bf16 %v8248_v33, %v8247_v54  ;;  %v16986_v54 = vld [vmem:[#allocation64_spill] sm:$0xff] }
 0x7c2   : > { %v7269_v63 = vadd.f32 %v16968_v37, %v7043_v7  ;;  %v7045_v58 = vpop.f32.mrb[155].mxu0  ;;  %10484 = vmatmul.mubr.f32.gmra.mrb[202].mxu1 %v7444_v40  ;;  %v7349_v39 = vadd.f32 %v16127_v44, %v7310_v41  ;;  %v16974_v40 = vld [vmem:[#allocation53_spill] sm:$0xff]  ;;  %v8249_v41 = vld [vmem:[#allocation13 + $0x120] sm:$0xff] }
 0x7c3   : > { %v8250_v7 = vld [vmem:[#allocation13 + $0x128] sm:$0xff]  ;;  %v8251_v58 = vld [vmem:[#allocation13 + $0x130] sm:$0xff] }
 0x7c4   : > { %v7311_v10 = vadd.f32 %v7269_v63, %v16969_v4  ;;  %10566 = vmatprep.mubr.f32.mxu0 %v7349_v39  ;;  %v7445_v52 = vadd.f32 %v16304_v5, %v7349_v39  ;;  %v16975_v37 = vld [vmem:[#allocation45_spill] sm:$0xff]  ;;  %v8252_v39 = vld [vmem:[#allocation13 + $0x138] sm:$0xff]  ;;  %v16977_v4 = vld [vmem:[#allocation58_spill] sm:$0xff] }
 0x7c5   : > { %v7048_v17 = vpop.f32.mrb[156].mxu0  ;;  %v16976_v63 = vld [vmem:[#allocation57_spill] sm:$0xff] }
 0x7c6   : > { %v7350_v30 = vadd.f32 %v16127_v44, %v7311_v10  ;;  %v7274_v61 = vadd.f32 %v16970_v55, %v7048_v17  ;;  %v7050_v3 = vpop.f32.mrb[157].mxu0  ;;  %10486 = vmatprep.mubr.f32.mxu1 %v7445_v52  ;;  %v16978_v10 = vld [vmem:[#allocation56_spill] sm:$0xff]  ;;  %v11800_v52 = vpack.c.bf16 %v8252_v39, %v8251_v58  ;;  %v16979_v55 = vld [vmem:[#allocation34_spill] sm:$0xff]  ;;  %v16992_v58 = vld [vmem:[#allocation69_spill] sm:$0xff] }
 0x7c7   : > { %v8253_v17 = vld [vmem:[#allocation13 + $0x140] sm:$0xff]  ;;  %v8255_v3 = vld [vmem:[#allocation13 + $0x150] sm:$0xff] }
 0x7c8   : > { %v7446_v47 = vadd.f32 %v16309_v18, %v7350_v30  ;;  %v7312_v23 = vadd.f32 %v7274_v61, %v16971_v60  ;;  %10567 = vmatmul.mubr.f32.gmra.mrb[188].mxu0 %v7350_v30  ;;  %v8254_v30 = vld [vmem:[#allocation13 + $0x148] sm:$0xff]  ;;  %v16980_v61 = vld [vmem:[#allocation60_spill] sm:$0xff] }
 0x7c9   : > { %v7053_v6 = vpop.f32.mrb[158].mxu0  ;;  %v16981_v60 = vld [vmem:[#allocation61_spill] sm:$0xff]  ;;  %v16993_v39 = vld [vmem:[#allocation68_spill] sm:$0xff] }
 0x7ca   : > { %v7279_v25 = vadd.f32 %v16972_v51, %v7053_v6  ;;  %v7055_v15 = vpop.f32.mrb[159].mxu0  ;;  %10487 = vmatmul.mubr.f32.gmra.mrb[204].mxu1 %v7446_v47  ;;  %v7351_v28 = vadd.f32 %v16127_v44, %v7312_v23  ;;  %v8256_v47 = vld [vmem:[#allocation13 + $0x158] sm:$0xff]  ;;  %v8257_v51 = vld [vmem:[#allocation13 + $0x160] sm:$0xff] }
 0x7cb   : > { %v16982_v23 = vld [vmem:[#allocation35_spill] sm:$0xff]  ;;  %v11808_v6 = vpack.c.bf16 %v8256_v47, %v8255_v3  ;;  %v17002_v3 = vld [vmem:[#allocation76_spill] sm:$0xff]  ;;  %v17003_v47 = vld [vmem:[#allocation41_spill] sm:$0xff] }
 0x7cc   : > { %v7313_v11 = vadd.f32 %v7279_v25, %v16973_v2  ;;  %10569 = vmatprep.mubr.f32.mxu0 %v7351_v28  ;;  %v7447_v56 = vadd.f32 %v16316_v32, %v7351_v28  ;;  %v8258_v25 = vld [vmem:[#allocation13 + $0x168] sm:$0xff]  ;;  %v16983_v15 = vld [vmem:[#allocation59_spill] sm:$0xff]  ;;  %v16984_v28 = vld [vmem:[#allocation62_spill] sm:$0xff] }
 0x7cd   : > { %v11812_v2 = vpack.c.bf16 %v8258_v25, %v8257_v51  ;;  %v8521_v25 = vld [vmem:[#allocation13 + $0x190] sm:$0xff] }
 0x7ce   : > { %v7352_v34 = vadd.f32 %v16127_v44, %v7313_v11  ;;  %10489 = vmatprep.mubr.f32.mxu1 %v7447_v56  ;;  %v11796_v44 = vpack.c.bf16 %v8250_v7, %v8249_v41  ;;  %v8259_v11 = vld [vmem:[#allocation13 + $0x170] sm:$0xff]  ;;  %v8260_v56 = vld [vmem:[#allocation13 + $0x178] sm:$0xff]  ;;  %v8520_v41 = vld [vmem:[#allocation13 + $0x188] sm:$0xff] }
 0x7cf   : > { %v11816_v33 = vpack.c.bf16 %v8260_v56, %v8259_v11  ;;  %v16989_v7 = vld [vmem:[#allocation37_spill] sm:$0xff] }
 0x7d0   : > { %v7448_v21 = vadd.f32 %v16320_v16, %v7352_v34  ;;  %10570 = vmatmul.mubr.f32.gmra.mrb[190].mxu0 %v7352_v34  ;;  %v16985_v34 = vld [vmem:[#allocation63_spill] sm:$0xff] }
 0x7d1   : > { %10604 = vmatprep.mubr.f32.mxu0 %v16974_v40  ;;  %v16988_v40 = vld [vmem:[#allocation66_spill] sm:$0xff] }
 0x7d2   : > { %10490 = vmatmul.mubr.f32.gmra.mrb[206].mxu1 %v7448_v21  ;;  %v16987_v21 = vld [vmem:[#allocation36_spill] sm:$0xff] }
 0x7d4   : > { %10605 = vmatmul.mubr.f32.vlgmr.msra.gmra.mrb[160].mxu0 %v16975_v37 }
 0x7d5   : > { %10607 = vmatprep.mubr.f32.mxu0 %v16976_v63  ;;  %11791 = vmatpush3.bf16.msra.mxu0 %v16226_v59  ;;  %v11804_v59 = vpack.c.bf16 %v8254_v30, %v8253_v17  ;;  %v16990_v63 = vld [vmem:[#allocation38_spill] sm:$0xff]  ;;  %v16997_v17 = vld [vmem:[#allocation71_spill] sm:$0xff]  ;;  %v16998_v30 = vld [vmem:[#allocation33_spill] sm:$0xff] }
 0x7d6   : > { %11793 = vmatprep.subr.bf16.mxu0 %v11792_v31 }
 0x7d8   : > { %10608 = vmatmul.mubr.f32.gmra.mrb[162].mxu0 %v16977_v4  ;;  %v16994_v4 = vld [vmem:[#allocation39_spill] sm:$0xff] }
 0x7d9   : > { %10610 = vmatprep.mubr.f32.mxu0 %v16978_v10  ;;  %11795 = vmatpush3.bf16.msra.mxu0 %v11792_v31  ;;  %v8519_v31 = vld [vmem:[#allocation13 + $0x180] sm:$0xff]  ;;  %v16995_v10 = vld [vmem:[#allocation67_spill] sm:$0xff] }
 0x7da   : > { %11797 = vmatprep.subr.bf16.mxu0 %v11796_v44  ;;  %v11820_v37 = vpack.c.bf16 %v8520_v41, %v8519_v31  ;;  %v8526_v31 = vld [vmem:[#allocation13 + $0x1b8] sm:$0xff] }
 0x7dc   : > { %10611 = vmatmul.mubr.f32.gmra.mrb[164].mxu0 %v16979_v55  ;;  %v16999_v55 = vld [vmem:[#allocation70_spill] sm:$0xff] }
 0x7dd   : > { %10613 = vmatprep.mubr.f32.mxu0 %v16980_v61  ;;  %11799 = vmatpush3.bf16.msra.mxu0 %v11796_v44  ;;  %v16991_v44 = vld [vmem:[#allocation65_spill] sm:$0xff] }
 0x7de   : > { %11801 = vmatprep.subr.bf16.mxu0 %v11800_v52  ;;  %v17000_v61 = vld [vmem:[#allocation73_spill] sm:$0xff] }
 0x7e0   : > { %10614 = vmatmul.mubr.f32.gmra.mrb[166].mxu0 %v16981_v60  ;;  %v17004_v60 = vld [vmem:[#allocation43_spill] sm:$0xff] }
 0x7e1   : > { %10616 = vmatprep.mubr.f32.mxu0 %v16982_v23  ;;  %11803 = vmatpush3.bf16.msra.mxu0 %v11800_v52  ;;  %v16996_v52 = vld [vmem:[#allocation72_spill] sm:$0xff]  ;;  %v17005_v23 = vld [vmem:[#allocation75_spill] sm:$0xff] }
 0x7e2   : > { %11805 = vmatprep.subr.bf16.mxu0 %v11804_v59 }
 0x7e4   : > { %10617 = vmatmul.mubr.f32.gmra.mrb[168].mxu0 %v16983_v15  ;;  %v8522_v15 = vld [vmem:[#allocation13 + $0x198] sm:$0xff] }
 0x7e5   : > { %10619 = vmatprep.mubr.f32.mxu0 %v16984_v28  ;;  %11807 = vmatpush3.bf16.msra.mxu0 %v11804_v59  ;;  %v17001_v59 = vld [vmem:[#allocation74_spill] sm:$0xff]  ;;  %v11824_v56 = vpack.c.bf16 %v8522_v15, %v8521_v25 }
 0x7e6   : > { %11809 = vmatprep.subr.bf16.mxu0 %v11808_v6 }
 0x7e8   : > { %10620 = vmatmul.mubr.f32.gmra.mrb[170].mxu0 %v16985_v34  ;;  %v8523_v34 = vld [vmem:[#allocation13 + $0x1a0] sm:$0xff] }
 0x7e9   : > { %10622 = vmatprep.mubr.f32.mxu0 %v16986_v54  ;;  %11811 = vmatpush3.bf16.msra.mxu0 %v11808_v6  ;;  %v16356_v6 = vld [vmem:[#allocation18] ss:$0 sm:$0xff]  ;;  %v8524_v54 = vld [vmem:[#allocation13 + $0x1a8] sm:$0xff] }
 0x7ea   : > { %11813 = vmatprep.subr.bf16.mxu0 %v11812_v2 }
 0x7ec   : > { %10623 = vmatmul.mubr.f32.gmra.mrb[172].mxu0 %v16987_v21 }
 0x7ed   : > { %10625 = vmatprep.mubr.f32.mxu0 %v16988_v40  ;;  %11815 = vmatpush3.bf16.msra.mxu0 %v11812_v2  ;;  %v8525_v40 = vld [vmem:[#allocation13 + $0x1b0] sm:$0xff] }
 0x7ee   : > { %11817 = vmatprep.subr.bf16.mxu0 %v11816_v33 }
 0x7f0   : > { %10626 = vmatmul.mubr.f32.gmra.mrb[174].mxu0 %v16989_v7 }
 0x7f1   : > { %10628 = vmatprep.mubr.f32.mxu0 %v16990_v63  ;;  %11819 = vmatpush3.bf16.msra.mxu0 %v11816_v33  ;;  %v11828_v33 = vpack.c.bf16 %v8524_v54, %v8523_v34 }
 0x7f2   : > { %11821 = vmatprep.subr.bf16.mxu0 %v11820_v37 }
 0x7f4   : > { %10629 = vmatmul.mubr.f32.gmra.mrb[176].mxu0 %v16991_v44  ;;  %v11832_v44 = vpack.c.bf16 %v8526_v31, %v8525_v40 }
 0x7f5   : > { %10631 = vmatprep.mubr.f32.mxu0 %v16992_v58  ;;  %v8527_v58 = vld [vmem:[#allocation13 + $0x1c0] sm:$0xff] }
 0x7f8   : > { %10632 = vmatmul.mubr.f32.gmra.mrb[178].mxu0 %v16993_v39  ;;  %v8528_v39 = vld [vmem:[#allocation13 + $0x1c8] sm:$0xff] }
 0x7f9   : > { %10634 = vmatprep.mubr.f32.mxu0 %v16994_v4 }
 0x7fc   : > { %10635 = vmatmul.mubr.f32.gmra.mrb[180].mxu0 %v16995_v10  ;;  %v8529_v10 = vld [vmem:[#allocation13 + $0x1d0] sm:$0xff] }
 0x7fd   : > { %10637 = vmatprep.mubr.f32.mxu0 %v16996_v52  ;;  %v8530_v52 = vld [vmem:[#allocation13 + $0x1d8] sm:$0xff] }
 0x800   : > { %10638 = vmatmul.mubr.f32.gmra.mrb[182].mxu0 %v16997_v17 }
 0x801   : > { %10640 = vmatprep.mubr.f32.mxu0 %v16998_v30 }
 0x804   : > { %10641 = vmatmul.mubr.f32.gmra.mrb[184].mxu0 %v16999_v55 }
 0x805   : > { %10643 = vmatprep.mubr.f32.mxu0 %v17000_v61  ;;  %v11840_v61 = vpack.c.bf16 %v8530_v52, %v8529_v10 }
 0x808   : > { %10644 = vmatmul.mubr.f32.gmra.mrb[186].mxu0 %v17001_v59  ;;  %v8531_v59 = vld [vmem:[#allocation13 + $0x1e0] sm:$0xff] }
 0x809   : > { %10646 = vmatprep.mubr.f32.mxu0 %v17002_v3  ;;  %v8532_v3 = vld [vmem:[#allocation13 + $0x1e8] sm:$0xff] }
 0x80c   : > { %10647 = vmatmul.mubr.f32.gmra.mrb[188].mxu0 %v17003_v47  ;;  %v11844_v47 = vpack.c.bf16 %v8532_v3, %v8531_v59 }
 0x80d   : > { %10649 = vmatprep.mubr.f32.mxu0 %v17004_v60 }
 0x810   : > { %10650 = vmatmul.mubr.f32.gmra.mrb[190].mxu0 %v17005_v23  ;;  %v8533_v23 = vld [vmem:[#allocation13 + $0x1f0] sm:$0xff] }
 0x82d   : > { %v10446_v51 = vpop.f32.mrb[176].mxu1 }
 0x82e   : > { %v7538_v28 = vpop.f32.mrb[177].mxu1  ;;  %v7544_v11 = vadd.f32 %v10446_v51, %v16356_v6  ;;  %v8534_v51 = vld [vmem:[#allocation13 + $0x1f8] sm:$0xff] }
 0x82f   : > { %v7539_v2 = vadd.f32 %v16356_v6, %v7538_v28 }
 0x831   : > { %10684 = vmatprep.mubr.f32.mxu0 %v7539_v2  ;;  %v11848_v2 = vpack.c.bf16 %v8534_v51, %v8533_v23 }
 0x832   : > { %10685 = vmatmul.mubr.f32.vlgmr.msra.gmra.mrb[160].mxu0 %v7544_v11 }
 0x833   : > { %11823 = vmatpush3.bf16.msra.mxu0 %v11820_v37  ;;  %v11836_v37 = vpack.c.bf16 %v8528_v39, %v8527_v58 }
 0x834   : > { %11825 = vmatprep.subr.bf16.mxu0 %v11824_v56 }
 0x835   : > { %v10449_v21 = vpop.f32.mrb[178].mxu1 }
 0x836   : > { %v7548_v41 = vpop.f32.mrb[179].mxu1  ;;  %v7554_v63 = vadd.f32 %v10449_v21, %v16356_v6 }
 0x837   : > { %v7549_v7 = vadd.f32 %v16356_v6, %v7548_v41  ;;  %11827 = vmatpush3.bf16.msra.mxu0 %v11824_v56 }
 0x838   : > { %11829 = vmatprep.subr.bf16.mxu0 %v11828_v33 }
 0x839   : > { %10687 = vmatprep.mubr.f32.mxu0 %v7549_v7 }
 0x83a   : > { %10688 = vmatmul.mubr.f32.gmra.mrb[162].mxu0 %v7554_v63 }
 0x83b   : > { %11831 = vmatpush3.bf16.msra.mxu0 %v11828_v33 }
 0x83c   : > { %11833 = vmatprep.subr.bf16.mxu0 %v11832_v44 }
 0x83d   : > { %v10452_v4 = vpop.f32.mrb[180].mxu1 }
 0x83e   : > { %v7558_v17 = vpop.f32.mrb[181].mxu1  ;;  %v7564_v55 = vadd.f32 %v10452_v4, %v16356_v6 }
 0x83f   : > { %v7559_v30 = vadd.f32 %v16356_v6, %v7558_v17  ;;  %11835 = vmatpush3.bf16.msra.mxu0 %v11832_v44 }
 0x840   : > { %11837 = vmatprep.subr.bf16.mxu0 %v11836_v37 }
 0x841   : > { %10690 = vmatprep.mubr.f32.mxu0 %v7559_v30 }
 0x842   : > { %10691 = vmatmul.mubr.f32.gmra.mrb[164].mxu0 %v7564_v55 }
 0x843   : > { %11839 = vmatpush3.bf16.msra.mxu0 %v11836_v37 }
 0x844   : > { %11841 = vmatprep.subr.bf16.mxu0 %v11840_v61 }
 0x845   : > { %v10455_v60 = vpop.f32.mrb[182].mxu1 }
 0x846   : > { %v7568_v25 = vpop.f32.mrb[183].mxu1  ;;  %v7574_v28 = vadd.f32 %v10455_v60, %v16356_v6 }
 0x847   : > { %v7569_v15 = vadd.f32 %v16356_v6, %v7568_v25  ;;  %11843 = vmatpush3.bf16.msra.mxu0 %v11840_v61 }
 0x848   : > { %11845 = vmatprep.subr.bf16.mxu0 %v11844_v47 }
 0x849   : > { %10693 = vmatprep.mubr.f32.mxu0 %v7569_v15 }
 0x84a   : > { %10694 = vmatmul.mubr.f32.gmra.mrb[166].mxu0 %v7574_v28 }
 0x84b   : > { %11847 = vmatpush3.bf16.msra.mxu0 %v11844_v47 }
 0x84c   : > { %11849 = vmatprep.subr.bf16.mxu0 %v11848_v2 }
 0x84d   : > { %v10458_v11 = vpop.f32.mrb[184].mxu1 }
 0x84e   : > { %v7578_v56 = vpop.f32.mrb[185].mxu1  ;;  %v7584_v54 = vadd.f32 %v10458_v11, %v16356_v6 }
 0x84f   : > { %v7579_v34 = vadd.f32 %v16356_v6, %v7578_v56  ;;  %11851 = vmatpush3.bf16.msra.mxu0 %v11848_v2 }
 0x851   : > { %10696 = vmatprep.mubr.f32.mxu0 %v7579_v34 }
 0x852   : > { %10697 = vmatmul.mubr.f32.gmra.mrb[168].mxu0 %v7584_v54 }
 0x855   : > { %v10461_v33 = vpop.f32.mrb[186].mxu1 }
 0x856   : > { %v7588_v21 = vpop.f32.mrb[187].mxu1  ;;  %v7594_v31 = vadd.f32 %v10461_v33, %v16356_v6 }
 0x857   : > { %v7589_v40 = vadd.f32 %v16356_v6, %v7588_v21 }
 0x859   : > { %10699 = vmatprep.mubr.f32.mxu0 %v7589_v40 }
 0x85a   : > { %10700 = vmatmul.mubr.f32.gmra.mrb[170].mxu0 %v7594_v31 }
 0x85d   : > { %v10464_v41 = vpop.f32.mrb[188].mxu1 }
 0x85e   : > { %v7598_v7 = vpop.f32.mrb[189].mxu1  ;;  %v7604_v44 = vadd.f32 %v10464_v41, %v16356_v6 }
 0x85f   : > { %v7599_v63 = vadd.f32 %v16356_v6, %v7598_v7 }
 0x861   : > { %10702 = vmatprep.mubr.f32.mxu0 %v7599_v63 }
 0x862   : > { %10703 = vmatmul.mubr.f32.gmra.mrb[172].mxu0 %v7604_v44 }
 0x865   : > { %v10467_v58 = vpop.f32.mrb[190].mxu1 }
 0x866   : > { %v7608_v39 = vpop.f32.mrb[191].mxu1  ;;  %v7614_v4 = vadd.f32 %v10467_v58, %v16356_v6 }
 0x867   : > { %v7609_v37 = vadd.f32 %v16356_v6, %v7608_v39 }
 0x869   : > { %10705 = vmatprep.mubr.f32.mxu0 %v7609_v37 }
 0x86a   : > { %10706 = vmatmul.mubr.f32.gmra.mrb[174].mxu0 %v7614_v4 }
 0x86d   : > { %v10470_v10 = vpop.f32.mrb[192].mxu1 }
 0x86e   : > { %v7618_v52 = vpop.f32.mrb[193].mxu1  ;;  %v7624_v30 = vadd.f32 %v10470_v10, %v16356_v6  ;;  %v17006_v10 = vld [vmem:[#allocation46_spill] sm:$0xff] }
 0x86f   : > { %v7619_v17 = vadd.f32 %v16356_v6, %v7618_v52 }
 0x871   : > { %10708 = vmatprep.mubr.f32.mxu0 %v7619_v17 }
 0x872   : > { %10709 = vmatmul.mubr.f32.gmra.mrb[176].mxu0 %v7624_v30 }
 0x875   : > { %v10473_v55 = vpop.f32.mrb[194].mxu1 }
 0x876   : > { %v7628_v61 = vpop.f32.mrb[195].mxu1  ;;  %v7634_v3 = vadd.f32 %v10473_v55, %v16356_v6 }
 0x877   : > { %v7629_v59 = vadd.f32 %v16356_v6, %v7628_v61 }
 0x879   : > { %10711 = vmatprep.mubr.f32.mxu0 %v7629_v59 }
 0x87a   : > { %10712 = vmatmul.mubr.f32.gmra.mrb[178].mxu0 %v7634_v3 }
 0x87d   : > { %v10476_v47 = vpop.f32.mrb[196].mxu1 }
 0x87e   : > { %v7638_v60 = vpop.f32.mrb[197].mxu1  ;;  %v7644_v51 = vadd.f32 %v10476_v47, %v16356_v6 }
 0x87f   : > { %v7639_v23 = vadd.f32 %v16356_v6, %v7638_v60 }
 0x881   : > { %10714 = vmatprep.mubr.f32.mxu0 %v7639_v23 }
 0x882   : > { %10715 = vmatmul.mubr.f32.gmra.mrb[180].mxu0 %v7644_v51 }
 0x885   : > { %v10479_v25 = vpop.f32.mrb[198].mxu1 }
 0x886   : > { %v7648_v15 = vpop.f32.mrb[199].mxu1  ;;  %v7654_v2 = vadd.f32 %v10479_v25, %v16356_v6 }
 0x887   : > { %v7649_v28 = vadd.f32 %v16356_v6, %v7648_v15 }
 0x889   : > { %10717 = vmatprep.mubr.f32.mxu0 %v7649_v28 }
 0x88a   : > { %10718 = vmatmul.mubr.f32.gmra.mrb[182].mxu0 %v7654_v2 }
 0x88d   : > { %v10482_v11 = vpop.f32.mrb[200].mxu1 }
 0x88e   : > { %v7658_v56 = vpop.f32.mrb[201].mxu1  ;;  %v7664_v54 = vadd.f32 %v10482_v11, %v16356_v6 }
 0x88f   : > { %v7659_v34 = vadd.f32 %v16356_v6, %v7658_v56 }
 0x891   : > { %10720 = vmatprep.mubr.f32.mxu0 %v7659_v34 }
 0x892   : > { %10721 = vmatmul.mubr.f32.gmra.mrb[184].mxu0 %v7664_v54 }
 0x895   : > { %v10485_v33 = vpop.f32.mrb[202].mxu1 }
 0x896   : > { %v7668_v21 = vpop.f32.mrb[203].mxu1  ;;  %v7674_v31 = vadd.f32 %v10485_v33, %v16356_v6 }
 0x897   : > { %v7669_v40 = vadd.f32 %v16356_v6, %v7668_v21 }
 0x899   : > { %10723 = vmatprep.mubr.f32.mxu0 %v7669_v40 }
 0x89a   : > { %10724 = vmatmul.mubr.f32.gmra.mrb[186].mxu0 %v7674_v31 }
 0x89d   : > { %v10488_v41 = vpop.f32.mrb[204].mxu1 }
 0x89e   : > { %v7678_v7 = vpop.f32.mrb[205].mxu1  ;;  %v7684_v44 = vadd.f32 %v10488_v41, %v16356_v6 }
 0x89f   : > { %v7679_v63 = vadd.f32 %v16356_v6, %v7678_v7 }
 0x8a1   : > { %10726 = vmatprep.mubr.f32.mxu0 %v7679_v63 }
 0x8a2   : > { %10727 = vmatmul.mubr.f32.gmra.mrb[188].mxu0 %v7684_v44 }
 0x8a5   : > { %v10491_v58 = vpop.f32.mrb[206].mxu1 }
 0x8a6   : > { %v7688_v39 = vpop.f32.mrb[207].mxu1  ;;  %v7694_v4 = vadd.f32 %v10491_v58, %v16356_v6 }
 0x8a7   : > { %v7689_v37 = vadd.f32 %v16356_v6, %v7688_v39 }
 0x8a9   : > { %10729 = vmatprep.mubr.f32.mxu0 %v7689_v37 }
 0x8aa   : > { %10730 = vmatmul.mubr.f32.gmra.mrb[190].mxu0 %v7694_v4 }
 0x8ab   : > { %10764 = vmatprep.mubr.f32.mxu0 %v17006_v10 }
 0x8ae   : > { %10765 = vmatmul.mubr.f32.vlgmr.msra.gmra.mrb[160].mxu0 %v16138_v19  ;;  %v16423_v19 = vld [vmem:[#allocation19] ss:$0 sm:$0xff] }
 0x8af   : > { %10767 = vmatprep.mubr.f32.mxu0 %v16145_v42 }
 0x8b2   : > { %10768 = vmatmul.mubr.f32.gmra.mrb[162].mxu0 %v16150_v26 }
 0x8b3   : > { %10770 = vmatprep.mubr.f32.mxu0 %v16157_v45 }
 0x8b6   : > { %10771 = vmatmul.mubr.f32.gmra.mrb[164].mxu0 %v16162_v27 }
 0x8b7   : > { %10773 = vmatprep.mubr.f32.mxu0 %v16169_v20 }
 0x8ba   : > { %10774 = vmatmul.mubr.f32.gmra.mrb[166].mxu0 %v16174_v57 }
 0x8bb   : > { %10776 = vmatprep.mubr.f32.mxu0 %v16181_v0 }
 0x8be   : > { %10777 = vmatmul.mubr.f32.gmra.mrb[168].mxu0 %v16186_v62 }
 0x8bf   : > { %10779 = vmatprep.mubr.f32.mxu0 %v16193_v50 }
 0x8c2   : > { %10780 = vmatmul.mubr.f32.gmra.mrb[170].mxu0 %v16198_v8 }
 0x8c3   : > { %10782 = vmatprep.mubr.f32.mxu0 %v16205_v43 }
 0x8c6   : > { %10783 = vmatmul.mubr.f32.gmra.mrb[172].mxu0 %v16210_v13 }
 0x8c7   : > { %10785 = vmatprep.mubr.f32.mxu0 %v16217_v49 }
 0x8ca   : > { %10786 = vmatmul.mubr.f32.gmra.mrb[174].mxu0 %v16222_v12 }
 0x8cb   : > { %10788 = vmatprep.mubr.f32.mxu0 %v16232_v46 }
 0x8ce   : > { %10789 = vmatmul.mubr.f32.gmra.mrb[176].mxu0 %v16237_v1 }
 0x8cf   : > { %10791 = vmatprep.mubr.f32.mxu0 %v16244_v38 }
 0x8d2   : > { %10792 = vmatmul.mubr.f32.gmra.mrb[178].mxu0 %v16249_v22 }
 0x8d3   : > { %10794 = vmatprep.mubr.f32.mxu0 %v16256_v48 }
 0x8d6   : > { %10795 = vmatmul.mubr.f32.gmra.mrb[180].mxu0 %v16261_v9 }
 0x8d7   : > { %10797 = vmatprep.mubr.f32.mxu0 %v16268_v53 }
 0x8da   : > { %10798 = vmatmul.mubr.f32.gmra.mrb[182].mxu0 %v16273_v24 }
 0x8db   : > { %10800 = vmatprep.mubr.f32.mxu0 %v16280_v14 }
 0x8de   : > { %10801 = vmatmul.mubr.f32.gmra.mrb[184].mxu0 %v16285_v29 }
 0x8df   : > { %10803 = vmatprep.mubr.f32.mxu0 %v16292_v36 }
 0x8e2   : > { %10804 = vmatmul.mubr.f32.gmra.mrb[186].mxu0 %v16297_v35 }
 0x8e3   : > { %10806 = vmatprep.mubr.f32.mxu0 %v16304_v5 }
 0x8e6   : > { %10807 = vmatmul.mubr.f32.gmra.mrb[188].mxu0 %v16309_v18 }
 0x8e7   : > { %10809 = vmatprep.mubr.f32.mxu0 %v16316_v32 }
 0x8ea   : > { %10810 = vmatmul.mubr.f32.gmra.mrb[190].mxu0 %v16320_v16 }
 0x981   : > { %v10766_v42 = vpop.f32.mrb[160].mxu0 }
 0x982   : > { %v8800_v26 = vadd.f32 %v10766_v42, %v16423_v19  ;;  %v8601_v45 = vpop.f32.mrb[161].mxu0 }
 0x983   : > { %v8799_v27 = vadd.f32 %v16423_v19, %v8601_v45 }
 0x984   : > { %vm8832_vm0 = vcmp.ge.f32.partialorder %v8800_v26, 0.0  ;;  %v8864_v20 = vmul.f32 0.05, %v8800_v26 }
 0x985   : > { %vm8831_vm1 = vcmp.ge.f32.partialorder %v8799_v27, 0.0  ;;  %v8863_v57 = vmul.f32 0.05, %v8799_v27  ;;  %v10769_v0 = vpop.f32.mrb[162].mxu0 }
 0x986   : > { %v8896_v62 = vsel %vm8832_vm0, %v8800_v26, %v8864_v20  ;;  %v8802_v50 = vadd.f32 %v10769_v0, %v16423_v19  ;;  %v8611_v8 = vpop.f32.mrb[163].mxu0 }
 0x987   : > { %8928 = vst [vmem:[%s16430_s14 + $0x8] sm:$0xff] %v8896_v62  ;;  %v8895_v43 = vsel %vm8831_vm1, %v8799_v27, %v8863_v57  ;;  %v8801_v13 = vadd.f32 %v16423_v19, %v8611_v8 }
 0x988   : > { %8927 = vst [vmem:[%s16430_s14] sm:$0xff] %v8895_v43  ;;  %vm8834_vm2 = vcmp.ge.f32.partialorder %v8802_v50, 0.0  ;;  %v8866_v49 = vmul.f32 0.05, %v8802_v50 }
 0x989   : > { %vm8833_vm3 = vcmp.ge.f32.partialorder %v8801_v13, 0.0  ;;  %v8865_v12 = vmul.f32 0.05, %v8801_v13  ;;  %v10772_v46 = vpop.f32.mrb[164].mxu0 }
 0x98a   : > { %v8898_v1 = vsel %vm8834_vm2, %v8802_v50, %v8866_v49  ;;  %v8804_v38 = vadd.f32 %v10772_v46, %v16423_v19  ;;  %v8621_v22 = vpop.f32.mrb[165].mxu0 }
 0x98b   : > { %8930 = vst [vmem:[%s16430_s14 + $0x18] sm:$0xff] %v8898_v1  ;;  %v8897_v48 = vsel %vm8833_vm3, %v8801_v13, %v8865_v12  ;;  %v8803_v9 = vadd.f32 %v16423_v19, %v8621_v22 }
 0x98c   : > { %8929 = vst [vmem:[%s16430_s14 + $0x10] sm:$0xff] %v8897_v48  ;;  %vm8836_vm4 = vcmp.ge.f32.partialorder %v8804_v38, 0.0  ;;  %v8868_v53 = vmul.f32 0.05, %v8804_v38 }
 0x98d   : > { %vm8835_vm5 = vcmp.ge.f32.partialorder %v8803_v9, 0.0  ;;  %v8867_v24 = vmul.f32 0.05, %v8803_v9  ;;  %v10775_v14 = vpop.f32.mrb[166].mxu0 }
 0x98e   : > { %v8900_v29 = vsel %vm8836_vm4, %v8804_v38, %v8868_v53  ;;  %v8806_v36 = vadd.f32 %v10775_v14, %v16423_v19  ;;  %v8631_v35 = vpop.f32.mrb[167].mxu0 }
 0x98f   : > { %8932 = vst [vmem:[%s16430_s14 + $0x28] sm:$0xff] %v8900_v29  ;;  %v8899_v5 = vsel %vm8835_vm5, %v8803_v9, %v8867_v24  ;;  %v8805_v18 = vadd.f32 %v16423_v19, %v8631_v35 }
 0x990   : > { %8931 = vst [vmem:[%s16430_s14 + $0x20] sm:$0xff] %v8899_v5  ;;  %vm8838_vm6 = vcmp.ge.f32.partialorder %v8806_v36, 0.0  ;;  %v8870_v32 = vmul.f32 0.05, %v8806_v36 }
 0x991   : > { %vm8837_vm7 = vcmp.ge.f32.partialorder %v8805_v18, 0.0  ;;  %v8869_v16 = vmul.f32 0.05, %v8805_v18  ;;  %v10778_v6 = vpop.f32.mrb[168].mxu0 }
 0x992   : > { %v8902_v52 = vsel %vm8838_vm6, %v8806_v36, %v8870_v32  ;;  %v8808_v17 = vadd.f32 %v10778_v6, %v16423_v19  ;;  %v8641_v30 = vpop.f32.mrb[169].mxu0 }
 0x993   : > { %8934 = vst [vmem:[%s16430_s14 + $0x38] sm:$0xff] %v8902_v52  ;;  %v8901_v55 = vsel %vm8837_vm7, %v8805_v18, %v8869_v16  ;;  %v8807_v61 = vadd.f32 %v16423_v19, %v8641_v30 }
 0x994   : > { %8933 = vst [vmem:[%s16430_s14 + $0x30] sm:$0xff] %v8901_v55  ;;  %vm8840_vm8 = vcmp.ge.f32.partialorder %v8808_v17, 0.0  ;;  %v8872_v59 = vmul.f32 0.05, %v8808_v17 }
 0x995   : > { %vm8839_vm9 = vcmp.ge.f32.partialorder %v8807_v61, 0.0  ;;  %v8871_v3 = vmul.f32 0.05, %v8807_v61  ;;  %v10781_v47 = vpop.f32.mrb[170].mxu0 }
 0x996   : > { %v8904_v60 = vsel %vm8840_vm8, %v8808_v17, %v8872_v59  ;;  %v8810_v23 = vadd.f32 %v10781_v47, %v16423_v19  ;;  %v8651_v51 = vpop.f32.mrb[171].mxu0 }
 0x997   : > { %8936 = vst [vmem:[%s16430_s14 + $0x48] sm:$0xff] %v8904_v60  ;;  %v8903_v25 = vsel %vm8839_vm9, %v8807_v61, %v8871_v3  ;;  %v8809_v15 = vadd.f32 %v16423_v19, %v8651_v51 }
 0x998   : > { %8935 = vst [vmem:[%s16430_s14 + $0x40] sm:$0xff] %v8903_v25  ;;  %vm8842_vm10 = vcmp.ge.f32.partialorder %v8810_v23, 0.0  ;;  %v8874_v28 = vmul.f32 0.05, %v8810_v23 }
 0x999   : > { %vm8841_vm11 = vcmp.ge.f32.partialorder %v8809_v15, 0.0  ;;  %v8873_v2 = vmul.f32 0.05, %v8809_v15  ;;  %v10784_v11 = vpop.f32.mrb[172].mxu0 }
 0x99a   : > { %v8906_v56 = vsel %vm8842_vm10, %v8810_v23, %v8874_v28  ;;  %v8812_v34 = vadd.f32 %v10784_v11, %v16423_v19  ;;  %v8661_v54 = vpop.f32.mrb[173].mxu0 }
 0x99b   : > { %8938 = vst [vmem:[%s16430_s14 + $0x58] sm:$0xff] %v8906_v56  ;;  %v8905_v33 = vsel %vm8841_vm11, %v8809_v15, %v8873_v2  ;;  %v8811_v21 = vadd.f32 %v16423_v19, %v8661_v54 }
 0x99c   : > { %8937 = vst [vmem:[%s16430_s14 + $0x50] sm:$0xff] %v8905_v33  ;;  %vm8844_vm12 = vcmp.ge.f32.partialorder %v8812_v34, 0.0  ;;  %v8876_v40 = vmul.f32 0.05, %v8812_v34 }
 0x99d   : > { %vm8843_vm13 = vcmp.ge.f32.partialorder %v8811_v21, 0.0  ;;  %v8875_v31 = vmul.f32 0.05, %v8811_v21  ;;  %v10787_v41 = vpop.f32.mrb[174].mxu0 }
 0x99e   : > { %v8908_v7 = vsel %vm8844_vm12, %v8812_v34, %v8876_v40  ;;  %v8814_v63 = vadd.f32 %v10787_v41, %v16423_v19  ;;  %v8671_v44 = vpop.f32.mrb[175].mxu0 }
 0x99f   : > { %8940 = vst [vmem:[%s16430_s14 + $0x68] sm:$0xff] %v8908_v7  ;;  %v8907_v58 = vsel %vm8843_vm13, %v8811_v21, %v8875_v31  ;;  %v8813_v39 = vadd.f32 %v16423_v19, %v8671_v44 }
 0x9a0   : > { %8939 = vst [vmem:[%s16430_s14 + $0x60] sm:$0xff] %v8907_v58  ;;  %vm8846_vm14 = vcmp.ge.f32.partialorder %v8814_v63, 0.0  ;;  %v8878_v37 = vmul.f32 0.05, %v8814_v63 }
 0x9a1   : > { %vm8845_vm15 = vcmp.ge.f32.partialorder %v8813_v39, 0.0  ;;  %v8877_v4 = vmul.f32 0.05, %v8813_v39  ;;  %v10790_v10 = vpop.f32.mrb[176].mxu0 }
 0x9a2   : > { %v8910_v42 = vsel %vm8846_vm14, %v8814_v63, %v8878_v37  ;;  %v8816_v26 = vadd.f32 %v10790_v10, %v16423_v19  ;;  %v8681_v45 = vpop.f32.mrb[177].mxu0 }
 0x9a3   : > { %8942 = vst [vmem:[%s16430_s14 + $0x78] sm:$0xff] %v8910_v42  ;;  %v8909_v27 = vsel %vm8845_vm15, %v8813_v39, %v8877_v4  ;;  %v8815_v20 = vadd.f32 %v16423_v19, %v8681_v45 }
 0x9a4   : > { %8941 = vst [vmem:[%s16430_s14 + $0x70] sm:$0xff] %v8909_v27  ;;  %vm8848_vm0 = vcmp.ge.f32.partialorder %v8816_v26, 0.0  ;;  %v8880_v57 = vmul.f32 0.05, %v8816_v26 }
 0x9a5   : > { %vm8847_vm1 = vcmp.ge.f32.partialorder %v8815_v20, 0.0  ;;  %v8879_v0 = vmul.f32 0.05, %v8815_v20  ;;  %v10793_v62 = vpop.f32.mrb[178].mxu0 }
 0x9a6   : > { %v8912_v50 = vsel %vm8848_vm0, %v8816_v26, %v8880_v57  ;;  %v8818_v8 = vadd.f32 %v10793_v62, %v16423_v19  ;;  %v8691_v43 = vpop.f32.mrb[179].mxu0 }
 0x9a7   : > { %8944 = vst [vmem:[%s16430_s14 + $0x88] sm:$0xff] %v8912_v50  ;;  %v8911_v13 = vsel %vm8847_vm1, %v8815_v20, %v8879_v0  ;;  %v8817_v49 = vadd.f32 %v16423_v19, %v8691_v43 }
 0x9a8   : > { %8943 = vst [vmem:[%s16430_s14 + $0x80] sm:$0xff] %v8911_v13  ;;  %vm8850_vm2 = vcmp.ge.f32.partialorder %v8818_v8, 0.0  ;;  %v8882_v12 = vmul.f32 0.05, %v8818_v8 }
 0x9a9   : > { %vm8849_vm3 = vcmp.ge.f32.partialorder %v8817_v49, 0.0  ;;  %v8881_v46 = vmul.f32 0.05, %v8817_v49  ;;  %v10796_v1 = vpop.f32.mrb[180].mxu0 }
 0x9aa   : > { %v8914_v38 = vsel %vm8850_vm2, %v8818_v8, %v8882_v12  ;;  %v8820_v22 = vadd.f32 %v10796_v1, %v16423_v19  ;;  %v8701_v48 = vpop.f32.mrb[181].mxu0 }
 0x9ab   : > { %8946 = vst [vmem:[%s16430_s14 + $0x98] sm:$0xff] %v8914_v38  ;;  %v8913_v9 = vsel %vm8849_vm3, %v8817_v49, %v8881_v46  ;;  %v8819_v53 = vadd.f32 %v16423_v19, %v8701_v48 }
 0x9ac   : > { %8945 = vst [vmem:[%s16430_s14 + $0x90] sm:$0xff] %v8913_v9  ;;  %vm8852_vm4 = vcmp.ge.f32.partialorder %v8820_v22, 0.0  ;;  %v8884_v24 = vmul.f32 0.05, %v8820_v22 }
 0x9ad   : > { %vm8851_vm5 = vcmp.ge.f32.partialorder %v8819_v53, 0.0  ;;  %v8883_v14 = vmul.f32 0.05, %v8819_v53  ;;  %v10799_v29 = vpop.f32.mrb[182].mxu0 }
 0x9ae   : > { %v8916_v36 = vsel %vm8852_vm4, %v8820_v22, %v8884_v24  ;;  %v8822_v35 = vadd.f32 %v10799_v29, %v16423_v19  ;;  %v8711_v5 = vpop.f32.mrb[183].mxu0 }
 0x9af   : > { %8948 = vst [vmem:[%s16430_s14 + $0xa8] sm:$0xff] %v8916_v36  ;;  %v8915_v18 = vsel %vm8851_vm5, %v8819_v53, %v8883_v14  ;;  %v8821_v32 = vadd.f32 %v16423_v19, %v8711_v5 }
 0x9b0   : > { %8947 = vst [vmem:[%s16430_s14 + $0xa0] sm:$0xff] %v8915_v18  ;;  %vm8854_vm6 = vcmp.ge.f32.partialorder %v8822_v35, 0.0  ;;  %v8886_v16 = vmul.f32 0.05, %v8822_v35 }
 0x9b1   : > { %vm8853_vm7 = vcmp.ge.f32.partialorder %v8821_v32, 0.0  ;;  %v8885_v6 = vmul.f32 0.05, %v8821_v32  ;;  %v10802_v52 = vpop.f32.mrb[184].mxu0 }
 0x9b2   : > { %v8918_v17 = vsel %vm8854_vm6, %v8822_v35, %v8886_v16  ;;  %v8824_v30 = vadd.f32 %v10802_v52, %v16423_v19  ;;  %v8721_v55 = vpop.f32.mrb[185].mxu0 }
 0x9b3   : > { %8950 = vst [vmem:[%s16430_s14 + $0xb8] sm:$0xff] %v8918_v17  ;;  %v8917_v61 = vsel %vm8853_vm7, %v8821_v32, %v8885_v6  ;;  %v8823_v59 = vadd.f32 %v16423_v19, %v8721_v55 }
 0x9b4   : > { %8949 = vst [vmem:[%s16430_s14 + $0xb0] sm:$0xff] %v8917_v61  ;;  %vm8856_vm8 = vcmp.ge.f32.partialorder %v8824_v30, 0.0  ;;  %v8888_v3 = vmul.f32 0.05, %v8824_v30 }
 0x9b5   : > { %vm8855_vm9 = vcmp.ge.f32.partialorder %v8823_v59, 0.0  ;;  %v8887_v47 = vmul.f32 0.05, %v8823_v59  ;;  %v10805_v60 = vpop.f32.mrb[186].mxu0 }
 0x9b6   : > { %v8920_v23 = vsel %vm8856_vm8, %v8824_v30, %v8888_v3  ;;  %v8826_v51 = vadd.f32 %v10805_v60, %v16423_v19  ;;  %v8731_v25 = vpop.f32.mrb[187].mxu0 }
 0x9b7   : > { %8952 = vst [vmem:[%s16430_s14 + $0xc8] sm:$0xff] %v8920_v23  ;;  %v8919_v15 = vsel %vm8855_vm9, %v8823_v59, %v8887_v47  ;;  %v8825_v28 = vadd.f32 %v16423_v19, %v8731_v25 }
 0x9b8   : > { %8951 = vst [vmem:[%s16430_s14 + $0xc0] sm:$0xff] %v8919_v15  ;;  %vm8858_vm10 = vcmp.ge.f32.partialorder %v8826_v51, 0.0  ;;  %v8890_v2 = vmul.f32 0.05, %v8826_v51 }
 0x9b9   : > { %vm8857_vm11 = vcmp.ge.f32.partialorder %v8825_v28, 0.0  ;;  %v8889_v11 = vmul.f32 0.05, %v8825_v28  ;;  %v10808_v56 = vpop.f32.mrb[188].mxu0 }
 0x9ba   : > { %v8922_v34 = vsel %vm8858_vm10, %v8826_v51, %v8890_v2  ;;  %v8828_v54 = vadd.f32 %v10808_v56, %v16423_v19  ;;  %v8741_v33 = vpop.f32.mrb[189].mxu0 }
 0x9bb   : > { %8954 = vst [vmem:[%s16430_s14 + $0xd8] sm:$0xff] %v8922_v34  ;;  %v8921_v21 = vsel %vm8857_vm11, %v8825_v28, %v8889_v11  ;;  %v8827_v40 = vadd.f32 %v16423_v19, %v8741_v33 }
 0x9bc   : > { %8953 = vst [vmem:[%s16430_s14 + $0xd0] sm:$0xff] %v8921_v21  ;;  %vm8860_vm12 = vcmp.ge.f32.partialorder %v8828_v54, 0.0  ;;  %v8892_v31 = vmul.f32 0.05, %v8828_v54 }
 0x9bd   : > { %vm8859_vm13 = vcmp.ge.f32.partialorder %v8827_v40, 0.0  ;;  %v8891_v41 = vmul.f32 0.05, %v8827_v40  ;;  %v10811_v7 = vpop.f32.mrb[190].mxu0 }
 0x9be   : > { %v8924_v63 = vsel %vm8860_vm12, %v8828_v54, %v8892_v31  ;;  %v8830_v44 = vadd.f32 %v10811_v7, %v16423_v19  ;;  %v8751_v58 = vpop.f32.mrb[191].mxu0 }
 0x9bf   : > { %8956 = vst [vmem:[%s16430_s14 + $0xe8] sm:$0xff] %v8924_v63  ;;  %v8923_v39 = vsel %vm8859_vm13, %v8827_v40, %v8891_v41  ;;  %v8829_v37 = vadd.f32 %v16423_v19, %v8751_v58 }
 0x9c0   : > { %8955 = vst [vmem:[%s16430_s14 + $0xe0] sm:$0xff] %v8923_v39  ;;  %vm8862_vm14 = vcmp.ge.f32.partialorder %v8830_v44, 0.0  ;;  %v8894_v4 = vmul.f32 0.05, %v8830_v44 }
 0x9c1   : > { %vm8861_vm15 = vcmp.ge.f32.partialorder %v8829_v37, 0.0  ;;  %v8893_v10 = vmul.f32 0.05, %v8829_v37 }
 0x9c2   : > { %v8926_v42 = vsel %vm8862_vm14, %v8830_v44, %v8894_v4 }
 0x9c3   : > { %8958 = vst [vmem:[%s16430_s14 + $0xf8] sm:$0xff] %v8926_v42  ;;  %v8925_v26 = vsel %vm8861_vm15, %v8829_v37, %v8893_v10 }
 0x9c4   : > { %8957 = vst [vmem:[%s16430_s14 + $0xf0] sm:$0xff] %v8925_v26 }
 0x9c5   : > { %12707 = shalt.err (!%p12704_p4)
}
 0x9c6   : > { %s12708_s17 = scalar_lea.hbm %s16496_s23, 4096  ;;  %s12712_s24 = scalar_lea.hbm %s16554_s9, 8192 }
 0x9c7   : > { %p12709_p12 = scmp.ne.s32.totalorder %s16496_s23, %s12708_s17  ;;  %p12713_p11 = scmp.lt.u32.totalorder %s16496_s23, %s16554_s9 }
 0x9c8   : > { %p12714_p13 = scmp.lt.u32.totalorder %s12712_s24, %s12708_s17  ;;  %p12716_p6 = scmp.lt.u32.totalorder %s12708_s17, %s16496_s23 }
 0x9c9   : > { %p12710_p7 = pnand %p12709_p12, %p17007_p9 }
 0x9ca   : > { %p12715_p1 = por %p12714_p13, %p12713_p11 }
 0x9cb   : > { %p12711_p8 = pneg %p12710_p7 }
 0x9cc   : > { %p12717_p5 = por %p12716_p6, %p12715_p1 }
 0x9ce   : > { %p12718_p10 = pnand %p12717_p5, %p12711_p8 }
 0x9d0   : > { %12721 = shalt.err (!%p12718_p10)
}
 0x9d1   : > { %s12791_s22 = smov 128   ;;  %s12792_s11 = smov 8  }
 0x9d2   : > { %12292 = dma.vmem_to_hbm [thread:$0]  (%p17007_p9), %s16498_s15, 4096, %s16496_s23, %s16504_s13, %s12791_s22, %s12791_s22, %s12792_s11  }
 0x9d3 PF: > { %s17008_s14 = sld [smem:[#allocation28_spill]]  ;;  %s17009_s1 = sld [smem:[#allocation32_spill]] }
 0x9d4   : > { %p12339_p0 = scmp.ge.s32.totalorder %s12776_s12, 2 }
 0x9d9   : > { %s8988_s25 = sand.u32 1, %s17008_s14   ;;  %p17010_p2 = scmp.ne.s32.totalorder %s17009_s1, 0 }
 0x9da   : > { %s8989_s29 = scalar_lea.sflag [#allocation9], %s8988_s25 }
 0x9db   : > { %p12320_p3 = pnand %p12339_p0, %p17010_p2 }
 0x9dd   : > { %12759 = dma.done.wait (!%p12320_p3), %s8989_s29, 4096  }
 0x9de   : > { %12761 = vsyncadd (!%p12320_p3), %s8989_s29, 4294963200  ;;  %s17011_s12 = sld [smem:[#allocation30_spill]]  ;;  %s17012_s26 = sld [smem:[#allocation29_spill]] }
 0x9df   : > { %s17013_s11 = sld [smem:[#allocation31_spill]]  ;;  %s17014_s30 = smov %s12768_s10 }
 0x9e4   : > { %p24_p4 = scmp.ge.s32.totalorder %s17011_s12, 4   ;;  %s17015_s10 = smov %s17012_s26 }
 0x9e6   :  { %26 = sbr.rel (!%p24_p4) target bundleno = 10 (0xa), region = 139 }
 0x9ed   :  { %8994 = vsyncpa [#allocation8], 1 }
 0x9ee   :  { %8996 = vsyncpa [#allocation8 + $0x1], 1 }
 0x9ef   :  { %8997 = vsyncpa [#allocation11], 1 }
 0x9f0   :  { %8998 = vsyncpa [#allocation14], 1 }
 0x9f1   :  { %8999 = vsyncpa [#allocation17], 1 }
 0x9f2   :  { %9000 = vsyncpa [#allocation20], 1 }
 0x9f3   :  { %9001 = vsyncpa [#allocation9], 1 }
 0x9f4   :  { %9003 = vsyncpa [#allocation9 + $0x1], 1 }

</bundles_post_ra>
